<compile_context>
chip_gen: v5e
topology: v5e:2x2
jax: 0.10.0
libtpu: 0.0.40
codegen_flags: <defaults>
</compile_context>

<pallas_src>
import numpy as np

import jax
import jax.numpy as jnp
from jax.experimental import pallas as pl
from jax.experimental.pallas import tpu as pltpu


# --------------------------------------------------------------------------
# Static spatial geometry for the shifted-slice conv / pool formulation.
# Activations are stored as (C, S) with S = H*W flattened row-major at a fixed
# row stride W ("w_in").  A 3x3 tap (di, dj) is the lane slice starting at
# di*W + dj; a 2x2 pool corner (dh, dw) is the lane slice starting at dh*W+dw.
# --------------------------------------------------------------------------
def _layer_geom(h_in, w_in):
    s_in = h_in * w_in
    l_conv = s_in - (2 * w_in + 2)          # slice length covering all taps
    l_pool = l_conv - (w_in + 1)            # slice length covering all corners
    h_out, w_out = (h_in - 2) // 2, (w_in - 2) // 2
    return dict(w_in=w_in, s_in=s_in, l_conv=l_conv, l_pool=l_pool,
                h_out=h_out, w_out=w_out, s_out=h_out * w_out)


_G1 = _layer_geom(30, 30)   # conv1 sees the zero-padded 30x30 input -> pool to 14x14
_G2 = _layer_geom(14, 14)   # -> 6x6
_G3 = _layer_geom(6, 6)     # -> 2x2


def _pool_select(g, dtype=jnp.bfloat16):
    """0/1 matrix (l_pool, s_out): picks column 2h*w_in + 2w for output (h, w).
    Right-multiplying the dense window-max by it performs the stride-2
    downsample into a compact h_out*w_out layout (exact: one 1 per column)."""
    src = (2 * np.arange(g["h_out"])[:, None] * g["w_in"]
           + 2 * np.arange(g["w_out"])[None, :]).reshape(-1)
    sel = (np.arange(g["l_pool"])[:, None] == src[None, :])
    return jnp.asarray(sel, dtype)


# --------------------------------------------------------------------------
# In-kernel building blocks (traced; only 2-D matmuls, contiguous static
# slices, broadcasts and elementwise ops -> no reshapes / strided accesses).
# --------------------------------------------------------------------------
def _conv3x3(x, w, g):
    """x: (Cin, s_in); w: (Cout, 9*Cin), tap-major column blocks.
    Returns (Cout, l_conv) f32.  Columns outside the valid (h_in-2, w_in-2)
    window hold finite garbage and are dropped by the pooling selection."""
    cin = x.shape[0]
    acc = jnp.zeros((w.shape[0], g["l_conv"]), jnp.float32)
    for di in range(3):
        for dj in range(3):
            t = di * 3 + dj
            off = di * g["w_in"] + dj
            xs = x[:, off:off + g["l_conv"]]
            wt = w[:, t * cin:(t + 1) * cin]
            if cin == 1:
                acc = acc + wt * xs                                   # VPU
            else:
                acc = acc + jnp.dot(wt, xs,                           # MXU (bf16)
                                    preferred_element_type=jnp.float32)
    return acc


def _maxpool_2x2_dense(y, g):
    """Max over the 4 corners of every 2x2 window (dense, stride 1); the
    stride-2 downsample is done by the selection matmul that follows."""
    l, w = g["l_pool"], g["w_in"]
    return jnp.maximum(jnp.maximum(y[:, 0:l], y[:, 1:l + 1]),
                       jnp.maximum(y[:, w:w + l], y[:, w + 1:w + 1 + l]))


# --------------------------------------------------------------------------
# The fused kernel: one grid step == one image.
# --------------------------------------------------------------------------
def _convnet_kernel(x_ref,
                    w1_ref, s1_ref, b1_ref, sel1_ref,
                    w2_ref, s2_ref, b2_ref, sel2_ref,
                    w3_ref, s3_ref, b3_ref, sel3_ref,
                    wfc1_ref, bfc1_ref, wfc2_ref, bfc2_ref,
                    out_ref):
    f32, bf16 = jnp.float32, jnp.bfloat16

    def conv_block(x, w_r, s_r, b_r, sel_r, g):
        y = _conv3x3(x, w_r[...], g)                              # (Cout, l_conv)
        y = jnp.maximum(y * s_r[...] + b_r[...], 0.0)             # folded BN + ReLU
        m = _maxpool_2x2_dense(y, g)                              # (Cout, l_pool)
        return jnp.dot(m.astype(bf16), sel_r[...],                # stride-2 select
                       preferred_element_type=f32)                # (Cout, s_out)

    p1 = conv_block(x_ref[...], w1_ref, s1_ref, b1_ref, sel1_ref, _G1)        # (32, 196)
    p2 = conv_block(p1.astype(bf16), w2_ref, s2_ref, b2_ref, sel2_ref, _G2)   # (64, 36)
    p3 = conv_block(p2.astype(bf16), w3_ref, s3_ref, b3_ref, sel3_ref, _G3)   # (128, 4)

    # fc1 (no activation).  PyTorch NCHW flatten index = c*4 + s; p3[c, s]
    # already matches, so fc1 is a sum over the 4 spatial slots.
    p3b = p3.astype(bf16)
    h = bfc1_ref[...]                                             # (256, 1) f32
    for s in range(4):
        h = h + jnp.dot(wfc1_ref[s], p3b[:, s:s + 1],
                        preferred_element_type=f32)
    # TODO(synk): nn.Dropout(0.5) is implemented as inference-mode identity (no RNG mask).
    logits = jnp.dot(wfc2_ref[...], h.astype(bf16),
                     preferred_element_type=f32) + bfc2_ref[...]  # (10, 1)
    out_ref[...] = logits


# --------------------------------------------------------------------------
# Parameter handling (PyTorch-native shapes -> kernel layouts).
# --------------------------------------------------------------------------
def init_params(key):
    """Random parameters in PyTorch-native shapes (Conv2d OIHW, BN vectors,
    Linear (out, in)), inference-mode BN statistics included."""
    ks = jax.random.split(key, 22)

    def conv(kw, kb, cout, cin):
        fan = cin * 9
        w = jax.random.normal(ks[kw], (cout, cin, 3, 3), jnp.float32) / np.sqrt(fan)
        b = 0.01 * jax.random.normal(ks[kb], (cout,), jnp.float32)
        return w, b

    def bn(k0, c):
        gamma = 1.0 + 0.1 * jax.random.normal(ks[k0], (c,), jnp.float32)
        beta = 0.1 * jax.random.normal(ks[k0 + 1], (c,), jnp.float32)
        mean = 0.1 * jax.random.normal(ks[k0 + 2], (c,), jnp.float32)
        var = 1.0 + 0.1 * jax.random.uniform(ks[k0 + 3], (c,), jnp.float32)
        return gamma, beta, mean, var

    p = {}
    p["c1_w"], p["c1_b"] = conv(0, 1, 32, 1)
    p["bn1"] = bn(2, 32)
    p["c2_w"], p["c2_b"] = conv(6, 7, 64, 32)
    p["bn2"] = bn(8, 64)
    p["c3_w"], p["c3_b"] = conv(12, 13, 128, 64)
    p["bn3"] = bn(14, 128)
    p["fc1_w"] = jax.random.normal(ks[18], (256, 512), jnp.float32) / np.sqrt(512.0)
    p["fc1_b"] = 0.01 * jax.random.normal(ks[19], (256,), jnp.float32)
    p["fc2_w"] = jax.random.normal(ks[20], (10, 256), jnp.float32) / np.sqrt(256.0)
    p["fc2_b"] = 0.01 * jax.random.normal(ks[21], (10,), jnp.float32)
    return p


def prepare_params(p):
    """Fold inference-mode BatchNorm into per-channel scale/bias and rearrange
    the weights into the kernel's channel-major layouts."""
    bf16 = jnp.bfloat16

    def conv_cols(w):                          # OIHW (Cout,Cin,3,3) -> (Cout, 9*Cin)
        cout, cin = w.shape[0], w.shape[1]     # column block t = (di*3+dj) holds W[:, :, di, dj]
        return jnp.transpose(w, (0, 2, 3, 1)).reshape(cout, 9 * cin)

    def fold_bn(conv_b, gamma, beta, mean, var, eps=1e-5):
        s = gamma / jnp.sqrt(var + eps)
        b = beta + (conv_b - mean) * s
        return s[:, None].astype(jnp.float32), b[:, None].astype(jnp.float32)

    s1, b1 = fold_bn(p["c1_b"], *p["bn1"])
    s2, b2 = fold_bn(p["c2_b"], *p["bn2"])
    s3, b3 = fold_bn(p["c3_b"], *p["bn3"])

    w1 = conv_cols(p["c1_w"]).astype(jnp.float32)        # (32, 9)   VPU path stays f32
    w2 = conv_cols(p["c2_w"]).astype(bf16)               # (64, 288)
    w3 = conv_cols(p["c3_w"]).astype(bf16)               # (128, 576)

    # fc1 consumes the PyTorch NCHW flatten of (128, 2, 2): feature = c*4 + s.
    wfc1 = p["fc1_w"].reshape(256, 128, 4).transpose(2, 0, 1).astype(bf16)  # (4,256,128)
    bfc1 = p["fc1_b"][:, None].astype(jnp.float32)       # (256, 1)
    wfc2 = p["fc2_w"].astype(bf16)                       # (10, 256)
    bfc2 = p["fc2_b"][:, None].astype(jnp.float32)       # (10, 1)

    sel1, sel2, sel3 = _pool_select(_G1), _pool_select(_G2), _pool_select(_G3)

    return (w1, s1, b1, sel1, w2, s2, b2, sel2, w3, s3, b3, sel3,
            wfc1, bfc1, wfc2, bfc2)


# --------------------------------------------------------------------------
# Forward pass wrapper: one pallas_call, grid over the batch.
# --------------------------------------------------------------------------
def convnet_forward(x_nchw, params):
    n = x_nchw.shape[0]
    assert x_nchw.shape[1:] == (1, 28, 28), x_nchw.shape
    kp = prepare_params(params)

    # conv1 padding=1 applied once to the tiny input; flatten to (N, Cin=1, 900).
    x = x_nchw.reshape(n, 28, 28).astype(jnp.float32)
    x = jnp.pad(x, ((0, 0), (1, 1), (1, 1)))
    x = x.reshape(n, 1, _G1["s_in"])

    def resident(arr):                      # VMEM-resident across all grid steps
        nd = arr.ndim
        return pl.BlockSpec(arr.shape, lambda i, _nd=nd: (0,) * _nd)

    in_specs = [pl.BlockSpec((None, 1, _G1["s_in"]), lambda i: (i, 0, 0))]
    in_specs += [resident(a) for a in kp]

    out = pl.pallas_call(
        _convnet_kernel,
        out_shape=jax.ShapeDtypeStruct((n, 10, 1), jnp.float32),
        grid=(n,),
        in_specs=in_specs,
        out_specs=pl.BlockSpec((None, 10, 1), lambda i: (i, 0, 0)),
        compiler_params=pltpu.CompilerParams(
            dimension_semantics=("parallel",)),   # v7x: shard images across 2 TCs
    )(x, *kp)

    return out.reshape(n, 10)


# --------------------------------------------------------------------------
if __name__ == "__main__":
    key = jax.random.PRNGKey(0)
    pkey, xkey = jax.random.split(key)
    params = init_params(pkey)

    # Small batch; spatial size 28x28 is dictated by fc1 = Linear(128*2*2, 256).
    x = jax.random.normal(xkey, (2, 1, 28, 28), jnp.float32)

    fwd = jax.jit(convnet_forward)
    logits = jax.block_until_ready(fwd(x, params))

    assert logits.shape == (2, 10), logits.shape
    assert bool(jnp.all(jnp.isfinite(logits)))
    print("KERNEL_OK")
</pallas_src>

<mosaic_0001>
module attributes {stable_mosaic.version = 11 : i64} {
  func.func @_convnet_kernel(%arg0: i32, %arg1: memref<1x1x900xf32, #tpu.memory_space<vmem>>, %arg2: memref<32x9xf32, #tpu.memory_space<vmem>>, %arg3: memref<32x1xf32, #tpu.memory_space<vmem>>, %arg4: memref<32x1xf32, #tpu.memory_space<vmem>>, %arg5: memref<807x196xbf16, #tpu.memory_space<vmem>>, %arg6: memref<64x288xbf16, #tpu.memory_space<vmem>>, %arg7: memref<64x1xf32, #tpu.memory_space<vmem>>, %arg8: memref<64x1xf32, #tpu.memory_space<vmem>>, %arg9: memref<151x36xbf16, #tpu.memory_space<vmem>>, %arg10: memref<128x576xbf16, #tpu.memory_space<vmem>>, %arg11: memref<128x1xf32, #tpu.memory_space<vmem>>, %arg12: memref<128x1xf32, #tpu.memory_space<vmem>>, %arg13: memref<15x4xbf16, #tpu.memory_space<vmem>>, %arg14: memref<4x256x128xbf16, #tpu.memory_space<vmem>>, %arg15: memref<256x1xf32, #tpu.memory_space<vmem>>, %arg16: memref<10x256xbf16, #tpu.memory_space<vmem>>, %arg17: memref<10x1xf32, #tpu.memory_space<vmem>>, %arg18: memref<1x10x1xf32, #tpu.memory_space<vmem>>) attributes {dimension_semantics = [#tpu.dimension_semantics<parallel>], iteration_bounds = array<i64: 2>, scalar_prefetch = 0 : i64, scratch_operands = 0 : i64, tpu.core_type = #tpu.core_type<tc>, window_params = [{transform_indices = @transform_0, window_bounds = array<i64: 1, 1, 900>}, {pipeline_mode = #tpu.pipeline_mode<synchronous>, transform_indices = @transform_1, window_bounds = array<i64: 32, 9>}, {pipeline_mode = #tpu.pipeline_mode<synchronous>, transform_indices = @transform_2, window_bounds = array<i64: 32, 1>}, {pipeline_mode = #tpu.pipeline_mode<synchronous>, transform_indices = @transform_3, window_bounds = array<i64: 32, 1>}, {pipeline_mode = #tpu.pipeline_mode<synchronous>, transform_indices = @transform_4, window_bounds = array<i64: 807, 196>}, {pipeline_mode = #tpu.pipeline_mode<synchronous>, transform_indices = @transform_5, window_bounds = array<i64: 64, 288>}, {pipeline_mode = #tpu.pipeline_mode<synchronous>, transform_indices = @transform_6, window_bounds = array<i64: 64, 1>}, {pipeline_mode = #tpu.pipeline_mode<synchronous>, transform_indices = @transform_7, window_bounds = array<i64: 64, 1>}, {pipeline_mode = #tpu.pipeline_mode<synchronous>, transform_indices = @transform_8, window_bounds = array<i64: 151, 36>}, {pipeline_mode = #tpu.pipeline_mode<synchronous>, transform_indices = @transform_9, window_bounds = array<i64: 128, 576>}, {pipeline_mode = #tpu.pipeline_mode<synchronous>, transform_indices = @transform_10, window_bounds = array<i64: 128, 1>}, {pipeline_mode = #tpu.pipeline_mode<synchronous>, transform_indices = @transform_11, window_bounds = array<i64: 128, 1>}, {pipeline_mode = #tpu.pipeline_mode<synchronous>, transform_indices = @transform_12, window_bounds = array<i64: 15, 4>}, {pipeline_mode = #tpu.pipeline_mode<synchronous>, transform_indices = @transform_13, window_bounds = array<i64: 4, 256, 128>}, {pipeline_mode = #tpu.pipeline_mode<synchronous>, transform_indices = @transform_14, window_bounds = array<i64: 256, 1>}, {pipeline_mode = #tpu.pipeline_mode<synchronous>, transform_indices = @transform_15, window_bounds = array<i64: 10, 256>}, {pipeline_mode = #tpu.pipeline_mode<synchronous>, transform_indices = @transform_16, window_bounds = array<i64: 10, 1>}, {transform_indices = @transform_17, window_bounds = array<i64: 1, 10, 1>}]} {
    %c0 = arith.constant 0 : index
    %c0_0 = arith.constant 0 : index
    %c0_1 = arith.constant 0 : index
    %0 = vector.load %arg1[%c0, %c0_0, %c0_1] : memref<1x1x900xf32, #tpu.memory_space<vmem>>, vector<1x1x900xf32>
    %1 = vector.shape_cast %0 : vector<1x1x900xf32> to vector<1x900xf32>
    %c0_2 = arith.constant 0 : index
    %c0_3 = arith.constant 0 : index
    %2 = vector.load %arg2[%c0_2, %c0_3] : memref<32x9xf32, #tpu.memory_space<vmem>>, vector<32x9xf32>
    %cst = arith.constant 0.000000e+00 : f32
    %3 = vector.broadcast %cst : f32 to vector<32x838xf32>
    %4 = vector.extract_strided_slice %1 {offsets = [0, 0], sizes = [1, 838], strides = [1, 1]} : vector<1x900xf32> to vector<1x838xf32>
    %5 = vector.extract_strided_slice %2 {offsets = [0, 0], sizes = [32, 1], strides = [1, 1]} : vector<32x9xf32> to vector<32x1xf32>
    %6 = vector.broadcast %5 : vector<32x1xf32> to vector<32x838xf32>
    %7 = vector.broadcast %4 : vector<1x838xf32> to vector<32x838xf32>
    %8 = arith.mulf %6, %7 : vector<32x838xf32>
    %9 = arith.addf %3, %8 : vector<32x838xf32>
    %10 = vector.extract_strided_slice %1 {offsets = [0, 1], sizes = [1, 838], strides = [1, 1]} : vector<1x900xf32> to vector<1x838xf32>
    %11 = vector.extract_strided_slice %2 {offsets = [0, 1], sizes = [32, 1], strides = [1, 1]} : vector<32x9xf32> to vector<32x1xf32>
    %12 = vector.broadcast %11 : vector<32x1xf32> to vector<32x838xf32>
    %13 = vector.broadcast %10 : vector<1x838xf32> to vector<32x838xf32>
    %14 = arith.mulf %12, %13 : vector<32x838xf32>
    %15 = arith.addf %9, %14 : vector<32x838xf32>
    %16 = vector.extract_strided_slice %1 {offsets = [0, 2], sizes = [1, 838], strides = [1, 1]} : vector<1x900xf32> to vector<1x838xf32>
    %17 = vector.extract_strided_slice %2 {offsets = [0, 2], sizes = [32, 1], strides = [1, 1]} : vector<32x9xf32> to vector<32x1xf32>
    %18 = vector.broadcast %17 : vector<32x1xf32> to vector<32x838xf32>
    %19 = vector.broadcast %16 : vector<1x838xf32> to vector<32x838xf32>
    %20 = arith.mulf %18, %19 : vector<32x838xf32>
    %21 = arith.addf %15, %20 : vector<32x838xf32>
    %22 = vector.extract_strided_slice %1 {offsets = [0, 30], sizes = [1, 838], strides = [1, 1]} : vector<1x900xf32> to vector<1x838xf32>
    %23 = vector.extract_strided_slice %2 {offsets = [0, 3], sizes = [32, 1], strides = [1, 1]} : vector<32x9xf32> to vector<32x1xf32>
    %24 = vector.broadcast %23 : vector<32x1xf32> to vector<32x838xf32>
    %25 = vector.broadcast %22 : vector<1x838xf32> to vector<32x838xf32>
    %26 = arith.mulf %24, %25 : vector<32x838xf32>
    %27 = arith.addf %21, %26 : vector<32x838xf32>
    %28 = vector.extract_strided_slice %1 {offsets = [0, 31], sizes = [1, 838], strides = [1, 1]} : vector<1x900xf32> to vector<1x838xf32>
    %29 = vector.extract_strided_slice %2 {offsets = [0, 4], sizes = [32, 1], strides = [1, 1]} : vector<32x9xf32> to vector<32x1xf32>
    %30 = vector.broadcast %29 : vector<32x1xf32> to vector<32x838xf32>
    %31 = vector.broadcast %28 : vector<1x838xf32> to vector<32x838xf32>
    %32 = arith.mulf %30, %31 : vector<32x838xf32>
    %33 = arith.addf %27, %32 : vector<32x838xf32>
    %34 = vector.extract_strided_slice %1 {offsets = [0, 32], sizes = [1, 838], strides = [1, 1]} : vector<1x900xf32> to vector<1x838xf32>
    %35 = vector.extract_strided_slice %2 {offsets = [0, 5], sizes = [32, 1], strides = [1, 1]} : vector<32x9xf32> to vector<32x1xf32>
    %36 = vector.broadcast %35 : vector<32x1xf32> to vector<32x838xf32>
    %37 = vector.broadcast %34 : vector<1x838xf32> to vector<32x838xf32>
    %38 = arith.mulf %36, %37 : vector<32x838xf32>
    %39 = arith.addf %33, %38 : vector<32x838xf32>
    %40 = vector.extract_strided_slice %1 {offsets = [0, 60], sizes = [1, 838], strides = [1, 1]} : vector<1x900xf32> to vector<1x838xf32>
    %41 = vector.extract_strided_slice %2 {offsets = [0, 6], sizes = [32, 1], strides = [1, 1]} : vector<32x9xf32> to vector<32x1xf32>
    %42 = vector.broadcast %41 : vector<32x1xf32> to vector<32x838xf32>
    %43 = vector.broadcast %40 : vector<1x838xf32> to vector<32x838xf32>
    %44 = arith.mulf %42, %43 : vector<32x838xf32>
    %45 = arith.addf %39, %44 : vector<32x838xf32>
    %46 = vector.extract_strided_slice %1 {offsets = [0, 61], sizes = [1, 838], strides = [1, 1]} : vector<1x900xf32> to vector<1x838xf32>
    %47 = vector.extract_strided_slice %2 {offsets = [0, 7], sizes = [32, 1], strides = [1, 1]} : vector<32x9xf32> to vector<32x1xf32>
    %48 = vector.broadcast %47 : vector<32x1xf32> to vector<32x838xf32>
    %49 = vector.broadcast %46 : vector<1x838xf32> to vector<32x838xf32>
    %50 = arith.mulf %48, %49 : vector<32x838xf32>
    %51 = arith.addf %45, %50 : vector<32x838xf32>
    %52 = vector.extract_strided_slice %1 {offsets = [0, 62], sizes = [1, 838], strides = [1, 1]} : vector<1x900xf32> to vector<1x838xf32>
    %53 = vector.extract_strided_slice %2 {offsets = [0, 8], sizes = [32, 1], strides = [1, 1]} : vector<32x9xf32> to vector<32x1xf32>
    %54 = vector.broadcast %53 : vector<32x1xf32> to vector<32x838xf32>
    %55 = vector.broadcast %52 : vector<1x838xf32> to vector<32x838xf32>
    %56 = arith.mulf %54, %55 : vector<32x838xf32>
    %57 = arith.addf %51, %56 : vector<32x838xf32>
    %c0_4 = arith.constant 0 : index
    %c0_5 = arith.constant 0 : index
    %58 = vector.load %arg3[%c0_4, %c0_5] : memref<32x1xf32, #tpu.memory_space<vmem>>, vector<32x1xf32>
    %59 = vector.broadcast %58 : vector<32x1xf32> to vector<32x838xf32>
    %60 = arith.mulf %57, %59 : vector<32x838xf32>
    %c0_6 = arith.constant 0 : index
    %c0_7 = arith.constant 0 : index
    %61 = vector.load %arg4[%c0_6, %c0_7] : memref<32x1xf32, #tpu.memory_space<vmem>>, vector<32x1xf32>
    %62 = vector.broadcast %61 : vector<32x1xf32> to vector<32x838xf32>
    %63 = arith.addf %60, %62 : vector<32x838xf32>
    %cst_8 = arith.constant 0.000000e+00 : f32
    %64 = vector.broadcast %cst_8 : f32 to vector<32x838xf32>
    %65 = arith.maximumf %63, %64 : vector<32x838xf32>
    %66 = vector.extract_strided_slice %65 {offsets = [0, 0], sizes = [32, 807], strides = [1, 1]} : vector<32x838xf32> to vector<32x807xf32>
    %67 = vector.extract_strided_slice %65 {offsets = [0, 1], sizes = [32, 807], strides = [1, 1]} : vector<32x838xf32> to vector<32x807xf32>
    %68 = arith.maximumf %66, %67 : vector<32x807xf32>
    %69 = vector.extract_strided_slice %65 {offsets = [0, 30], sizes = [32, 807], strides = [1, 1]} : vector<32x838xf32> to vector<32x807xf32>
    %70 = vector.extract_strided_slice %65 {offsets = [0, 31], sizes = [32, 807], strides = [1, 1]} : vector<32x838xf32> to vector<32x807xf32>
    %71 = arith.maximumf %69, %70 : vector<32x807xf32>
    %72 = arith.maximumf %68, %71 : vector<32x807xf32>
    %73 = arith.truncf %72 : vector<32x807xf32> to vector<32x807xbf16>
    %c0_9 = arith.constant 0 : index
    %c0_10 = arith.constant 0 : index
    %74 = vector.load %arg5[%c0_9, %c0_10] : memref<807x196xbf16, #tpu.memory_space<vmem>>, vector<807x196xbf16>
    %cst_11 = arith.constant dense<0.000000e+00> : vector<32x196xf32>
    %75 = tpu.matmul %73, %74, %cst_11 {dimension_numbers = #tpu.dot_dimension_numbers<[1], [0], [0], [1], [0, 0, 1, 1], [], []>} : vector<32x807xbf16>, vector<807x196xbf16>, vector<32x196xf32> -> vector<32x196xf32>
    %76 = arith.truncf %75 : vector<32x196xf32> to vector<32x196xbf16>
    %c0_12 = arith.constant 0 : index
    %c0_13 = arith.constant 0 : index
    %77 = vector.load %arg6[%c0_12, %c0_13] : memref<64x288xbf16, #tpu.memory_space<vmem>>, vector<64x288xbf16>
    %cst_14 = arith.constant 0.000000e+00 : f32
    %78 = vector.broadcast %cst_14 : f32 to vector<64x166xf32>
    %79 = vector.extract_strided_slice %76 {offsets = [0, 0], sizes = [32, 166], strides = [1, 1]} : vector<32x196xbf16> to vector<32x166xbf16>
    %80 = vector.extract_strided_slice %77 {offsets = [0, 0], sizes = [64, 32], strides = [1, 1]} : vector<64x288xbf16> to vector<64x32xbf16>
    %cst_15 = arith.constant dense<0.000000e+00> : vector<64x166xf32>
    %81 = tpu.matmul %80, %79, %cst_15 {dimension_numbers = #tpu.dot_dimension_numbers<[1], [0], [0], [1], [0, 0, 1, 1], [], []>} : vector<64x32xbf16>, vector<32x166xbf16>, vector<64x166xf32> -> vector<64x166xf32>
    %82 = arith.addf %78, %81 : vector<64x166xf32>
    %83 = vector.extract_strided_slice %76 {offsets = [0, 1], sizes = [32, 166], strides = [1, 1]} : vector<32x196xbf16> to vector<32x166xbf16>
    %84 = vector.extract_strided_slice %77 {offsets = [0, 32], sizes = [64, 32], strides = [1, 1]} : vector<64x288xbf16> to vector<64x32xbf16>
    %cst_16 = arith.constant dense<0.000000e+00> : vector<64x166xf32>
    %85 = tpu.matmul %84, %83, %cst_16 {dimension_numbers = #tpu.dot_dimension_numbers<[1], [0], [0], [1], [0, 0, 1, 1], [], []>} : vector<64x32xbf16>, vector<32x166xbf16>, vector<64x166xf32> -> vector<64x166xf32>
    %86 = arith.addf %82, %85 : vector<64x166xf32>
    %87 = vector.extract_strided_slice %76 {offsets = [0, 2], sizes = [32, 166], strides = [1, 1]} : vector<32x196xbf16> to vector<32x166xbf16>
    %88 = vector.extract_strided_slice %77 {offsets = [0, 64], sizes = [64, 32], strides = [1, 1]} : vector<64x288xbf16> to vector<64x32xbf16>
    %cst_17 = arith.constant dense<0.000000e+00> : vector<64x166xf32>
    %89 = tpu.matmul %88, %87, %cst_17 {dimension_numbers = #tpu.dot_dimension_numbers<[1], [0], [0], [1], [0, 0, 1, 1], [], []>} : vector<64x32xbf16>, vector<32x166xbf16>, vector<64x166xf32> -> vector<64x166xf32>
    %90 = arith.addf %86, %89 : vector<64x166xf32>
    %91 = vector.extract_strided_slice %76 {offsets = [0, 14], sizes = [32, 166], strides = [1, 1]} : vector<32x196xbf16> to vector<32x166xbf16>
    %92 = vector.extract_strided_slice %77 {offsets = [0, 96], sizes = [64, 32], strides = [1, 1]} : vector<64x288xbf16> to vector<64x32xbf16>
    %cst_18 = arith.constant dense<0.000000e+00> : vector<64x166xf32>
    %93 = tpu.matmul %92, %91, %cst_18 {dimension_numbers = #tpu.dot_dimension_numbers<[1], [0], [0], [1], [0, 0, 1, 1], [], []>} : vector<64x32xbf16>, vector<32x166xbf16>, vector<64x166xf32> -> vector<64x166xf32>
    %94 = arith.addf %90, %93 : vector<64x166xf32>
    %95 = vector.extract_strided_slice %76 {offsets = [0, 15], sizes = [32, 166], strides = [1, 1]} : vector<32x196xbf16> to vector<32x166xbf16>
    %96 = vector.extract_strided_slice %77 {offsets = [0, 128], sizes = [64, 32], strides = [1, 1]} : vector<64x288xbf16> to vector<64x32xbf16>
    %cst_19 = arith.constant dense<0.000000e+00> : vector<64x166xf32>
    %97 = tpu.matmul %96, %95, %cst_19 {dimension_numbers = #tpu.dot_dimension_numbers<[1], [0], [0], [1], [0, 0, 1, 1], [], []>} : vector<64x32xbf16>, vector<32x166xbf16>, vector<64x166xf32> -> vector<64x166xf32>
    %98 = arith.addf %94, %97 : vector<64x166xf32>
    %99 = vector.extract_strided_slice %76 {offsets = [0, 16], sizes = [32, 166], strides = [1, 1]} : vector<32x196xbf16> to vector<32x166xbf16>
    %100 = vector.extract_strided_slice %77 {offsets = [0, 160], sizes = [64, 32], strides = [1, 1]} : vector<64x288xbf16> to vector<64x32xbf16>
    %cst_20 = arith.constant dense<0.000000e+00> : vector<64x166xf32>
    %101 = tpu.matmul %100, %99, %cst_20 {dimension_numbers = #tpu.dot_dimension_numbers<[1], [0], [0], [1], [0, 0, 1, 1], [], []>} : vector<64x32xbf16>, vector<32x166xbf16>, vector<64x166xf32> -> vector<64x166xf32>
    %102 = arith.addf %98, %101 : vector<64x166xf32>
    %103 = vector.extract_strided_slice %76 {offsets = [0, 28], sizes = [32, 166], strides = [1, 1]} : vector<32x196xbf16> to vector<32x166xbf16>
    %104 = vector.extract_strided_slice %77 {offsets = [0, 192], sizes = [64, 32], strides = [1, 1]} : vector<64x288xbf16> to vector<64x32xbf16>
    %cst_21 = arith.constant dense<0.000000e+00> : vector<64x166xf32>
    %105 = tpu.matmul %104, %103, %cst_21 {dimension_numbers = #tpu.dot_dimension_numbers<[1], [0], [0], [1], [0, 0, 1, 1], [], []>} : vector<64x32xbf16>, vector<32x166xbf16>, vector<64x166xf32> -> vector<64x166xf32>
    %106 = arith.addf %102, %105 : vector<64x166xf32>
    %107 = vector.extract_strided_slice %76 {offsets = [0, 29], sizes = [32, 166], strides = [1, 1]} : vector<32x196xbf16> to vector<32x166xbf16>
    %108 = vector.extract_strided_slice %77 {offsets = [0, 224], sizes = [64, 32], strides = [1, 1]} : vector<64x288xbf16> to vector<64x32xbf16>
    %cst_22 = arith.constant dense<0.000000e+00> : vector<64x166xf32>
    %109 = tpu.matmul %108, %107, %cst_22 {dimension_numbers = #tpu.dot_dimension_numbers<[1], [0], [0], [1], [0, 0, 1, 1], [], []>} : vector<64x32xbf16>, vector<32x166xbf16>, vector<64x166xf32> -> vector<64x166xf32>
    %110 = arith.addf %106, %109 : vector<64x166xf32>
    %111 = vector.extract_strided_slice %76 {offsets = [0, 30], sizes = [32, 166], strides = [1, 1]} : vector<32x196xbf16> to vector<32x166xbf16>
    %112 = vector.extract_strided_slice %77 {offsets = [0, 256], sizes = [64, 32], strides = [1, 1]} : vector<64x288xbf16> to vector<64x32xbf16>
    %cst_23 = arith.constant dense<0.000000e+00> : vector<64x166xf32>
    %113 = tpu.matmul %112, %111, %cst_23 {dimension_numbers = #tpu.dot_dimension_numbers<[1], [0], [0], [1], [0, 0, 1, 1], [], []>} : vector<64x32xbf16>, vector<32x166xbf16>, vector<64x166xf32> -> vector<64x166xf32>
    %114 = arith.addf %110, %113 : vector<64x166xf32>
    %c0_24 = arith.constant 0 : index
    %c0_25 = arith.constant 0 : index
    %115 = vector.load %arg7[%c0_24, %c0_25] : memref<64x1xf32, #tpu.memory_space<vmem>>, vector<64x1xf32>
    %116 = vector.broadcast %115 : vector<64x1xf32> to vector<64x166xf32>
    %117 = arith.mulf %114, %116 : vector<64x166xf32>
    %c0_26 = arith.constant 0 : index
    %c0_27 = arith.constant 0 : index
    %118 = vector.load %arg8[%c0_26, %c0_27] : memref<64x1xf32, #tpu.memory_space<vmem>>, vector<64x1xf32>
    %119 = vector.broadcast %118 : vector<64x1xf32> to vector<64x166xf32>
    %120 = arith.addf %117, %119 : vector<64x166xf32>
    %cst_28 = arith.constant 0.000000e+00 : f32
    %121 = vector.broadcast %cst_28 : f32 to vector<64x166xf32>
    %122 = arith.maximumf %120, %121 : vector<64x166xf32>
    %123 = vector.extract_strided_slice %122 {offsets = [0, 0], sizes = [64, 151], strides = [1, 1]} : vector<64x166xf32> to vector<64x151xf32>
    %124 = vector.extract_strided_slice %122 {offsets = [0, 1], sizes = [64, 151], strides = [1, 1]} : vector<64x166xf32> to vector<64x151xf32>
    %125 = arith.maximumf %123, %124 : vector<64x151xf32>
    %126 = vector.extract_strided_slice %122 {offsets = [0, 14], sizes = [64, 151], strides = [1, 1]} : vector<64x166xf32> to vector<64x151xf32>
    %127 = vector.extract_strided_slice %122 {offsets = [0, 15], sizes = [64, 151], strides = [1, 1]} : vector<64x166xf32> to vector<64x151xf32>
    %128 = arith.maximumf %126, %127 : vector<64x151xf32>
    %129 = arith.maximumf %125, %128 : vector<64x151xf32>
    %130 = arith.truncf %129 : vector<64x151xf32> to vector<64x151xbf16>
    %c0_29 = arith.constant 0 : index
    %c0_30 = arith.constant 0 : index
    %131 = vector.load %arg9[%c0_29, %c0_30] : memref<151x36xbf16, #tpu.memory_space<vmem>>, vector<151x36xbf16>
    %cst_31 = arith.constant dense<0.000000e+00> : vector<64x36xf32>
    %132 = tpu.matmul %130, %131, %cst_31 {dimension_numbers = #tpu.dot_dimension_numbers<[1], [0], [0], [1], [0, 0, 1, 1], [], []>} : vector<64x151xbf16>, vector<151x36xbf16>, vector<64x36xf32> -> vector<64x36xf32>
    %133 = arith.truncf %132 : vector<64x36xf32> to vector<64x36xbf16>
    %c0_32 = arith.constant 0 : index
    %c0_33 = arith.constant 0 : index
    %134 = vector.load %arg10[%c0_32, %c0_33] : memref<128x576xbf16, #tpu.memory_space<vmem>>, vector<128x576xbf16>
    %cst_34 = arith.constant 0.000000e+00 : f32
    %135 = vector.broadcast %cst_34 : f32 to vector<128x22xf32>
    %136 = vector.extract_strided_slice %133 {offsets = [0, 0], sizes = [64, 22], strides = [1, 1]} : vector<64x36xbf16> to vector<64x22xbf16>
    %137 = vector.extract_strided_slice %134 {offsets = [0, 0], sizes = [128, 64], strides = [1, 1]} : vector<128x576xbf16> to vector<128x64xbf16>
    %cst_35 = arith.constant dense<0.000000e+00> : vector<128x22xf32>
    %138 = tpu.matmul %137, %136, %cst_35 {dimension_numbers = #tpu.dot_dimension_numbers<[1], [0], [0], [1], [0, 0, 1, 1], [], []>} : vector<128x64xbf16>, vector<64x22xbf16>, vector<128x22xf32> -> vector<128x22xf32>
    %139 = arith.addf %135, %138 : vector<128x22xf32>
    %140 = vector.extract_strided_slice %133 {offsets = [0, 1], sizes = [64, 22], strides = [1, 1]} : vector<64x36xbf16> to vector<64x22xbf16>
    %141 = vector.extract_strided_slice %134 {offsets = [0, 64], sizes = [128, 64], strides = [1, 1]} : vector<128x576xbf16> to vector<128x64xbf16>
    %cst_36 = arith.constant dense<0.000000e+00> : vector<128x22xf32>
    %142 = tpu.matmul %141, %140, %cst_36 {dimension_numbers = #tpu.dot_dimension_numbers<[1], [0], [0], [1], [0, 0, 1, 1], [], []>} : vector<128x64xbf16>, vector<64x22xbf16>, vector<128x22xf32> -> vector<128x22xf32>
    %143 = arith.addf %139, %142 : vector<128x22xf32>
    %144 = vector.extract_strided_slice %133 {offsets = [0, 2], sizes = [64, 22], strides = [1, 1]} : vector<64x36xbf16> to vector<64x22xbf16>
    %145 = vector.extract_strided_slice %134 {offsets = [0, 128], sizes = [128, 64], strides = [1, 1]} : vector<128x576xbf16> to vector<128x64xbf16>
    %cst_37 = arith.constant dense<0.000000e+00> : vector<128x22xf32>
    %146 = tpu.matmul %145, %144, %cst_37 {dimension_numbers = #tpu.dot_dimension_numbers<[1], [0], [0], [1], [0, 0, 1, 1], [], []>} : vector<128x64xbf16>, vector<64x22xbf16>, vector<128x22xf32> -> vector<128x22xf32>
    %147 = arith.addf %143, %146 : vector<128x22xf32>
    %148 = vector.extract_strided_slice %133 {offsets = [0, 6], sizes = [64, 22], strides = [1, 1]} : vector<64x36xbf16> to vector<64x22xbf16>
    %149 = vector.extract_strided_slice %134 {offsets = [0, 192], sizes = [128, 64], strides = [1, 1]} : vector<128x576xbf16> to vector<128x64xbf16>
    %cst_38 = arith.constant dense<0.000000e+00> : vector<128x22xf32>
    %150 = tpu.matmul %149, %148, %cst_38 {dimension_numbers = #tpu.dot_dimension_numbers<[1], [0], [0], [1], [0, 0, 1, 1], [], []>} : vector<128x64xbf16>, vector<64x22xbf16>, vector<128x22xf32> -> vector<128x22xf32>
    %151 = arith.addf %147, %150 : vector<128x22xf32>
    %152 = vector.extract_strided_slice %133 {offsets = [0, 7], sizes = [64, 22], strides = [1, 1]} : vector<64x36xbf16> to vector<64x22xbf16>
    %153 = vector.extract_strided_slice %134 {offsets = [0, 256], sizes = [128, 64], strides = [1, 1]} : vector<128x576xbf16> to vector<128x64xbf16>
    %cst_39 = arith.constant dense<0.000000e+00> : vector<128x22xf32>
    %154 = tpu.matmul %153, %152, %cst_39 {dimension_numbers = #tpu.dot_dimension_numbers<[1], [0], [0], [1], [0, 0, 1, 1], [], []>} : vector<128x64xbf16>, vector<64x22xbf16>, vector<128x22xf32> -> vector<128x22xf32>
    %155 = arith.addf %151, %154 : vector<128x22xf32>
    %156 = vector.extract_strided_slice %133 {offsets = [0, 8], sizes = [64, 22], strides = [1, 1]} : vector<64x36xbf16> to vector<64x22xbf16>
    %157 = vector.extract_strided_slice %134 {offsets = [0, 320], sizes = [128, 64], strides = [1, 1]} : vector<128x576xbf16> to vector<128x64xbf16>
    %cst_40 = arith.constant dense<0.000000e+00> : vector<128x22xf32>
    %158 = tpu.matmul %157, %156, %cst_40 {dimension_numbers = #tpu.dot_dimension_numbers<[1], [0], [0], [1], [0, 0, 1, 1], [], []>} : vector<128x64xbf16>, vector<64x22xbf16>, vector<128x22xf32> -> vector<128x22xf32>
    %159 = arith.addf %155, %158 : vector<128x22xf32>
    %160 = vector.extract_strided_slice %133 {offsets = [0, 12], sizes = [64, 22], strides = [1, 1]} : vector<64x36xbf16> to vector<64x22xbf16>
    %161 = vector.extract_strided_slice %134 {offsets = [0, 384], sizes = [128, 64], strides = [1, 1]} : vector<128x576xbf16> to vector<128x64xbf16>
    %cst_41 = arith.constant dense<0.000000e+00> : vector<128x22xf32>
    %162 = tpu.matmul %161, %160, %cst_41 {dimension_numbers = #tpu.dot_dimension_numbers<[1], [0], [0], [1], [0, 0, 1, 1], [], []>} : vector<128x64xbf16>, vector<64x22xbf16>, vector<128x22xf32> -> vector<128x22xf32>
    %163 = arith.addf %159, %162 : vector<128x22xf32>
    %164 = vector.extract_strided_slice %133 {offsets = [0, 13], sizes = [64, 22], strides = [1, 1]} : vector<64x36xbf16> to vector<64x22xbf16>
    %165 = vector.extract_strided_slice %134 {offsets = [0, 448], sizes = [128, 64], strides = [1, 1]} : vector<128x576xbf16> to vector<128x64xbf16>
    %cst_42 = arith.constant dense<0.000000e+00> : vector<128x22xf32>
    %166 = tpu.matmul %165, %164, %cst_42 {dimension_numbers = #tpu.dot_dimension_numbers<[1], [0], [0], [1], [0, 0, 1, 1], [], []>} : vector<128x64xbf16>, vector<64x22xbf16>, vector<128x22xf32> -> vector<128x22xf32>
    %167 = arith.addf %163, %166 : vector<128x22xf32>
    %168 = vector.extract_strided_slice %133 {offsets = [0, 14], sizes = [64, 22], strides = [1, 1]} : vector<64x36xbf16> to vector<64x22xbf16>
    %169 = vector.extract_strided_slice %134 {offsets = [0, 512], sizes = [128, 64], strides = [1, 1]} : vector<128x576xbf16> to vector<128x64xbf16>
    %cst_43 = arith.constant dense<0.000000e+00> : vector<128x22xf32>
    %170 = tpu.matmul %169, %168, %cst_43 {dimension_numbers = #tpu.dot_dimension_numbers<[1], [0], [0], [1], [0, 0, 1, 1], [], []>} : vector<128x64xbf16>, vector<64x22xbf16>, vector<128x22xf32> -> vector<128x22xf32>
    %171 = arith.addf %167, %170 : vector<128x22xf32>
    %c0_44 = arith.constant 0 : index
    %c0_45 = arith.constant 0 : index
    %172 = vector.load %arg11[%c0_44, %c0_45] : memref<128x1xf32, #tpu.memory_space<vmem>>, vector<128x1xf32>
    %173 = vector.broadcast %172 : vector<128x1xf32> to vector<128x22xf32>
    %174 = arith.mulf %171, %173 : vector<128x22xf32>
    %c0_46 = arith.constant 0 : index
    %c0_47 = arith.constant 0 : index
    %175 = vector.load %arg12[%c0_46, %c0_47] : memref<128x1xf32, #tpu.memory_space<vmem>>, vector<128x1xf32>
    %176 = vector.broadcast %175 : vector<128x1xf32> to vector<128x22xf32>
    %177 = arith.addf %174, %176 : vector<128x22xf32>
    %cst_48 = arith.constant 0.000000e+00 : f32
    %178 = vector.broadcast %cst_48 : f32 to vector<128x22xf32>
    %179 = arith.maximumf %177, %178 : vector<128x22xf32>
    %180 = vector.extract_strided_slice %179 {offsets = [0, 0], sizes = [128, 15], strides = [1, 1]} : vector<128x22xf32> to vector<128x15xf32>
    %181 = vector.extract_strided_slice %179 {offsets = [0, 1], sizes = [128, 15], strides = [1, 1]} : vector<128x22xf32> to vector<128x15xf32>
    %182 = arith.maximumf %180, %181 : vector<128x15xf32>
    %183 = vector.extract_strided_slice %179 {offsets = [0, 6], sizes = [128, 15], strides = [1, 1]} : vector<128x22xf32> to vector<128x15xf32>
    %184 = vector.extract_strided_slice %179 {offsets = [0, 7], sizes = [128, 15], strides = [1, 1]} : vector<128x22xf32> to vector<128x15xf32>
    %185 = arith.maximumf %183, %184 : vector<128x15xf32>
    %186 = arith.maximumf %182, %185 : vector<128x15xf32>
    %187 = arith.truncf %186 : vector<128x15xf32> to vector<128x15xbf16>
    %c0_49 = arith.constant 0 : index
    %c0_50 = arith.constant 0 : index
    %188 = vector.load %arg13[%c0_49, %c0_50] : memref<15x4xbf16, #tpu.memory_space<vmem>>, vector<15x4xbf16>
    %cst_51 = arith.constant dense<0.000000e+00> : vector<128x4xf32>
    %189 = tpu.matmul %187, %188, %cst_51 {dimension_numbers = #tpu.dot_dimension_numbers<[1], [0], [0], [1], [0, 0, 1, 1], [], []>} : vector<128x15xbf16>, vector<15x4xbf16>, vector<128x4xf32> -> vector<128x4xf32>
    %190 = arith.truncf %189 : vector<128x4xf32> to vector<128x4xbf16>
    %c0_52 = arith.constant 0 : index
    %c0_53 = arith.constant 0 : index
    %191 = vector.load %arg15[%c0_52, %c0_53] : memref<256x1xf32, #tpu.memory_space<vmem>>, vector<256x1xf32>
    %c0_54 = arith.constant 0 : index
    %c0_55 = arith.constant 0 : index
    %c0_56 = arith.constant 0 : index
    %192 = vector.load %arg14[%c0_54, %c0_55, %c0_56] : memref<4x256x128xbf16, #tpu.memory_space<vmem>>, vector<1x256x128xbf16>
    %193 = vector.shape_cast %192 : vector<1x256x128xbf16> to vector<256x128xbf16>
    %194 = vector.extract_strided_slice %190 {offsets = [0, 0], sizes = [128, 1], strides = [1, 1]} : vector<128x4xbf16> to vector<128x1xbf16>
    %cst_57 = arith.constant dense<0.000000e+00> : vector<256x1xf32>
    %195 = tpu.matmul %193, %194, %cst_57 {dimension_numbers = #tpu.dot_dimension_numbers<[1], [0], [0], [1], [0, 0, 1, 1], [], []>} : vector<256x128xbf16>, vector<128x1xbf16>, vector<256x1xf32> -> vector<256x1xf32>
    %196 = arith.addf %191, %195 : vector<256x1xf32>
    %c1 = arith.constant 1 : index
    %c0_58 = arith.constant 0 : index
    %c0_59 = arith.constant 0 : index
    %197 = vector.load %arg14[%c1, %c0_58, %c0_59] : memref<4x256x128xbf16, #tpu.memory_space<vmem>>, vector<1x256x128xbf16>
    %198 = vector.shape_cast %197 : vector<1x256x128xbf16> to vector<256x128xbf16>
    %199 = vector.extract_strided_slice %190 {offsets = [0, 1], sizes = [128, 1], strides = [1, 1]} : vector<128x4xbf16> to vector<128x1xbf16>
    %cst_60 = arith.constant dense<0.000000e+00> : vector<256x1xf32>
    %200 = tpu.matmul %198, %199, %cst_60 {dimension_numbers = #tpu.dot_dimension_numbers<[1], [0], [0], [1], [0, 0, 1, 1], [], []>} : vector<256x128xbf16>, vector<128x1xbf16>, vector<256x1xf32> -> vector<256x1xf32>
    %201 = arith.addf %196, %200 : vector<256x1xf32>
    %c2 = arith.constant 2 : index
    %c0_61 = arith.constant 0 : index
    %c0_62 = arith.constant 0 : index
    %202 = vector.load %arg14[%c2, %c0_61, %c0_62] : memref<4x256x128xbf16, #tpu.memory_space<vmem>>, vector<1x256x128xbf16>
    %203 = vector.shape_cast %202 : vector<1x256x128xbf16> to vector<256x128xbf16>
    %204 = vector.extract_strided_slice %190 {offsets = [0, 2], sizes = [128, 1], strides = [1, 1]} : vector<128x4xbf16> to vector<128x1xbf16>
    %cst_63 = arith.constant dense<0.000000e+00> : vector<256x1xf32>
    %205 = tpu.matmul %203, %204, %cst_63 {dimension_numbers = #tpu.dot_dimension_numbers<[1], [0], [0], [1], [0, 0, 1, 1], [], []>} : vector<256x128xbf16>, vector<128x1xbf16>, vector<256x1xf32> -> vector<256x1xf32>
    %206 = arith.addf %201, %205 : vector<256x1xf32>
    %c3 = arith.constant 3 : index
    %c0_64 = arith.constant 0 : index
    %c0_65 = arith.constant 0 : index
    %207 = vector.load %arg14[%c3, %c0_64, %c0_65] : memref<4x256x128xbf16, #tpu.memory_space<vmem>>, vector<1x256x128xbf16>
    %208 = vector.shape_cast %207 : vector<1x256x128xbf16> to vector<256x128xbf16>
    %209 = vector.extract_strided_slice %190 {offsets = [0, 3], sizes = [128, 1], strides = [1, 1]} : vector<128x4xbf16> to vector<128x1xbf16>
    %cst_66 = arith.constant dense<0.000000e+00> : vector<256x1xf32>
    %210 = tpu.matmul %208, %209, %cst_66 {dimension_numbers = #tpu.dot_dimension_numbers<[1], [0], [0], [1], [0, 0, 1, 1], [], []>} : vector<256x128xbf16>, vector<128x1xbf16>, vector<256x1xf32> -> vector<256x1xf32>
    %211 = arith.addf %206, %210 : vector<256x1xf32>
    %c0_67 = arith.constant 0 : index
    %c0_68 = arith.constant 0 : index
    %212 = vector.load %arg16[%c0_67, %c0_68] : memref<10x256xbf16, #tpu.memory_space<vmem>>, vector<10x256xbf16>
    %213 = arith.truncf %211 : vector<256x1xf32> to vector<256x1xbf16>
    %cst_69 = arith.constant dense<0.000000e+00> : vector<10x1xf32>
    %214 = tpu.matmul %212, %213, %cst_69 {dimension_numbers = #tpu.dot_dimension_numbers<[1], [0], [0], [1], [0, 0, 1, 1], [], []>} : vector<10x256xbf16>, vector<256x1xbf16>, vector<10x1xf32> -> vector<10x1xf32>
    %c0_70 = arith.constant 0 : index
    %c0_71 = arith.constant 0 : index
    %215 = vector.load %arg17[%c0_70, %c0_71] : memref<10x1xf32, #tpu.memory_space<vmem>>, vector<10x1xf32>
    %216 = arith.addf %214, %215 : vector<10x1xf32>
    %c0_72 = arith.constant 0 : index
    %c0_73 = arith.constant 0 : index
    %c0_74 = arith.constant 0 : index
    %217 = vector.load %arg18[%c0_72, %c0_73, %c0_74] : memref<1x10x1xf32, #tpu.memory_space<vmem>>, vector<1x10x1xf32>
    %218 = vector.shape_cast %217 : vector<1x10x1xf32> to vector<10x1xf32>
    %219 = vector.shape_cast %216 : vector<10x1xf32> to vector<1x10x1xf32>
    tpu.vector_store %arg18[%c0_72, %c0_73, %c0_74], %219 {strides = array<i32>} : memref<1x10x1xf32, #tpu.memory_space<vmem>>, vector<1x10x1xf32>,
    return
  }
  func.func @transform_0(%arg0: i32) -> (i32, i32, i32) {
    %c0_i32 = arith.constant 0 : i32
    %c0_i32_0 = arith.constant 0 : i32
    %c0_i32_1 = arith.constant 0 : i32
    return %arg0, %c0_i32, %c0_i32_0 : i32, i32, i32
  }
  func.func @transform_1(%arg0: i32) -> (i32, i32) {
    %c0_i32 = arith.constant 0 : i32
    %c0_i32_0 = arith.constant 0 : i32
    %c0_i32_1 = arith.constant 0 : i32
    return %c0_i32, %c0_i32_0 : i32, i32
  }
  func.func @transform_2(%arg0: i32) -> (i32, i32) {
    %c0_i32 = arith.constant 0 : i32
    %c0_i32_0 = arith.constant 0 : i32
    %c0_i32_1 = arith.constant 0 : i32
    return %c0_i32, %c0_i32_0 : i32, i32
  }
  func.func @transform_3(%arg0: i32) -> (i32, i32) {
    %c0_i32 = arith.constant 0 : i32
    %c0_i32_0 = arith.constant 0 : i32
    %c0_i32_1 = arith.constant 0 : i32
    return %c0_i32, %c0_i32_0 : i32, i32
  }
  func.func @transform_4(%arg0: i32) -> (i32, i32) {
    %c0_i32 = arith.constant 0 : i32
    %c0_i32_0 = arith.constant 0 : i32
    %c0_i32_1 = arith.constant 0 : i32
    return %c0_i32, %c0_i32_0 : i32, i32
  }
  func.func @transform_5(%arg0: i32) -> (i32, i32) {
    %c0_i32 = arith.constant 0 : i32
    %c0_i32_0 = arith.constant 0 : i32
    %c0_i32_1 = arith.constant 0 : i32
    return %c0_i32, %c0_i32_0 : i32, i32
  }
  func.func @transform_6(%arg0: i32) -> (i32, i32) {
    %c0_i32 = arith.constant 0 : i32
    %c0_i32_0 = arith.constant 0 : i32
    %c0_i32_1 = arith.constant 0 : i32
    return %c0_i32, %c0_i32_0 : i32, i32
  }
  func.func @transform_7(%arg0: i32) -> (i32, i32) {
    %c0_i32 = arith.constant 0 : i32
    %c0_i32_0 = arith.constant 0 : i32
    %c0_i32_1 = arith.constant 0 : i32
    return %c0_i32, %c0_i32_0 : i32, i32
  }
  func.func @transform_8(%arg0: i32) -> (i32, i32) {
    %c0_i32 = arith.constant 0 : i32
    %c0_i32_0 = arith.constant 0 : i32
    %c0_i32_1 = arith.constant 0 : i32
    return %c0_i32, %c0_i32_0 : i32, i32
  }
  func.func @transform_9(%arg0: i32) -> (i32, i32) {
    %c0_i32 = arith.constant 0 : i32
    %c0_i32_0 = arith.constant 0 : i32
    %c0_i32_1 = arith.constant 0 : i32
    return %c0_i32, %c0_i32_0 : i32, i32
  }
  func.func @transform_10(%arg0: i32) -> (i32, i32) {
    %c0_i32 = arith.constant 0 : i32
    %c0_i32_0 = arith.constant 0 : i32
    %c0_i32_1 = arith.constant 0 : i32
    return %c0_i32, %c0_i32_0 : i32, i32
  }
  func.func @transform_11(%arg0: i32) -> (i32, i32) {
    %c0_i32 = arith.constant 0 : i32
    %c0_i32_0 = arith.constant 0 : i32
    %c0_i32_1 = arith.constant 0 : i32
    return %c0_i32, %c0_i32_0 : i32, i32
  }
  func.func @transform_12(%arg0: i32) -> (i32, i32) {
    %c0_i32 = arith.constant 0 : i32
    %c0_i32_0 = arith.constant 0 : i32
    %c0_i32_1 = arith.constant 0 : i32
    return %c0_i32, %c0_i32_0 : i32, i32
  }
  func.func @transform_13(%arg0: i32) -> (i32, i32, i32) {
    %c0_i32 = arith.constant 0 : i32
    %c0_i32_0 = arith.constant 0 : i32
    %c0_i32_1 = arith.constant 0 : i32
    %c0_i32_2 = arith.constant 0 : i32
    return %c0_i32, %c0_i32_0, %c0_i32_1 : i32, i32, i32
  }
  func.func @transform_14(%arg0: i32) -> (i32, i32) {
    %c0_i32 = arith.constant 0 : i32
    %c0_i32_0 = arith.constant 0 : i32
    %c0_i32_1 = arith.constant 0 : i32
    return %c0_i32, %c0_i32_0 : i32, i32
  }
  func.func @transform_15(%arg0: i32) -> (i32, i32) {
    %c0_i32 = arith.constant 0 : i32
    %c0_i32_0 = arith.constant 0 : i32
    %c0_i32_1 = arith.constant 0 : i32
    return %c0_i32, %c0_i32_0 : i32, i32
  }
  func.func @transform_16(%arg0: i32) -> (i32, i32) {
    %c0_i32 = arith.constant 0 : i32
    %c0_i32_0 = arith.constant 0 : i32
    %c0_i32_1 = arith.constant 0 : i32
    return %c0_i32, %c0_i32_0 : i32, i32
  }
  func.func @transform_17(%arg0: i32) -> (i32, i32, i32) {
    %c0_i32 = arith.constant 0 : i32
    %c0_i32_0 = arith.constant 0 : i32
    %c0_i32_1 = arith.constant 0 : i32
    return %arg0, %c0_i32, %c0_i32_0 : i32, i32, i32
  }
}

</mosaic_0001>

<bundles_post_ra>
// kernel: convnet_forward.1
= control target key start
LH: loop header
LB: loop body
LE: loop exit
PB: predicated region body
PF: predicated region fallthrough
CT: control target
= control target key end

     0   :  { %s10094_s24 = smov 0   ;;  %s15833_s0 = inlined_call_operand.vmem [shape: f32[2,1,900], index: 0, kind: input, shape index: {}]   ;;  %s15834_s1 = inlined_call_operand.vmem [shape: f32[32,9], index: 1, kind: input, shape index: {}]   ;;  %s15835_s2 = inlined_call_operand.vmem [shape: f32[32,1], index: 2, kind: input, shape index: {}]   ;;  %s15836_s3 = inlined_call_operand.vmem [shape: f32[32,1], index: 3, kind: input, shape index: {}]   ;;  %s15837_s4 = inlined_call_operand.vmem [shape: bf16[807,196], index: 4, kind: input, shape index: {}]   ;;  %s15838_s5 = inlined_call_operand.vmem [shape: bf16[64,288], index: 5, kind: input, shape index: {}]   ;;  %s15839_s6 = inlined_call_operand.vmem [shape: f32[64,1], index: 6, kind: input, shape index: {}]   ;;  %s15840_s7 = inlined_call_operand.vmem [shape: f32[64,1], index: 7, kind: input, shape index: {}]   ;;  %s15841_s8 = inlined_call_operand.vmem [shape: bf16[151,36], index: 8, kind: input, shape index: {}]   ;;  %s15842_s9 = inlined_call_operand.vmem [shape: bf16[128,576], index: 9, kind: input, shape index: {}]   ;;  %s15843_s10 = inlined_call_operand.vmem [shape: f32[128,1], index: 10, kind: input, shape index: {}]   ;;  %s15844_s11 = inlined_call_operand.vmem [shape: f32[128,1], index: 11, kind: input, shape index: {}]   ;;  %s15845_s12 = inlined_call_operand.vmem [shape: bf16[15,4], index: 12, kind: input, shape index: {}]   ;;  %s15846_s13 = inlined_call_operand.vmem [shape: bf16[4,256,128], index: 13, kind: input, shape index: {}]   ;;  %s15847_s14 = inlined_call_operand.vmem [shape: f32[256,1], index: 14, kind: input, shape index: {}]   ;;  %s15848_s15 = inlined_call_operand.vmem [shape: bf16[10,256], index: 15, kind: input, shape index: {}]   ;;  %s15849_s16 = inlined_call_operand.vmem [shape: f32[10,1], index: 16, kind: input, shape index: {}]   ;;  %s15850_s17 = inlined_call_operand.vmem [shape: f32[2,10,1], index: 17, kind: output, shape index: {}]  }
   0x1   :  { %16065 = sst [smem:[#allocation180_spill]] %s15833_s0 }
   0x2   :  { %16066 = sst [smem:[#allocation181_spill]] %s15834_s1 }
   0x3   :  { %16067 = sst [smem:[#allocation182_spill]] %s15835_s2 }
   0x4   :  { %16068 = sst [smem:[#allocation183_spill]] %s15836_s3 }
   0x5   :  { %16069 = sst [smem:[#allocation184_spill]] %s15837_s4 }
   0x6 LB: > { %s8180_s25 = sadd.s32 4294967295, %s9971_s24   ;;  %p8184_p0 = scmp.ge.s32.totalorder %s9971_s24, 1  ;;  %s9971_s24 = sphi %s10094_s24, %s27_s24  }
   0x7   : > { %p486_p1 = scmp.lt.s32.totalorder %s9971_s24, 3 }
   0x9   : > { %p487_p2 = pnand %p8184_p0, %p486_p1 }
   0xb   : > { %490 = sbr.rel (%p487_p2) target bundleno = 4316 (0x10dc), region = 88 }
  0x10   : > { %s16070_s28 = sld [smem:[#allocation181_spill]]  ;;  %v9973_v1 = vmov 4   ;;  %v9974_v2 = vmov 2   ;;  %v9975_v3 = vmov 3   ;;  %v9976_v5 = vmov 1   ;;  %p537_p3 = scmp.lt.s32.totalorder %s8180_s25, 1 }
  0x11   : > { %9636 = vset.pattern.permute.xlu0 %v9973_v1  ;;  %9634 = vset.pattern.permute.xlu1 %v9974_v2  ;;  %v9977_v6 = vmov 5   ;;  %v9978_v8 = vmov 6   ;;  %v9979_v10 = vmov 7   ;;  %v9980_v11 = vmov 8   ;;  %s16071_s23 = sld [smem:[#allocation180_spill]]  ;;  %s16050_s27 = smov 127  }
  0x12   : > { %9635 = vset.pattern.permute.xlu2 %v9975_v3  ;;  %v9981_v12 = vmov 0   ;;  %s16587_s25 = smov (!%p537_p3, %s8180_s25), 1  ;;  %s16046_s29 = smov 126   ;;  %vm771_vm0 = vcmask 1039360   ;;  %vm980_vm1 = vcmask 1031168   ;;  %vm1189_vm2 = vcmask 801792  }
  0x13   : > { %s8185_s20 = sshll.u32 %s16587_s25, 3  ;;  %s16052_s0 = smov 98   ;;  %vm1398_vm3 = vcmask 793600   ;;  %vm1607_vm4 = vcmask 785408   ;;  %vm1834_vm5 = vcmask 556032   ;;  %vm2063_vm6 = vcmask 547840  }
  0x14   : > { %s9985_s30 = smov 97   ;;  %s16048_s18 = smov 96   ;;  %vm2292_vm7 = vcmask 539648   ;;  %vm3464_vm8 = vcmask 1042432   ;;  %vm3465_vm9 = vcmask 1043456   ;;  %vm3457_vm10 = vcmask 318464  }
  0x15   : > { %s9987_s19 = smov 68   ;;  %s15878_s1 = smov 67   ;;  %vm3819_vm11 = vcmask 261120   ;;  %vm4202_vm12 = vcmask 924672   ;;  %vm4089_vm13 = vcmask 932864   ;;  %vm4420_vm14 = vcmask 818176  }
  0x16   : > { %v10105_v0 = vld [vmem:[%s16070_s28] sm:$0xff]  ;;  %v10113_v4 = vld [vmem:[%s16070_s28 + $0x8] sm:$0xff]  ;;  %v10124_v7 = vld [vmem:[%s16070_s28 + $0x10] sm:$0xff]  ;;  %s16119_s2 = sld [smem:[#allocation182_spill]]  ;;  %s16556_s22 = smov 96   ;;  %vm4311_vm15 = vcmask 916480  }
  0x17   : > { %1271 = vperm.xlu0 %9636, %v10105_v0   ;;  %853 = vperm.xlu1 %9634, %v10105_v0   ;;  %v10132_v9 = vld [vmem:[%s16070_s28 + $0x18] sm:$0xff]  ;;  %s10176_s26 = scalar_lea.vmem %s16071_s23, %s8185_s20  ;;  %s15943_s20 = smov 66  }
  0x18   : > { %1062 = vperm.xlu2 %9635, %v10105_v0   ;;  %v10181_v19 = vld [vmem:[%s10176_s26] sm:$0xff]  ;;  %s16132_s3 = sld [smem:[#allocation183_spill]]  ;;  %s16056_s21 = smov 32  }
  0x19   : > { %v10184_v20 = vperm.slane %v10181_v19, 2  ;;  %v10187_v21 = vperm.slane %v10181_v19, 1  ;;  %v10190_v22 = vperm.slane %v10181_v19, 0  ;;  %v10210_v30 = vperm.slane %v10181_v19, 3  ;;  %s16545_s4 = sld [smem:[#allocation184_spill]]  ;;  %s10003_s23 = smov 125  }
  0x1a   : > { %v10226_v36 = vperm.slane %v10181_v19, 4 }
  0x1c   : > { %16072 = vst [vmem:[#allocation2_spill] sm:$0xff] %v10226_v36 }
  0x1f   : > { %9637 = vset.pattern.permute.xlu0 %v9976_v5  ;;  %857 = vperm.xlu1 %9634, %v10113_v4  }
  0x20   : > { %644 = vperm.xlu0 %9637, %v10105_v0   ;;  %1066 = vperm.xlu2 %9635, %v10113_v4  }
  0x27   : > { %9638 = vset.pattern.permute.xlu1 %v9973_v1 }
  0x28   : > { %648 = vperm.xlu0 %9637, %v10113_v4   ;;  %1275 = vperm.xlu1 %9638, %v10113_v4  }
  0x29   : > { %9639 = vset.pattern.permute.xlu2 %v9977_v6 }
  0x2a   : > { %1480 = vperm.xlu2 %9639, %v10105_v0  }
  0x30   : > { %652 = vperm.xlu0 %9637, %v10124_v7   ;;  %9640 = vset.pattern.permute.xlu1 %v9977_v6 }
  0x31   : > { %1484 = vperm.xlu1 %9640, %v10113_v4  }
  0x32   : > { %9641 = vset.pattern.permute.xlu2 %v9978_v8 }
  0x33   : > { %1689 = vperm.xlu2 %9641, %v10105_v0  }
  0x38   : > { %9650 = vset.pattern.permute.xlu0 %v9975_v3 }
  0x39   : > { %9642 = vset.pattern.permute.xlu1 %v9979_v10  ;;  %1074 = vperm.xlu0 %9650, %v10132_v9  }
  0x3a   : > { %1920 = vperm.xlu1 %9642, %v10105_v0  }
  0x3b   : > { %9643 = vset.pattern.permute.xlu2 %v9979_v10 }
  0x3c   : > { %1924 = vperm.xlu2 %9643, %v10113_v4  }
  0x41   : > { %9651 = vset.pattern.permute.xlu0 %v9978_v8 }
  0x42   : > { %9644 = vset.pattern.permute.xlu1 %v9980_v11  ;;  %1693 = vperm.xlu0 %9651, %v10113_v4  }
  0x43   : > { %2149 = vperm.xlu1 %9644, %v10105_v0  }
  0x44   : > { %9645 = vset.pattern.permute.xlu2 %v9980_v11 }
  0x45   : > { %2153 = vperm.xlu2 %9645, %v10113_v4  }
  0x4a   : > { %1697 = vperm.xlu0 %9651, %v10124_v7  }
  0x4b   : > { %9646 = vset.pattern.permute.xlu1 %v9976_v5 }
  0x4c   : > { %656 = vperm.xlu1 %9646, %v10132_v9  }
  0x4d   : > { %9647 = vset.pattern.permute.xlu2 %v9974_v2 }
  0x4e   : > { %861 = vperm.xlu2 %9647, %v10124_v7  }
  0x52   : > { %9660 = vset.pattern.permute.xlu0 %v9980_v11 }
  0x53   : > { %2161 = vperm.xlu0 %9660, %v10132_v9  }
  0x54   : > { %9648 = vset.pattern.permute.xlu1 %v9974_v2 }
  0x55   : > { %865 = vperm.xlu1 %9648, %v10132_v9  }
  0x56   : > { %9649 = vset.pattern.permute.xlu2 %v9975_v3 }
  0x57   : > { %1070 = vperm.xlu2 %9649, %v10124_v7  }
  0x5b   : > { %9803 = vset.pattern.permute.xlu0 %v9981_v12 }
  0x5d   : > { %9652 = vset.pattern.permute.xlu1 %v9973_v1 }
  0x5e   : > { %1279 = vperm.xlu1 %9652, %v10124_v7  }
  0x5f   : > { %9653 = vset.pattern.permute.xlu2 %v9973_v1 }
  0x60   : > { %1283 = vperm.xlu2 %9653, %v10132_v9  }
  0x66   : > { %9654 = vset.pattern.permute.xlu1 %v9977_v6 }
  0x67   : > { %1488 = vperm.xlu1 %9654, %v10124_v7  }
  0x68   : > { %9655 = vset.pattern.permute.xlu2 %v9977_v6 }
  0x69   : > { %1492 = vperm.xlu2 %9655, %v10132_v9  }
  0x6f   : > { %9656 = vset.pattern.permute.xlu1 %v9978_v8 }
  0x70   : > { %1701 = vperm.xlu1 %9656, %v10132_v9  }
  0x71   : > { %9657 = vset.pattern.permute.xlu2 %v9979_v10 }
  0x72   : > { %1928 = vperm.xlu2 %9657, %v10124_v7   ;;  %v10152_v13 = vpop.permute.xlu2 %1062 }
  0x73   : > { %v1077_v56 = vmul.f32 %v10152_v13, %v10190_v22  ;;  %v1080_v60 = vmul.f32 %v10152_v13, %v10210_v30  ;;  %v1079_v61 = vmul.f32 %v10152_v13, %v10184_v20  ;;  %v1078_v62 = vmul.f32 %v10152_v13, %v10187_v21 }
  0x74   : > { %v1081_v8 = vmul.f32 %v10152_v13, %v10226_v36 }
  0x78   : > { %9658 = vset.pattern.permute.xlu1 %v9979_v10 }
  0x79   : > { %1932 = vperm.xlu1 %9658, %v10132_v9  }
  0x7a   : > { %9659 = vset.pattern.permute.xlu2 %v9980_v11  ;;  %v10156_v14 = vpop.permute.xlu2 %1066 }
  0x7b   : > { %2157 = vperm.xlu2 %9659, %v10124_v7   ;;  %v1086_v1 = vmul.f32 %v10156_v14, %v10184_v20  ;;  %v1085_v2 = vmul.f32 %v10156_v14, %v10187_v21  ;;  %v1084_v3 = vmul.f32 %v10156_v14, %v10190_v22  ;;  %v1088_v6 = vmul.f32 %v10156_v14, %v10226_v36 }
  0x7c   : > { %v1087_v11 = vmul.f32 %v10156_v14, %v10210_v30 }
  0x81   : > { %9661 = vset.pattern.permute.xlu1 %v9981_v12 }
  0x82   : > { %554 = vperm.xlu1 %9661, %v10105_v0  }
  0x83   : > { %9662 = vset.pattern.permute.xlu2 %v9981_v12 }
  0x84   : > { %559 = vperm.xlu2 %9662, %v10113_v4   ;;  %v10166_v15 = vpop.permute.xlu2 %1480 }
  0x89   : > { %v10169_v16 = vpop.permute.xlu0 %1271  ;;  %v10171_v17 = vpop.permute.xlu1 %853 }
  0x8a   : > { %v869_v42 = vmul.f32 %v10171_v17, %v10187_v21  ;;  %v868_v43 = vmul.f32 %v10171_v17, %v10190_v22  ;;  %v871_v47 = vmul.f32 %v10171_v17, %v10210_v30  ;;  %v870_v49 = vmul.f32 %v10171_v17, %v10184_v20 }
  0x8b   : > { %v872_v58 = vmul.f32 %v10171_v17, %v10226_v36 }
  0x8d   : > { %v10178_v18 = vpop.permute.xlu2 %1689 }
  0x91   : > { %v10194_v24 = vpop.permute.xlu1 %857 }
  0x92   : > { %v10192_v23 = vpop.permute.xlu0 %644  ;;  %v875_v46 = vmul.f32 %v10194_v24, %v10190_v22  ;;  %v878_v51 = vmul.f32 %v10194_v24, %v10210_v30  ;;  %v877_v52 = vmul.f32 %v10194_v24, %v10184_v20  ;;  %v876_v53 = vmul.f32 %v10194_v24, %v10187_v21 }
  0x93   : > { %v661_v25 = vmul.f32 %v10192_v23, %v10184_v20  ;;  %v660_v26 = vmul.f32 %v10192_v23, %v10187_v21  ;;  %v659_v27 = vmul.f32 %v10192_v23, %v10190_v22  ;;  %v662_v34 = vmul.f32 %v10192_v23, %v10210_v30 }
  0x94   : > { %v663_v37 = vmul.f32 %v10192_v23, %v10226_v36  ;;  %v879_v57 = vmul.f32 %v10194_v24, %v10226_v36 }
  0x95   : > { %719 = vrot.lane.b32.xlu0 %v661_v25, %s16050_s27  ;;  %717 = vrot.lane.b32.xlu2 %v660_v26, %s16050_s27  ;;  %v1288_v26 = vmul.f32 %v10169_v16, %v10184_v20 }
  0x96   : > { %715 = vrot.lane.b32.xlu1 %v659_v27, %s16050_s27  ;;  %v10205_v28 = vpop.permute.xlu2 %1924  ;;  %v1287_v27 = vmul.f32 %v10169_v16, %v10187_v21 }
  0x9a   : > { %v10207_v29 = vpop.permute.xlu0 %648  ;;  %v10212_v31 = vpop.permute.xlu1 %1275 }
  0x9b   : > { %v667_v32 = vmul.f32 %v10207_v29, %v10187_v21  ;;  %v666_v33 = vmul.f32 %v10207_v29, %v10190_v22  ;;  %v669_v38 = vmul.f32 %v10207_v29, %v10210_v30  ;;  %v668_v39 = vmul.f32 %v10207_v29, %v10184_v20 }
  0x9c   : > { %v670_v44 = vmul.f32 %v10207_v29, %v10226_v36 }
  0x9d   : > { %731 = vrot.lane.b32.xlu0 %v667_v32, %s16050_s27  ;;  %729 = vrot.lane.b32.xlu2 %v666_v33, %s16050_s27  ;;  %v1286_v32 = vmul.f32 %v10169_v16, %v10190_v22 }
  0x9e   : > { %721 = vrot.lane.b32.xlu1 %v662_v34, %s16050_s27 }
  0x9f   : > { %v10223_v35 = vpop.permute.xlu2 %2153 }
  0xa2   : > { %v10313_v5 = vpop.permute.xlu0 %652 }
  0xa3   : > { %v10234_v40 = vpop.permute.xlu1 %1484 }
  0xa5   : > { %723 = vrot.lane.b32.xlu0 %v663_v37, %s16050_s27  ;;  %735 = vrot.lane.b32.xlu2 %v669_v38, %s16050_s27  ;;  %v1294_v38 = vmul.f32 %v10212_v31, %v10187_v21 }
  0xa6   : > { %733 = vrot.lane.b32.xlu1 %v668_v39, %s16050_s27  ;;  %v1293_v39 = vmul.f32 %v10212_v31, %v10190_v22 }
  0xa8   : > { %v10239_v41 = vpop.permute.xlu2 %861 }
  0xab   : > { %v10328_v25 = vpop.permute.xlu0 %1074 }
  0xac   : > { %v10250_v45 = vpop.permute.xlu1 %1920 }
  0xad   : > { %926 = vrot.lane.b32.xlu0 %v869_v42, %s16046_s29  ;;  %924 = vrot.lane.b32.xlu2 %v868_v43, %s16046_s29  ;;  %v1289_v42 = vmul.f32 %v10169_v16, %v10210_v30 }
  0xae   : > { %737 = vrot.lane.b32.xlu1 %v670_v44, %s16050_s27  ;;  %v1290_v44 = vmul.f32 %v10169_v16, %v10226_v36 }
  0xb1   : > { %v10256_v48 = vpop.permute.xlu2 %1070 }
  0xb4   : > { %v10343_v37 = vpop.permute.xlu0 %1693 }
  0xb5   : > { %938 = vrot.lane.b32.xlu0 %v875_v46, %s16046_s29  ;;  %930 = vrot.lane.b32.xlu2 %v871_v47, %s16046_s29  ;;  %v10263_v50 = vpop.permute.xlu1 %2149  ;;  %v1296_v46 = vmul.f32 %v10212_v31, %v10210_v30  ;;  %v1295_v47 = vmul.f32 %v10212_v31, %v10184_v20 }
  0xb6   : > { %928 = vrot.lane.b32.xlu1 %v870_v49, %s16046_s29 }
  0xba   : > { %v10273_v54 = vpop.permute.xlu2 %1283 }
  0xbd   : > { %944 = vrot.lane.b32.xlu0 %v878_v51, %s16046_s29  ;;  %942 = vrot.lane.b32.xlu2 %v877_v52, %s16046_s29  ;;  %v10364_v51 = vpop.permute.xlu0 %1697 }
  0xbe   : > { %940 = vrot.lane.b32.xlu1 %v876_v53, %s16046_s29  ;;  %v10276_v55 = vpop.permute.xlu1 %656  ;;  %16078 = vst [vmem:[#allocation8_spill] sm:$0xff] %v10364_v51  ;;  %v1496_v53 = vmul.f32 %v10166_v15, %v10187_v21 }
  0xc3   : > { %v10287_v59 = vpop.permute.xlu2 %1492 }
  0xc5   : > { %1133 = vrot.lane.b32.xlu0 %v1077_v56, %s16052_s0  ;;  %946 = vrot.lane.b32.xlu2 %v879_v57, %s16046_s29  ;;  %v1495_v56 = vmul.f32 %v10166_v15, %v10190_v22  ;;  %v1297_v57 = vmul.f32 %v10212_v31, %v10226_v36 }
  0xc6   : > { %932 = vrot.lane.b32.xlu1 %v872_v58, %s16046_s29  ;;  %v10379_v58 = vpop.permute.xlu0 %2161 }
  0xc7   : > { %v10295_v63 = vpop.permute.xlu1 %865  ;;  %16079 = vst [vmem:[#allocation9_spill] sm:$0xff] %v10379_v58 }
  0xcc   : > { %v10300_v0 = vpop.permute.xlu2 %1928 }
  0xcd   : > { %1139 = vrot.lane.b32.xlu0 %v1080_v60, %s16052_s0  ;;  %1137 = vrot.lane.b32.xlu2 %v1079_v61, %s16052_s0  ;;  %16073 = vst [vmem:[#allocation3_spill] sm:$0xff] %v10300_v0 }
  0xce   : > { %1135 = vrot.lane.b32.xlu1 %v1078_v62, %s16052_s0  ;;  %v1502_v62 = vmul.f32 %v10234_v40, %v10190_v22 }
  0xd0   : > { %v10311_v4 = vpop.permute.xlu1 %1279 }
  0xd5   : > { %1151 = vrot.lane.b32.xlu0 %v1086_v1, %s16052_s0  ;;  %1149 = vrot.lane.b32.xlu2 %v1085_v2, %s16052_s0  ;;  %v10319_v10 = vpop.permute.xlu2 %2157  ;;  %v1498_v1 = vmul.f32 %v10166_v15, %v10210_v30  ;;  %v1497_v2 = vmul.f32 %v10166_v15, %v10184_v20 }
  0xd6   : > { %1147 = vrot.lane.b32.xlu1 %v1084_v3, %s16052_s0  ;;  %16074 = vst [vmem:[#allocation4_spill] sm:$0xff] %v10319_v10 }
  0xd9   : > { %v10326_v12 = vpop.permute.xlu1 %1488 }
  0xdd   : > { %1155 = vrot.lane.b32.xlu0 %v1088_v6, %s16052_s0  ;;  %1141 = vrot.lane.b32.xlu2 %v1081_v8, %s16052_s0 }
  0xde   : > { %1153 = vrot.lane.b32.xlu1 %v1087_v11, %s16052_s0  ;;  %v10338_v33 = vpop.permute.xlu2 %559  ;;  %v1505_v11 = vmul.f32 %v10234_v40, %v10210_v30 }
  0xdf   : > { %16075 = vst [vmem:[#allocation5_spill] sm:$0xff] %v10338_v33 }
  0xe2   : > { %v10341_v34 = vpop.permute.xlu1 %1701 }
  0xe3   : > { %16076 = vst [vmem:[#allocation6_spill] sm:$0xff] %v10341_v34 }
  0xe5   : > { %1346 = vrot.lane.b32.xlu0 %v1288_v26, %s9985_s30  ;;  %1344 = vrot.lane.b32.xlu2 %v1287_v27, %s9985_s30  ;;  %v1504_v26 = vmul.f32 %v10234_v40, %v10184_v20  ;;  %v1503_v27 = vmul.f32 %v10234_v40, %v10187_v21 }
  0xe6   : > { %1342 = vrot.lane.b32.xlu1 %v1286_v32, %s9985_s30 }
  0xeb   : > { %v10362_v49 = vpop.permute.xlu1 %1932 }
  0xec   : > { %16077 = vst [vmem:[#allocation7_spill] sm:$0xff] %v10362_v49 }
  0xed   : > { %1358 = vrot.lane.b32.xlu0 %v1294_v38, %s9985_s30  ;;  %1356 = vrot.lane.b32.xlu2 %v1293_v39, %s9985_s30 }
  0xee   : > { %1348 = vrot.lane.b32.xlu1 %v1289_v42, %s9985_s30  ;;  %v1706_v42 = vmul.f32 %v10178_v18, %v10190_v22 }
  0xef   : > { %v10354_v43 = vpop.permute.xlu2 %717 }
  0xf4   : > { %v10382_v60 = vpop.permute.xlu1 %554 }
  0xf5   : > { %1350 = vrot.lane.b32.xlu0 %v1290_v44, %s9985_s30  ;;  %1362 = vrot.lane.b32.xlu2 %v1296_v46, %s9985_s30  ;;  %16080 = vst [vmem:[#allocation10_spill] sm:$0xff] %v10382_v60  ;;  %v1506_v44 = vmul.f32 %v10234_v40, %v10226_v36  ;;  %v1499_v46 = vmul.f32 %v10166_v15, %v10226_v36 }
  0xf6   : > { %1360 = vrot.lane.b32.xlu1 %v1295_v47, %s9985_s30 }
  0xf7   : > { %v10369_v52 = vpop.permute.xlu2 %729 }
  0xfd   : > { %1553 = vrot.lane.b32.xlu0 %v1496_v53, %s16048_s18  ;;  %1551 = vrot.lane.b32.xlu2 %v1495_v56, %s16048_s18 }
  0xfe   : > { %1364 = vrot.lane.b32.xlu1 %v1297_v57, %s9985_s30  ;;  %v1709_v57 = vmul.f32 %v10178_v18, %v10210_v30 }
  0xff   : > { %v10384_v61 = vpop.permute.xlu2 %735 }
 0x105   : > { %1565 = vrot.lane.b32.xlu0 %v1502_v62, %s16048_s18  ;;  %1557 = vrot.lane.b32.xlu2 %v1498_v1, %s16048_s18  ;;  %v1708_v62 = vmul.f32 %v10178_v18, %v10184_v20  ;;  %v1707_v1 = vmul.f32 %v10178_v18, %v10187_v21 }
 0x106   : > { %1555 = vrot.lane.b32.xlu1 %v1497_v2, %s16048_s18 }
 0x107   : > { %v10395_v3 = vpop.permute.xlu0 %719  ;;  %v10397_v6 = vpop.permute.xlu2 %924 }
 0x108   : > { %v10399_v8 = vpop.permute.xlu1 %715 }
 0x10d   : > { %1571 = vrot.lane.b32.xlu0 %v1505_v11, %s16048_s18  ;;  %1569 = vrot.lane.b32.xlu2 %v1504_v26, %s16048_s18 }
 0x10e   : > { %1567 = vrot.lane.b32.xlu1 %v1503_v27, %s16048_s18  ;;  %v1716_v27 = vmul.f32 %v10343_v37, %v10184_v20 }
 0x10f   : > { %v10410_v32 = vpop.permute.xlu0 %731  ;;  %v10412_v38 = vpop.permute.xlu2 %930 }
 0x110   : > { %16081 = vst [vmem:[#allocation11_spill] sm:$0xff] %v10412_v38  ;;  %v10414_v39 = vpop.permute.xlu1 %721  ;;  %v1935_v38 = vmul.f32 %v10250_v45, %v10190_v22 }
 0x115   : > { %1770 = vrot.lane.b32.xlu0 %v1706_v42, %s9987_s19  ;;  %1573 = vrot.lane.b32.xlu2 %v1506_v44, %s16048_s18  ;;  %v1715_v42 = vmul.f32 %v10343_v37, %v10187_v21  ;;  %v1714_v44 = vmul.f32 %v10343_v37, %v10190_v22 }
 0x116   : > { %1559 = vrot.lane.b32.xlu1 %v1499_v46, %s16048_s18 }
 0x117   : > { %v10425_v47 = vpop.permute.xlu0 %723  ;;  %v10427_v53 = vpop.permute.xlu2 %942 }
 0x118   : > { %16082 = vst [vmem:[#allocation12_spill] sm:$0xff] %v10425_v47  ;;  %v10429_v56 = vpop.permute.xlu1 %733 }
 0x119   : > { %16083 = vst [vmem:[#allocation13_spill] sm:$0xff] %v10427_v53  ;;  %v1717_v53 = vmul.f32 %v10343_v37, %v10210_v30 }
 0x11d   : > { %1776 = vrot.lane.b32.xlu0 %v1709_v57, %s9987_s19  ;;  %1774 = vrot.lane.b32.xlu2 %v1708_v62, %s9987_s19 }
 0x11e   : > { %1772 = vrot.lane.b32.xlu1 %v1707_v1, %s9987_s19  ;;  %v1718_v1 = vmul.f32 %v10343_v37, %v10226_v36 }
 0x11f   : > { %v10440_v2 = vpop.permute.xlu0 %926  ;;  %v10442_v11 = vpop.permute.xlu2 %946 }
 0x120   : > { %16084 = vst [vmem:[#allocation14_spill] sm:$0xff] %v10442_v11  ;;  %v10444_v26 = vpop.permute.xlu1 %737  ;;  %v1710_v11 = vmul.f32 %v10178_v18, %v10226_v36 }
 0x125   : > { %1790 = vrot.lane.b32.xlu0 %v1716_v27, %s9987_s19  ;;  %1788 = vrot.lane.b32.xlu2 %v1715_v42, %s9987_s19 }
 0x126   : > { %1786 = vrot.lane.b32.xlu1 %v1714_v44, %s9987_s19 }
 0x127   : > { %v10455_v46 = vpop.permute.xlu0 %938  ;;  %v10457_v57 = vpop.permute.xlu2 %1137 }
 0x128   : > { %16085 = vst [vmem:[#allocation15_spill] sm:$0xff] %v10455_v46  ;;  %v10459_v62 = vpop.permute.xlu1 %928  ;;  %v1936_v46 = vmul.f32 %v10250_v45, %v10187_v21 }
 0x129   : > { %16086 = vst [vmem:[#allocation16_spill] sm:$0xff] %v10457_v57  ;;  %v1937_v57 = vmul.f32 %v10250_v45, %v10184_v20 }
 0x12d   : > { %1794 = vrot.lane.b32.xlu0 %v1718_v1, %s9987_s19  ;;  %1778 = vrot.lane.b32.xlu2 %v1710_v11, %s9987_s19 }
 0x12e   : > { %1792 = vrot.lane.b32.xlu1 %v1717_v53, %s9987_s19 }
 0x12f   : > { %v10470_v27 = vpop.permute.xlu0 %944  ;;  %v10472_v42 = vpop.permute.xlu2 %1149 }
 0x130   : > { %16087 = vst [vmem:[#allocation17_spill] sm:$0xff] %v10470_v27  ;;  %v10474_v44 = vpop.permute.xlu1 %940  ;;  %v1938_v27 = vmul.f32 %v10250_v45, %v10210_v30 }
 0x131   : > { %16088 = vst [vmem:[#allocation18_spill] sm:$0xff] %v10472_v42  ;;  %v1944_v42 = vmul.f32 %v10205_v28, %v10187_v21 }
 0x132   : > { %16089 = vst [vmem:[#allocation19_spill] sm:$0xff] %v10474_v44  ;;  %v1943_v44 = vmul.f32 %v10205_v28, %v10190_v22 }
 0x135   : > { %2003 = vrot.lane.b32.xlu0 %v1937_v57, %s15878_s1  ;;  %2001 = vrot.lane.b32.xlu2 %v1936_v46, %s15878_s1 }
 0x136   : > { %1999 = vrot.lane.b32.xlu1 %v1935_v38, %s15878_s1 }
 0x137   : > { %v10485_v53 = vpop.permute.xlu0 %1133  ;;  %v10487_v11 = vpop.permute.xlu2 %1141 }
 0x138   : > { %16090 = vst [vmem:[#allocation20_spill] sm:$0xff] %v10485_v53  ;;  %v10489_v1 = vpop.permute.xlu1 %932  ;;  %v1939_v53 = vmul.f32 %v10250_v45, %v10226_v36 }
 0x139   : > { %16091 = vst [vmem:[#allocation21_spill] sm:$0xff] %v10487_v11  ;;  %v1946_v11 = vmul.f32 %v10205_v28, %v10210_v30 }
 0x13a   : > { %16092 = vst [vmem:[#allocation22_spill] sm:$0xff] %v10489_v1  ;;  %v1945_v1 = vmul.f32 %v10205_v28, %v10184_v20 }
 0x13d   : > { %2017 = vrot.lane.b32.xlu0 %v1944_v42, %s15878_s1  ;;  %2015 = vrot.lane.b32.xlu2 %v1943_v44, %s15878_s1 }
 0x13e   : > { %2005 = vrot.lane.b32.xlu1 %v1938_v27, %s15878_s1 }
 0x13f   : > { %v10500_v38 = vpop.permute.xlu0 %1139  ;;  %v10502_v46 = vpop.permute.xlu2 %1344 }
 0x140   : > { %16093 = vst [vmem:[#allocation23_spill] sm:$0xff] %v10500_v38  ;;  %v10504_v57 = vpop.permute.xlu1 %1135  ;;  %v1947_v38 = vmul.f32 %v10205_v28, %v10226_v36 }
 0x141   : > { %16094 = vst [vmem:[#allocation24_spill] sm:$0xff] %v10502_v46  ;;  %v2165_v46 = vmul.f32 %v10263_v50, %v10187_v21 }
 0x142   : > { %16095 = vst [vmem:[#allocation25_spill] sm:$0xff] %v10504_v57  ;;  %v2164_v57 = vmul.f32 %v10263_v50, %v10190_v22 }
 0x145   : > { %2007 = vrot.lane.b32.xlu0 %v1939_v53, %s15878_s1  ;;  %2021 = vrot.lane.b32.xlu2 %v1946_v11, %s15878_s1 }
 0x146   : > { %2019 = vrot.lane.b32.xlu1 %v1945_v1, %s15878_s1 }
 0x147   : > { %v10515_v27 = vpop.permute.xlu0 %1151  ;;  %v10517_v42 = vpop.permute.xlu2 %1356 }
 0x148   : > { %16096 = vst [vmem:[#allocation26_spill] sm:$0xff] %v10515_v27  ;;  %v10519_v44 = vpop.permute.xlu1 %1147  ;;  %v2166_v27 = vmul.f32 %v10263_v50, %v10184_v20 }
 0x149   : > { %16097 = vst [vmem:[#allocation27_spill] sm:$0xff] %v10517_v42  ;;  %v2172_v42 = vmul.f32 %v10223_v35, %v10190_v22 }
 0x14a   : > { %16098 = vst [vmem:[#allocation28_spill] sm:$0xff] %v10519_v44  ;;  %v2167_v44 = vmul.f32 %v10263_v50, %v10210_v30 }
 0x14d   : > { %2230 = vrot.lane.b32.xlu0 %v2165_v46, %s15943_s20  ;;  %2228 = vrot.lane.b32.xlu2 %v2164_v57, %s15943_s20 }
 0x14e   : > { %2023 = vrot.lane.b32.xlu1 %v1947_v38, %s15878_s1  ;;  %s16175_s1 = smov 67  }
 0x14f   : > { %v10530_v53 = vpop.permute.xlu0 %1155  ;;  %v10532_v11 = vpop.permute.xlu2 %1362 }
 0x150   : > { %16099 = vst [vmem:[#allocation29_spill] sm:$0xff] %v10530_v53  ;;  %v10534_v1 = vpop.permute.xlu1 %1153  ;;  %v2174_v53 = vmul.f32 %v10223_v35, %v10184_v20 }
 0x151   : > { %16100 = vst [vmem:[#allocation30_spill] sm:$0xff] %v10532_v11  ;;  %v2175_v11 = vmul.f32 %v10223_v35, %v10210_v30 }
 0x152   : > { %16101 = vst [vmem:[#allocation31_spill] sm:$0xff] %v10534_v1  ;;  %v2173_v1 = vmul.f32 %v10223_v35, %v10187_v21 }
 0x155   : > { %2244 = vrot.lane.b32.xlu0 %v2172_v42, %s15943_s20  ;;  %2234 = vrot.lane.b32.xlu2 %v2167_v44, %s15943_s20 }
 0x156   : > { %2232 = vrot.lane.b32.xlu1 %v2166_v27, %s15943_s20 }
 0x157   : > { %v10545_v38 = vpop.permute.xlu0 %1346  ;;  %v10547_v46 = vpop.permute.xlu2 %1551 }
 0x158   : > { %16102 = vst [vmem:[#allocation32_spill] sm:$0xff] %v10547_v46  ;;  %v10549_v57 = vpop.permute.xlu1 %1342  ;;  %v673_v46 = vmul.f32 %v10313_v5, %v10190_v22 }
 0x159   : > { %16103 = vst [vmem:[#allocation33_spill] sm:$0xff] %v10549_v57 }
 0x15d   : > { %2250 = vrot.lane.b32.xlu0 %v2175_v11, %s15943_s20  ;;  %2248 = vrot.lane.b32.xlu2 %v2174_v53, %s15943_s20 }
 0x15e   : > { %2246 = vrot.lane.b32.xlu1 %v2173_v1, %s15943_s20 }
 0x15f   : > { %v10560_v27 = vpop.permute.xlu0 %1358  ;;  %v10562_v42 = vpop.permute.xlu2 %1557 }
 0x160   : > { %16104 = vst [vmem:[#allocation34_spill] sm:$0xff] %v10560_v27  ;;  %v10564_v44 = vpop.permute.xlu1 %1348  ;;  %v674_v27 = vmul.f32 %v10313_v5, %v10187_v21 }
 0x161   : > { %16105 = vst [vmem:[#allocation35_spill] sm:$0xff] %v10562_v42  ;;  %v676_v42 = vmul.f32 %v10313_v5, %v10210_v30 }
 0x162   : > { %16106 = vst [vmem:[#allocation36_spill] sm:$0xff] %v10564_v44  ;;  %v675_v44 = vmul.f32 %v10313_v5, %v10184_v20 }
 0x165   : > { %743 = vrot.lane.b32.xlu0 %v673_v46, %s16050_s27  ;;  %569 = vperm.xlu2 %9662, %v10132_v9  }
 0x166   : > { %564 = vperm.xlu1 %9661, %v10124_v7  }
 0x167   : > { %v10571_v11 = vpop.permute.xlu0 %1350  ;;  %v10573_v53 = vpop.permute.xlu2 %1569 }
 0x168   : > { %16107 = vst [vmem:[#allocation37_spill] sm:$0xff] %v10571_v11  ;;  %v10575_v1 = vpop.permute.xlu1 %1360  ;;  %v680_v11 = vmul.f32 %v10276_v55, %v10190_v22 }
 0x169   : > { %16108 = vst [vmem:[#allocation38_spill] sm:$0xff] %v10573_v53  ;;  %v682_v53 = vmul.f32 %v10276_v55, %v10184_v20 }
 0x16a   : > { %16109 = vst [vmem:[#allocation39_spill] sm:$0xff] %v10575_v1  ;;  %v681_v1 = vmul.f32 %v10276_v55, %v10187_v21 }
 0x16d   : > { %749 = vrot.lane.b32.xlu0 %v676_v42, %s16050_s27  ;;  %747 = vrot.lane.b32.xlu2 %v675_v44, %s16050_s27 }
 0x16e   : > { %745 = vrot.lane.b32.xlu1 %v674_v27, %s16050_s27 }
 0x16f   : > { %v10586_v7 = vpop.permute.xlu0 %1553  ;;  %v10588_v9 = vpop.permute.xlu2 %1573 }
 0x170   : > { %16110 = vst [vmem:[#allocation40_spill] sm:$0xff] %v10586_v7  ;;  %v10590_v46 = vpop.permute.xlu1 %1364  ;;  %v683_v7 = vmul.f32 %v10276_v55, %v10210_v30 }
 0x171   : > { %16111 = vst [vmem:[#allocation41_spill] sm:$0xff] %v10588_v9  ;;  %v2176_v9 = vmul.f32 %v10223_v35, %v10226_v36 }
 0x172   : > { %16112 = vst [vmem:[#allocation42_spill] sm:$0xff] %v10590_v46  ;;  %v2168_v46 = vmul.f32 %v10263_v50, %v10226_v36 }
 0x175   : > { %761 = vrot.lane.b32.xlu0 %v682_v53, %s16050_s27  ;;  %759 = vrot.lane.b32.xlu2 %v681_v1, %s16050_s27 }
 0x176   : > { %757 = vrot.lane.b32.xlu1 %v680_v11, %s16050_s27 }
 0x177   : > { %v10601_v27 = vpop.permute.xlu0 %1565  ;;  %v10603_v42 = vpop.permute.xlu2 %1774 }
 0x178   : > { %16113 = vst [vmem:[#allocation43_spill] sm:$0xff] %v10601_v27  ;;  %v10605_v44 = vpop.permute.xlu1 %1555  ;;  %v677_v27 = vmul.f32 %v10313_v5, %v10226_v36 }
 0x179   : > { %16114 = vst [vmem:[#allocation44_spill] sm:$0xff] %v10603_v42  ;;  %v2378_v42 = vld [vmem:[%s16119_s2 + $0x8] sm:$0xff] }
 0x17a   : > { %16115 = vst [vmem:[#allocation45_spill] sm:$0xff] %v10605_v44  ;;  %v684_v44 = vmul.f32 %v10276_v55, %v10226_v36 }
 0x17d   : > { %2252 = vrot.lane.b32.xlu0 %v2176_v9, %s15943_s20  ;;  %2236 = vrot.lane.b32.xlu2 %v2168_v46, %s15943_s20  ;;  %v2377_v9 = vld [vmem:[%s16119_s2] sm:$0xff] }
 0x17e   : > { %763 = vrot.lane.b32.xlu1 %v683_v7, %s16050_s27 }
 0x17f   : > { %v10616_v11 = vpop.permute.xlu0 %1571  ;;  %v10618_v53 = vpop.permute.xlu2 %1788 }
 0x180   : > { %16116 = vst [vmem:[#allocation46_spill] sm:$0xff] %v10616_v11  ;;  %v10620_v1 = vpop.permute.xlu1 %1567  ;;  %v882_v11 = vmul.f32 %v10239_v41, %v10190_v22 }
 0x181   : > { %16117 = vst [vmem:[#allocation47_spill] sm:$0xff] %v10618_v53 }
 0x182   : > { %16118 = vst [vmem:[#allocation48_spill] sm:$0xff] %v10620_v1  ;;  %v883_v1 = vmul.f32 %v10239_v41, %v10187_v21 }
 0x185   : > { %751 = vrot.lane.b32.xlu0 %v677_v27, %s16050_s27  ;;  %2388 = vperm.xlu2 %9662, %v2378_v42  }
 0x186   : > { %2383 = vperm.xlu1 %9661, %v2377_v9  }
 0x187   : > { %v10631_v7 = vpop.permute.xlu0 %1770  ;;  %v10633_v46 = vpop.permute.xlu2 %1778 }
 0x188   : > { %16120 = vst [vmem:[#allocation49_spill] sm:$0xff] %v10631_v7  ;;  %v10635_v53 = vpop.permute.xlu1 %1559  ;;  %v889_v7 = vmul.f32 %v10295_v63, %v10190_v22 }
 0x189   : > { %16121 = vst [vmem:[#allocation50_spill] sm:$0xff] %v10633_v46  ;;  %v885_v46 = vmul.f32 %v10239_v41, %v10210_v30 }
 0x18a   : > { %16122 = vst [vmem:[#allocation51_spill] sm:$0xff] %v10635_v53  ;;  %v884_v53 = vmul.f32 %v10239_v41, %v10184_v20 }
 0x18d   : > { %954 = vrot.lane.b32.xlu0 %v883_v1, %s16046_s29  ;;  %952 = vrot.lane.b32.xlu2 %v882_v11, %s16046_s29 }
 0x18e   : > { %765 = vrot.lane.b32.xlu1 %v684_v44, %s16050_s27 }
 0x18f   : > { %v10646_v27 = vpop.permute.xlu0 %1776  ;;  %v10648_v42 = vpop.permute.xlu2 %2001 }
 0x190   : > { %16123 = vst [vmem:[#allocation52_spill] sm:$0xff] %v10646_v27  ;;  %v10650_v9 = vpop.permute.xlu1 %1772  ;;  %v890_v27 = vmul.f32 %v10295_v63, %v10187_v21 }
 0x191   : > { %16124 = vst [vmem:[#allocation53_spill] sm:$0xff] %v10648_v42  ;;  %v892_v42 = vmul.f32 %v10295_v63, %v10210_v30 }
 0x192   : > { %16125 = vst [vmem:[#allocation54_spill] sm:$0xff] %v10650_v9  ;;  %v891_v9 = vmul.f32 %v10295_v63, %v10184_v20 }
 0x195   : > { %966 = vrot.lane.b32.xlu0 %v889_v7, %s16046_s29  ;;  %958 = vrot.lane.b32.xlu2 %v885_v46, %s16046_s29 }
 0x196   : > { %956 = vrot.lane.b32.xlu1 %v884_v53, %s16046_s29 }
 0x197   : > { %v10661_v44 = vpop.permute.xlu0 %1790  ;;  %v10663_v11 = vpop.permute.xlu2 %2015 }
 0x198   : > { %16126 = vst [vmem:[#allocation55_spill] sm:$0xff] %v10661_v44  ;;  %v10665_v1 = vpop.permute.xlu1 %1786  ;;  %v886_v44 = vmul.f32 %v10239_v41, %v10226_v36 }
 0x199   : > { %16127 = vst [vmem:[#allocation56_spill] sm:$0xff] %v10663_v11  ;;  %v2430_v11 = vld [vmem:[%s16132_s3 + $0x8] sm:$0xff] }
 0x19a   : > { %16128 = vst [vmem:[#allocation57_spill] sm:$0xff] %v10665_v1  ;;  %v893_v1 = vmul.f32 %v10295_v63, %v10226_v36 }
 0x19d   : > { %972 = vrot.lane.b32.xlu0 %v892_v42, %s16046_s29  ;;  %970 = vrot.lane.b32.xlu2 %v891_v9, %s16046_s29  ;;  %v2429_v42 = vld [vmem:[%s16132_s3] sm:$0xff] }
 0x19e   : > { %968 = vrot.lane.b32.xlu1 %v890_v27, %s16046_s29 }
 0x19f   : > { %v10676_v53 = vpop.permute.xlu0 %1794  ;;  %v10678_v7 = vpop.permute.xlu2 %2021 }
 0x1a0   : > { %16129 = vst [vmem:[#allocation58_spill] sm:$0xff] %v10676_v53  ;;  %v10680_v46 = vpop.permute.xlu1 %1792  ;;  %v1092_v53 = vmul.f32 %v10256_v48, %v10187_v21 }
 0x1a1   : > { %16130 = vst [vmem:[#allocation59_spill] sm:$0xff] %v10678_v7 }
 0x1a2   : > { %16131 = vst [vmem:[#allocation60_spill] sm:$0xff] %v10680_v46  ;;  %v1091_v46 = vmul.f32 %v10256_v48, %v10190_v22 }
 0x1a5   : > { %960 = vrot.lane.b32.xlu0 %v886_v44, %s16046_s29  ;;  %2440 = vperm.xlu2 %9662, %v2430_v11  }
 0x1a6   : > { %2435 = vperm.xlu1 %9661, %v2429_v42  }
 0x1a7   : > { %v10691_v27 = vpop.permute.xlu0 %2003  ;;  %v10693_v9 = vpop.permute.xlu2 %2228 }
 0x1a8   : > { %16133 = vst [vmem:[#allocation61_spill] sm:$0xff] %v10691_v27  ;;  %v10695_v7 = vpop.permute.xlu1 %1999  ;;  %v1093_v27 = vmul.f32 %v10256_v48, %v10184_v20 }
 0x1a9   : > { %16134 = vst [vmem:[#allocation62_spill] sm:$0xff] %v10693_v9  ;;  %v1098_v9 = vmul.f32 %v10328_v25, %v10190_v22 }
 0x1aa   : > { %16135 = vst [vmem:[#allocation63_spill] sm:$0xff] %v10695_v7  ;;  %v1094_v7 = vmul.f32 %v10256_v48, %v10210_v30 }
 0x1ad   : > { %1163 = vrot.lane.b32.xlu0 %v1092_v53, %s16052_s0  ;;  %1161 = vrot.lane.b32.xlu2 %v1091_v46, %s16052_s0 }
 0x1ae   : > { %974 = vrot.lane.b32.xlu1 %v893_v1, %s16046_s29 }
 0x1af   : > { %v10706_v44 = vpop.permute.xlu0 %2017  ;;  %v10708_v11 = vpop.permute.xlu2 %2234 }
 0x1b0   : > { %16136 = vst [vmem:[#allocation64_spill] sm:$0xff] %v10706_v44  ;;  %v10710_v42 = vpop.permute.xlu1 %2005  ;;  %v1099_v44 = vmul.f32 %v10328_v25, %v10187_v21 }
 0x1b1   : > { %16137 = vst [vmem:[#allocation65_spill] sm:$0xff] %v10708_v11  ;;  %v1101_v11 = vmul.f32 %v10328_v25, %v10210_v30 }
 0x1b2   : > { %16138 = vst [vmem:[#allocation66_spill] sm:$0xff] %v10710_v42  ;;  %v1100_v42 = vmul.f32 %v10328_v25, %v10184_v20 }
 0x1b5   : > { %1175 = vrot.lane.b32.xlu0 %v1098_v9, %s16052_s0  ;;  %1167 = vrot.lane.b32.xlu2 %v1094_v7, %s16052_s0 }
 0x1b6   : > { %1165 = vrot.lane.b32.xlu1 %v1093_v27, %s16052_s0 }
 0x1b7   : > { %v10721_v1 = vpop.permute.xlu0 %2007  ;;  %v10723_v53 = vpop.permute.xlu2 %2248 }
 0x1b8   : > { %16139 = vst [vmem:[#allocation67_spill] sm:$0xff] %v10721_v1  ;;  %v10725_v46 = vpop.permute.xlu1 %2019  ;;  %v1095_v1 = vmul.f32 %v10256_v48, %v10226_v36 }
 0x1b9   : > { %16140 = vst [vmem:[#allocation68_spill] sm:$0xff] %v10723_v53  ;;  %v1300_v53 = vmul.f32 %v10311_v4, %v10190_v22 }
 0x1ba   : > { %16141 = vst [vmem:[#allocation69_spill] sm:$0xff] %v10725_v46  ;;  %v1102_v46 = vmul.f32 %v10328_v25, %v10226_v36 }
 0x1bd   : > { %1181 = vrot.lane.b32.xlu0 %v1101_v11, %s16052_s0  ;;  %1179 = vrot.lane.b32.xlu2 %v1100_v42, %s16052_s0 }
 0x1be   : > { %1177 = vrot.lane.b32.xlu1 %v1099_v44, %s16052_s0 }
 0x1bf   : > { %v10736_v7 = vpop.permute.xlu0 %2230  ;;  %v10738_v27 = vpop.permute.xlu2 %569 }
 0x1c0   : > { %16142 = vst [vmem:[#allocation70_spill] sm:$0xff] %v10736_v7  ;;  %v10740_v9 = vpop.permute.xlu1 %2023  ;;  %v1301_v7 = vmul.f32 %v10311_v4, %v10187_v21 }
 0x1c1   : > { %16143 = vst [vmem:[#allocation71_spill] sm:$0xff] %v10738_v27  ;;  %v1303_v27 = vmul.f32 %v10311_v4, %v10210_v30 }
 0x1c2   : > { %16144 = vst [vmem:[#allocation72_spill] sm:$0xff] %v10740_v9  ;;  %v1302_v9 = vmul.f32 %v10311_v4, %v10184_v20 }
 0x1c5   : > { %1370 = vrot.lane.b32.xlu0 %v1300_v53, %s9985_s30  ;;  %1183 = vrot.lane.b32.xlu2 %v1102_v46, %s16052_s0 }
 0x1c6   : > { %1169 = vrot.lane.b32.xlu1 %v1095_v1, %s16052_s0 }
 0x1c7   : > { %v10751_v44 = vpop.permute.xlu0 %2244  ;;  %v10753_v11 = vpop.permute.xlu2 %747 }
 0x1c8   : > { %16145 = vst [vmem:[#allocation73_spill] sm:$0xff] %v10751_v44  ;;  %v10755_v42 = vpop.permute.xlu1 %2232  ;;  %v1308_v44 = vmul.f32 %v10273_v54, %v10187_v21 }
 0x1c9   : > { %16146 = vst [vmem:[#allocation74_spill] sm:$0xff] %v10753_v11  ;;  %v1309_v11 = vmul.f32 %v10273_v54, %v10184_v20 }
 0x1ca   : > { %16147 = vst [vmem:[#allocation75_spill] sm:$0xff] %v10755_v42  ;;  %v1307_v42 = vmul.f32 %v10273_v54, %v10190_v22 }
 0x1cd   : > { %1376 = vrot.lane.b32.xlu0 %v1303_v27, %s9985_s30  ;;  %1374 = vrot.lane.b32.xlu2 %v1302_v9, %s9985_s30 }
 0x1ce   : > { %1372 = vrot.lane.b32.xlu1 %v1301_v7, %s9985_s30 }
 0x1cf   : > { %v10766_v1 = vpop.permute.xlu0 %2250  ;;  %v10768_v53 = vpop.permute.xlu2 %759 }
 0x1d0   : > { %16148 = vst [vmem:[#allocation76_spill] sm:$0xff] %v10766_v1  ;;  %v10770_v46 = vpop.permute.xlu1 %2246  ;;  %v1304_v1 = vmul.f32 %v10311_v4, %v10226_v36 }
 0x1d1   : > { %16149 = vst [vmem:[#allocation77_spill] sm:$0xff] %v10768_v53  ;;  %v1311_v53 = vmul.f32 %v10273_v54, %v10226_v36 }
 0x1d2   : > { %16150 = vst [vmem:[#allocation78_spill] sm:$0xff] %v10770_v46  ;;  %v1310_v46 = vmul.f32 %v10273_v54, %v10210_v30 }
 0x1d5   : > { %1388 = vrot.lane.b32.xlu0 %v1309_v11, %s9985_s30  ;;  %1386 = vrot.lane.b32.xlu2 %v1308_v44, %s9985_s30 }
 0x1d6   : > { %1384 = vrot.lane.b32.xlu1 %v1307_v42, %s9985_s30 }
 0x1d7   : > { %v10781_v7 = vpop.permute.xlu0 %743  ;;  %v10783_v27 = vpop.permute.xlu2 %2236 }
 0x1d8   : > { %16151 = vst [vmem:[#allocation79_spill] sm:$0xff] %v10781_v7  ;;  %v10785_v9 = vpop.permute.xlu1 %564  ;;  %v1511_v7 = vmul.f32 %v10326_v12, %v10184_v20 }
 0x1d9   : > { %16152 = vst [vmem:[#allocation80_spill] sm:$0xff] %v10783_v27  ;;  %v1509_v27 = vmul.f32 %v10326_v12, %v10190_v22 }
 0x1da   : > { %16153 = vst [vmem:[#allocation81_spill] sm:$0xff] %v10785_v9  ;;  %v1510_v9 = vmul.f32 %v10326_v12, %v10187_v21 }
 0x1dd   : > { %1392 = vrot.lane.b32.xlu0 %v1311_v53, %s9985_s30  ;;  %1378 = vrot.lane.b32.xlu2 %v1304_v1, %s9985_s30 }
 0x1de   : > { %1390 = vrot.lane.b32.xlu1 %v1310_v46, %s9985_s30 }
 0x1df   : > { %v10796_v44 = vpop.permute.xlu0 %749  ;;  %v10798_v11 = vpop.permute.xlu2 %2388 }
 0x1e0   : > { %16154 = vst [vmem:[#allocation82_spill] sm:$0xff] %v10796_v44  ;;  %v10800_v42 = vpop.permute.xlu1 %745  ;;  %v1512_v44 = vmul.f32 %v10326_v12, %v10210_v30 }
 0x1e1   : > { %16155 = vst [vmem:[#allocation83_spill] sm:$0xff] %v10798_v11  ;;  %v1517_v11 = vmul.f32 %v10287_v59, %v10187_v21 }
 0x1e2   : > { %16156 = vst [vmem:[#allocation84_spill] sm:$0xff] %v10800_v42  ;;  %v1516_v42 = vmul.f32 %v10287_v59, %v10190_v22 }
 0x1e5   : > { %1583 = vrot.lane.b32.xlu0 %v1511_v7, %s16048_s18  ;;  %1581 = vrot.lane.b32.xlu2 %v1510_v9, %s16048_s18 }
 0x1e6   : > { %1579 = vrot.lane.b32.xlu1 %v1509_v27, %s16048_s18 }
 0x1e7   : > { %v10811_v1 = vpop.permute.xlu0 %761  ;;  %v10813_v53 = vpop.permute.xlu2 %952 }
 0x1e8   : > { %16157 = vst [vmem:[#allocation85_spill] sm:$0xff] %v10811_v1  ;;  %v10815_v46 = vpop.permute.xlu1 %757  ;;  %v1518_v1 = vmul.f32 %v10287_v59, %v10184_v20 }
 0x1e9   : > { %16158 = vst [vmem:[#allocation86_spill] sm:$0xff] %v10813_v53  ;;  %v1513_v53 = vmul.f32 %v10326_v12, %v10226_v36 }
 0x1ea   : > { %16159 = vst [vmem:[#allocation87_spill] sm:$0xff] %v10815_v46  ;;  %v1519_v46 = vmul.f32 %v10287_v59, %v10210_v30 }
 0x1ed   : > { %1595 = vrot.lane.b32.xlu0 %v1517_v11, %s16048_s18  ;;  %1593 = vrot.lane.b32.xlu2 %v1516_v42, %s16048_s18 }
 0x1ee   : > { %1585 = vrot.lane.b32.xlu1 %v1512_v44, %s16048_s18 }
 0x1ef   : > { %v10826_v7 = vpop.permute.xlu0 %2252  ;;  %v10828_v27 = vpop.permute.xlu2 %958 }
 0x1f0   : > { %16160 = vst [vmem:[#allocation88_spill] sm:$0xff] %v10826_v7  ;;  %v10830_v9 = vpop.permute.xlu1 %763  ;;  %v1520_v7 = vmul.f32 %v10287_v59, %v10226_v36 }
 0x1f1   : > { %16161 = vst [vmem:[#allocation89_spill] sm:$0xff] %v10828_v27  ;;  %v1723_v27 = vmul.f32 %v10364_v51, %v10187_v21 }
 0x1f2   : > { %16162 = vst [vmem:[#allocation90_spill] sm:$0xff] %v10830_v9  ;;  %v1722_v9 = vmul.f32 %v10364_v51, %v10190_v22 }
 0x1f5   : > { %1587 = vrot.lane.b32.xlu0 %v1513_v53, %s16048_s18  ;;  %1599 = vrot.lane.b32.xlu2 %v1519_v46, %s16048_s18 }
 0x1f6   : > { %1597 = vrot.lane.b32.xlu1 %v1518_v1, %s16048_s18 }
 0x1f7   : > { %v10841_v44 = vpop.permute.xlu0 %751  ;;  %v10843_v11 = vpop.permute.xlu2 %970 }
 0x1f8   : > { %16163 = vst [vmem:[#allocation91_spill] sm:$0xff] %v10841_v44  ;;  %v10845_v42 = vpop.permute.xlu1 %2383  ;;  %v1724_v44 = vmul.f32 %v10364_v51, %v10184_v20 }
 0x1f9   : > { %16164 = vst [vmem:[#allocation92_spill] sm:$0xff] %v10843_v11  ;;  %v1730_v11 = vmul.f32 %v10341_v34, %v10190_v22 }
 0x1fa   : > { %16165 = vst [vmem:[#allocation93_spill] sm:$0xff] %v10845_v42  ;;  %v1725_v42 = vmul.f32 %v10364_v51, %v10210_v30 }
 0x1fd   : > { %1804 = vrot.lane.b32.xlu0 %v1723_v27, %s9987_s19  ;;  %1802 = vrot.lane.b32.xlu2 %v1722_v9, %s9987_s19 }
 0x1fe   : > { %1601 = vrot.lane.b32.xlu1 %v1520_v7, %s16048_s18 }
 0x1ff   : > { %v10856_v1 = vpop.permute.xlu0 %954  ;;  %v10858_v53 = vpop.permute.xlu2 %2440 }
 0x200   : > { %16166 = vst [vmem:[#allocation94_spill] sm:$0xff] %v10856_v1  ;;  %v10860_v46 = vpop.permute.xlu1 %765  ;;  %v1732_v1 = vmul.f32 %v10341_v34, %v10184_v20 }
 0x201   : > { %16167 = vst [vmem:[#allocation95_spill] sm:$0xff] %v10858_v53  ;;  %v1731_v53 = vmul.f32 %v10341_v34, %v10187_v21 }
 0x202   : > { %16168 = vst [vmem:[#allocation96_spill] sm:$0xff] %v10860_v46  ;;  %v1733_v46 = vmul.f32 %v10341_v34, %v10210_v30 }
 0x205   : > { %1818 = vrot.lane.b32.xlu0 %v1730_v11, %s9987_s19  ;;  %1808 = vrot.lane.b32.xlu2 %v1725_v42, %s9987_s19 }
 0x206   : > { %1806 = vrot.lane.b32.xlu1 %v1724_v44, %s9987_s19 }
 0x207   : > { %v10871_v7 = vpop.permute.xlu0 %966  ;;  %v10873_v27 = vpop.permute.xlu2 %1161 }
 0x208   : > { %16169 = vst [vmem:[#allocation97_spill] sm:$0xff] %v10871_v7  ;;  %v10875_v9 = vpop.permute.xlu1 %956  ;;  %v1734_v7 = vmul.f32 %v10341_v34, %v10226_v36 }
 0x209   : > { %16170 = vst [vmem:[#allocation98_spill] sm:$0xff] %v10873_v27  ;;  %v1951_v27 = vmul.f32 %v10300_v0, %v10190_v22 }
 0x20a   : > { %16171 = vst [vmem:[#allocation99_spill] sm:$0xff] %v10875_v9  ;;  %v1726_v9 = vmul.f32 %v10364_v51, %v10226_v36 }
 0x20d   : > { %1824 = vrot.lane.b32.xlu0 %v1733_v46, %s9987_s19  ;;  %1822 = vrot.lane.b32.xlu2 %v1732_v1, %s9987_s19 }
 0x20e   : > { %1820 = vrot.lane.b32.xlu1 %v1731_v53, %s9987_s19 }
 0x20f   : > { %v10886_v44 = vpop.permute.xlu0 %972  ;;  %v10888_v11 = vpop.permute.xlu2 %1167 }
 0x210   : > { %16172 = vst [vmem:[#allocation100_spill] sm:$0xff] %v10886_v44  ;;  %v10890_v42 = vpop.permute.xlu1 %968  ;;  %v1952_v44 = vmul.f32 %v10300_v0, %v10187_v21 }
 0x211   : > { %16173 = vst [vmem:[#allocation101_spill] sm:$0xff] %v10888_v11  ;;  %v1954_v11 = vmul.f32 %v10300_v0, %v10210_v30 }
 0x212   : > { %16174 = vst [vmem:[#allocation102_spill] sm:$0xff] %v10890_v42  ;;  %v1953_v42 = vmul.f32 %v10300_v0, %v10184_v20 }
 0x215   : > { %2031 = vrot.lane.b32.xlu0 %v1951_v27, %s16175_s1  ;;  %1826 = vrot.lane.b32.xlu2 %v1734_v7, %s9987_s19 }
 0x216   : > { %1810 = vrot.lane.b32.xlu1 %v1726_v9, %s9987_s19 }
 0x217   : > { %v10901_v1 = vpop.permute.xlu0 %960  ;;  %v10903_v53 = vpop.permute.xlu2 %1179 }
 0x218   : > { %16176 = vst [vmem:[#allocation103_spill] sm:$0xff] %v10901_v1  ;;  %v10905_v46 = vpop.permute.xlu1 %2435  ;;  %v1960_v1 = vmul.f32 %v10362_v49, %v10187_v21 }
 0x219   : > { %16177 = vst [vmem:[#allocation104_spill] sm:$0xff] %v10903_v53  ;;  %v1961_v53 = vmul.f32 %v10362_v49, %v10184_v20 }
 0x21a   : > { %16178 = vst [vmem:[#allocation105_spill] sm:$0xff] %v10905_v46  ;;  %v1959_v46 = vmul.f32 %v10362_v49, %v10190_v22 }
 0x21d   : > { %2037 = vrot.lane.b32.xlu0 %v1954_v11, %s16175_s1  ;;  %2035 = vrot.lane.b32.xlu2 %v1953_v42, %s16175_s1 }
 0x21e   : > { %2033 = vrot.lane.b32.xlu1 %v1952_v44, %s16175_s1 }
 0x21f   : > { %v10916_v7 = vpop.permute.xlu0 %1163  ;;  %v10918_v27 = vpop.permute.xlu2 %1183 }
 0x220   : > { %16179 = vst [vmem:[#allocation106_spill] sm:$0xff] %v10916_v7  ;;  %v10920_v9 = vpop.permute.xlu1 %974  ;;  %v1962_v7 = vmul.f32 %v10362_v49, %v10210_v30 }
 0x221   : > { %16180 = vst [vmem:[#allocation107_spill] sm:$0xff] %v10918_v27  ;;  %v1963_v27 = vmul.f32 %v10362_v49, %v10226_v36 }
 0x222   : > { %16181 = vst [vmem:[#allocation108_spill] sm:$0xff] %v10920_v9  ;;  %v1955_v9 = vmul.f32 %v10300_v0, %v10226_v36 }
 0x225   : > { %2051 = vrot.lane.b32.xlu0 %v1961_v53, %s16175_s1  ;;  %2049 = vrot.lane.b32.xlu2 %v1960_v1, %s16175_s1 }
 0x226   : > { %2047 = vrot.lane.b32.xlu1 %v1959_v46, %s16175_s1 }
 0x227   : > { %v10931_v44 = vpop.permute.xlu0 %1175  ;;  %v10933_v11 = vpop.permute.xlu2 %1374 }
 0x228   : > { %16182 = vst [vmem:[#allocation109_spill] sm:$0xff] %v10931_v44  ;;  %v10935_v42 = vpop.permute.xlu1 %1165  ;;  %v2181_v44 = vmul.f32 %v10319_v10, %v10187_v21 }
 0x229   : > { %16183 = vst [vmem:[#allocation110_spill] sm:$0xff] %v10933_v11  ;;  %v2182_v11 = vmul.f32 %v10319_v10, %v10184_v20 }
 0x22a   : > { %16184 = vst [vmem:[#allocation111_spill] sm:$0xff] %v10935_v42  ;;  %v2180_v42 = vmul.f32 %v10319_v10, %v10190_v22 }
 0x22d   : > { %2055 = vrot.lane.b32.xlu0 %v1963_v27, %s16175_s1  ;;  %2039 = vrot.lane.b32.xlu2 %v1955_v9, %s16175_s1 }
 0x22e   : > { %2053 = vrot.lane.b32.xlu1 %v1962_v7, %s16175_s1 }
 0x22f   : > { %v10946_v1 = vpop.permute.xlu0 %1181  ;;  %v10948_v53 = vpop.permute.xlu2 %1386 }
 0x230   : > { %16185 = vst [vmem:[#allocation112_spill] sm:$0xff] %v10946_v1  ;;  %v10950_v46 = vpop.permute.xlu1 %1177  ;;  %v2183_v1 = vmul.f32 %v10319_v10, %v10210_v30 }
 0x231   : > { %16186 = vst [vmem:[#allocation113_spill] sm:$0xff] %v10948_v53  ;;  %v2189_v53 = vmul.f32 %v10379_v58, %v10187_v21 }
 0x232   : > { %16187 = vst [vmem:[#allocation114_spill] sm:$0xff] %v10950_v46  ;;  %v2188_v46 = vmul.f32 %v10379_v58, %v10190_v22 }
 0x235   : > { %2264 = vrot.lane.b32.xlu0 %v2182_v11, %s15943_s20  ;;  %2262 = vrot.lane.b32.xlu2 %v2181_v44, %s15943_s20 }
 0x236   : > { %2260 = vrot.lane.b32.xlu1 %v2180_v42, %s15943_s20 }
 0x237   : > { %v10961_v7 = vpop.permute.xlu0 %1370  ;;  %v10963_v27 = vpop.permute.xlu2 %1378 }
 0x238   : > { %16188 = vst [vmem:[#allocation115_spill] sm:$0xff] %v10961_v7  ;;  %v10965_v9 = vpop.permute.xlu1 %1169  ;;  %v10983_v7 = vperm.slane %v10181_v19, 5 }
 0x239   : > { %16189 = vst [vmem:[#allocation116_spill] sm:$0xff] %v10963_v27 }
 0x23a   : > { %16190 = vst [vmem:[#allocation117_spill] sm:$0xff] %v10965_v9  ;;  %v664_v27 = vmul.f32 %v10192_v23, %v10983_v7  ;;  %v2191_v9 = vmul.f32 %v10379_v58, %v10210_v30  ;;  %v671_v57 = vmul.f32 %v10207_v29, %v10983_v7 }
 0x23b   : > { %16194 = vst [vmem:[#allocation121_spill] sm:$0xff] %v10983_v7 }
 0x23d   : > { %2278 = vrot.lane.b32.xlu0 %v2189_v53, %s15943_s20  ;;  %2276 = vrot.lane.b32.xlu2 %v2188_v46, %s15943_s20  ;;  %v2190_v53 = vmul.f32 %v10379_v58, %v10184_v20 }
 0x23e   : > { %2266 = vrot.lane.b32.xlu1 %v2183_v1, %s15943_s20 }
 0x23f   : > { %v10976_v44 = vpop.permute.xlu0 %1376  ;;  %v10978_v11 = vpop.permute.xlu2 %1581 }
 0x240   : > { %16191 = vst [vmem:[#allocation118_spill] sm:$0xff] %v10976_v44  ;;  %v10980_v42 = vpop.permute.xlu1 %1372  ;;  %v2184_v44 = vmul.f32 %v10319_v10, %v10226_v36 }
 0x241   : > { %16192 = vst [vmem:[#allocation119_spill] sm:$0xff] %v10978_v11 }
 0x242   : > { %16193 = vst [vmem:[#allocation120_spill] sm:$0xff] %v10980_v42  ;;  %v2192_v42 = vmul.f32 %v10379_v58, %v10226_v36 }
 0x245   : > { %725 = vrot.lane.b32.xlu0 %v664_v27, %s16050_s27  ;;  %2282 = vrot.lane.b32.xlu2 %v2191_v9, %s15943_s20 }
 0x246   : > { %2280 = vrot.lane.b32.xlu1 %v2190_v53, %s15943_s20 }
 0x247   : > { %v10994_v1 = vpop.permute.xlu0 %1388  ;;  %v10996_v46 = vpop.permute.xlu2 %1593 }
 0x248   : > { %16195 = vst [vmem:[#allocation122_spill] sm:$0xff] %v10996_v46  ;;  %v10998_v11 = vpop.permute.xlu1 %1384  ;;  %v11016_v46 = vperm.slane %v10181_v19, 6 }
 0x249   : > { %16196 = vst [vmem:[#allocation123_spill] sm:$0xff] %v10998_v11  ;;  %v2380_v11 = vld [vmem:[%s16119_s2 + $0x18] sm:$0xff] }
 0x24a   : > { %16200 = vst [vmem:[#allocation127_spill] sm:$0xff] %v11016_v46 }
 0x24d   : > { %2284 = vrot.lane.b32.xlu0 %v2192_v42, %s15943_s20  ;;  %2268 = vrot.lane.b32.xlu2 %v2184_v44, %s15943_s20  ;;  %v665_v42 = vmul.f32 %v10192_v23, %v11016_v46  ;;  %v873_v23 = vmul.f32 %v10171_v17, %v10983_v7  ;;  %s16226_s20 = smov 66  }
 0x24e   : > { %739 = vrot.lane.b32.xlu1 %v671_v57, %s16050_s27  ;;  %v2379_v57 = vld [vmem:[%s16119_s2 + $0x10] sm:$0xff]  ;;  %s9999_s2 = smov 121  }
 0x24f   : > { %v11009_v27 = vpop.permute.xlu0 %1392  ;;  %v11011_v9 = vpop.permute.xlu2 %1599 }
 0x250   : > { %16197 = vst [vmem:[#allocation124_spill] sm:$0xff] %v11009_v27  ;;  %v11013_v53 = vpop.permute.xlu1 %1390  ;;  %v880_v27 = vmul.f32 %v10194_v24, %v10983_v7 }
 0x251   : > { %16198 = vst [vmem:[#allocation125_spill] sm:$0xff] %v11011_v9 }
 0x252   : > { %16199 = vst [vmem:[#allocation126_spill] sm:$0xff] %v11013_v53  ;;  %v672_v53 = vmul.f32 %v10207_v29, %v11016_v46  ;;  %v2431_v29 = vld [vmem:[%s16132_s3 + $0x10] sm:$0xff] }
 0x255   : > { %727 = vrot.lane.b32.xlu0 %v665_v42, %s16050_s27  ;;  %2398 = vperm.xlu2 %9662, %v2380_v11  }
 0x256   : > { %2393 = vperm.xlu1 %9661, %v2379_v57  }
 0x257   : > { %v11027_v44 = vpop.permute.xlu0 %1583  ;;  %v11029_v9 = vpop.permute.xlu2 %1802 }
 0x258   : > { %16201 = vst [vmem:[#allocation128_spill] sm:$0xff] %v11029_v9  ;;  %v11031_v19 = vpop.permute.xlu1 %1579  ;;  %v2432_v9 = vld [vmem:[%s16132_s3 + $0x18] sm:$0xff]  ;;  %s10000_s3 = smov 120  }
 0x259   : > { %16202 = vst [vmem:[#allocation129_spill] sm:$0xff] %v11031_v19  ;;  %v874_v19 = vmul.f32 %v10171_v17, %v11016_v46  ;;  %v1082_v17 = vmul.f32 %v10152_v13, %v10983_v7 }
 0x25d   : > { %948 = vrot.lane.b32.xlu0 %v880_v27, %s16046_s29  ;;  %934 = vrot.lane.b32.xlu2 %v873_v23, %s16046_s29 }
 0x25e   : > { %741 = vrot.lane.b32.xlu1 %v672_v53, %s16050_s27 }
 0x25f   : > { %v11042_v11 = vpop.permute.xlu0 %1595  ;;  %v11044_v42 = vpop.permute.xlu2 %1808 }
 0x260   : > { %16203 = vst [vmem:[#allocation130_spill] sm:$0xff] %v11044_v42  ;;  %v11046_v57 = vpop.permute.xlu1 %1585  ;;  %v1089_v42 = vmul.f32 %v10156_v14, %v10983_v7 }
 0x261   : > { %16204 = vst [vmem:[#allocation131_spill] sm:$0xff] %v11046_v57  ;;  %v881_v57 = vmul.f32 %v10194_v24, %v11016_v46  ;;  %v1083_v24 = vmul.f32 %v10152_v13, %v11016_v46  ;;  %v1298_v13 = vmul.f32 %v10212_v31, %v10983_v7 }
 0x265   : > { %936 = vrot.lane.b32.xlu0 %v874_v19, %s16046_s29  ;;  %2450 = vperm.xlu2 %9662, %v2432_v9  }
 0x266   : > { %2445 = vperm.xlu1 %9661, %v2431_v29  }
 0x267   : > { %v11057_v27 = vpop.permute.xlu0 %1587  ;;  %v11059_v53 = vpop.permute.xlu2 %1822 }
 0x268   : > { %16205 = vst [vmem:[#allocation132_spill] sm:$0xff] %v11059_v53  ;;  %v11061_v23 = vpop.permute.xlu1 %1597  ;;  %v1291_v53 = vmul.f32 %v10169_v16, %v10983_v7 }
 0x269   : > { %16206 = vst [vmem:[#allocation133_spill] sm:$0xff] %v11061_v23  ;;  %v1090_v23 = vmul.f32 %v10156_v14, %v11016_v46  ;;  %v1292_v14 = vmul.f32 %v10169_v16, %v11016_v46  ;;  %v1507_v16 = vmul.f32 %v10234_v40, %v10983_v7 }
 0x26d   : > { %1157 = vrot.lane.b32.xlu0 %v1089_v42, %s16052_s0  ;;  %1143 = vrot.lane.b32.xlu2 %v1082_v17, %s16052_s0 }
 0x26e   : > { %950 = vrot.lane.b32.xlu1 %v881_v57, %s16046_s29 }
 0x26f   : > { %v11072_v9 = vpop.permute.xlu0 %1804  ;;  %v11074_v19 = vpop.permute.xlu2 %1826 }
 0x270   : > { %16207 = vst [vmem:[#allocation134_spill] sm:$0xff] %v11074_v19  ;;  %v11076_v29 = vpop.permute.xlu1 %1601  ;;  %v1299_v19 = vmul.f32 %v10212_v31, %v11016_v46  ;;  %v1500_v31 = vmul.f32 %v10166_v15, %v10983_v7 }
 0x271   : > { %16208 = vst [vmem:[#allocation135_spill] sm:$0xff] %v11076_v29 }
 0x275   : > { %1352 = vrot.lane.b32.xlu0 %v1291_v53, %s9985_s30  ;;  %1159 = vrot.lane.b32.xlu2 %v1090_v23, %s16052_s0 }
 0x276   : > { %1145 = vrot.lane.b32.xlu1 %v1083_v24, %s16052_s0 }
 0x277   : > { %v11087_v42 = vpop.permute.xlu0 %1818  ;;  %v11089_v57 = vpop.permute.xlu2 %2035 }
 0x278   : > { %16209 = vst [vmem:[#allocation136_spill] sm:$0xff] %v11087_v42  ;;  %v11091_v17 = vpop.permute.xlu1 %1806  ;;  %v1711_v42 = vmul.f32 %v10178_v18, %v10983_v7 }
 0x279   : > { %16210 = vst [vmem:[#allocation137_spill] sm:$0xff] %v11089_v57  ;;  %v1501_v57 = vmul.f32 %v10166_v15, %v11016_v46  ;;  %v1508_v15 = vmul.f32 %v10234_v40, %v11016_v46  ;;  %v1712_v40 = vmul.f32 %v10178_v18, %v11016_v46 }
 0x27d   : > { %1368 = vrot.lane.b32.xlu0 %v1299_v19, %s9985_s30  ;;  %1354 = vrot.lane.b32.xlu2 %v1292_v14, %s9985_s30 }
 0x27e   : > { %1366 = vrot.lane.b32.xlu1 %v1298_v13, %s9985_s30 }
 0x27f   : > { %v11102_v53 = vpop.permute.xlu0 %1824  ;;  %v11104_v23 = vpop.permute.xlu2 %2049 }
 0x280   : > { %16211 = vst [vmem:[#allocation138_spill] sm:$0xff] %v11102_v53  ;;  %v11106_v24 = vpop.permute.xlu1 %1820  ;;  %v11386_v53 = vmul.f32 %v10226_v36, %v10382_v60 }
 0x281   : > { %16212 = vst [vmem:[#allocation139_spill] sm:$0xff] %v11104_v23  ;;  %v1719_v23 = vmul.f32 %v10343_v37, %v10983_v7 }
 0x282   : > { %16213 = vst [vmem:[#allocation140_spill] sm:$0xff] %v11106_v24  ;;  %v774_v24 = vsel %vm771_vm0, %v10395_v3, %v10414_v39 }
 0x283   : > { %16250 = vst [vmem:[#allocation176_spill] sm:$0xff] %v11386_v53  ;;  %v981_v53 = vsel %vm980_vm1, %v10397_v6, %v10440_v2 }
 0x285   : > { %1563 = vrot.lane.b32.xlu0 %v1501_v57, %s16048_s18  ;;  %1575 = vrot.lane.b32.xlu2 %v1507_v16, %s16048_s18 }
 0x286   : > { %1561 = vrot.lane.b32.xlu1 %v1500_v31, %s16048_s18 }
 0x287   : > { %v11117_v19 = vpop.permute.xlu0 %2031  ;;  %v11119_v14 = vpop.permute.xlu2 %2039 }
 0x288   : > { %16214 = vst [vmem:[#allocation141_spill] sm:$0xff] %v11117_v19  ;;  %v11121_v13 = vpop.permute.xlu1 %1810  ;;  %v1720_v19 = vmul.f32 %v10343_v37, %v11016_v46 }
 0x289   : > { %16215 = vst [vmem:[#allocation142_spill] sm:$0xff] %v11119_v14  ;;  %v1940_v14 = vmul.f32 %v10250_v45, %v10983_v7 }
 0x28a   : > { %16216 = vst [vmem:[#allocation143_spill] sm:$0xff] %v11121_v13 }
 0x28d   : > { %1796 = vrot.lane.b32.xlu0 %v1719_v23, %s9987_s19  ;;  %1780 = vrot.lane.b32.xlu2 %v1711_v42, %s9987_s19 }
 0x28e   : > { %1577 = vrot.lane.b32.xlu1 %v1508_v15, %s16048_s18 }
 0x28f   : > { %v11132_v57 = vpop.permute.xlu0 %2037  ;;  %v11134_v16 = vpop.permute.xlu2 %2262 }
 0x290   : > { %16217 = vst [vmem:[#allocation144_spill] sm:$0xff] %v11132_v57  ;;  %v11136_v31 = vpop.permute.xlu1 %2033  ;;  %v1948_v57 = vmul.f32 %v10205_v28, %v10983_v7 }
 0x291   : > { %16218 = vst [vmem:[#allocation145_spill] sm:$0xff] %v11134_v16  ;;  %v1949_v16 = vmul.f32 %v10205_v28, %v11016_v46 }
 0x292   : > { %16219 = vst [vmem:[#allocation146_spill] sm:$0xff] %v11136_v31  ;;  %v1941_v31 = vmul.f32 %v10250_v45, %v11016_v46 }
 0x295   : > { %2009 = vrot.lane.b32.xlu0 %v1940_v14, %s16175_s1  ;;  %1798 = vrot.lane.b32.xlu2 %v1720_v19, %s9987_s19 }
 0x296   : > { %1782 = vrot.lane.b32.xlu1 %v1712_v40, %s9987_s19 }
 0x297   : > { %v11147_v42 = vpop.permute.xlu0 %2051  ;;  %v11149_v23 = vpop.permute.xlu2 %2276 }
 0x298   : > { %16220 = vst [vmem:[#allocation147_spill] sm:$0xff] %v11147_v42  ;;  %v11151_v15 = vpop.permute.xlu1 %2047  ;;  %v2177_v42 = vmul.f32 %v10223_v35, %v10983_v7 }
 0x299   : > { %16221 = vst [vmem:[#allocation148_spill] sm:$0xff] %v11149_v23  ;;  %v678_v23 = vmul.f32 %v10313_v5, %v10983_v7 }
 0x29a   : > { %16222 = vst [vmem:[#allocation149_spill] sm:$0xff] %v11151_v15  ;;  %v2169_v15 = vmul.f32 %v10263_v50, %v10983_v7 }
 0x29d   : > { %2027 = vrot.lane.b32.xlu0 %v1949_v16, %s16175_s1  ;;  %2011 = vrot.lane.b32.xlu2 %v1941_v31, %s16175_s1 }
 0x29e   : > { %2025 = vrot.lane.b32.xlu1 %v1948_v57, %s16175_s1 }
 0x29f   : > { %v11162_v19 = vpop.permute.xlu0 %2055  ;;  %v11164_v14 = vpop.permute.xlu2 %2282 }
 0x2a0   : > { %16223 = vst [vmem:[#allocation150_spill] sm:$0xff] %v11162_v19  ;;  %v11166_v40 = vpop.permute.xlu1 %2053  ;;  %v2170_v19 = vmul.f32 %v10263_v50, %v11016_v46 }
 0x2a1   : > { %16224 = vst [vmem:[#allocation151_spill] sm:$0xff] %v11164_v14  ;;  %v2178_v14 = vmul.f32 %v10223_v35, %v11016_v46 }
 0x2a2   : > { %16225 = vst [vmem:[#allocation152_spill] sm:$0xff] %v11166_v40  ;;  %v679_v40 = vmul.f32 %v10313_v5, %v11016_v46 }
 0x2a5   : > { %753 = vrot.lane.b32.xlu0 %v678_v23, %s16050_s27  ;;  %2254 = vrot.lane.b32.xlu2 %v2177_v42, %s16226_s20  ;;  %v685_v23 = vmul.f32 %v10276_v55, %v10983_v7 }
 0x2a6   : > { %2238 = vrot.lane.b32.xlu1 %v2169_v15, %s16226_s20 }
 0x2a7   : > { %v11177_v57 = vpop.permute.xlu0 %2264  ;;  %v11179_v16 = vpop.permute.xlu2 %2268 }
 0x2a8   : > { %16227 = vst [vmem:[#allocation153_spill] sm:$0xff] %v11177_v57  ;;  %v11181_v31 = vpop.permute.xlu1 %2260  ;;  %v686_v57 = vmul.f32 %v10276_v55, %v11016_v46  ;;  %v888_v55 = vmul.f32 %v10239_v41, %v11016_v46 }
 0x2a9   : > { %16228 = vst [vmem:[#allocation154_spill] sm:$0xff] %v11179_v16 }
 0x2aa   : > { %16229 = vst [vmem:[#allocation155_spill] sm:$0xff] %v11181_v31  ;;  %v887_v31 = vmul.f32 %v10239_v41, %v10983_v7 }
 0x2ad   : > { %2256 = vrot.lane.b32.xlu0 %v2178_v14, %s16226_s20  ;;  %2240 = vrot.lane.b32.xlu2 %v2170_v19, %s16226_s20  ;;  %v9964_v14 = vld [vmem:[%s10176_s26] sm:$0xff]  ;;  %s16555_s26 = smov 127  }
 0x2ae   : > { %767 = vrot.lane.b32.xlu1 %v685_v23, %s16050_s27  ;;  %v11205_v13 = vperm.slane %v9964_v14, 7  ;;  %v1096_v14 = vmul.f32 %v10256_v48, %v10983_v7 }
 0x2af   : > { %v11192_v42 = vpop.permute.xlu0 %2278  ;;  %v11194_v15 = vpop.permute.xlu2 %2398 }
 0x2b0   : > { %16230 = vst [vmem:[#allocation156_spill] sm:$0xff] %v11192_v42  ;;  %v11196_v16 = vpop.permute.xlu1 %2266  ;;  %v11220_v5 = vmul.f32 %v11205_v13, %v10178_v18  ;;  %v11236_v41 = vmul.f32 %v10250_v45, %v11205_v13  ;;  %v11240_v18 = vmul.f32 %v10263_v50, %v11205_v13  ;;  %v1103_v45 = vmul.f32 %v10328_v25, %v10983_v7 }
 0x2b1   : > { %16231 = vst [vmem:[#allocation157_spill] sm:$0xff] %v11194_v15  ;;  %v11258_v50 = vmul.f32 %v10328_v25, %v11016_v46  ;;  %v11278_v25 = vmul.f32 %v10300_v0, %v10983_v7  ;;  %v587_v42 = vmul.f32 %v10190_v22, %v10382_v60 }
 0x2b2   : > { %16232 = vst [vmem:[#allocation158_spill] sm:$0xff] %v11196_v16  ;;  %v11335_v16 = vmul.f32 %v10341_v34, %v10983_v7 }
 0x2b3   : > { %16233 = vst [vmem:[#allocation159_spill] sm:$0xff] %v11205_v13 }
 0x2b4   : > { %16237 = vst [vmem:[#allocation163_spill] sm:$0xff] %v11220_v5 }
 0x2b5   : > { %962 = vrot.lane.b32.xlu0 %v887_v31, %s16046_s29  ;;  %769 = vrot.lane.b32.xlu2 %v686_v57, %s16050_s27  ;;  %v11224_v31 = vmul.f32 %v10205_v28, %v11205_v13  ;;  %v1097_v57 = vmul.f32 %v10256_v48, %v11016_v46  ;;  %16240 = vst [vmem:[#allocation166_spill] sm:$0xff] %v11236_v41 }
 0x2b6   : > { %755 = vrot.lane.b32.xlu1 %v679_v40, %s16050_s27  ;;  %v11228_v40 = vmul.f32 %v10223_v35, %v11205_v13  ;;  %16241 = vst [vmem:[#allocation167_spill] sm:$0xff] %v11240_v18  ;;  %v895_v28 = vmul.f32 %v10295_v63, %v11016_v46  ;;  %v894_v35 = vmul.f32 %v10295_v63, %v10983_v7 }
 0x2b7   : > { %v11210_v19 = vpop.permute.xlu0 %725  ;;  %v11212_v23 = vpop.permute.xlu2 %934  ;;  %16238 = vst [vmem:[#allocation164_spill] sm:$0xff] %v11224_v31  ;;  %v11252_v48 = vmul.f32 %v10273_v54, %v11016_v46  ;;  %v11262_v41 = vmul.f32 %v10287_v59, %v11016_v46  ;;  %v11266_v63 = vmul.f32 %v10287_v59, %v10983_v7  ;;  %v11270_v31 = vmul.f32 %v10311_v4, %v10983_v7 }
 0x2b8   : > { %16234 = vst [vmem:[#allocation160_spill] sm:$0xff] %v11210_v19  ;;  %v11214_v15 = vpop.permute.xlu1 %2280  ;;  %v11282_v18 = vmul.f32 %v10300_v0, %v11016_v46  ;;  %v11288_v59 = vmul.f32 %v10364_v51, %v11016_v46  ;;  %v11301_v0 = vmul.f32 %v10326_v12, %v10983_v7 }
 0x2b9   : > { %16235 = vst [vmem:[#allocation161_spill] sm:$0xff] %v11212_v23  ;;  %v11296_v23 = vmul.f32 %v11205_v13, %v10343_v37  ;;  %v594_v37 = vmul.f32 %v10190_v22, %v10338_v33  ;;  %v596_v13 = vmul.f32 %v10184_v20, %v10338_v33 }
 0x2ba   : > { %16236 = vst [vmem:[#allocation162_spill] sm:$0xff] %v11214_v15  ;;  %v11339_v15 = vmul.f32 %v10341_v34, %v11016_v46  ;;  %v588_v34 = vmul.f32 %v10187_v21, %v10382_v60 }
 0x2bb   : > { %16239 = vst [vmem:[#allocation165_spill] sm:$0xff] %v11228_v40  ;;  %v11248_v40 = vmul.f32 %v10273_v54, %v10983_v7  ;;  %v11274_v54 = vmul.f32 %v10311_v4, %v11016_v46  ;;  %v11292_v4 = vmul.f32 %v10364_v51, %v10983_v7  ;;  %v11313_v51 = vmul.f32 %v10319_v10, %v11016_v46 }
 0x2bc   : > { %16242 = vst [vmem:[#allocation168_spill] sm:$0xff] %v11296_v23 }
 0x2bd   : > { %978 = vrot.lane.b32.xlu0 %v895_v28, %s16046_s29  ;;  %964 = vrot.lane.b32.xlu2 %v888_v55, %s16046_s29  ;;  %v11305_v55 = vmul.f32 %v10326_v12, %v11016_v46  ;;  %v11309_v28 = vmul.f32 %v10319_v10, %v10983_v7  ;;  %16243 = vst [vmem:[#allocation169_spill] sm:$0xff] %v11313_v51 }
 0x2be   : > { %976 = vrot.lane.b32.xlu1 %v894_v35, %s16046_s29  ;;  %v595_v35 = vmul.f32 %v10187_v21, %v10338_v33  ;;  %v597_v12 = vmul.f32 %v10210_v30, %v10338_v33  ;;  %v11329_v10 = vmul.f32 %v10226_v36, %v10338_v33  ;;  %v773_v51 = vsel %vm771_vm0, %v10354_v43, %v10395_v3  ;;  %s9995_s29 = smov 100  }
 0x2bf   : > { %v11323_v5 = vpop.permute.xlu0 %2284  ;;  %v11325_v23 = vpop.permute.xlu2 %2450  ;;  %v11398_v3 = vmul.f32 %v10983_v7, %v10382_v60 }
 0x2c0   : > { %16244 = vst [vmem:[#allocation170_spill] sm:$0xff] %v11323_v5  ;;  %v11331_v19 = vpop.permute.xlu1 %739  ;;  %v11343_v5 = vmul.f32 %v10983_v7, %v10338_v33  ;;  %v589_v33 = vmul.f32 %v10184_v20, %v10382_v60 }
 0x2c1   : > { %16245 = vst [vmem:[#allocation171_spill] sm:$0xff] %v11325_v23  ;;  %v11347_v23 = vmul.f32 %v10362_v49, %v10983_v7 }
 0x2c2   : > { %16246 = vst [vmem:[#allocation172_spill] sm:$0xff] %v11329_v10  ;;  %v11351_v10 = vmul.f32 %v10379_v58, %v10983_v7  ;;  %v16263_v7 = vld [vmem:[#allocation16_spill] sm:$0xff] }
 0x2c3   : > { %16247 = vst [vmem:[#allocation173_spill] sm:$0xff] %v11331_v19  ;;  %v11355_v19 = vmul.f32 %v10379_v58, %v11016_v46  ;;  %v772_v58 = vsel %vm771_vm0, %v10399_v8, %v10354_v43  ;;  %v779_v43 = vsel %vm771_vm0, %v10410_v32, %v10429_v56  ;;  %v825_v8 = vadd.f32 %v773_v51, %v588_v34 }
 0x2c4   : > { %16248 = vst [vmem:[#allocation174_spill] sm:$0xff] %v11343_v5  ;;  %v11365_v5 = vmul.f32 %v10362_v49, %v11016_v46  ;;  %v590_v46 = vmul.f32 %v10210_v30, %v10382_v60  ;;  %v775_v49 = vsel %vm771_vm0, %v10414_v39, %v10425_v47  ;;  %v824_v39 = vadd.f32 %v772_v58, %v587_v42  ;;  %v16254_v42 = vld [vmem:[#allocation11_spill] sm:$0xff] }
 0x2c5   : > { %16249 = vst [vmem:[#allocation175_spill] sm:$0xff] %v11355_v19  ;;  %v778_v19 = vsel %vm771_vm0, %v10369_v52, %v10410_v32  ;;  %v780_v52 = vsel %vm771_vm0, %v10429_v56, %v10384_v61  ;;  %1173 = vrot.lane.b32.xlu0 %v1097_v57, %s16052_s0  ;;  %1185 = vrot.lane.b32.xlu2 %v1103_v45, %s16052_s0  ;;  %v16262_v60 = vld [vmem:[#allocation23_spill] sm:$0xff] }
 0x2c6   : > { %16251 = vst [vmem:[#allocation177_spill] sm:$0xff] %v11398_v3  ;;  %v831_v36 = vadd.f32 %v778_v19, %v594_v37  ;;  %1171 = vrot.lane.b32.xlu1 %v1096_v14, %s16052_s0  ;;  %v826_v32 = vadd.f32 %v774_v24, %v589_v33  ;;  %v827_v47 = vadd.f32 %v775_v49, %v590_v46  ;;  %v16256_v46 = vld [vmem:[#allocation17_spill] sm:$0xff]  ;;  %v16258_v19 = vld [vmem:[#allocation14_spill] sm:$0xff] }
 0x2c7   : > { %v781_v56 = vsel %vm771_vm0, %v10384_v61, %v10444_v26  ;;  %v982_v57 = vsel %vm980_vm1, %v10440_v2, %v10459_v62  ;;  %v11410_v45 = vpop.permute.xlu0 %727  ;;  %v11412_v34 = vpop.permute.xlu2 %1143  ;;  %v832_v51 = vadd.f32 %v779_v43, %v595_v35  ;;  %v833_v58 = vadd.f32 %v780_v52, %v596_v13  ;;  %v16257_v61 = vld [vmem:[#allocation13_spill] sm:$0xff]  ;;  %v16259_v14 = vld [vmem:[#allocation22_spill] sm:$0xff]  ;;  %v16260_v43 = vld [vmem:[#allocation19_spill] sm:$0xff] }
 0x2c8   : > { %16252 = vst [vmem:[#allocation178_spill] sm:$0xff] %v11410_v45  ;;  %v983_v6 = vsel %vm980_vm1, %v10459_v62, %v16254_v42  ;;  %v11417_v33 = vpop.permute.xlu1 %2393  ;;  %v1033_v49 = vadd.f32 %v981_v53, %v824_v39  ;;  %v989_v24 = vsel %vm980_vm1, %v16257_v61, %v16256_v46  ;;  %v990_v2 = vsel %vm980_vm1, %v16256_v46, %v16258_v19  ;;  %v16261_v62 = vld [vmem:[#allocation15_spill] sm:$0xff]  ;;  %v16264_v46 = vld [vmem:[#allocation21_spill] sm:$0xff] }
 0x2c9   : > { %16253 = vst [vmem:[#allocation179_spill] sm:$0xff] %v11412_v34  ;;  %v984_v13 = vsel %vm980_vm1, %v16254_v42, %v16259_v14  ;;  %v834_v37 = vadd.f32 %v781_v56, %v597_v12  ;;  %v1034_v35 = vadd.f32 %v982_v57, %v825_v8  ;;  %v987_v52 = vsel %vm980_vm1, %v16261_v62, %v16260_v43  ;;  %v16265_v42 = vld [vmem:[#allocation25_spill] sm:$0xff]  ;;  %v16266_v12 = vld [vmem:[#allocation20_spill] sm:$0xff]  ;;  %v16268_v34 = vld [vmem:[#allocation18_spill] sm:$0xff] }
 0x2ca   : > { %16255 = vst [vmem:[#allocation11_spill] sm:$0xff] %v11417_v33  ;;  %v988_v53 = vsel %vm980_vm1, %v16260_v43, %v16257_v61  ;;  %v1035_v39 = vadd.f32 %v983_v6, %v826_v32  ;;  %v1192_v3 = vsel %vm1189_vm2, %v16263_v7, %v16262_v60  ;;  %v1193_v45 = vsel %vm1189_vm2, %v16262_v60, %v16264_v46  ;;  %v16267_v43 = vld [vmem:[#allocation26_spill] sm:$0xff] }
 0x2cb   : > { %v1190_v8 = vsel %vm1189_vm2, %v16266_v12, %v16265_v42  ;;  %v1042_v56 = vadd.f32 %v989_v24, %v833_v58  ;;  %v1043_v57 = vadd.f32 %v990_v2, %v834_v37  ;;  %v1036_v62 = vadd.f32 %v984_v13, %v827_v47  ;;  %v16269_v24 = vld [vmem:[#allocation28_spill] sm:$0xff]  ;;  %v16271_v13 = vld [vmem:[#allocation29_spill] sm:$0xff] }
 0x2cc   : > { %v1191_v61 = vsel %vm1189_vm2, %v16265_v42, %v16263_v7  ;;  %v1040_v32 = vadd.f32 %v987_v52, %v831_v36  ;;  %v1041_v6 = vadd.f32 %v988_v53, %v832_v51  ;;  %v1197_v19 = vsel %vm1189_vm2, %v16268_v34, %v16267_v43  ;;  %v16270_v51 = vld [vmem:[#allocation31_spill] sm:$0xff]  ;;  %v16278_v12 = vld [vmem:[#allocation36_spill] sm:$0xff] }
 0x2cd   : > { %1394 = vrot.lane.b32.xlu0 %v11248_v40, %s9985_s30  ;;  %1380 = vrot.lane.b32.xlu2 %v11270_v31, %s9985_s30  ;;  %v1244_v60 = vadd.f32 %v1192_v3, %v1035_v39  ;;  %v1245_v58 = vadd.f32 %v1193_v45, %v1036_v62  ;;  %v1242_v47 = vadd.f32 %v1190_v8, %v1033_v49  ;;  %v16276_v52 = vld [vmem:[#allocation27_spill] sm:$0xff] }
 0x2ce   : > { %v1196_v7 = vsel %vm1189_vm2, %v16269_v24, %v16268_v34  ;;  %1187 = vrot.lane.b32.xlu1 %v11258_v50, %s16052_s0  ;;  %v1243_v36 = vadd.f32 %v1191_v61, %v1034_v35  ;;  %v1198_v2 = vsel %vm1189_vm2, %v16267_v43, %v16270_v51  ;;  %v1199_v40 = vsel %vm1189_vm2, %v16270_v51, %v16271_v13  ;;  %v16273_v34 = vld [vmem:[#allocation24_spill] sm:$0xff]  ;;  %v16274_v50 = vld [vmem:[#allocation33_spill] sm:$0xff]  ;;  %v16275_v35 = vld [vmem:[#allocation34_spill] sm:$0xff] }
 0x2cf   : > { %v11464_v31 = vpop.permute.xlu0 %948  ;;  %v11466_v3 = vpop.permute.xlu2 %1159  ;;  %v1250_v45 = vadd.f32 %v1197_v19, %v1041_v6  ;;  %v1400_v49 = vsel %vm1398_vm3, %v16273_v34, %v10545_v38  ;;  %v1399_v37 = vsel %vm1398_vm3, %v16274_v50, %v16273_v34  ;;  %v1405_v53 = vsel %vm1398_vm3, %v16276_v52, %v16275_v35  ;;  %v16279_v19 = vld [vmem:[#allocation37_spill] sm:$0xff]  ;;  %v16280_v61 = vld [vmem:[#allocation39_spill] sm:$0xff]  ;;  %v16281_v51 = vld [vmem:[#allocation30_spill] sm:$0xff] }
 0x2d0   : > { %16272 = vst [vmem:[#allocation17_spill] sm:$0xff] %v11466_v3  ;;  %v11477_v39 = vpop.permute.xlu1 %741  ;;  %v1249_v42 = vadd.f32 %v1196_v7, %v1040_v32  ;;  %v1401_v8 = vsel %vm1398_vm3, %v10545_v38, %v16278_v12  ;;  %v1402_v62 = vsel %vm1398_vm3, %v16278_v12, %v16279_v19  ;;  %v1406_v6 = vsel %vm1398_vm3, %v16275_v35, %v16280_v61  ;;  %v16282_v50 = vld [vmem:[#allocation40_spill] sm:$0xff] }
 0x2d1   : > { %16277 = vst [vmem:[#allocation13_spill] sm:$0xff] %v11477_v39  ;;  %v1251_v43 = vadd.f32 %v1198_v2, %v1042_v56  ;;  %v1252_v24 = vadd.f32 %v1199_v40, %v1043_v57  ;;  %v1407_v34 = vsel %vm1398_vm3, %v16280_v61, %v16281_v51  ;;  %v16283_v32 = vld [vmem:[#allocation32_spill] sm:$0xff]  ;;  %v1452_v52 = vadd.f32 %v1400_v49, %v1243_v36  ;;  %v16284_v39 = vld [vmem:[#allocation42_spill] sm:$0xff]  ;;  %v16285_v2 = vld [vmem:[#allocation35_spill] sm:$0xff] }
 0x2d2   : > { %v1608_v7 = vsel %vm1607_vm4, %v16283_v32, %v16282_v50  ;;  %v1451_v38 = vadd.f32 %v1399_v37, %v1242_v47  ;;  %v1458_v3 = vadd.f32 %v1405_v53, %v1249_v42  ;;  %v1408_v12 = vsel %vm1398_vm3, %v16281_v51, %v16284_v39  ;;  %v16286_v40 = vld [vmem:[#allocation45_spill] sm:$0xff]  ;;  %v16288_v36 = vld [vmem:[#allocation38_spill] sm:$0xff]  ;;  %v16289_v49 = vld [vmem:[#allocation51_spill] sm:$0xff] }
 0x2d3   : > { %v1453_v19 = vadd.f32 %v1401_v8, %v1244_v60  ;;  %v1454_v13 = vadd.f32 %v1402_v62, %v1245_v58  ;;  %v1459_v35 = vadd.f32 %v1406_v6, %v1250_v45  ;;  %v1460_v56 = vadd.f32 %v1407_v34, %v1251_v43  ;;  %v16287_v58 = vld [vmem:[#allocation46_spill] sm:$0xff]  ;;  %v16291_v53 = vld [vmem:[#allocation48_spill] sm:$0xff]  ;;  %v16292_v42 = vld [vmem:[#allocation43_spill] sm:$0xff] }
 0x2d4   : > { %v1660_v57 = vadd.f32 %v1608_v7, %v1451_v38  ;;  %v1610_v61 = vsel %vm1607_vm4, %v16286_v40, %v16285_v2  ;;  %v1461_v47 = vadd.f32 %v1408_v12, %v1252_v24  ;;  %v1609_v60 = vsel %vm1607_vm4, %v16282_v50, %v16286_v40  ;;  %v16293_v6 = vld [vmem:[#allocation52_spill] sm:$0xff]  ;;  %v16297_v50 = vld [vmem:[#allocation50_spill] sm:$0xff]  ;;  %v16299_v38 = vld [vmem:[#allocation49_spill] sm:$0xff] }
 0x2d5   : > { %1589 = vrot.lane.b32.xlu0 %v11301_v0, %s16048_s18  ;;  %1396 = vrot.lane.b32.xlu2 %v11252_v48, %s9985_s30  ;;  %v1616_v45 = vsel %vm1607_vm4, %v16288_v36, %v16287_v58  ;;  %v1611_v37 = vsel %vm1607_vm4, %v16285_v2, %v16289_v49  ;;  %v16290_v0 = vld [vmem:[#allocation41_spill] sm:$0xff]  ;;  %v1614_v8 = vsel %vm1607_vm4, %v16292_v42, %v16291_v53  ;;  %v16294_v43 = vld [vmem:[#allocation44_spill] sm:$0xff]  ;;  %v16298_v7 = vld [vmem:[#allocation54_spill] sm:$0xff] }
 0x2d6   : > { %1382 = vrot.lane.b32.xlu1 %v11274_v54, %s9985_s30  ;;  %v1617_v48 = vsel %vm1607_vm4, %v16287_v58, %v16290_v0  ;;  %v1615_v62 = vsel %vm1607_vm4, %v16291_v53, %v16288_v36  ;;  %v1837_v24 = vsel %vm1834_vm5, %v16294_v43, %v16293_v6  ;;  %v1662_v54 = vadd.f32 %v1610_v61, %v1453_v19  ;;  %v16301_v49 = vld [vmem:[#allocation57_spill] sm:$0xff]  ;;  %v16302_v39 = vld [vmem:[#allocation55_spill] sm:$0xff]  ;;  %s16550_s30 = smov 98  }
 0x2d7   : > { %v11527_v51 = vpop.permute.xlu0 %936  ;;  %v11529_v34 = vpop.permute.xlu2 %1354  ;;  %v1838_v32 = vsel %vm1834_vm5, %v16293_v6, %v16297_v50  ;;  %v1835_v12 = vsel %vm1834_vm5, %v16299_v38, %v16298_v7  ;;  %v1836_v2 = vsel %vm1834_vm5, %v16298_v7, %v16294_v43  ;;  %v1661_v58 = vadd.f32 %v1609_v60, %v1452_v52  ;;  %v16303_v7 = vld [vmem:[#allocation60_spill] sm:$0xff]  ;;  %v16304_v52 = vld [vmem:[#allocation58_spill] sm:$0xff] }
 0x2d8   : > { %16295 = vst [vmem:[#allocation22_spill] sm:$0xff] %v11527_v51  ;;  %v11540_v40 = vpop.permute.xlu1 %2445  ;;  %v1669_v36 = vadd.f32 %v1616_v45, %v1460_v56  ;;  %v1663_v53 = vadd.f32 %v1611_v37, %v1454_v13  ;;  %v1670_v42 = vadd.f32 %v1617_v48, %v1461_v47  ;;  %v1667_v19 = vadd.f32 %v1614_v8, %v1458_v3  ;;  %v16300_v51 = vld [vmem:[#allocation47_spill] sm:$0xff]  ;;  %v16306_v56 = vld [vmem:[#allocation53_spill] sm:$0xff]  ;;  %v16308_v45 = vld [vmem:[#allocation64_spill] sm:$0xff] }
 0x2d9   : > { %16296 = vst [vmem:[#allocation19_spill] sm:$0xff] %v11529_v34  ;;  %v1668_v61 = vadd.f32 %v1615_v62, %v1459_v35  ;;  %v1893_v34 = vadd.f32 %v1837_v24, %v1662_v54  ;;  %v1891_v6 = vadd.f32 %v1835_v12, %v1660_v57  ;;  %v1892_v50 = vadd.f32 %v1836_v2, %v1661_v58  ;;  %v16305_v35 = vld [vmem:[#allocation61_spill] sm:$0xff]  ;;  %v16307_v47 = vld [vmem:[#allocation63_spill] sm:$0xff]  ;;  %v16310_v48 = vld [vmem:[#allocation66_spill] sm:$0xff] }
 0x2da   : > { %v1894_v0 = vadd.f32 %v1838_v32, %v1663_v53  ;;  %v1842_v38 = vsel %vm1834_vm5, %v16301_v49, %v16300_v51  ;;  %v1843_v43 = vsel %vm1834_vm5, %v16300_v51, %v16302_v39  ;;  %v1844_v13 = vsel %vm1834_vm5, %v16302_v39, %v16303_v7  ;;  %v16309_v49 = vld [vmem:[#allocation56_spill] sm:$0xff]  ;;  %v16311_v62 = vld [vmem:[#allocation67_spill] sm:$0xff]  ;;  %v16312_v51 = vld [vmem:[#allocation69_spill] sm:$0xff] }
 0x2db   : > { %v1845_v3 = vsel %vm1834_vm5, %v16303_v7, %v16304_v52  ;;  %v2065_v57 = vsel %vm2063_vm6, %v16306_v56, %v16305_v35  ;;  %v2064_v60 = vsel %vm2063_vm6, %v16307_v47, %v16306_v56  ;;  %v2071_v37 = vsel %vm2063_vm6, %v16309_v49, %v16308_v45  ;;  %v16321_v49 = vld [vmem:[#allocation76_spill] sm:$0xff] }
 0x2dc   : > { %v2066_v39 = vsel %vm2063_vm6, %v16305_v35, %v16310_v48  ;;  %v1898_v8 = vadd.f32 %v1842_v38, %v1667_v19  ;;  %v2067_v24 = vsel %vm2063_vm6, %v16310_v48, %v16311_v62  ;;  %v2072_v54 = vsel %vm2063_vm6, %v16308_v45, %v16312_v51  ;;  %v16322_v48 = vld [vmem:[#allocation73_spill] sm:$0xff]  ;;  %v16336_v62 = vld [vmem:[#allocation95_spill] sm:$0xff] }
 0x2dd   : > { %1605 = vrot.lane.b32.xlu0 %v11262_v41, %s16048_s18  ;;  %1591 = vrot.lane.b32.xlu2 %v11305_v55, %s16048_s18  ;;  %v1899_v32 = vadd.f32 %v1843_v43, %v1668_v61  ;;  %v1900_v12 = vadd.f32 %v1844_v13, %v1669_v36  ;;  %v1901_v2 = vadd.f32 %v1845_v3, %v1670_v42  ;;  %v16313_v41 = vld [vmem:[#allocation59_spill] sm:$0xff]  ;;  %v16315_v61 = vld [vmem:[#allocation62_spill] sm:$0xff]  ;;  %v16316_v42 = vld [vmem:[#allocation72_spill] sm:$0xff] }
 0x2de   : > { %1603 = vrot.lane.b32.xlu1 %v11266_v63, %s16048_s18  ;;  %v2073_v55 = vsel %vm2063_vm6, %v16312_v51, %v16313_v41  ;;  %v2121_v19 = vadd.f32 %v2065_v57, %v1892_v50  ;;  %v2120_v38 = vadd.f32 %v2064_v60, %v1891_v6  ;;  %v2127_v7 = vadd.f32 %v2071_v37, %v1898_v8  ;;  %v16314_v63 = vld [vmem:[#allocation70_spill] sm:$0xff]  ;;  %v16317_v3 = vld [vmem:[#allocation75_spill] sm:$0xff]  ;;  %v16318_v6 = vld [vmem:[#allocation65_spill] sm:$0xff]  ;;  %s9996_s18 = smov 112  }
 0x2df   : > { %v11581_v58 = vpop.permute.xlu0 %1157  ;;  %v11583_v53 = vpop.permute.xlu2 %1575  ;;  %v2122_v35 = vadd.f32 %v2066_v39, %v1893_v34  ;;  %v2123_v47 = vadd.f32 %v2067_v24, %v1894_v0  ;;  %v2128_v45 = vadd.f32 %v2072_v54, %v1899_v32  ;;  %v2293_v36 = vsel %vm2292_vm7, %v16315_v61, %v16314_v63  ;;  %v16319_v57 = vld [vmem:[#allocation68_spill] sm:$0xff]  ;;  %v16320_v0 = vld [vmem:[#allocation78_spill] sm:$0xff]  ;;  %v16323_v8 = vld [vmem:[#allocation71_spill] sm:$0xff] }
 0x2e0   : > { %v11585_v56 = vpop.permute.xlu1 %950  ;;  %v2074_v43 = vsel %vm2063_vm6, %v16313_v41, %v16316_v42  ;;  %v2129_v13 = vadd.f32 %v2073_v55, %v1900_v12  ;;  %v2294_v50 = vsel %vm2292_vm7, %v16314_v63, %v16317_v3  ;;  %v2295_v34 = vsel %vm2292_vm7, %v16317_v3, %v16318_v6 }
 0x2e1   : > { %v2301_v60 = vsel %vm2292_vm7, %v16320_v0, %v16319_v57  ;;  %v2302_v37 = vsel %vm2292_vm7, %v16319_v57, %v16321_v49  ;;  %v2300_v39 = vsel %vm2292_vm7, %v16322_v48, %v16320_v0  ;;  %v609_v24 = vmul.f32 %v10187_v21, %v16323_v8  ;;  %v16324_v0 = vld [vmem:[#allocation80_spill] sm:$0xff] }
 0x2e2   : > { %v608_v51 = vmul.f32 %v10190_v22, %v16323_v8  ;;  %v2349_v54 = vadd.f32 %v2293_v36, %v2120_v38  ;;  %v2130_v32 = vadd.f32 %v2074_v43, %v1901_v2  ;;  %v610_v12 = vmul.f32 %v10184_v20, %v16323_v8  ;;  %v16325_v38 = vld [vmem:[#allocation81_spill] sm:$0xff]  ;;  %v16329_v43 = vld [vmem:[#allocation79_spill] sm:$0xff]  ;;  %v16334_v48 = vld [vmem:[#allocation88_spill] sm:$0xff] }
 0x2e3   : > { %v611_v41 = vmul.f32 %v10210_v30, %v16323_v8  ;;  %v2350_v55 = vadd.f32 %v2294_v50, %v2121_v19  ;;  %v2351_v63 = vadd.f32 %v2295_v34, %v2122_v35  ;;  %v2357_v61 = vadd.f32 %v2301_v60, %v2128_v45  ;;  %v16326_v19 = vld [vmem:[#allocation82_spill] sm:$0xff]  ;;  %v16332_v34 = vld [vmem:[#allocation85_spill] sm:$0xff] }
 0x2e4   : > { %v2358_v3 = vadd.f32 %v2302_v37, %v2129_v13  ;;  %v2356_v57 = vadd.f32 %v2300_v39, %v2127_v7  ;;  %v2296_v2 = vsel %vm2292_vm7, %v16318_v6, %v16324_v0  ;;  %v603_v36 = vmul.f32 %v10184_v20, %v16325_v38  ;;  %v16327_v35 = vld [vmem:[#allocation74_spill] sm:$0xff]  ;;  %v16331_v6 = vld [vmem:[#allocation83_spill] sm:$0xff]  ;;  %v16333_v60 = vld [vmem:[#allocation77_spill] sm:$0xff] }
 0x2e5   : > { %1814 = vrot.lane.b32.xlu0 %v11288_v59, %s9987_s19  ;;  %1828 = vrot.lane.b32.xlu2 %v11335_v16, %s9987_s19  ;;  %v786_v45 = vsel %vm771_vm0, %v16327_v35, %v16326_v19  ;;  %v601_v59 = vmul.f32 %v10190_v22, %v16325_v38  ;;  %v16328_v16 = vld [vmem:[#allocation84_spill] sm:$0xff]  ;;  %v2409_v20 = vmul.f32 %v16331_v6, %v2357_v61 }
 0x2e6   : > { %1812 = vrot.lane.b32.xlu1 %v11292_v4, %s9987_s19  ;;  %v784_v7 = vsel %vm771_vm0, %v16329_v43, %v16328_v16  ;;  %v785_v4 = vsel %vm771_vm0, %v16328_v16, %v16327_v35  ;;  %v791_v37 = vsel %vm771_vm0, %v16333_v60, %v16332_v34  ;;  %v2303_v22 = vsel %vm2292_vm7, %v16321_v49, %v16334_v48 }
 0x2e7   : > { %v11635_v13 = vpop.permute.xlu0 %1352  ;;  %v11637_v50 = vpop.permute.xlu2 %1780  ;;  %v2410_v43 = vmul.f32 %v16331_v6, %v2358_v3  ;;  %v2352_v8 = vadd.f32 %v2296_v2, %v2123_v47  ;;  %v602_v61 = vmul.f32 %v10187_v21, %v16325_v38  ;;  %v604_v0 = vmul.f32 %v10210_v30, %v16325_v38  ;;  %v16339_v47 = vld [vmem:[#allocation87_spill] sm:$0xff]  ;;  %v16340_v2 = vld [vmem:[#allocation90_spill] sm:$0xff] }
 0x2e8   : > { %16330 = vst [vmem:[#allocation15_spill] sm:$0xff] %v11637_v50  ;;  %v11649_v39 = vpop.permute.xlu1 %1145  ;;  %v2408_v35 = vmul.f32 %v16331_v6, %v2356_v57  ;;  %v840_v16 = vadd.f32 %v786_v45, %v603_v36  ;;  %v838_v42 = vadd.f32 %v784_v7, %v601_v59  ;;  %v11658_v50 = vadd.f32 %v16336_v62, %v2409_v20  ;;  %v16341_v57 = vld [vmem:[#allocation91_spill] sm:$0xff]  ;;  %v16342_v45 = vld [vmem:[#allocation93_spill] sm:$0xff]  ;;  %v16343_v20 = vld [vmem:[#allocation94_spill] sm:$0xff] }
 0x2e9   : > { %16335 = vst [vmem:[#allocation23_spill] sm:$0xff] %v11649_v39  ;;  %v11661_v49 = vadd.f32 %v16336_v62, %v2410_v43  ;;  %v839_v48 = vadd.f32 %v785_v4, %v602_v61  ;;  %v846_v39 = vadd.f32 %v791_v37, %v609_v24  ;;  %v790_v3 = vsel %vm771_vm0, %v16339_v47, %v16333_v60  ;;  %v16344_v4 = vld [vmem:[#allocation86_spill] sm:$0xff]  ;;  %v16345_v60 = vld [vmem:[#allocation96_spill] sm:$0xff]  ;;  %v16347_v43 = vld [vmem:[#allocation105_spill] sm:$0xff] }
 0x2ea   : > { %16337 = vst [vmem:[#allocation16_spill] sm:$0xff] %v11658_v50  ;;  %v2359_v21 = vadd.f32 %v2303_v22, %v2130_v32  ;;  %v792_v30 = vsel %vm771_vm0, %v16332_v34, %v16340_v2  ;;  %v787_v36 = vsel %vm771_vm0, %v16326_v19, %v16341_v57  ;;  %v2403_v59 = vmul.f32 %v16342_v45, %v2351_v63  ;;  %v16360_v38 = vld [vmem:[#allocation106_spill] sm:$0xff] }
 0x2eb   : > { %16338 = vst [vmem:[#allocation21_spill] sm:$0xff] %v11661_v49  ;;  %v2401_v7 = vmul.f32 %v16342_v45, %v2349_v54  ;;  %v993_v24 = vsel %vm980_vm1, %v16344_v4, %v16343_v20  ;;  %v2402_v32 = vmul.f32 %v16342_v45, %v2350_v55  ;;  %v2404_v34 = vmul.f32 %v16342_v45, %v2352_v8  ;;  %v16356_v4 = vld [vmem:[#allocation92_spill] sm:$0xff] }
 0x2ec   : > { %v793_v63 = vsel %vm771_vm0, %v16340_v2, %v16345_v60  ;;  %v11689_v54 = vadd.f32 %v16336_v62, %v2408_v35  ;;  %v16005_v19 = vmax.f32 %v11658_v50, 0.0  ;;  %v845_v37 = vadd.f32 %v790_v3, %v608_v51 }
 0x2ed   : > { %2057 = vrot.lane.b32.xlu0 %v11347_v23, %s16175_s1  ;;  %2041 = vrot.lane.b32.xlu2 %v11278_v25, %s16175_s1  ;;  %v16004_v23 = vmax.f32 %v11661_v49, 0.0  ;;  %v2411_v25 = vmul.f32 %v16331_v6, %v2359_v21  ;;  %v847_v55 = vadd.f32 %v792_v30, %v610_v12  ;;  %v11699_v61 = vadd.f32 %v16347_v43, %v2403_v59  ;;  %v16352_v21 = vld [vmem:[#allocation99_spill] sm:$0xff] }
 0x2ee   : > { %1830 = vrot.lane.b32.xlu1 %v11339_v15, %s9987_s19  ;;  %16346 = vst [vmem:[#allocation25_spill] sm:$0xff] %v11689_v54  ;;  %v841_v47 = vadd.f32 %v787_v36, %v604_v0  ;;  %v11704_v35 = vadd.f32 %v16347_v43, %v2401_v7  ;;  %v11707_v2 = vadd.f32 %v16347_v43, %v2402_v32  ;;  %v16354_v0 = vld [vmem:[#allocation89_spill] sm:$0xff]  ;;  %v16355_v7 = vld [vmem:[#allocation100_spill] sm:$0xff] }
 0x2ef   : > { %v11694_v22 = vpop.permute.xlu0 %1368  ;;  %v11696_v8 = vpop.permute.xlu2 %1798  ;;  %16348 = vst [vmem:[#allocation20_spill] sm:$0xff] %v11699_v61  ;;  %v11710_v51 = vadd.f32 %v16347_v43, %v2404_v34  ;;  %v1047_v12 = vadd.f32 %v993_v24, %v838_v42  ;;  %v848_v3 = vadd.f32 %v793_v63, %v611_v41  ;;  %v994_v30 = vsel %vm980_vm1, %v16343_v20, %v16352_v21  ;;  %v16357_v41 = vld [vmem:[#allocation102_spill] sm:$0xff]  ;;  %v16358_v20 = vld [vmem:[#allocation97_spill] sm:$0xff] }
 0x2f0   : > { %v11701_v15 = vpop.permute.xlu1 %1366  ;;  %16349 = vst [vmem:[#allocation26_spill] sm:$0xff] %v11704_v35  ;;  %v11716_v59 = vadd.f32 %v16336_v62, %v2411_v25  ;;  %v995_v36 = vsel %vm980_vm1, %v16352_v21, %v16354_v0  ;;  %v1001_v32 = vsel %vm980_vm1, %v16356_v4, %v16355_v7  ;;  %v11729_v42 = vpack.i.bf16 %v16004_v23, %v16005_v19  ;;  %v16359_v25 = vld [vmem:[#allocation103_spill] sm:$0xff]  ;;  %v16362_v62 = vld [vmem:[#allocation108_spill] sm:$0xff] }
 0x2f1   : > { %16350 = vst [vmem:[#allocation18_spill] sm:$0xff] %v11707_v2  ;;  %v999_v24 = vsel %vm980_vm1, %v16358_v20, %v16357_v41  ;;  %v1000_v63 = vsel %vm980_vm1, %v16357_v41, %v16356_v4  ;;  %v996_v21 = vsel %vm980_vm1, %v16354_v0, %v16359_v25  ;;  %v16010_v34 = vmax.f32 %v11699_v61, 0.0  ;;  %v16361_v20 = vld [vmem:[#allocation98_spill] sm:$0xff]  ;;  %v16365_v19 = vld [vmem:[#allocation112_spill] sm:$0xff] }
 0x2f2   : > { %16351 = vst [vmem:[#allocation28_spill] sm:$0xff] %v11710_v51  ;;  %v1048_v60 = vadd.f32 %v994_v30, %v839_v48  ;;  %v16011_v50 = vmax.f32 %v11704_v35, 0.0  ;;  %v1049_v49 = vadd.f32 %v995_v36, %v840_v16  ;;  %v1202_v57 = vsel %vm1189_vm2, %v16361_v20, %v16360_v38  ;;  %v16363_v36 = vld [vmem:[#allocation111_spill] sm:$0xff]  ;;  %v16366_v23 = vld [vmem:[#allocation104_spill] sm:$0xff] }
 0x2f3   : > { %16353 = vst [vmem:[#allocation31_spill] sm:$0xff] %v11716_v59  ;;  %v1002_v4 = vsel %vm980_vm1, %v16355_v7, %v16362_v62  ;;  %v1056_v30 = vadd.f32 %v1001_v32, %v847_v55  ;;  %v1054_v0 = vadd.f32 %v999_v24, %v845_v37  ;;  %v1055_v41 = vadd.f32 %v1000_v63, %v846_v39  ;;  %v16364_v7 = vld [vmem:[#allocation101_spill] sm:$0xff]  ;;  %v16371_v62 = vld [vmem:[#allocation107_spill] sm:$0xff] }
 0x2f4   : > { %v1050_v16 = vadd.f32 %v996_v21, %v841_v47  ;;  %v1203_v20 = vsel %vm1189_vm2, %v16360_v38, %v16363_v36  ;;  %v1256_v55 = vadd.f32 %v1202_v57, %v1047_v12  ;;  %v1057_v47 = vadd.f32 %v1002_v4, %v848_v3  ;;  %v16373_v57 = vld [vmem:[#allocation109_spill] sm:$0xff] }
 0x2f5   : > { %2270 = vrot.lane.b32.xlu0 %v11309_v28, %s16226_s20  ;;  %2059 = vrot.lane.b32.xlu2 %v11365_v5, %s16175_s1  ;;  %v1204_v28 = vsel %vm1189_vm2, %v16363_v36, %v16364_v7  ;;  %v1210_v5 = vsel %vm1189_vm2, %v16366_v23, %v16365_v19  ;;  %v16368_v32 = vmax.f32 %v11707_v2, 0.0  ;;  %v16369_v63 = vmax.f32 %v11710_v51, 0.0  ;;  %v16374_v4 = vld [vmem:[#allocation117_spill] sm:$0xff]  ;;  %v16376_v51 = vld [vmem:[#allocation110_spill] sm:$0xff]  ;;  %v16379_v2 = vld [vmem:[#allocation115_spill] sm:$0xff] }
 0x2f6   : > { %2043 = vrot.lane.b32.xlu1 %v11282_v18, %s16175_s1  ;;  %v16367_v18 = vmax.f32 %v11689_v54, 0.0  ;;  %v16370_v21 = vmax.f32 %v11716_v59, 0.0  ;;  %v1211_v61 = vsel %vm1189_vm2, %v16365_v19, %v16371_v62  ;;  %v16377_v19 = vld [vmem:[#allocation116_spill] sm:$0xff]  ;;  %v16382_v62 = vld [vmem:[#allocation126_spill] sm:$0xff] }
 0x2f7   : > { %v11766_v48 = vpop.permute.xlu0 %1563  ;;  %v11768_v37 = vpop.permute.xlu2 %2011  ;;  %v9663_v24 = vpack.i.bf16 %v16368_v32, %v16011_v50  ;;  %v1205_v32 = vsel %vm1189_vm2, %v16364_v7, %v16374_v4  ;;  %v1258_v50 = vadd.f32 %v1204_v28, %v1049_v49 }
 0x2f8   : > { %v9668_v39 = vpack.i.bf16 %v16367_v18, %v16010_v34  ;;  %v11774_v38 = vpop.permute.xlu1 %1561  ;;  %v11784_v36 = vpack.i.bf16 %v16370_v21, %v16369_v63  ;;  %v16372_v18 = vld [vmem:[#allocation114_spill] sm:$0xff]  ;;  %v1257_v34 = vadd.f32 %v1203_v20, %v1048_v60  ;;  %v1265_v63 = vadd.f32 %v1210_v5, %v1056_v30  ;;  %v16380_v60 = vld [vmem:[#allocation113_spill] sm:$0xff] }
 0x2f9   : > { %v1208_v12 = vsel %vm1189_vm2, %v16373_v57, %v16372_v18  ;;  %v1209_v3 = vsel %vm1189_vm2, %v16372_v18, %v16366_v23  ;;  %v16375_v21 = vld [vmem:[#allocation118_spill] sm:$0xff]  ;;  %v16378_v57 = vld [vmem:[#allocation120_spill] sm:$0xff]  ;;  %v1418_v49 = vsel %vm1398_vm3, %v16380_v60, %v10994_v1  ;;  %v1266_v30 = vadd.f32 %v1211_v61, %v1057_v47  ;;  %v16381_v18 = vld [vmem:[#allocation123_spill] sm:$0xff] }
 0x2fa   : > { %v1413_v59 = vsel %vm1398_vm3, %v16376_v51, %v16375_v21  ;;  %v1414_v54 = vsel %vm1398_vm3, %v16375_v21, %v16377_v19  ;;  %v1411_v35 = vsel %vm1398_vm3, %v16379_v2, %v16378_v57  ;;  %v1412_v23 = vsel %vm1398_vm3, %v16378_v57, %v16376_v51  ;;  %v16387_v47 = vld [vmem:[#allocation131_spill] sm:$0xff] }
 0x2fb   : > { %v1263_v20 = vadd.f32 %v1208_v12, %v1054_v0  ;;  %v1264_v7 = vadd.f32 %v1209_v3, %v1055_v41  ;;  %v1259_v28 = vadd.f32 %v1205_v32, %v1050_v16  ;;  %v1467_v5 = vadd.f32 %v1413_v59, %v1258_v50  ;;  %v16383_v50 = vld [vmem:[#allocation124_spill] sm:$0xff]  ;;  %v16384_v0 = vld [vmem:[#allocation119_spill] sm:$0xff]  ;;  %v16388_v3 = vld [vmem:[#allocation133_spill] sm:$0xff] }
 0x2fc   : > { %v1417_v21 = vsel %vm1398_vm3, %v16381_v18, %v16380_v60  ;;  %v1419_v2 = vsel %vm1398_vm3, %v10994_v1, %v16382_v62  ;;  %v1465_v57 = vadd.f32 %v1411_v35, %v1256_v55  ;;  %v1466_v19 = vadd.f32 %v1412_v23, %v1257_v34  ;;  %v16385_v1 = vld [vmem:[#allocation129_spill] sm:$0xff] }
 0x2fd   : > { %9669 = vrot.lane.b32.xlu0 %v9668_v39, %s16050_s27  ;;  %9664 = vrot.lane.b32.xlu2 %v9663_v24, %s16050_s27  ;;  %v1468_v51 = vadd.f32 %v1414_v54, %v1259_v28  ;;  %v1473_v61 = vadd.f32 %v1418_v49, %v1264_v7  ;;  %v1420_v59 = vsel %vm1398_vm3, %v16382_v62, %v16383_v50  ;;  %v16386_v54 = vld [vmem:[#allocation122_spill] sm:$0xff]  ;;  %v16389_v23 = vld [vmem:[#allocation125_spill] sm:$0xff] }
 0x2fe   : > { %2286 = vrot.lane.b32.xlu1 %v11351_v10, %s16226_s20  ;;  %v1621_v41 = vsel %vm1607_vm4, %v16384_v0, %v11027_v44  ;;  %v1620_v16 = vsel %vm1607_vm4, %v16385_v1, %v16384_v0  ;;  %v1626_v35 = vsel %vm1607_vm4, %v16386_v54, %v11042_v11  ;;  %v1472_v10 = vadd.f32 %v1417_v21, %v1263_v20  ;;  %v16391_v0 = vld [vmem:[#allocation130_spill] sm:$0xff] }
 0x2ff   : > { %v11835_v34 = vpop.permute.xlu0 %1796  ;;  %v11837_v39 = vpop.permute.xlu2 %2254  ;;  %v1474_v55 = vadd.f32 %v1419_v2, %v1265_v63  ;;  %v1622_v62 = vsel %vm1607_vm4, %v11027_v44, %v16387_v47  ;;  %v1623_v24 = vsel %vm1607_vm4, %v16387_v47, %v11057_v27  ;;  %v1627_v32 = vsel %vm1607_vm4, %v11042_v11, %v16388_v3  ;;  %v16390_v63 = vld [vmem:[#allocation128_spill] sm:$0xff]  ;;  %v16392_v50 = vld [vmem:[#allocation138_spill] sm:$0xff] }
 0x300   : > { %v11845_v12 = vpop.permute.xlu1 %1577  ;;  %v1628_v60 = vsel %vm1607_vm4, %v16388_v3, %v16389_v23  ;;  %v1849_v49 = vsel %vm1834_vm5, %v16390_v63, %v11072_v9  ;;  %v1629_v44 = vsel %vm1607_vm4, %v16389_v23, %v11076_v29  ;;  %v1475_v20 = vadd.f32 %v1420_v59, %v1266_v30  ;;  %v16393_v23 = vld [vmem:[#allocation132_spill] sm:$0xff]  ;;  %v16394_v30 = vld [vmem:[#allocation134_spill] sm:$0xff]  ;;  %v16397_v59 = vld [vmem:[#allocation175_spill] sm:$0xff] }
 0x301   : > { %v1675_v7 = vadd.f32 %v1621_v41, %v1466_v19  ;;  %v1674_v28 = vadd.f32 %v1620_v16, %v1465_v57  ;;  %v1681_v18 = vadd.f32 %v1626_v35, %v1472_v10  ;;  %v1676_v21 = vadd.f32 %v1622_v62, %v1467_v5  ;;  %v16396_v57 = vld [vmem:[#allocation136_spill] sm:$0xff]  ;;  %v16399_v35 = vld [vmem:[#allocation143_spill] sm:$0xff] }
 0x302   : > { %v1677_v2 = vadd.f32 %v1623_v24, %v1468_v51  ;;  %v1850_v11 = vsel %vm1834_vm5, %v11072_v9, %v11091_v17  ;;  %v1851_v1 = vsel %vm1834_vm5, %v11091_v17, %v16391_v0  ;;  %v1682_v54 = vadd.f32 %v1627_v32, %v1473_v61  ;;  %v16395_v51 = vld [vmem:[#allocation140_spill] sm:$0xff]  ;;  %v16398_v17 = vld [vmem:[#allocation169_spill] sm:$0xff]  ;;  %v16402_v24 = vld [vmem:[#allocation146_spill] sm:$0xff] }
 0x303   : > { %v1683_v47 = vadd.f32 %v1628_v60, %v1474_v55  ;;  %v1905_v3 = vadd.f32 %v1849_v49, %v1674_v28  ;;  %v1684_v63 = vadd.f32 %v1629_v44, %v1475_v20  ;;  %v1858_v19 = vsel %vm1834_vm5, %v16393_v23, %v16392_v50  ;;  %v16400_v10 = vld [vmem:[#allocation144_spill] sm:$0xff]  ;;  %v16401_v55 = vld [vmem:[#allocation137_spill] sm:$0xff]  ;;  %v16404_v44 = vld [vmem:[#allocation139_spill] sm:$0xff] }
 0x304   : > { %v1859_v5 = vsel %vm1834_vm5, %v16392_v50, %v16394_v30  ;;  %v1856_v9 = vsel %vm1834_vm5, %v16396_v57, %v16395_v51  ;;  %v1906_v61 = vadd.f32 %v1850_v11, %v1675_v7  ;;  %v1907_v41 = vadd.f32 %v1851_v1, %v1676_v21  ;;  %v16403_v32 = vld [vmem:[#allocation141_spill] sm:$0xff]  ;;  %v16406_v1 = vld [vmem:[#allocation147_spill] sm:$0xff] }
 0x305   : > { %2288 = vrot.lane.b32.xlu0 %v16397_v59, %s16226_s20  ;;  %2272 = vrot.lane.b32.xlu2 %v16398_v17, %s16226_s20  ;;  %v1857_v16 = vsel %vm1834_vm5, %v16395_v51, %v16393_v23  ;;  %v1852_v50 = vsel %vm1834_vm5, %v16391_v0, %v16399_v35  ;;  %v2080_v62 = vsel %vm2063_vm6, %v16401_v55, %v16400_v10  ;;  %v16405_v20 = vld [vmem:[#allocation149_spill] sm:$0xff]  ;;  %v16407_v17 = vld [vmem:[#allocation142_spill] sm:$0xff] }
 0x306   : > { %9674 = vrot.lane.b32.xlu1 %v11729_v42, %s16050_s27  ;;  %v2078_v60 = vsel %vm2063_vm6, %v16403_v32, %v16402_v24  ;;  %v2079_v49 = vsel %vm2063_vm6, %v16402_v24, %v16401_v55  ;;  %v2085_v7 = vsel %vm2063_vm6, %v16405_v20, %v16404_v44  ;;  %v1914_v42 = vadd.f32 %v1858_v19, %v1683_v47  ;;  %v16408_v24 = vld [vmem:[#allocation156_spill] sm:$0xff] }
 0x307   : > { %v11898_v28 = vpop.permute.xlu0 %2009  ;;  %v11900_v21 = vpop.permute.xlu2 %2240  ;;  %v1915_v11 = vadd.f32 %v1859_v5, %v1684_v63  ;;  %v1912_v0 = vadd.f32 %v1856_v9, %v1681_v18  ;;  %v2086_v23 = vsel %vm2063_vm6, %v16404_v44, %v16406_v1  ;;  %v1913_v57 = vadd.f32 %v1857_v16, %v1682_v54  ;;  %v16409_v32 = vld [vmem:[#allocation148_spill] sm:$0xff]  ;;  %v16411_v44 = vld [vmem:[#allocation150_spill] sm:$0xff] }
 0x308   : > { %v11905_v51 = vpop.permute.xlu1 %1782  ;;  %v1908_v59 = vadd.f32 %v1852_v50, %v1677_v2  ;;  %v2081_v55 = vsel %vm2063_vm6, %v16400_v10, %v16407_v17  ;;  %v2314_v20 = vsel %vm2292_vm7, %v16409_v32, %v16408_v24  ;;  %v2136_v30 = vadd.f32 %v2080_v62, %v1907_v41  ;;  %v16410_v5 = vld [vmem:[#allocation152_spill] sm:$0xff]  ;;  %v16412_v54 = vld [vmem:[#allocation162_spill] sm:$0xff]  ;;  %v16413_v50 = vld [vmem:[#allocation153_spill] sm:$0xff] }
 0x309   : > { %v2134_v47 = vadd.f32 %v2078_v60, %v1905_v3  ;;  %v2135_v63 = vadd.f32 %v2079_v49, %v1906_v61  ;;  %v2141_v18 = vadd.f32 %v2085_v7, %v1912_v0  ;;  %v2142_v19 = vadd.f32 %v2086_v23, %v1913_v57  ;;  %v16414_v10 = vld [vmem:[#allocation145_spill] sm:$0xff]  ;;  %v16415_v3 = vld [vmem:[#allocation155_spill] sm:$0xff]  ;;  %v16416_v60 = vld [vmem:[#allocation158_spill] sm:$0xff] }
 0x30a   : > { %v2087_v9 = vsel %vm2063_vm6, %v16406_v1, %v16410_v5  ;;  %v2088_v2 = vsel %vm2063_vm6, %v16410_v5, %v16411_v44  ;;  %v2315_v16 = vsel %vm2292_vm7, %v16408_v24, %v16412_v54  ;;  %v2308_v41 = vsel %vm2292_vm7, %v16414_v10, %v16413_v50  ;;  %v16417_v7 = vld [vmem:[#allocation154_spill] sm:$0xff]  ;;  %v16418_v1 = vld [vmem:[#allocation160_spill] sm:$0xff]  ;;  %v16420_v24 = vld [vmem:[#allocation151_spill] sm:$0xff] }
 0x30b   : > { %v2307_v61 = vsel %vm2292_vm7, %v16415_v3, %v16414_v10  ;;  %v2370_v62 = vadd.f32 %v2314_v20, %v2141_v18  ;;  %v2309_v49 = vsel %vm2292_vm7, %v16413_v50, %v16416_v60  ;;  %v2310_v0 = vsel %vm2292_vm7, %v16416_v60, %v16417_v7  ;;  %v16419_v23 = vld [vmem:[#allocation12_spill] sm:$0xff]  ;;  %v16422_v20 = vld [vmem:[#allocation163_spill] sm:$0xff]  ;;  %v16423_v7 = vld [vmem:[#allocation173_spill] sm:$0xff] }
 0x30c   : > { %v776_v57 = vsel %vm771_vm0, %v16419_v23, %v16418_v1  ;;  %v2316_v32 = vsel %vm2292_vm7, %v16412_v54, %v16420_v24  ;;  %v16421_v5 = vld [vmem:[#allocation168_spill] sm:$0xff]  ;;  %v2137_v18 = vadd.f32 %v2081_v55, %v1908_v59  ;;  %v2143_v50 = vadd.f32 %v2087_v9, %v1914_v42  ;;  %v16426_v55 = vld [vmem:[#allocation157_spill] sm:$0xff] }
 0x30d   : > { %1800 = vrot.lane.b32.xlu0 %v16421_v5, %s9987_s19  ;;  %1784 = vrot.lane.b32.xlu2 %v16422_v20, %s9987_s19  ;;  %v2144_v10 = vadd.f32 %v2088_v2, %v1915_v11  ;;  %v2371_v3 = vadd.f32 %v2315_v16, %v2142_v19  ;;  %v2364_v60 = vadd.f32 %v2308_v41, %v2135_v63  ;;  %v16425_v20 = vld [vmem:[#allocation176_spill] sm:$0xff]  ;;  %v16428_v9 = vld [vmem:[#allocation161_spill] sm:$0xff] }
 0x30e   : > { %9679 = vrot.lane.b32.xlu1 %v11784_v36, %s16050_s27  ;;  %v2363_v44 = vadd.f32 %v2307_v61, %v2134_v47  ;;  %v2365_v23 = vadd.f32 %v2309_v49, %v2136_v30  ;;  %v782_v54 = vsel %vm771_vm0, %v10444_v26, %v16423_v7  ;;  %v2366_v29 = vadd.f32 %v2310_v0, %v2137_v18  ;;  %v16427_v36 = vld [vmem:[#allocation170_spill] sm:$0xff]  ;;  %v16429_v41 = vld [vmem:[#allocation172_spill] sm:$0xff]  ;;  %v16431_v0 = vld [vmem:[#allocation179_spill] sm:$0xff] }
 0x30f   : > { %v11949_v17 = vpop.permute.xlu0 %2027  ;;  %v11951_v5 = vpop.permute.xlu2 %769  ;;  %v828_v59 = vadd.f32 %v776_v57, %v16425_v20  ;;  %v2372_v42 = vadd.f32 %v2316_v32, %v2143_v50  ;;  %v2422_v19 = vmul.f32 %v16426_v55, %v2370_v62  ;;  %v2317_v30 = vsel %vm2292_vm7, %v16420_v24, %v16427_v36  ;;  %v16430_v62 = vld [vmem:[#allocation14_spill] sm:$0xff]  ;;  %v16438_v20 = vld [vmem:[#allocation171_spill] sm:$0xff] }
 0x310   : > { %16424 = vst [vmem:[#allocation24_spill] sm:$0xff] %v11951_v5  ;;  %v11954_v11 = vpop.permute.xlu1 %2025  ;;  %v2417_v47 = vmul.f32 %v11417_v33, %v2365_v23  ;;  %v2415_v26 = vmul.f32 %v11417_v33, %v2363_v44  ;;  %v2416_v63 = vmul.f32 %v11417_v33, %v2364_v60  ;;  %v985_v2 = vsel %vm980_vm1, %v16259_v14, %v16428_v9 }
 0x311   : > { %v2423_v16 = vmul.f32 %v16426_v55, %v2371_v3  ;;  %v835_v61 = vadd.f32 %v782_v54, %v16429_v41  ;;  %v991_v49 = vsel %vm980_vm1, %v16430_v62, %v11464_v31  ;;  %v1194_v57 = vsel %vm1189_vm2, %v16264_v46, %v16431_v0  ;;  %v16435_v3 = vld [vmem:[#allocation29_spill] sm:$0xff]  ;;  %v16436_v46 = vld [vmem:[#allocation167_spill] sm:$0xff]  ;;  %v16437_v54 = vld [vmem:[#allocation164_spill] sm:$0xff] }
 0x312   : > { %v11975_v44 = vadd.f32 %v11540_v40, %v2417_v47  ;;  %v11978_v24 = vadd.f32 %v11540_v40, %v2415_v26  ;;  %v11981_v14 = vadd.f32 %v11540_v40, %v2416_v63  ;;  %v1037_v32 = vadd.f32 %v985_v2, %v828_v59  ;;  %v16443_v2 = vld [vmem:[#allocation42_spill] sm:$0xff] }
 0x313   : > { %v2424_v18 = vmul.f32 %v16426_v55, %v2372_v42  ;;  %v2373_v50 = vadd.f32 %v2317_v30, %v2144_v10  ;;  %v1200_v60 = vsel %vm1189_vm2, %v16435_v3, %v11581_v58  ;;  %v1044_v23 = vadd.f32 %v991_v49, %v835_v61  ;;  %v16441_v42 = vld [vmem:[#allocation13_spill] sm:$0xff]  ;;  %v16444_v61 = vld [vmem:[#allocation166_spill] sm:$0xff] }
 0x314   : > { %16432 = vst [vmem:[#allocation33_spill] sm:$0xff] %v11975_v44  ;;  %v11992_v47 = vadd.f32 %v16438_v20, %v2422_v19  ;;  %v11995_v26 = vadd.f32 %v16438_v20, %v2423_v16  ;;  %v1246_v59 = vadd.f32 %v1194_v57, %v1037_v32  ;;  %v783_v10 = vsel %vm771_vm0, %v16423_v7, %v16441_v42  ;;  %v16442_v30 = vld [vmem:[#allocation37_spill] sm:$0xff]  ;;  %v16446_v3 = vld [vmem:[#allocation178_spill] sm:$0xff] }
 0x315   : > { %16433 = vst [vmem:[#allocation34_spill] sm:$0xff] %v11978_v24  ;;  %2242 = vrot.lane.b32.xlu0 %v16436_v46, %s16226_s20  ;;  %2029 = vrot.lane.b32.xlu2 %v16437_v54, %s16175_s1  ;;  %v1403_v63 = vsel %vm1398_vm3, %v16442_v30, %v11635_v13  ;;  %v1409_v41 = vsel %vm1398_vm3, %v16443_v2, %v11701_v15  ;;  %v16447_v54 = vld [vmem:[#allocation51_spill] sm:$0xff]  ;;  %v16448_v7 = vld [vmem:[#allocation174_spill] sm:$0xff] }
 0x316   : > { %16434 = vst [vmem:[#allocation27_spill] sm:$0xff] %v11981_v14  ;;  %2013 = vrot.lane.b32.xlu1 %v16444_v61, %s16175_s1  ;;  %v1253_v19 = vadd.f32 %v1200_v60, %v1044_v23  ;;  %v2425_v32 = vmul.f32 %v16426_v55, %v2373_v50  ;;  %v777_v46 = vsel %vm771_vm0, %v16418_v1, %v16446_v3  ;;  %v16021_v50 = vmax.f32 %v11992_v47, 0.0  ;;  %v16449_v42 = vld [vmem:[#allocation22_spill] sm:$0xff] }
 0x317   : > { %16439 = vst [vmem:[#allocation36_spill] sm:$0xff] %v11992_v47  ;;  %v12008_v62 = vpop.permute.xlu0 %753  ;;  %v12010_v16 = vpop.permute.xlu2 %964  ;;  %v1612_v60 = vsel %vm1607_vm4, %v16447_v54, %v11774_v38  ;;  %v2418_v30 = vmul.f32 %v11417_v33, %v2366_v29  ;;  %v992_v2 = vsel %vm980_vm1, %v11464_v31, %v11585_v56  ;;  %v1455_v61 = vadd.f32 %v1403_v63, %v1246_v59  ;;  %v16452_v29 = vld [vmem:[#allocation177_spill] sm:$0xff]  ;;  %v16467_v47 = vld [vmem:[#allocation8_spill] sm:$0xff] }
 0x318   : > { %16440 = vst [vmem:[#allocation39_spill] sm:$0xff] %v11995_v26  ;;  %v12022_v23 = vpop.permute.xlu1 %2238  ;;  %v1462_v57 = vadd.f32 %v1409_v41, %v1253_v19  ;;  %v836_v49 = vadd.f32 %v783_v10, %v16448_v7  ;;  %v986_v1 = vsel %vm980_vm1, %v16428_v9, %v16449_v42  ;;  %v12034_v54 = vadd.f32 %v16438_v20, %v2424_v18  ;;  %v16456_v9 = vld [vmem:[#allocation41_spill] sm:$0xff] }
 0x319   : > { %16445 = vst [vmem:[#allocation30_spill] sm:$0xff] %v12010_v16  ;;  %v12037_v3 = vadd.f32 %v11540_v40, %v2418_v30  ;;  %v829_v55 = vadd.f32 %v777_v46, %v16452_v29  ;;  %v1664_v33 = vadd.f32 %v1612_v60, %v1455_v61  ;;  %v16453_v31 = vmax.f32 %v11975_v44, 0.0  ;;  %v16458_v30 = vld [vmem:[#allocation23_spill] sm:$0xff] }
 0x31a   : > { %16450 = vst [vmem:[#allocation40_spill] sm:$0xff] %v12034_v54  ;;  %v16454_v10 = vmax.f32 %v11978_v24, 0.0  ;;  %v16455_v63 = vmax.f32 %v11981_v14, 0.0  ;;  %v1618_v18 = vsel %vm1607_vm4, %v16456_v9, %v11583_v53  ;;  %v1045_v19 = vadd.f32 %v992_v2, %v836_v49  ;;  %v16459_v49 = vld [vmem:[#allocation15_spill] sm:$0xff]  ;;  %v16460_v2 = vld [vmem:[#allocation50_spill] sm:$0xff] }
 0x31b   : > { %16451 = vst [vmem:[#allocation32_spill] sm:$0xff] %v12037_v3  ;;  %v9688_v59 = vpack.i.bf16 %v16021_v50, %v16453_v31  ;;  %v1846_v7 = vsel %vm1834_vm5, %v16304_v52, %v11835_v34  ;;  %v12055_v46 = vadd.f32 %v16438_v20, %v2425_v32  ;;  %v1038_v60 = vadd.f32 %v986_v1, %v829_v55  ;;  %v16461_v52 = vld [vmem:[#allocation67_spill] sm:$0xff]  ;;  %v16462_v55 = vld [vmem:[#allocation72_spill] sm:$0xff] }
 0x31c   : > { %v9683_v41 = vpack.i.bf16 %v16455_v63, %v16454_v10  ;;  %v1195_v61 = vsel %vm1189_vm2, %v16431_v0, %v16458_v30  ;;  %v1671_v29 = vadd.f32 %v1618_v18, %v1462_v57  ;;  %v1839_v10 = vsel %vm1834_vm5, %v16460_v2, %v16459_v49  ;;  %v16463_v0 = vld [vmem:[#allocation165_spill] sm:$0xff] }
 0x31d   : > { %16457 = vst [vmem:[#allocation35_spill] sm:$0xff] %v12055_v46  ;;  %9689 = vrot.lane.b32.xlu0 %v9688_v59, %s16050_s27  ;;  %v2068_v32 = vsel %vm2063_vm6, %v16461_v52, %v11898_v28  ;;  %v2075_v1 = vsel %vm2063_vm6, %v16462_v55, %v11954_v11  ;;  %v16464_v59 = vld [vmem:[#allocation17_spill] sm:$0xff]  ;;  %v1895_v18 = vadd.f32 %v1839_v10, %v1664_v33  ;;  %v16470_v44 = vmax.f32 %v12037_v3, 0.0 }
 0x31e   : > { %9684 = vrot.lane.b32.xlu2 %v9683_v41, %s16050_s27  ;;  %2258 = vrot.lane.b32.xlu1 %v16463_v0, %s16226_s20  ;;  %v1201_v63 = vsel %vm1189_vm2, %v11581_v58, %v16464_v59  ;;  %v1410_v41 = vsel %vm1398_vm3, %v11701_v15, %v11694_v22  ;;  %v1902_v9 = vadd.f32 %v1846_v7, %v1671_v29  ;;  %v16466_v0 = vld [vmem:[#allocation80_spill] sm:$0xff]  ;;  %v16026_v29 = vmax.f32 %v12055_v46, 0.0 }
 0x31f   : > { %v12081_v2 = vpop.permute.xlu0 %2256  ;;  %v12083_v52 = vpop.permute.xlu2 %1185  ;;  %v1247_v55 = vadd.f32 %v1195_v61, %v1038_v60  ;;  %v1254_v50 = vadd.f32 %v1201_v63, %v1045_v19  ;;  %v2297_v31 = vsel %vm2292_vm7, %v16466_v0, %v12022_v23  ;;  %v1619_v15 = vsel %vm1607_vm4, %v11583_v53, %v11845_v12  ;;  %v16468_v60 = vld [vmem:[#allocation159_spill] sm:$0xff] }
 0x320   : > { %16465 = vst [vmem:[#allocation45_spill] sm:$0xff] %v12081_v2  ;;  %v12088_v57 = vpop.permute.xlu1 %767  ;;  %v2124_v7 = vadd.f32 %v2068_v32, %v1895_v18  ;;  %v2131_v33 = vadd.f32 %v2075_v1, %v1902_v9  ;;  %v1729_v19 = vmul.f32 %v16468_v60, %v16467_v47  ;;  %v16469_v61 = vld [vmem:[#allocation19_spill] sm:$0xff]  ;;  %v1613_v0 = vsel %vm1607_vm4, %v11774_v38, %v11766_v48 }
 0x321   : > { %v1463_v10 = vadd.f32 %v1410_v41, %v1254_v50  ;;  %v1404_v63 = vsel %vm1398_vm3, %v11635_v13, %v16469_v61  ;;  %v9698_v53 = vpack.i.bf16 %v16026_v29, %v16470_v44  ;;  %v16471_v50 = vld [vmem:[#allocation88_spill] sm:$0xff]  ;;  %v16472_v41 = vmax.f32 %v11995_v26, 0.0 }
 0x322   : > { %v2353_v58 = vadd.f32 %v2297_v31, %v2124_v7  ;;  %v1456_v32 = vadd.f32 %v1404_v63, %v1247_v55  ;;  %v2304_v1 = vsel %vm2292_vm7, %v16471_v50, %v11837_v39  ;;  %v16473_v13 = vmax.f32 %v12034_v54, 0.0  ;;  %v16488_v54 = vld [vmem:[#allocation71_spill] sm:$0xff] }
 0x323   : > { %v1672_v47 = vadd.f32 %v1619_v15, %v1463_v10  ;;  %v1840_v38 = vsel %vm1834_vm5, %v16459_v49, %v11905_v51  ;;  %v2360_v31 = vadd.f32 %v2304_v1, %v2131_v33  ;;  %v1847_v18 = vsel %vm1834_vm5, %v11835_v34, %v11696_v8  ;;  %v16476_v1 = vld [vmem:[#allocation7_spill] sm:$0xff] }
 0x324   : > { %v9693_v9 = vpack.i.bf16 %v16473_v13, %v16472_v41  ;;  %v1665_v44 = vadd.f32 %v1613_v0, %v1456_v32  ;;  %v2076_v55 = vsel %vm2063_vm6, %v11954_v11, %v11949_v17  ;;  %v2405_v15 = vmul.f32 %v16342_v45, %v2353_v58  ;;  %v16477_v13 = vld [vmem:[#allocation6_spill] sm:$0xff] }
 0x325   : > { %1816 = vrot.lane.b32.xlu0 %v1729_v19, %s9987_s19  ;;  %v1903_v10 = vadd.f32 %v1847_v18, %v1672_v47  ;;  %v2412_v63 = vmul.f32 %v16331_v6, %v2360_v31  ;;  %v2305_v34 = vsel %vm2292_vm7, %v11837_v39, %v12081_v2  ;;  %v2069_v58 = vsel %vm2063_vm6, %v11898_v28, %v11768_v37  ;;  %v16478_v28 = vld [vmem:[#allocation95_spill] sm:$0xff] }
 0x326   : > { %9699 = vrot.lane.b32.xlu2 %v9698_v53, %s16050_s27  ;;  %9694 = vrot.lane.b32.xlu1 %v9693_v9, %s16050_s27  ;;  %v1896_v33 = vadd.f32 %v1840_v38, %v1665_v44  ;;  %v16474_v53 = vld [vmem:[#allocation3_spill] sm:$0xff]  ;;  %v2298_v32 = vsel %vm2292_vm7, %v12022_v23, %v11900_v21  ;;  %v12146_v50 = vadd.f32 %v16347_v43, %v2405_v15 }
 0x327   : > { %v12127_v7 = vpop.permute.xlu0 %962  ;;  %v12129_v49 = vpop.permute.xlu2 %1380  ;;  %v2132_v0 = vadd.f32 %v2076_v55, %v1903_v10  ;;  %v1958_v11 = vmul.f32 %v16474_v53, %v16468_v60  ;;  %v1966_v47 = vmul.f32 %v16476_v1, %v16468_v60  ;;  %v1737_v9 = vmul.f32 %v16468_v60, %v16477_v13 }
 0x328   : > { %v12131_v19 = vpop.permute.xlu1 %755  ;;  %16475 = vst [vmem:[#allocation46_spill] sm:$0xff] %v12146_v50  ;;  %v2125_v41 = vadd.f32 %v2069_v58, %v1896_v33  ;;  %v12155_v38 = vadd.f32 %v16478_v28, %v2412_v63  ;;  %v16028_v23 = vmax.f32 %v12146_v50, 0.0 }
 0x329   : > { %v2361_v39 = vadd.f32 %v2305_v34, %v2132_v0  ;;  %v16480_v34 = vld [vmem:[#allocation9_spill] sm:$0xff] }
 0x32a   : > { %16479 = vst [vmem:[#allocation38_spill] sm:$0xff] %v12155_v38  ;;  %v2354_v31 = vadd.f32 %v2298_v32, %v2125_v41  ;;  %v16027_v33 = vmax.f32 %v12155_v38, 0.0  ;;  %v2195_v0 = vmul.f32 %v16480_v34, %v16468_v60  ;;  %v16487_v38 = vld [vmem:[#allocation96_spill] sm:$0xff] }
 0x32b   : > { %v2413_v55 = vmul.f32 %v16331_v6, %v2361_v39  ;;  %v794_v50 = vsel %vm771_vm0, %v16487_v38, %v12088_v57  ;;  %v16490_v38 = vld [vmem:[#allocation121_spill] sm:$0xff] }
 0x32c   : > { %v2406_v10 = vmul.f32 %v16342_v45, %v2354_v31  ;;  %v9703_v63 = vpack.i.bf16 %v16027_v33, %v16028_v23  ;;  %v16485_v33 = vld [vmem:[#allocation81_spill] sm:$0xff]  ;;  %v16486_v23 = vld [vmem:[#allocation2_spill] sm:$0xff] }
 0x32d   : > { %2061 = vrot.lane.b32.xlu0 %v1966_v47, %s16175_s1  ;;  %v12173_v53 = vadd.f32 %v16478_v28, %v2413_v55  ;;  %v612_v26 = vmul.f32 %v16486_v23, %v16488_v54  ;;  %v16489_v28 = vld [vmem:[#allocation108_spill] sm:$0xff]  ;;  %v606_v45 = vmul.f32 %v16490_v38, %v16485_v33 }
 0x32e   : > { %2045 = vrot.lane.b32.xlu2 %v1958_v11, %s16175_s1  ;;  %1832 = vrot.lane.b32.xlu1 %v1737_v9, %s9987_s19  ;;  %v16482_v11 = vld [vmem:[#allocation4_spill] sm:$0xff]  ;;  %v12180_v32 = vadd.f32 %v16347_v43, %v2406_v10  ;;  %s9992_s19 = smov 113   ;;  %s16054_s1 = smov 114  }
 0x32f   : > { %v12159_v44 = vpop.permute.xlu0 %978  ;;  %v12161_v18 = vpop.permute.xlu2 %1396  ;;  %16481 = vst [vmem:[#allocation48_spill] sm:$0xff] %v12173_v53  ;;  %v2187_v58 = vmul.f32 %v16482_v11, %v16468_v60  ;;  %v16025_v41 = vmax.f32 %v12173_v53, 0.0  ;;  %v997_v53 = vsel %vm980_vm1, %v16359_v25, %v12127_v7  ;;  %v849_v25 = vadd.f32 %v794_v50, %v612_v26  ;;  %v16491_v26 = vld [vmem:[#allocation116_spill] sm:$0xff] }
 0x330   : > { %v977_v15 = vpop.permute.xlu1 %976  ;;  %16483 = vst [vmem:[#allocation43_spill] sm:$0xff] %v12180_v32  ;;  %v16024_v13 = vmax.f32 %v12180_v32, 0.0  ;;  %v605_v32 = vmul.f32 %v16486_v23, %v16485_v33  ;;  %v1415_v50 = vsel %vm1398_vm3, %v16491_v26, %v12129_v49 }
 0x331   : > { %v1003_v6 = vsel %vm980_vm1, %v16489_v28, %v977_v15  ;;  %v16492_v28 = vld [vmem:[#allocation107_spill] sm:$0xff] }
 0x332   : > { %v9708_v60 = vpack.i.bf16 %v16025_v41, %v16024_v13  ;;  %v16484_v41 = vld [vmem:[#allocation91_spill] sm:$0xff]  ;;  %v1058_v24 = vadd.f32 %v1003_v6, %v849_v25  ;;  %v1212_v6 = vsel %vm1189_vm2, %v16492_v28, %v12083_v52 }
 0x333   : > { %v788_v29 = vsel %vm771_vm0, %v16484_v41, %v12008_v62 }
 0x334   : > { %v842_v46 = vadd.f32 %v788_v29, %v605_v32  ;;  %v789_v29 = vsel %vm771_vm0, %v12008_v62, %v12131_v19 }
 0x335   : > { %9704 = vrot.lane.b32.xlu0 %v9703_v63, %s16050_s27  ;;  %v843_v2 = vadd.f32 %v789_v29, %v606_v45  ;;  %v998_v45 = vsel %vm980_vm1, %v12127_v7, %v12010_v16  ;;  %v16494_v16 = vld [vmem:[#allocation135_spill] sm:$0xff] }
 0x336   : > { %2290 = vrot.lane.b32.xlu2 %v2195_v0, %s16226_s20  ;;  %2274 = vrot.lane.b32.xlu1 %v2187_v58, %s16226_s20  ;;  %v1051_v43 = vadd.f32 %v997_v53, %v842_v46  ;;  %v795_v46 = vsel %vm771_vm0, %v12088_v57, %v11951_v5  ;;  %s16557_s20 = smov 126  }
 0x337   : > { %v12183_v1 = vpop.permute.xlu0 %1173  ;;  %v12185_v47 = vpop.permute.xlu2 %1591  ;;  %v1052_v28 = vadd.f32 %v998_v45, %v843_v2 }
 0x338   : > { %v1172_v39 = vpop.permute.xlu1 %1171 }
 0x339   : > { %v1206_v41 = vsel %vm1189_vm2, %v16374_v4, %v1172_v39  ;;  %v613_v4 = vmul.f32 %v16490_v38, %v16488_v54  ;;  %v1207_v25 = vsel %vm1189_vm2, %v1172_v39, %v12183_v1 }
 0x33a   : > { %v1260_v23 = vadd.f32 %v1206_v41, %v1051_v43  ;;  %v16493_v43 = vld [vmem:[#allocation124_spill] sm:$0xff]  ;;  %v1004_v41 = vsel %vm980_vm1, %v977_v15, %v12159_v44 }
 0x33b   : > { %v850_v26 = vadd.f32 %v795_v46, %v613_v4 }
 0x33c   : > { %v1469_v53 = vadd.f32 %v1415_v50, %v1260_v23  ;;  %v1261_v50 = vadd.f32 %v1207_v25, %v1052_v28  ;;  %v16498_v25 = vld [vmem:[#allocation150_spill] sm:$0xff] }
 0x33e   : > { %9709 = vrot.lane.b32.xlu1 %v9708_v60, %s16050_s27 }
 0x33f   : > { %v12194_v9 = vpop.permute.xlu0 %1394  ;;  %v12196_v31 = vpop.permute.xlu2 %1828 }
 0x340   : > { %v12198_v55 = vpop.permute.xlu1 %1187  ;;  %v1421_v57 = vsel %vm1398_vm3, %v16493_v43, %v12194_v9 }
 0x341   : > { %v1213_v15 = vsel %vm1189_vm2, %v12083_v52, %v12198_v55 }
 0x347   : > { %v12200_v10 = vpop.permute.xlu0 %1589  ;;  %v12202_v63 = vpop.permute.xlu2 %2041 }
 0x348   : > { %v12204_v34 = vpop.permute.xlu1 %1382  ;;  %v1624_v62 = vsel %vm1607_vm4, %v11057_v27, %v12200_v10  ;;  %v1267_v27 = vadd.f32 %v1212_v6, %v1058_v24 }
 0x349   : > { %v1678_v7 = vadd.f32 %v1624_v62, %v1469_v53  ;;  %v1416_v24 = vsel %vm1398_vm3, %v12129_v49, %v12204_v34  ;;  %v16497_v49 = vld [vmem:[#allocation134_spill] sm:$0xff] }
 0x34a   : > { %v1476_v23 = vadd.f32 %v1421_v57, %v1267_v27  ;;  %v1470_v62 = vadd.f32 %v1416_v24, %v1261_v50  ;;  %v16496_v57 = vld [vmem:[#allocation154_spill] sm:$0xff] }
 0x34f   : > { %v12206_v0 = vpop.permute.xlu0 %1605  ;;  %v12208_v58 = vpop.permute.xlu2 %2059 }
 0x350   : > { %v1604_v11 = vpop.permute.xlu1 %1603 }
 0x351   : > { %v1630_v5 = vsel %vm1607_vm4, %v16494_v16, %v1604_v11  ;;  %v16495_v16 = vld [vmem:[#allocation142_spill] sm:$0xff] }
 0x352   : > { %v1685_v2 = vadd.f32 %v1630_v5, %v1476_v23  ;;  %v2082_v6 = vsel %vm2063_vm6, %v16495_v16, %v12202_v63 }
 0x357   : > { %v12210_v13 = vpop.permute.xlu0 %1814  ;;  %v12220_v3 = vpop.permute.xlu2 %9664 }
 0x358   : > { %v1813_v60 = vpop.permute.xlu1 %1812  ;;  %v9667_v45 = vunpack.i.h.bf16 %v12220_v3  ;;  %v9666_v52 = vunpack.i.l.bf16 %v12220_v3  ;;  %v1625_v3 = vsel %vm1607_vm4, %v12200_v10, %v12185_v47 }
 0x359   : > { %v1853_v29 = vsel %vm1834_vm5, %v16399_v35, %v1813_v60  ;;  %v1059_v35 = vadd.f32 %v1004_v41, %v850_v26  ;;  %v1860_v41 = vsel %vm1834_vm5, %v16497_v49, %v12196_v31  ;;  %v1631_v26 = vsel %vm1607_vm4, %v1604_v11, %v12206_v0 }
 0x35a   : > { %v1909_v4 = vadd.f32 %v1853_v29, %v1678_v7  ;;  %v1422_v29 = vsel %vm1398_vm3, %v12194_v9, %v12161_v18  ;;  %v1916_v28 = vadd.f32 %v1860_v41, %v1685_v2  ;;  %v1679_v23 = vadd.f32 %v1625_v3, %v1470_v62  ;;  %v16501_v41 = vld [vmem:[#allocation11_spill] sm:$0xff] }
 0x35b   : > { %v1268_v46 = vadd.f32 %v1213_v15, %v1059_v35  ;;  %v1854_v15 = vsel %vm1834_vm5, %v1813_v60, %v12210_v13  ;;  %v2593_v50 = vsel %vm771_vm0, %v9666_v52, %v9667_v45  ;;  %vm6840_vm3 = vcmask 1046528  }
 0x35c   : > { %v2138_v27 = vadd.f32 %v2082_v6, %v1909_v4  ;;  %v1910_v62 = vadd.f32 %v1854_v15, %v1679_v23  ;;  %vm6841_vm4 = vcmask 1047552  }
 0x35d   : > { %v1477_v7 = vadd.f32 %v1422_v29, %v1268_v46 }
 0x35f   : > { %v12231_v14 = vpop.permute.xlu0 %2057  ;;  %v12266_v38 = vpop.permute.xlu2 %2272  ;;  %v1686_v2 = vadd.f32 %v1631_v26, %v1477_v7 }
 0x360   : > { %v12236_v32 = vpop.permute.xlu1 %1830  ;;  %v2089_v5 = vsel %vm2063_vm6, %v16498_v25, %v12231_v14 }
 0x361   : > { %v2145_v4 = vadd.f32 %v2089_v5, %v1916_v28  ;;  %v1861_v9 = vsel %vm1834_vm5, %v12196_v31, %v12236_v32  ;;  %v16502_v5 = vld [vmem:[#allocation18_spill] sm:$0xff] }
 0x362   : > { %v1917_v49 = vadd.f32 %v1861_v9, %v1686_v2 }
 0x367   : > { %v2271_v43 = vpop.permute.xlu0 %2270  ;;  %v12307_v10 = vpop.permute.xlu2 %1784 }
 0x368   : > { %v12276_v39 = vpop.permute.xlu1 %2043  ;;  %v2311_v53 = vsel %vm2292_vm7, %v16496_v57, %v2271_v43  ;;  %v16499_v57 = vld [vmem:[#allocation26_spill] sm:$0xff]  ;;  %v2312_v7 = vsel %vm2292_vm7, %v2271_v43, %v12266_v38 }
 0x369   : > { %v2367_v24 = vadd.f32 %v2311_v53, %v2138_v27  ;;  %v2083_v60 = vsel %vm2063_vm6, %v12202_v63, %v12276_v39  ;;  %v16500_v53 = vmax.f32 %v16499_v57, 0.0  ;;  %v16503_v27 = vmax.f32 %v16502_v5, 0.0  ;;  %v16504_v63 = vld [vmem:[#allocation157_spill] sm:$0xff] }
 0x36a   : > { %v2139_v3 = vadd.f32 %v2083_v60, %v1910_v62  ;;  %v16505_v62 = vld [vmem:[#allocation10_spill] sm:$0xff] }
 0x36b   : > { %v12318_v31 = vmax.f32 %v16500_v53, %v2593_v50  ;;  %v2419_v25 = vmul.f32 %v16501_v41, %v2367_v24 }
 0x36c   : > { %v2368_v50 = vadd.f32 %v2312_v7, %v2139_v3  ;;  %v16511_v7 = vld [vmem:[#allocation178_spill] sm:$0xff] }
 0x36d   : > { %v12337_v23 = vadd.f32 %v11540_v40, %v2419_v25 }
 0x36e   : > { %v2420_v5 = vmul.f32 %v16501_v41, %v2368_v50 }
 0x36f   : > { %v12301_v35 = vpop.permute.xlu0 %9669  ;;  %v2030_v57 = vpop.permute.xlu2 %2029  ;;  %v2499_v53 = vmax.f32 %v12337_v23, 0.0  ;;  %v8406_v23 = vld [vmem:[%s16545_s4 + $0x1b0] sm:$0xf] }
 0x370   : > { %v2287_v16 = vpop.permute.xlu1 %2286  ;;  %v9671_v11 = vunpack.i.l.bf16 %v12301_v35 }
 0x371   : > { %v2318_v46 = vsel %vm2292_vm7, %v16427_v36, %v2287_v16 }
 0x372   : > { %v2374_v6 = vadd.f32 %v2318_v46, %v2145_v4  ;;  %v2594_v52 = vsel %vm771_vm0, %v9667_v45, %v9671_v11  ;;  %v2090_v45 = vsel %vm2063_vm6, %v12231_v14, %v12208_v58  ;;  %v9672_v4 = vunpack.i.h.bf16 %v12301_v35 }
 0x373   : > { %v12323_v29 = vmax.f32 %v16503_v27, %v2594_v52  ;;  %v2146_v15 = vadd.f32 %v2090_v45, %v1917_v49 }
 0x374   : > { %v2426_v26 = vmul.f32 %v16504_v63, %v2374_v6  ;;  %v16506_v6 = vld [vmem:[#allocation127_spill] sm:$0xff] }
 0x375   : > { %v9713_v36 = vpack.i.bf16 %v12323_v29, %v12318_v31  ;;  %v593_v52 = vmul.f32 %v16506_v6, %v16505_v62 }
 0x376   : > { %v12332_v28 = vadd.f32 %v16438_v20, %v2426_v26  ;;  %v16509_v26 = vld [vmem:[#allocation16_spill] sm:$0xff] }
 0x377   : > { %v12339_v24 = vpop.permute.xlu0 %2288  ;;  %9714 = vrot.lane.b32.xlu2 %v9713_v36, %s16052_s0  ;;  %v16510_v36 = vmax.f32 %v16509_v26, 0.0 }
 0x378   : > { %v9675_v9 = vpop.permute.xlu1 %9674  ;;  %v2319_v14 = vsel %vm2292_vm7, %v2287_v16, %v12339_v24  ;;  %v2506_v2 = vmax.f32 %v12332_v28, 0.0  ;;  %v16507_v16 = vld [vmem:[#allocation25_spill] sm:$0xff] }
 0x379   : > { %v9677_v60 = vunpack.i.h.bf16 %v9675_v9  ;;  %v9676_v46 = vunpack.i.l.bf16 %v9675_v9  ;;  %v2375_v43 = vadd.f32 %v2319_v14, %v2146_v15  ;;  %v16508_v27 = vmax.f32 %v16507_v16, 0.0  ;;  %v16512_v9 = vld [vmem:[#allocation5_spill] sm:$0xff] }
 0x37a   : > { %v830_v15 = vadd.f32 %v16511_v7, %v593_v52  ;;  %v600_v14 = vmul.f32 %v16506_v6, %v16512_v9  ;;  %v16513_v52 = vld [vmem:[#allocation13_spill] sm:$0xff]  ;;  %v12380_v16 = vadd.f32 %v11540_v40, %v2420_v5  ;;  %v9685_v5 = vpop.permute.xlu2 %9684 }
 0x37b   : > { %v2599_v49 = vsel %vm771_vm0, %v9672_v4, %v9676_v46  ;;  %v2600_v25 = vsel %vm771_vm0, %v9676_v46, %v9677_v60  ;;  %v2427_v35 = vmul.f32 %v16504_v63, %v2375_v43  ;;  %v9728_v4 = vpack.i.bf16 %v2506_v2, %v2499_v53  ;;  %v9414_v28 = vld [vmem:[%s16545_s4 + $0x1b4] sm:$0xf0] }
 0x37c   : > { %v12355_v3 = vmax.f32 %v16508_v27, %v2599_v49  ;;  %v12359_v45 = vmax.f32 %v16510_v36, %v2600_v25  ;;  %v1039_v43 = vadd.f32 %v16449_v42, %v830_v15  ;;  %v837_v49 = vadd.f32 %v16513_v52, %v600_v14  ;;  %v16516_v14 = vld [vmem:[#allocation21_spill] sm:$0xff] }
 0x37d   : > { %v12369_v50 = vadd.f32 %v16438_v20, %v2427_v35 }
 0x37e   : > { %v9718_v46 = vpack.i.bf16 %v12359_v45, %v12355_v3  ;;  %v1248_v35 = vadd.f32 %v16458_v30, %v1039_v43  ;;  %v1046_v42 = vadd.f32 %v11585_v56, %v837_v49  ;;  %v2500_v56 = vmax.f32 %v12380_v16, 0.0 }
 0x37f   : > { %v1801_v62 = vpop.permute.xlu0 %1800  ;;  %9729 = vrot.lane.b32.xlu2 %v9728_v4, %s16050_s27  ;;  %v2507_v36 = vmax.f32 %v12369_v50, 0.0  ;;  %v16514_v4 = vld [vmem:[#allocation20_spill] sm:$0xff] }
 0x380   : > { %v12376_v25 = vpop.permute.xlu1 %9679  ;;  %9719 = vrot.lane.b32.xlu0 %v9718_v46, %s16052_s0  ;;  %v16515_v9 = vmax.f32 %v16514_v4, 0.0  ;;  %v16517_v46 = vmax.f32 %v16516_v14, 0.0  ;;  %v1457_v52 = vadd.f32 %v16469_v61, %v1248_v35  ;;  %v1255_v49 = vadd.f32 %v16464_v59, %v1046_v42 }
 0x381   : > { %v9682_v27 = vunpack.i.h.bf16 %v12376_v25  ;;  %v9681_v26 = vunpack.i.l.bf16 %v12376_v25  ;;  %v9687_v14 = vunpack.i.h.bf16 %v9685_v5 }
 0x383   : > { %v2595_v7 = vsel %vm771_vm0, %v9671_v11, %v9681_v26  ;;  %v2601_v15 = vsel %vm771_vm0, %v9677_v60, %v9682_v27  ;;  %v1841_v11 = vsel %vm1834_vm5, %v11905_v51, %v12307_v10  ;;  %v1848_v51 = vsel %vm1834_vm5, %v11696_v8, %v1801_v62 }
 0x384   : > { %v12395_v30 = vmax.f32 %v16515_v9, %v2595_v7  ;;  %v12399_v43 = vmax.f32 %v16517_v46, %v2601_v15  ;;  %v9733_v7 = vpack.i.bf16 %v2507_v36, %v2500_v56  ;;  %v1666_v15 = vadd.f32 %v11766_v48, %v1457_v52  ;;  %v12422_v52 = vpop.permute.xlu2 %9699 }
 0x385   : > { %v1464_v9 = vadd.f32 %v11694_v22, %v1255_v49  ;;  %v9686_v48 = vunpack.i.l.bf16 %v9685_v5  ;;  %v2077_v49 = vsel %vm2063_vm6, %v11949_v17, %v2030_v57  ;;  %v607_v5 = vmul.f32 %v16506_v6, %v16485_v33  ;;  %v16521_v17 = vld [vmem:[#allocation93_spill] sm:$0xff] }
 0x386   : > { %v9723_v60 = vpack.i.bf16 %v12399_v43, %v12395_v30  ;;  %v1897_v59 = vadd.f32 %v1841_v11, %v1666_v15 }
 0x387   : > { %v2243_v4 = vpop.permute.xlu0 %2242  ;;  %v1673_v35 = vadd.f32 %v11845_v12, %v1464_v9  ;;  %v2605_v8 = vsel %vm771_vm0, %v9686_v48, %v9687_v14  ;;  %v16518_v12 = vld [vmem:[#allocation45_spill] sm:$0xff]  ;;  %v844_v48 = vadd.f32 %v12131_v19, %v607_v5  ;;  %v16528_v19 = vld [vmem:[#allocation30_spill] sm:$0xff]  ;;  %v9702_v5 = vunpack.i.h.bf16 %v12422_v52 }
 0x388   : > { %v2014_v61 = vpop.permute.xlu1 %2013  ;;  %9724 = vrot.lane.b32.xlu1 %v9723_v60, %s16052_s0  ;;  %9734 = vrot.lane.b32.xlu0 %v9733_v7, %s16050_s27  ;;  %v2299_v22 = vsel %vm2292_vm7, %v11900_v21, %v2243_v4  ;;  %v16519_v21 = vld [vmem:[#allocation34_spill] sm:$0xff] }
 0x389   : > { %v2070_v10 = vsel %vm2063_vm6, %v11768_v37, %v2014_v61  ;;  %v1904_v46 = vadd.f32 %v1848_v51, %v1673_v35  ;;  %v16520_v4 = vmax.f32 %v16519_v21, 0.0  ;;  %v16522_v51 = vld [vmem:[#allocation27_spill] sm:$0xff] }
 0x38a   : > { %v2126_v42 = vadd.f32 %v2070_v10, %v1897_v59  ;;  %v16523_v10 = vmax.f32 %v16522_v51, 0.0 }
 0x38b   : > { %v2133_v37 = vadd.f32 %v2077_v49, %v1904_v46  ;;  %v12436_v59 = vmax.f32 %v16520_v4, %v2605_v8  ;;  %v16524_v46 = vld [vmem:[#allocation83_spill] sm:$0xff] }
 0x38c   : > { %v2355_v11 = vadd.f32 %v2299_v22, %v2126_v42  ;;  %v614_v42 = vmul.f32 %v16506_v6, %v16488_v54  ;;  %v16525_v22 = vld [vmem:[#allocation24_spill] sm:$0xff]  ;;  %v16526_v8 = vld [vmem:[#allocation95_spill] sm:$0xff]  ;;  %v1053_v6 = vadd.f32 %v16528_v19, %v844_v48 }
 0x38e   : > { %v2407_v57 = vmul.f32 %v16521_v17, %v2355_v11  ;;  %v851_v49 = vadd.f32 %v16525_v22, %v614_v42  ;;  %v9701_v11 = vunpack.i.l.bf16 %v12422_v52 }
 0x38f   : > { %v9690_v60 = vpop.permute.xlu0 %9689 }
 0x390   : > { %v2259_v62 = vpop.permute.xlu1 %2258  ;;  %v9691_v7 = vunpack.i.l.bf16 %v9690_v60  ;;  %v1060_v54 = vadd.f32 %v12159_v44, %v851_v49 }
 0x391   : > { %v2306_v15 = vsel %vm2292_vm7, %v16518_v12, %v2259_v62 }
 0x392   : > { %v2362_v9 = vadd.f32 %v2306_v15, %v2133_v37  ;;  %v2606_v61 = vsel %vm771_vm0, %v9687_v14, %v9691_v7  ;;  %v16527_v37 = vld [vmem:[#allocation105_spill] sm:$0xff]  ;;  %v2607_v17 = vsel %vm771_vm0, %v9691_v7, %v9701_v11  ;;  %v1269_v42 = vadd.f32 %v12198_v55, %v1060_v54  ;;  %v16531_v7 = vld [vmem:[#allocation36_spill] sm:$0xff] }
 0x393   : > { %v12441_v35 = vmax.f32 %v16523_v10, %v2606_v61  ;;  %v12455_v12 = vadd.f32 %v16527_v37, %v2407_v57  ;;  %v9692_v61 = vunpack.i.h.bf16 %v9690_v60  ;;  %v1262_v10 = vadd.f32 %v12183_v1, %v1053_v6  ;;  %v16533_v1 = vld [vmem:[#allocation39_spill] sm:$0xff]  ;;  %v16535_v54 = vld [vmem:[#allocation40_spill] sm:$0xff] }
 0x394   : > { %v2414_v33 = vmul.f32 %v16524_v46, %v2362_v9  ;;  %v2046_v9 = vpop.permute.xlu2 %2045  ;;  %v16532_v49 = vmax.f32 %v16531_v7, 0.0  ;;  %v16534_v55 = vmax.f32 %v16533_v1, 0.0  ;;  %v16536_v19 = vmax.f32 %v16535_v54, 0.0 }
 0x395   : > { %v9738_v14 = vpack.i.bf16 %v12441_v35, %v12436_v59  ;;  %v2487_v44 = vmax.f32 %v12455_v12, 0.0 }
 0x396   : > { %v12451_v62 = vadd.f32 %v16526_v8, %v2414_v33  ;;  %v16529_v33 = vld [vmem:[#allocation33_spill] sm:$0xff] }
 0x397   : > { %v1817_v15 = vpop.permute.xlu0 %1816  ;;  %9739 = vrot.lane.b32.xlu1 %v9738_v14, %s16052_s0  ;;  %v16530_v14 = vmax.f32 %v16529_v33, 0.0 }
 0x398   : > { %v9695_v21 = vpop.permute.xlu1 %9694  ;;  %v2494_v4 = vmax.f32 %v12451_v62, 0.0 }
 0x399   : > { %v9697_v57 = vunpack.i.h.bf16 %v9695_v21  ;;  %v9696_v51 = vunpack.i.l.bf16 %v9695_v21  ;;  %v12475_v22 = vmax.f32 %v16530_v14, %v2607_v17  ;;  %v1471_v21 = vadd.f32 %v12204_v34, %v1262_v10 }
 0x39a   : > { %v1478_v17 = vadd.f32 %v12161_v18, %v1269_v42  ;;  %v1855_v34 = vsel %vm1834_vm5, %v12210_v13, %v1817_v15 }
 0x39b   : > { %v2611_v48 = vsel %vm771_vm0, %v9692_v61, %v9696_v51  ;;  %v2612_v46 = vsel %vm771_vm0, %v9696_v51, %v9697_v57  ;;  %v2613_v60 = vsel %vm771_vm0, %v9697_v57, %v9702_v5  ;;  %v9753_v61 = vpack.i.bf16 %v2494_v4, %v2487_v44 }
 0x39c   : > { %v12479_v8 = vmax.f32 %v16532_v49, %v2611_v48  ;;  %v12483_v37 = vmax.f32 %v16534_v55, %v2612_v46  ;;  %v12487_v6 = vmax.f32 %v16536_v19, %v2613_v60  ;;  %v1687_v46 = vadd.f32 %v12206_v0, %v1478_v17  ;;  %v2291_v10 = vpop.permute.xlu2 %2290 }
 0x39d   : > { %v1680_v42 = vadd.f32 %v12185_v47, %v1471_v21  ;;  %v2320_v49 = vsel %vm2292_vm7, %v12339_v24, %v2291_v10  ;;  %v2084_v55 = vsel %vm2063_vm6, %v12276_v39, %v2046_v9  ;;  %v16537_v39 = vld [vmem:[#allocation31_spill] sm:$0xff]  ;;  %v16541_v10 = vld [vmem:[#allocation46_spill] sm:$0xff] }
 0x39e   : > { %v9748_v57 = vpack.i.bf16 %v12487_v6, %v12475_v22  ;;  %v9743_v51 = vpack.i.bf16 %v12483_v37, %v12479_v8  ;;  %v16538_v9 = vmax.f32 %v16537_v39, 0.0  ;;  %v8230_v39 = vld [vmem:[%s16545_s4 + $0x50] sm:$0xf] }
 0x39f   : > { %v2062_v48 = vpop.permute.xlu0 %2061  ;;  %9754 = vrot.lane.b32.xlu1 %v9753_v61, %s16050_s27  ;;  %v1911_v7 = vadd.f32 %v1855_v34, %v1680_v42  ;;  %v16542_v42 = vmax.f32 %v16541_v10, 0.0 }
 0x3a0   : > { %v1833_v60 = vpop.permute.xlu1 %1832  ;;  %9749 = vrot.lane.b32.xlu0 %v9748_v57, %s16052_s0  ;;  %9744 = vrot.lane.b32.xlu2 %v9743_v51, %s16052_s0  ;;  %v2091_v14 = vsel %vm2063_vm6, %v12208_v58, %v2062_v48  ;;  %vm8121_vm6 = vcmask 7168  }
 0x3a1   : > { %v1862_v18 = vsel %vm1834_vm5, %v12236_v32, %v1833_v60  ;;  %v2140_v54 = vadd.f32 %v2084_v55, %v1911_v7  ;;  %v9374_v55 = vld [vmem:[%s16545_s4 + $0x74] sm:$0xf0]  ;;  %vm6815_vm5 = vcmask 121856  }
 0x3a2   : > { %v1918_v33 = vadd.f32 %v1862_v18, %v1687_v46 }
 0x3a4   : > { %v2147_v0 = vadd.f32 %v2091_v14, %v1918_v33  ;;  %v16543_v14 = vld [vmem:[#allocation38_spill] sm:$0xff] }
 0x3a5   : > { %v16544_v7 = vmax.f32 %v16543_v14, 0.0  ;;  %v9368_v14 = vld [vmem:[%s16545_s4 + $0x44] sm:$0xf0] }
 0x3a6   : > { %v2376_v1 = vadd.f32 %v2320_v49, %v2147_v0 }
 0x3a7   : > { %v9705_v13 = vpop.permute.xlu0 %9704 }
 0x3a8   : > { %v2428_v15 = vmul.f32 %v16504_v63, %v2376_v1  ;;  %v2275_v32 = vpop.permute.xlu1 %2274  ;;  %v9707_v19 = vunpack.i.h.bf16 %v9705_v13  ;;  %v9706_v47 = vunpack.i.l.bf16 %v9705_v13  ;;  %v16539_v63 = vld [vmem:[#allocation28_spill] sm:$0xff] }
 0x3a9   : > { %v2313_v61 = vsel %vm2292_vm7, %v12266_v38, %v2275_v32  ;;  %v16540_v57 = vmax.f32 %v16539_v63, 0.0  ;;  %v8246_v1 = vld [vmem:[%s16545_s4 + $0x70] sm:$0xf]  ;;  %v9373_v13 = vld [vmem:[%s16545_s4 + $0x74] sm:$0xf]  ;;  %vm8123_vm7 = vcmask 1024  }
 0x3aa   : > { %v2369_v58 = vadd.f32 %v2313_v61, %v2140_v54  ;;  %v2602_v21 = vsel %vm771_vm0, %v9682_v27, %v9707_v19  ;;  %v2596_v24 = vsel %vm771_vm0, %v9681_v26, %v9706_v47  ;;  %v12532_v48 = vadd.f32 %v16438_v20, %v2428_v15  ;;  %v8248_v32 = vld [vmem:[%s16545_s4 + $0x78] sm:$0xf0]  ;;  %v8238_v54 = vld [vmem:[%s16545_s4 + $0x60] sm:$0xf]  ;;  %v9371_v61 = vld [vmem:[%s16545_s4 + $0x64] sm:$0xf] }
 0x3ab   : > { %v12525_v17 = vmax.f32 %v16538_v9, %v2602_v21  ;;  %v12529_v51 = vmax.f32 %v16540_v57, %v2596_v24  ;;  %v8247_v15 = vor.u32 %v9374_v55, %v8246_v1  ;;  %v9370_v9 = vld [vmem:[%s16545_s4 + $0x54] sm:$0xf0]  ;;  %v8310_v63 = vld [vmem:[%s16545_s4 + $0xf0] sm:$0xf]  ;;  %v9367_v1 = vld [vmem:[%s16545_s4 + $0x44] sm:$0xf] }
 0x3ac   : > { %v2421_v38 = vmul.f32 %v16501_v41, %v2369_v58  ;;  %v2508_v26 = vmax.f32 %v12532_v48, 0.0  ;;  %v8240_v58 = vld [vmem:[%s16545_s4 + $0x68] sm:$0xf0]  ;;  %v9390_v57 = vld [vmem:[%s16545_s4 + $0xf4] sm:$0xf0] }
 0x3ad   : > { %v9758_v27 = vpack.i.bf16 %v12525_v17, %v12529_v51  ;;  %3474 = vmatpush.bf16.msra.mxu0 %v8247_v15  ;;  %v8243_v24 = vor.u32 %v9371_v61, %v8240_v58  ;;  %v8224_v55 = vld [vmem:[%s16545_s4 + $0x48] sm:$0xf0]  ;;  %v9386_v15 = vld [vmem:[%s16545_s4 + $0xd4] sm:$0xf0]  ;;  %v9365_v58 = vld [vmem:[%s16545_s4 + $0x34] sm:$0xf] }
 0x3ae   : > { %v12538_v25 = vadd.f32 %v11540_v40, %v2421_v38  ;;  %v9369_v38 = vld [vmem:[%s16545_s4 + $0x54] sm:$0xf] }
 0x3af   : > { %9759 = vrot.lane.b32.xlu2 %v9758_v27, %s16052_s0  ;;  %v8232_v27 = vld [vmem:[%s16545_s4 + $0x58] sm:$0xf0] }
 0x3b0   : > { %v2501_v46 = vmax.f32 %v12538_v25, 0.0  ;;  %v12543_v60 = vpop.permute.xlu1 %9709  ;;  %v8235_v10 = vor.u32 %v9369_v38, %v8232_v27  ;;  %v9364_v38 = vld [vmem:[%s16545_s4 + $0x24] sm:$0xf0] }
 0x3b1   : > { %v9712_v34 = vunpack.i.h.bf16 %v12543_v60  ;;  %v9711_v20 = vunpack.i.l.bf16 %v12543_v60 }
 0x3b2   : > { %v9768_v41 = vpack.i.bf16 %v2508_v26, %v2501_v46 }
 0x3b3   : > { %v2597_v40 = vsel %vm771_vm0, %v9706_v47, %v9711_v20  ;;  %v2603_v18 = vsel %vm771_vm0, %v9707_v19, %v9712_v34  ;;  %v9372_v19 = vld [vmem:[%s16545_s4 + $0x64] sm:$0xf0]  ;;  %v8251_v47 = vor.u32 %v9373_v13, %v8248_v32  ;;  %v8294_v13 = vld [vmem:[%s16545_s4 + $0xd0] sm:$0xf] }
 0x3b4   : > { %v12559_v33 = vmax.f32 %v16542_v42, %v2597_v40  ;;  %v12563_v0 = vmax.f32 %v16544_v7, %v2603_v18  ;;  %9769 = vrot.lane.b32.xlu1 %v9768_v41, %s16050_s27  ;;  %v8239_v21 = vor.u32 %v9372_v19, %v8238_v54  ;;  %v8231_v41 = vor.u32 %v9370_v9, %v8230_v39  ;;  %v8302_v18 = vld [vmem:[%s16545_s4 + $0xe0] sm:$0xf]  ;;  %v9388_v7 = vld [vmem:[%s16545_s4 + $0xe4] sm:$0xf0]  ;;  %v8214_v19 = vld [vmem:[%s16545_s4 + $0x30] sm:$0xf] }
 0x3b5   : > { %3607 = vmatpush.bf16.msra.mxu3 %v8251_v47  ;;  %v8311_v40 = vor.u32 %v9390_v57, %v8310_v63  ;;  %v8222_v42 = vld [vmem:[%s16545_s4 + $0x40] sm:$0xf]  ;;  %v8227_v54 = vor.u32 %v9367_v1, %v8224_v55  ;;  %v9366_v47 = vld [vmem:[%s16545_s4 + $0x34] sm:$0xf0]  ;;  %v8295_v61 = vor.u32 %v9386_v15, %v8294_v13  ;;  %v9384_v39 = vld [vmem:[%s16545_s4 + $0xc4] sm:$0xf0] }
 0x3b6   : > { %v9763_v49 = vpack.i.bf16 %v12563_v0, %v12559_v33  ;;  %3475 = vmatpush.bf16.msra.mxu0 %v8239_v21  ;;  %v8223_v32 = vor.u32 %v9368_v14, %v8222_v42  ;;  %v8216_v21 = vld [vmem:[%s16545_s4 + $0x38] sm:$0xf0]  ;;  %v8215_v9 = vor.u32 %v9366_v47, %v8214_v19  ;;  %v8206_v57 = vld [vmem:[%s16545_s4 + $0x20] sm:$0xf]  ;;  %v8198_v14 = vld [vmem:[%s16545_s4 + $0x10] sm:$0xf] }
 0x3b7   : > { %3493 = vmatpush.bf16.msra.mxu1 %v8311_v40  ;;  %v8219_v63 = vor.u32 %v9365_v58, %v8216_v21  ;;  %v8208_v40 = vld [vmem:[%s16545_s4 + $0x28] sm:$0xf0]  ;;  %v9382_v55 = vld [vmem:[%s16545_s4 + $0xb4] sm:$0xf0]  ;;  %v9361_v13 = vld [vmem:[%s16545_s4 + $0x14] sm:$0xf] }
 0x3b8   : > { %9764 = vrot.lane.b32.xlu0 %v9763_v49, %s16052_s0  ;;  %v8303_v49 = vor.u32 %v9388_v7, %v8302_v18  ;;  %v8207_v18 = vor.u32 %v9364_v38, %v8206_v57  ;;  %v9362_v7 = vld [vmem:[%s16545_s4 + $0x14] sm:$0xf0]  ;;  %v8200_v15 = vld [vmem:[%s16545_s4 + $0x18] sm:$0xf0]  ;;  %v8190_v19 = vld [vmem:[%s16545_s4] sm:$0xf] }
 0x3b9   : > { %3608 = vmatpush.bf16.msra.mxu3 %v8243_v24  ;;  %v8286_v24 = vld [vmem:[%s16545_s4 + $0xc0] sm:$0xf]  ;;  %v8199_v1 = vor.u32 %v9362_v7, %v8198_v14  ;;  %v9360_v47 = vld [vmem:[%s16545_s4 + $0x4] sm:$0xf0]  ;;  %v9359_v21 = vld [vmem:[%s16545_s4 + $0x4] sm:$0xf] }
 0x3ba   : > { %3476 = vmatpush.bf16.msra.mxu0 %v8231_v41  ;;  %v8287_v27 = vor.u32 %v9384_v39, %v8286_v24  ;;  %v9363_v41 = vld [vmem:[%s16545_s4 + $0x24] sm:$0xf]  ;;  %v9380_v58 = vld [vmem:[%s16545_s4 + $0xa4] sm:$0xf0]  ;;  %v8192_v24 = vld [vmem:[%s16545_s4 + $0x8] sm:$0xf0]  ;;  %v8191_v39 = vor.u32 %v9360_v47, %v8190_v19 }
 0x3bb   : > { %3494 = vmatpush.bf16.msra.mxu1 %v8303_v49  ;;  %v8278_v49 = vld [vmem:[%s16545_s4 + $0xb0] sm:$0xf]  ;;  %v16546_v14 = vld [vmem:[#allocation35_spill] sm:$0xff]  ;;  %v9406_v19 = vld [vmem:[%s16545_s4 + $0x174] sm:$0xf0]  ;;  %s16061_s0 = smov 64  }
 0x3bc   : > { %v16547_v7 = vmax.f32 %v16546_v14, 0.0  ;;  %v8366_v47 = vld [vmem:[%s16545_s4 + $0x160] sm:$0xf] }
 0x3bd   : > { %3609 = vmatpush.bf16.msra.mxu3 %v8235_v10  ;;  %v8211_v10 = vor.u32 %v9363_v41, %v8208_v40 }
 0x3be   : > { %3477 = vmatpush.bf16.msra.mxu0 %v8223_v32  ;;  %v8279_v32 = vor.u32 %v9382_v55, %v8278_v49 }
 0x3bf   : > { %3495 = vmatpush.bf16.msra.mxu1 %v8295_v61  ;;  %v8270_v61 = vld [vmem:[%s16545_s4 + $0xa0] sm:$0xf] }
 0x3c1   : > { %3610 = vmatpush.bf16.msra.mxu3 %v8227_v54  ;;  %v8203_v54 = vor.u32 %v9361_v13, %v8200_v15  ;;  %v9376_v13 = vld [vmem:[%s16545_s4 + $0x84] sm:$0xf0] }
 0x3c2   : > { %3478 = vmatpush.bf16.msra.mxu0 %v8215_v9  ;;  %v8271_v9 = vor.u32 %v9380_v58, %v8270_v61  ;;  %v9404_v58 = vld [vmem:[%s16545_s4 + $0x164] sm:$0xf0] }
 0x3c3   : > { %3496 = vmatpush.bf16.msra.mxu1 %v8287_v27 }
 0x3c5   : > { %3611 = vmatpush.bf16.msra.mxu3 %v8219_v63  ;;  %v8195_v63 = vor.u32 %v9359_v21, %v8192_v24  ;;  %v8367_v21 = vor.u32 %v9404_v58, %v8366_v47  ;;  %v8358_v24 = vld [vmem:[%s16545_s4 + $0x150] sm:$0xf] }
 0x3c6   : > { %3479 = vmatpush.bf16.msra.mxu0 %v8207_v18  ;;  %v8262_v18 = vld [vmem:[%s16545_s4 + $0x90] sm:$0xf] }
 0x3c7   : > { %3497 = vmatpush.bf16.msra.mxu1 %v8279_v32 }
 0x3c9   : > { %3612 = vmatpush.bf16.msra.mxu3 %v8211_v10  ;;  %v9378_v10 = vld [vmem:[%s16545_s4 + $0x94] sm:$0xf0] }
 0x3ca   : > { %3480 = vmatpush.bf16.msra.mxu0 %v8199_v1  ;;  %v8263_v52 = vor.u32 %v9378_v10, %v8262_v18 }
 0x3cb   : > { %3498 = vmatpush.bf16.msra.mxu1 %v8271_v9  ;;  %v8350_v9 = vld [vmem:[%s16545_s4 + $0x140] sm:$0xf] }
 0x3cd   : > { %3613 = vmatpush.bf16.msra.mxu3 %v8203_v54  ;;  %v8374_v54 = vld [vmem:[%s16545_s4 + $0x170] sm:$0xf] }
 0x3ce   : > { %3481 = vmatpush.bf16.msra.mxu0 %v8191_v39  ;;  %v8375_v61 = vor.u32 %v9406_v19, %v8374_v54  ;;  %v9402_v39 = vld [vmem:[%s16545_s4 + $0x154] sm:$0xf0]  ;;  %v8334_v54 = vld [vmem:[%s16545_s4 + $0x120] sm:$0xf]  ;;  %v9396_v19 = vld [vmem:[%s16545_s4 + $0x124] sm:$0xf0] }
 0x3cf   : > { %3499 = vmatpush.bf16.msra.mxu1 %v8263_v52  ;;  %v8342_v52 = vld [vmem:[%s16545_s4 + $0x130] sm:$0xf] }
 0x3d1   : > { %v12665_v42 = vpop.permute.xlu2 %9714  ;;  %3614 = vmatpush.bf16.msra.mxu3 %v8195_v63  ;;  %v8359_v63 = vor.u32 %v9402_v39, %v8358_v24  ;;  %v9420_v24 = vld [vmem:[%s16545_s4 + $0x1e4] sm:$0xf0]  ;;  %v8335_v39 = vor.u32 %v9396_v19, %v8334_v54 }
 0x3d2   : > { %3512 = vmatpush.bf16.msrb.mxu0 %v8375_v61  ;;  %v9717_v18 = vunpack.i.h.bf16 %v12665_v42  ;;  %v9716_v10 = vunpack.i.l.bf16 %v12665_v42 }
 0x3d6   : > { %3513 = vmatpush.bf16.msrb.mxu0 %v8367_v21  ;;  %v8430_v21 = vld [vmem:[%s16545_s4 + $0x1e0] sm:$0xf] }
 0x3d9   : > { %v12703_v57 = vpop.permute.xlu2 %9729 }
 0x3da   : > { %v9732_v38 = vunpack.i.h.bf16 %v12703_v57  ;;  %v9731_v27 = vunpack.i.l.bf16 %v12703_v57  ;;  %3514 = vmatpush.bf16.msrb.mxu0 %v8359_v63  ;;  %v8431_v63 = vor.u32 %v9420_v24, %v8430_v21 }
 0x3dc   : > { %v2614_v41 = vsel %vm771_vm0, %v9702_v5, %v9732_v38  ;;  %v2608_v40 = vsel %vm771_vm0, %v9701_v11, %v9731_v27  ;;  %v16548_v5 = vld [vmem:[#allocation32_spill] sm:$0xff]  ;;  %v8254_v11 = vld [vmem:[%s16545_s4 + $0x80] sm:$0xf] }
 0x3dd   : > { %v12725_v49 = vmax.f32 %v16547_v7, %v2614_v41  ;;  %v16549_v1 = vmax.f32 %v16548_v5, 0.0  ;;  %v8255_v32 = vor.u32 %v9376_v13, %v8254_v11  ;;  %v9400_v41 = vld [vmem:[%s16545_s4 + $0x144] sm:$0xf0]  ;;  %v9398_v11 = vld [vmem:[%s16545_s4 + $0x134] sm:$0xf0] }
 0x3de   : > { %v8438_v13 = vld [vmem:[%s16545_s4 + $0x1f0] sm:$0xf] }
 0x3df   : > { %v12729_v55 = vmax.f32 %v16549_v1, %v2608_v40  ;;  %3500 = vmatpush.bf16.msra.mxu1 %v8255_v32  ;;  %v8351_v40 = vor.u32 %v9400_v41, %v8350_v9  ;;  %v2757_v1 = vsel %vm1189_vm2, %v9716_v10, %v9717_v18  ;;  %v9422_v32 = vld [vmem:[%s16545_s4 + $0x1f4] sm:$0xf0]  ;;  %v8422_v10 = vld [vmem:[%s16545_s4 + $0x1d0] sm:$0xf] }
 0x3e0   : > { %v2809_v47 = vmax.f32 %v12318_v31, %v2757_v1  ;;  %v8439_v58 = vor.u32 %v9422_v32, %v8438_v13  ;;  %v8326_v31 = vld [vmem:[%s16545_s4 + $0x110] sm:$0xf]  ;;  %v9392_v32 = vld [vmem:[%s16545_s4 + $0x104] sm:$0xf0] }
 0x3e1   : > { %v9773_v15 = vpack.i.bf16 %v12725_v49, %v12729_v55  ;;  %3515 = vmatpush.bf16.msrb.mxu0 %v8351_v40 }
 0x3e3   : > { %9774 = vrot.lane.b32.xlu2 %v9773_v15, %s16550_s30  ;;  %v8343_v15 = vor.u32 %v9398_v11, %v8342_v52  ;;  %3531 = vmatpush.bf16.msrb.mxu1 %v8439_v58  ;;  %v9418_v11 = vld [vmem:[%s16545_s4 + $0x1d4] sm:$0xf0]  ;;  %v8414_v58 = vld [vmem:[%s16545_s4 + $0x1c0] sm:$0xf] }
 0x3e5   : > { %3516 = vmatpush.bf16.msrb.mxu0 %v8343_v15  ;;  %v8318_v15 = vld [vmem:[%s16545_s4 + $0x100] sm:$0xf] }
 0x3e6   : > { %v8319_v21 = vor.u32 %v9392_v32, %v8318_v15  ;;  %v8390_v15 = vld [vmem:[%s16545_s4 + $0x190] sm:$0xf]  ;;  %v9410_v32 = vld [vmem:[%s16545_s4 + $0x194] sm:$0xf0] }
 0x3e7   : > { %3532 = vmatpush.bf16.msrb.mxu1 %v8431_v63  ;;  %v8398_v63 = vld [vmem:[%s16545_s4 + $0x1a0] sm:$0xf] }
 0x3e9   : > { %3517 = vmatpush.bf16.msrb.mxu0 %v8335_v39 }
 0x3f2   : > { %v9720_v14 = vpop.permute.xlu0 %9719 }
 0x3f3   : > { %v9722_v7 = vunpack.i.h.bf16 %v9720_v14  ;;  %v9721_v5 = vunpack.i.l.bf16 %v9720_v14 }
 0x3f5   : > { %v2763_v42 = vsel %vm1189_vm2, %v9721_v5, %v9722_v7 }
 0x3f6   : > { %v2816_v61 = vmax.f32 %v12355_v3, %v2763_v42  ;;  %v9394_v3 = vld [vmem:[%s16545_s4 + $0x114] sm:$0xf0]  ;;  %v8423_v42 = vor.u32 %v9418_v11, %v8422_v10 }
 0x3f7   : > { %v8327_v13 = vor.u32 %v9394_v3, %v8326_v31  ;;  %v9412_v31 = vld [vmem:[%s16545_s4 + $0x1a4] sm:$0xf0] }
 0x3f8   : > { %v2837_v9 = vpack.c.bf16 %v2816_v61, %v2809_v47  ;;  %3533 = vmatpush.bf16.msrb.mxu1 %v8423_v42  ;;  %v8399_v10 = vor.u32 %v9412_v31, %v8398_v63 }
 0x3f9   : > { %3518 = vmatpush.bf16.msrb.mxu0 %v8327_v13 }
 0x3fa   : > { %v12794_v41 = vpop.permute.xlu1 %9724  ;;  %v12796_v40 = vpop.permute.xlu0 %9734  ;;  %3482 = vmatmul.bf16.vlgmr.msra.gmra.mxu0 %v2837_v9  ;;  %3615 = vmatmul.bf16.vlgmr.msra.gmra.mxu3 %v2837_v9 }
 0x3fb   : > { %v9727_v14 = vunpack.i.h.bf16 %v12794_v41  ;;  %v9726_v5 = vunpack.i.l.bf16 %v12794_v41  ;;  %v9737_v1 = vunpack.i.h.bf16 %v12796_v40  ;;  %v9736_v52 = vunpack.i.l.bf16 %v12796_v40 }
 0x3fd   : > { %v2609_v54 = vsel %vm771_vm0, %v9731_v27, %v9736_v52  ;;  %v2615_v19 = vsel %vm771_vm0, %v9732_v38, %v9737_v1  ;;  %v2758_v47 = vsel %vm1189_vm2, %v9717_v18, %v9726_v5  ;;  %v2764_v61 = vsel %vm1189_vm2, %v9722_v7, %v9727_v14  ;;  %v9416_v27 = vld [vmem:[%s16545_s4 + $0x1c4] sm:$0xf0]  ;;  %3519 = vmatpush.bf16.msrb.mxu0 %v8319_v21 }
 0x3fe   : > { %v12844_v57 = vmax.f32 %v2499_v53, %v2609_v54  ;;  %v12848_v38 = vmax.f32 %v2506_v2, %v2615_v19  ;;  %v2810_v18 = vmax.f32 %v12323_v29, %v2758_v47  ;;  %v2817_v7 = vmax.f32 %v12359_v45, %v2764_v61  ;;  %v9745_v29 = vpop.permute.xlu2 %9744 }
 0x3ff   : > { %v8415_v9 = vor.u32 %v9416_v27, %v8414_v58  ;;  %v8407_v2 = vor.u32 %v9414_v28, %v8406_v23  ;;  %v9747_v53 = vunpack.i.h.bf16 %v9745_v29  ;;  %v9746_v45 = vunpack.i.l.bf16 %v9745_v29  ;;  %v8382_v58 = vld [vmem:[%s16545_s4 + $0x180] sm:$0xf]  ;;  %v9408_v27 = vld [vmem:[%s16545_s4 + $0x184] sm:$0xf0] }
 0x400   : > { %v9778_v24 = vpack.i.bf16 %v12848_v38, %v12844_v57  ;;  %v12854_v39 = vpack.c.bf16 %v2817_v7, %v2810_v18  ;;  %v8391_v19 = vor.u32 %v9410_v32, %v8390_v15  ;;  %v8383_v21 = vor.u32 %v9408_v27, %v8382_v58  ;;  %v16553_v15 = vld [vmem:[#allocation43_spill] sm:$0xff] }
 0x401   : > { %3534 = vmatpush.bf16.msrb.mxu1 %v8415_v9  ;;  %v2775_v42 = vsel %vm1189_vm2, %v9746_v45, %v9747_v53  ;;  %v16554_v32 = vmax.f32 %v16553_v15, 0.0 }
 0x402   : > { %9779 = vrot.lane.b32.xlu0 %v9778_v24, %s16550_s30  ;;  %3501 = vmatmul.bf16.vlgmr.msra.gmra.mxu1 %v12854_v39  ;;  %v2830_v61 = vmax.f32 %v12479_v8, %v2775_v42 }
 0x405   : > { %3535 = vmatpush.bf16.msrb.mxu1 %v8407_v2 }
 0x409   : > { %v9740_v3 = vpop.permute.xlu1 %9739  ;;  %3536 = vmatpush.bf16.msrb.mxu1 %v8399_v10  ;;  %v12886_v7 = vpop.permute.xlu2 %9759  ;;  %v16551_v10 = vld [vmem:[#allocation48_spill] sm:$0xff] }
 0x40a   : > { %v9742_v11 = vunpack.i.h.bf16 %v9740_v3  ;;  %v9741_v13 = vunpack.i.l.bf16 %v9740_v3  ;;  %v9762_v23 = vunpack.i.h.bf16 %v12886_v7  ;;  %v9761_v28 = vunpack.i.l.bf16 %v12886_v7 }
 0x40c   : > { %v2769_v54 = vsel %vm1189_vm2, %v9741_v13, %v9742_v11  ;;  %v16552_v13 = vmax.f32 %v16551_v10, 0.0 }
 0x40d   : > { %v2823_v47 = vmax.f32 %v12436_v59, %v2769_v54  ;;  %3537 = vmatpush.bf16.msrb.mxu1 %v8391_v19 }
 0x40f   : > { %v2844_v18 = vpack.c.bf16 %v2830_v61, %v2823_v47  ;;  %v16058_v47 = vmov 65535  }
 0x410   : > { %v3466_v61 = vsel %vm3464_vm8, 4294967295, %v16058_v47 }
 0x411   : > { %v9755_v24 = vpop.permute.xlu1 %9754  ;;  %3487 = vmatmul.bf16.gmra.mxu0 %v2844_v18  ;;  %3620 = vmatmul.bf16.gmra.mxu3 %v2844_v18  ;;  %v12948_v58 = vsel %vm3465_vm9, %v3466_v61, 0 }
 0x412   : > { %v12888_v9 = vpop.permute.xlu0 %9749  ;;  %v9757_v59 = vunpack.i.h.bf16 %v9755_v24  ;;  %v9756_v8 = vunpack.i.l.bf16 %v9755_v24  ;;  %3538 = vmatpush.bf16.msrb.mxu1 %v8383_v21  ;;  %v8582_v21 = vld [vmem:[%s16545_s4 + $0x310] sm:$0xf]  ;;  %v9458_v24 = vld [vmem:[%s16545_s4 + $0x314] sm:$0xf0] }
 0x413   : > { %v9752_v29 = vunpack.i.h.bf16 %v12888_v9  ;;  %v9751_v2 = vunpack.i.l.bf16 %v12888_v9  ;;  %v8583_v48 = vor.u32 %v9458_v24, %v8582_v21  ;;  %v8566_v9 = vld [vmem:[%s16545_s4 + $0x2f0] sm:$0xf]  ;;  %v9450_v21 = vld [vmem:[%s16545_s4 + $0x2d4] sm:$0xf0] }
 0x414   : > { %v2604_v45 = vsel %vm771_vm0, %v9712_v34, %v9757_v59  ;;  %v12899_v63 = vmax.f32 %v2494_v4, %v9757_v59  ;;  %v2598_v31 = vsel %vm771_vm0, %v9711_v20, %v9756_v8  ;;  %v12906_v3 = vmax.f32 %v2487_v44, %v9756_v8 }
 0x415   : > { %v12910_v42 = vmax.f32 %v16552_v13, %v2604_v45  ;;  %v12914_v34 = vmax.f32 %v16554_v32, %v2598_v31  ;;  %v2770_v62 = vsel %vm1189_vm2, %v9742_v11, %v9751_v2  ;;  %v2776_v4 = vsel %vm1189_vm2, %v9747_v53, %v9752_v29 }
 0x416   : > { %v9788_v12 = vpack.i.bf16 %v12899_v63, %v12906_v3  ;;  %v2824_v44 = vmax.f32 %v12441_v35, %v2770_v62  ;;  %v2831_v60 = vmax.f32 %v12483_v37, %v2776_v4  ;;  %v2759_v11 = vsel %vm1189_vm2, %v9726_v5, %v9761_v28  ;;  %v2951_v5 = vld [vmem:[%s16545_s4 + $0x320] sm:$0xff] }
 0x417   : > { %v9783_v20 = vpack.i.bf16 %v12910_v42, %v12914_v34  ;;  %v2765_v53 = vsel %vm1189_vm2, %v9727_v14, %v9762_v23  ;;  %v2811_v35 = vmax.f32 %v12395_v30, %v2759_v11  ;;  %v3253_v41 = vunpack.c.l.b16 %v2951_v5  ;;  %v9456_v11 = vld [vmem:[%s16545_s4 + $0x304] sm:$0xf0] }
 0x418   : > { %9789 = vrot.lane.b32.xlu2 %v9788_v12, %s16550_s30  ;;  %v12929_v54 = vpack.c.bf16 %v2831_v60, %v2824_v44  ;;  %v2818_v37 = vmax.f32 %v12399_v43, %v2765_v53  ;;  %v3254_v14 = vunpack.c.h.b16 %v2951_v5  ;;  %v8502_v60 = vld [vmem:[%s16545_s4 + $0x270] sm:$0xf]  ;;  %v8494_v53 = vld [vmem:[%s16545_s4 + $0x260] sm:$0xf] }
 0x419   : > { %9784 = vrot.lane.b32.xlu1 %v9783_v20, %s16550_s30  ;;  %v3355_v27 = vpack.c.b16 %v3253_v41, %v3253_v41  ;;  %v8574_v20 = vld [vmem:[%s16545_s4 + $0x300] sm:$0xf]  ;;  %v9452_v41 = vld [vmem:[%s16545_s4 + $0x2e4] sm:$0xf0] }
 0x41a   : > { %3506 = vmatmul.bf16.gmra.mxu1 %v12929_v54  ;;  %v12941_v19 = vpack.c.bf16 %v2818_v37, %v2811_v35  ;;  %v12950_v43 = vpack.c.b16 %v3254_v14, %v3254_v14  ;;  %v8575_v35 = vor.u32 %v9456_v11, %v8574_v20  ;;  %v9436_v37 = vld [vmem:[%s16545_s4 + $0x264] sm:$0xf0]  ;;  %v8558_v5 = vld [vmem:[%s16545_s4 + $0x2e0] sm:$0xf]  ;;  %v8454_v11 = vld [vmem:[%s16545_s4 + $0x210] sm:$0xf] }
 0x41b   : > { %v3469_v59 = vand.u32 %v12948_v58, %v3355_v27  ;;  %v8495_v14 = vor.u32 %v9436_v37, %v8494_v53  ;;  %v8559_v61 = vor.u32 %v9452_v41, %v8558_v5  ;;  %v9434_v27 = vld [vmem:[%s16545_s4 + $0x254] sm:$0xf0]  ;;  %v9435_v41 = vld [vmem:[%s16545_s4 + $0x264] sm:$0xf] }
 0x41c   : > { %v3472_v8 = vand.u32 %v12948_v58, %v12950_v43  ;;  %v9426_v53 = vld [vmem:[%s16545_s4 + $0x214] sm:$0xf0]  ;;  %v9449_v43 = vld [vmem:[%s16545_s4 + $0x2d4] sm:$0xf] }
 0x41d   : > { %3593 = vmatpush.bf16.msra.mxu2 %v3469_v59  ;;  %v8478_v59 = vld [vmem:[%s16545_s4 + $0x240] sm:$0xf]  ;;  %v8455_v37 = vor.u32 %v9426_v53, %v8454_v11  ;;  %v9442_v5 = vld [vmem:[%s16545_s4 + $0x294] sm:$0xf0] }
 0x421   : > { %3520 = vmatmul.bf16.vlgmr.msrb.gmra.mxu0 %v12941_v19  ;;  %3594 = vmatpush.bf16.msra.mxu2 %v8583_v48 }
 0x425   : > { %3595 = vmatpush.bf16.msra.mxu2 %v8575_v35  ;;  %v8518_v35 = vld [vmem:[%s16545_s4 + $0x290] sm:$0xf] }
 0x426   : > { %v9770_v30 = vpop.permute.xlu1 %9769 }
 0x427   : > { %v9772_v18 = vunpack.i.h.bf16 %v9770_v30  ;;  %v9771_v7 = vunpack.i.l.bf16 %v9770_v30  ;;  %v8486_v30 = vld [vmem:[%s16545_s4 + $0x250] sm:$0xf] }
 0x429   : > { %v2616_v45 = vsel %vm771_vm0, %v9737_v1, %v9772_v18  ;;  %v12966_v31 = vmax.f32 %v2508_v26, %v9772_v18  ;;  %v2610_v10 = vsel %vm771_vm0, %v9736_v52, %v9771_v7  ;;  %v12973_v13 = vmax.f32 %v2501_v46, %v9771_v7  ;;  %v8550_v18 = vld [vmem:[%s16545_s4 + $0x2d0] sm:$0xf] }
 0x42a   : > { %v12977_v15 = vmax.f32 %v2507_v36, %v2616_v45  ;;  %v12981_v32 = vmax.f32 %v2500_v56, %v2610_v10  ;;  %v12983_v1 = vpop.permute.xlu0 %9764  ;;  %v8487_v7 = vor.u32 %v9434_v27, %v8486_v30  ;;  %v8551_v24 = vor.u32 %v9450_v21, %v8550_v18  ;;  %v9432_v45 = vld [vmem:[%s16545_s4 + $0x244] sm:$0xf0]  ;;  %v8542_v10 = vld [vmem:[%s16545_s4 + $0x2c0] sm:$0xf] }
 0x42b   : > { %v9767_v26 = vunpack.i.h.bf16 %v12983_v1  ;;  %v9766_v40 = vunpack.i.l.bf16 %v12983_v1  ;;  %v9798_v25 = vpack.i.bf16 %v12966_v31, %v12973_v13  ;;  %v8479_v48 = vor.u32 %v9432_v45, %v8478_v59  ;;  %v8446_v27 = vld [vmem:[%s16545_s4 + $0x200] sm:$0xf]  ;;  %v9424_v18 = vld [vmem:[%s16545_s4 + $0x204] sm:$0xf0]  ;;  %v9433_v59 = vld [vmem:[%s16545_s4 + $0x254] sm:$0xf] }
 0x42c   : > { %v9793_v50 = vpack.i.bf16 %v12977_v15, %v12981_v32  ;;  %v8447_v21 = vor.u32 %v9424_v18, %v8446_v27  ;;  %v8488_v45 = vld [vmem:[%s16545_s4 + $0x258] sm:$0xf0] }
 0x42d   : > { %9799 = vrot.lane.b32.xlu1 %v9798_v25, %s16550_s30  ;;  %v2760_v16 = vsel %vm1189_vm2, %v9761_v28, %v9766_v40  ;;  %v2766_v36 = vsel %vm1189_vm2, %v9762_v23, %v9767_v26  ;;  %v9448_v25 = vld [vmem:[%s16545_s4 + $0x2c4] sm:$0xf0] }
 0x42e   : > { %9794 = vrot.lane.b32.xlu0 %v9793_v50, %s16550_s30  ;;  %v2812_v56 = vmax.f32 %v12529_v51, %v2760_v16  ;;  %v2819_v46 = vmax.f32 %v12525_v17, %v2766_v36  ;;  %v8470_v50 = vld [vmem:[%s16545_s4 + $0x230] sm:$0xf]  ;;  %v9430_v16 = vld [vmem:[%s16545_s4 + $0x234] sm:$0xf0]  ;;  %v8543_v36 = vor.u32 %v9448_v25, %v8542_v10  ;;  %v13151_v25 = vor.u32 %v9433_v59, %v8488_v45  ;;  %v8368_v45 = vld [vmem:[%s16545_s4 + $0x168] sm:$0xf0] }
 0x430   : > { %v13001_v52 = vpack.c.bf16 %v2819_v46, %v2812_v56  ;;  %v8534_v56 = vld [vmem:[%s16545_s4 + $0x2b0] sm:$0xf]  ;;  %v9446_v46 = vld [vmem:[%s16545_s4 + $0x2b4] sm:$0xf0] }
 0x432   : > { %3539 = vmatmul.bf16.vlgmr.msrb.gmra.mxu1 %v13001_v52 }
 0x43d   : > { %v13004_v62 = vpop.permute.xlu2 %9774 }
 0x43e   : > { %v9777_v4 = vunpack.i.h.bf16 %v13004_v62  ;;  %v9776_v28 = vunpack.i.l.bf16 %v13004_v62 }
 0x440   : > { %v2771_v23 = vsel %vm1189_vm2, %v9751_v2, %v9776_v28  ;;  %v2777_v17 = vsel %vm1189_vm2, %v9752_v29, %v9777_v4  ;;  %v9438_v2 = vld [vmem:[%s16545_s4 + $0x274] sm:$0xf0] }
 0x441   : > { %v2825_v51 = vmax.f32 %v12475_v22, %v2771_v23  ;;  %v2832_v12 = vmax.f32 %v12487_v6, %v2777_v17  ;;  %v8503_v29 = vor.u32 %v9438_v2, %v8502_v60  ;;  %v9454_v22 = vld [vmem:[%s16545_s4 + $0x2f4] sm:$0xf0]  ;;  %v8471_v23 = vor.u32 %v9430_v16, %v8470_v50  ;;  %v8526_v60 = vld [vmem:[%s16545_s4 + $0x2a0] sm:$0xf] }
 0x442   : > { %v8567_v6 = vor.u32 %v9454_v22, %v8566_v9  ;;  %v8535_v17 = vor.u32 %v9446_v46, %v8534_v56  ;;  %v9444_v9 = vld [vmem:[%s16545_s4 + $0x2a4] sm:$0xf0]  ;;  %v8504_v22 = vld [vmem:[%s16545_s4 + $0x278] sm:$0xf0]  ;;  %v9431_v56 = vld [vmem:[%s16545_s4 + $0x244] sm:$0xf] }
 0x443   : > { %v13020_v44 = vpack.c.bf16 %v2832_v12, %v2825_v51  ;;  %3550 = vmatpush.bf16.msra.mxu0 %v8503_v29  ;;  %v8462_v51 = vld [vmem:[%s16545_s4 + $0x220] sm:$0xf]  ;;  %v9428_v12 = vld [vmem:[%s16545_s4 + $0x224] sm:$0xf0]  ;;  %v9437_v29 = vld [vmem:[%s16545_s4 + $0x274] sm:$0xf] }
 0x444   : > { %3569 = vmatpush.bf16.msra.mxu1 %v8567_v6  ;;  %v8463_v2 = vor.u32 %v9428_v12, %v8462_v51  ;;  %v8527_v6 = vor.u32 %v9444_v9, %v8526_v60  ;;  %v13107_v20 = vor.u32 %v9437_v29, %v8504_v22  ;;  %v8480_v46 = vld [vmem:[%s16545_s4 + $0x248] sm:$0xf0]  ;;  %v9421_v22 = vld [vmem:[%s16545_s4 + $0x1f4] sm:$0xf] }
 0x445   : > { %3525 = vmatmul.bf16.gmra.mxu0 %v13020_v44  ;;  %v13172_v60 = vor.u32 %v9431_v56, %v8480_v46  ;;  %v8464_v56 = vld [vmem:[%s16545_s4 + $0x228] sm:$0xf0] }
 0x446   : > { %9587 = vmatpush.bf16.msrb.mxu3 %v13107_v20 }
 0x447   : > { %3551 = vmatpush.bf16.msra.mxu0 %v8495_v14  ;;  %v8496_v14 = vld [vmem:[%s16545_s4 + $0x268] sm:$0xf0] }
 0x448   : > { %3570 = vmatpush.bf16.msra.mxu1 %v8559_v61  ;;  %v8519_v61 = vor.u32 %v9442_v5, %v8518_v35  ;;  %v13128_v30 = vor.u32 %v9435_v41, %v8496_v14  ;;  %v8472_v5 = vld [vmem:[%s16545_s4 + $0x238] sm:$0xf0]  ;;  %v9419_v41 = vld [vmem:[%s16545_s4 + $0x1e4] sm:$0xf] }
 0x44a   : > { %9588 = vmatpush.bf16.msrb.mxu3 %v13128_v30 }
 0x44b   : > { %3552 = vmatpush.bf16.msra.mxu0 %v8487_v7  ;;  %v8510_v7 = vld [vmem:[%s16545_s4 + $0x280] sm:$0xf] }
 0x44c   : > { %3571 = vmatpush.bf16.msra.mxu1 %v8551_v24  ;;  %v9440_v24 = vld [vmem:[%s16545_s4 + $0x284] sm:$0xf0] }
 0x44e   : > { %9589 = vmatpush.bf16.msrb.mxu3 %v13151_v25 }
 0x44f   : > { %3553 = vmatpush.bf16.msra.mxu0 %v8479_v48  ;;  %v8511_v48 = vor.u32 %v9440_v24, %v8510_v7  ;;  %v9387_v7 = vld [vmem:[%s16545_s4 + $0xe4] sm:$0xf] }
 0x450   : > { %3572 = vmatpush.bf16.msra.mxu1 %v8543_v36  ;;  %v9403_v24 = vld [vmem:[%s16545_s4 + $0x164] sm:$0xf] }
 0x451   : > { %v8371_v46 = vor.u32 %v9403_v24, %v8368_v45  ;;  %v9423_v45 = vld [vmem:[%s16545_s4 + $0x204] sm:$0xf] }
 0x452   : > { %9590 = vmatpush.bf16.msrb.mxu3 %v13172_v60 }
 0x453   : > { %3554 = vmatpush.bf16.msra.mxu0 %v8471_v23 }
 0x454   : > { %3573 = vmatpush.bf16.msra.mxu1 %v8535_v17 }
 0x457   : > { %3555 = vmatpush.bf16.msra.mxu0 %v8463_v2 }
 0x458   : > { %3574 = vmatpush.bf16.msra.mxu1 %v8527_v6  ;;  %v8440_v6 = vld [vmem:[%s16545_s4 + $0x1f8] sm:$0xf0] }
 0x459   : > { %v8443_v62 = vor.u32 %v9421_v22, %v8440_v6  ;;  %v9385_v22 = vld [vmem:[%s16545_s4 + $0xd4] sm:$0xf]  ;;  %v8296_v6 = vld [vmem:[%s16545_s4 + $0xd8] sm:$0xf0] }
 0x45b   : > { %3556 = vmatpush.bf16.msra.mxu0 %v8455_v37  ;;  %v9429_v37 = vld [vmem:[%s16545_s4 + $0x234] sm:$0xf]  ;;  %3664 = vmatpush.bf16.msrb.mxu2 %v8443_v62  ;;  %v8299_v62 = vor.u32 %v9385_v22, %v8296_v6 }
 0x45c   : > { %3575 = vmatpush.bf16.msra.mxu1 %v8519_v61  ;;  %v13220_v14 = vor.u32 %v9429_v37, %v8472_v5  ;;  %v8432_v61 = vld [vmem:[%s16545_s4 + $0x1e8] sm:$0xf0]  ;;  %v9415_v37 = vld [vmem:[%s16545_s4 + $0x1c4] sm:$0xf]  ;;  %v9397_v22 = vld [vmem:[%s16545_s4 + $0x134] sm:$0xf] }
 0x45d   : > { %v8435_v18 = vor.u32 %v9419_v41, %v8432_v61  ;;  %v8416_v5 = vld [vmem:[%s16545_s4 + $0x1c8] sm:$0xf0]  ;;  %v9383_v41 = vld [vmem:[%s16545_s4 + $0xc4] sm:$0xf] }
 0x45e   : > { %9591 = vmatpush.bf16.msrb.mxu3 %v13220_v14  ;;  %v8419_v61 = vor.u32 %v9415_v37, %v8416_v5  ;;  %v9379_v37 = vld [vmem:[%s16545_s4 + $0xa4] sm:$0xf]  ;;  %v8272_v5 = vld [vmem:[%s16545_s4 + $0xa8] sm:$0xf0] }
 0x45f   : > { %3557 = vmatpush.bf16.msra.mxu0 %v8447_v21  ;;  %v8304_v21 = vld [vmem:[%s16545_s4 + $0xe8] sm:$0xf0]  ;;  %3665 = vmatpush.bf16.msrb.mxu2 %v8435_v18  ;;  %v9399_v18 = vld [vmem:[%s16545_s4 + $0x144] sm:$0xf] }
 0x460   : > { %3576 = vmatpush.bf16.msra.mxu1 %v8511_v48  ;;  %v8307_v59 = vor.u32 %v9387_v7, %v8304_v21  ;;  %v9427_v48 = vld [vmem:[%s16545_s4 + $0x224] sm:$0xf]  ;;  %v8352_v7 = vld [vmem:[%s16545_s4 + $0x148] sm:$0xf0] }
 0x472   : > { %v13148_v10 = vpop.permute.xlu2 %9789 }
 0x473   : > { %v9792_v50 = vunpack.i.h.bf16 %v13148_v10  ;;  %v9791_v16 = vunpack.i.l.bf16 %v13148_v10  ;;  %v8392_v10 = vld [vmem:[%s16545_s4 + $0x198] sm:$0xf0] }
 0x474   : > { %v13155_v36 = vpop.permute.xlu0 %9779 }
 0x475   : > { %v2822_v23 = vmax.f32 %v12899_v63, %v9792_v50  ;;  %v2815_v17 = vmax.f32 %v12906_v3, %v9791_v16  ;;  %v9782_v51 = vunpack.i.h.bf16 %v13155_v36  ;;  %v9781_v12 = vunpack.i.l.bf16 %v13155_v36 }
 0x477   : > { %v13174_v2 = vpack.c.bf16 %v2822_v23, %v2815_v17  ;;  %v2772_v63 = vsel %vm1189_vm2, %v9776_v28, %v9781_v12  ;;  %v2778_v3 = vsel %vm1189_vm2, %v9777_v4, %v9782_v51  ;;  %v9389_v28 = vld [vmem:[%s16545_s4 + $0xf4] sm:$0xf]  ;;  %v8376_v4 = vld [vmem:[%s16545_s4 + $0x178] sm:$0xf0]  ;;  %v3483_v27 = vpop.f32.mrf.mxu0  ;;  %v13245_v23 = vor.u32 %v9427_v48, %v8464_v56  ;;  %v8448_v48 = vld [vmem:[%s16545_s4 + $0x208] sm:$0xf0] }
 0x478   : > { %v2826_v9 = vmax.f32 %v12729_v55, %v2772_v63  ;;  %v2833_v29 = vmax.f32 %v12725_v49, %v2778_v3  ;;  %v8312_v49 = vld [vmem:[%s16545_s4 + $0xf8] sm:$0xf0]  ;;  %v9405_v55 = vld [vmem:[%s16545_s4 + $0x174] sm:$0xf]  ;;  %v13303_v56 = vor.u32 %v9423_v45, %v8448_v48 }
 0x479   : > { %8588 = vmatmul.msk.bf16.vlgmr.msra.gmra.mxu2 %vm3457_vm10, %v13174_v2  ;;  %v8315_v53 = vor.u32 %v9389_v28, %v8312_v49  ;;  %v8379_v35 = vor.u32 %v9405_v55, %v8376_v4  ;;  %v9417_v17 = vld [vmem:[%s16545_s4 + $0x1d4] sm:$0xf]  ;;  %v8424_v63 = vld [vmem:[%s16545_s4 + $0x1d8] sm:$0xf0]  ;;  %9592 = vmatpush.bf16.msrb.mxu3 %v13245_v23 }
 0x47a   : > { %v13208_v11 = vpack.c.bf16 %v2833_v29, %v2826_v9  ;;  %v8427_v9 = vor.u32 %v9417_v17, %v8424_v63  ;;  %v9401_v28 = vld [vmem:[%s16545_s4 + $0x154] sm:$0xf]  ;;  %v8360_v49 = vld [vmem:[%s16545_s4 + $0x158] sm:$0xf0] }
 0x47b   : > { %3626 = vmatpush.bf16.msrb.mxu0 %v8315_v53  ;;  %3645 = vmatpush.bf16.msrb.mxu1 %v8379_v35  ;;  %v9425_v55 = vld [vmem:[%s16545_s4 + $0x214] sm:$0xf]  ;;  %v8456_v4 = vld [vmem:[%s16545_s4 + $0x218] sm:$0xf0]  ;;  %v8363_v53 = vor.u32 %v9401_v28, %v8360_v49  ;;  %v8400_v49 = vld [vmem:[%s16545_s4 + $0x1a8] sm:$0xf0] }
 0x47c   : > { %3544 = vmatmul.bf16.gmra.mxu1 %v13208_v11  ;;  %3666 = vmatpush.bf16.msrb.mxu2 %v8427_v9  ;;  %v13274_v35 = vor.u32 %v9425_v55, %v8456_v4  ;;  %v8408_v17 = vld [vmem:[%s16545_s4 + $0x1b8] sm:$0xf0] }
 0x47d   : > { %v8280_v9 = vld [vmem:[%s16545_s4 + $0xb8] sm:$0xf0] }
 0x47e   : > { %9593 = vmatpush.bf16.msrb.mxu3 %v13274_v35  ;;  %v8344_v28 = vld [vmem:[%s16545_s4 + $0x138] sm:$0xf0] }
 0x47f   : > { %v3502_v3 = vpop.f32.mrf.mxu1  ;;  %3627 = vmatpush.bf16.msrb.mxu0 %v8307_v59  ;;  %3646 = vmatpush.bf16.msrb.mxu1 %v8371_v46  ;;  %v13294_v21 = vpop.f32.mrf.mxu0  ;;  %v8355_v59 = vor.u32 %v9399_v18, %v8352_v7  ;;  %v9413_v46 = vld [vmem:[%s16545_s4 + $0x1b4] sm:$0xf]  ;;  %v8347_v4 = vor.u32 %v9397_v22, %v8344_v28  ;;  %v8336_v18 = vld [vmem:[%s16545_s4 + $0x128] sm:$0xf0]  ;;  %v8275_v7 = vor.u32 %v9379_v37, %v8272_v5  ;;  %v8328_v22 = vld [vmem:[%s16545_s4 + $0x118] sm:$0xf0] }
 0x480   : > { %v13253_v29 = vadd.f32 %v3502_v3, %v3483_v27  ;;  %v8288_v27 = vld [vmem:[%s16545_s4 + $0xc8] sm:$0xf0]  ;;  %3667 = vmatpush.bf16.msrb.mxu2 %v8419_v61  ;;  %v8411_v63 = vor.u32 %v9413_v46, %v8408_v17  ;;  %v9381_v3 = vld [vmem:[%s16545_s4 + $0xb4] sm:$0xf] }
 0x481   : > { %v8291_v24 = vor.u32 %v9383_v41, %v8288_v27  ;;  %v8283_v6 = vor.u32 %v9381_v3, %v8280_v9  ;;  %v9395_v41 = vld [vmem:[%s16545_s4 + $0x124] sm:$0xf]  ;;  %v9393_v9 = vld [vmem:[%s16545_s4 + $0x114] sm:$0xf]  ;;  %v8320_v37 = vld [vmem:[%s16545_s4 + $0x108] sm:$0xf0] }
 0x482   : > { %9594 = vmatpush.bf16.msrb.mxu3 %v13303_v56  ;;  %v8331_v28 = vor.u32 %v9393_v9, %v8328_v22 }
 0x483   : > { %3628 = vmatpush.bf16.msrb.mxu0 %v8299_v62  ;;  %3647 = vmatpush.bf16.msrb.mxu1 %v8363_v53  ;;  %v9411_v62 = vld [vmem:[%s16545_s4 + $0x1a4] sm:$0xf] }
 0x484   : > { %3668 = vmatpush.bf16.msrb.mxu2 %v8411_v63  ;;  %v8403_v53 = vor.u32 %v9411_v62, %v8400_v49  ;;  %v9407_v62 = vld [vmem:[%s16545_s4 + $0x184] sm:$0xf]  ;;  %v8384_v49 = vld [vmem:[%s16545_s4 + $0x188] sm:$0xf0] }
 0x485   : > { %v8387_v5 = vor.u32 %v9407_v62, %v8384_v49 }
 0x487   : > { %3629 = vmatpush.bf16.msrb.mxu0 %v8291_v24  ;;  %3648 = vmatpush.bf16.msrb.mxu1 %v8355_v59  ;;  %v8339_v24 = vor.u32 %v9395_v41, %v8336_v18  ;;  %v13354_v63 = vpop.f32.mrf.mxu1 }
 0x488   : > { %3669 = vmatpush.bf16.msrb.mxu2 %v8403_v53  ;;  %v9391_v53 = vld [vmem:[%s16545_s4 + $0x104] sm:$0xf] }
 0x48b   : > { %v9785_v55 = vpop.permute.xlu1 %9784  ;;  %3630 = vmatpush.bf16.msrb.mxu0 %v8283_v6  ;;  %3649 = vmatpush.bf16.msrb.mxu1 %v8347_v4  ;;  %v8256_v4 = vld [vmem:[%s16545_s4 + $0x88] sm:$0xf0] }
 0x48c   : > { %v9787_v61 = vunpack.i.h.bf16 %v9785_v55  ;;  %v9786_v27 = vunpack.i.l.bf16 %v9785_v55  ;;  %v9375_v55 = vld [vmem:[%s16545_s4 + $0x84] sm:$0xf] }
 0x48d   : > { %v8259_v41 = vor.u32 %v9375_v55, %v8256_v4 }
 0x48e   : > { %v2767_v59 = vsel %vm1189_vm2, %v9767_v26, %v9787_v61  ;;  %v2761_v45 = vsel %vm1189_vm2, %v9766_v40, %v9786_v27  ;;  %v2762_v48 = vsel %vm1189_vm2, %v9786_v27, %v9791_v16  ;;  %v2768_v46 = vsel %vm1189_vm2, %v9787_v61, %v9792_v50  ;;  %v3488_v17 = vpop.f32.mrf.mxu0  ;;  %v9409_v16 = vld [vmem:[%s16545_s4 + $0x194] sm:$0xf] }
 0x48f   : > { %v2820_v3 = vmax.f32 %v12563_v0, %v2767_v59  ;;  %v2813_v26 = vmax.f32 %v12559_v33, %v2761_v45  ;;  %v2814_v1 = vmax.f32 %v12914_v34, %v2762_v48  ;;  %v2821_v40 = vmax.f32 %v12910_v42, %v2768_v46  ;;  %v9377_v50 = vld [vmem:[%s16545_s4 + $0x94] sm:$0xf]  ;;  %3631 = vmatpush.bf16.msrb.mxu0 %v8275_v7  ;;  %v8264_v42 = vld [vmem:[%s16545_s4 + $0x98] sm:$0xf0]  ;;  %v9451_v45 = vld [vmem:[%s16545_s4 + $0x2e4] sm:$0xf] }
 0x490   : > { %v8395_v34 = vor.u32 %v9409_v16, %v8392_v10  ;;  %3650 = vmatpush.bf16.msrb.mxu1 %v8339_v24  ;;  %v8267_v6 = vor.u32 %v9377_v50, %v8264_v42  ;;  %v8323_v27 = vor.u32 %v9391_v53, %v8320_v37  ;;  %v9453_v24 = vld [vmem:[%s16545_s4 + $0x2f4] sm:$0xf]  ;;  %v8568_v59 = vld [vmem:[%s16545_s4 + $0x2f8] sm:$0xf0]  ;;  %v8560_v46 = vld [vmem:[%s16545_s4 + $0x2e8] sm:$0xf0] }
 0x491   : > { %v13369_v0 = vpack.c.bf16 %v2820_v3, %v2813_v26  ;;  %v13371_v33 = vpack.c.bf16 %v2821_v40, %v2814_v1  ;;  %v8571_v48 = vor.u32 %v9453_v24, %v8568_v59  ;;  %v9447_v42 = vld [vmem:[%s16545_s4 + $0x2c4] sm:$0xf]  ;;  %v9457_v53 = vld [vmem:[%s16545_s4 + $0x314] sm:$0xf]  ;;  %v8584_v37 = vld [vmem:[%s16545_s4 + $0x318] sm:$0xf0] }
 0x492   : > { %3670 = vmatpush.bf16.msrb.mxu2 %v8395_v34  ;;  %v8520_v24 = vld [vmem:[%s16545_s4 + $0x298] sm:$0xf0] }
 0x493   : > { %3558 = vmatmul.bf16.vlgmr.msra.gmra.mxu0 %v13369_v0  ;;  %3577 = vmatmul.bf16.vlgmr.msra.gmra.mxu1 %v13371_v33 }
 0x494   : > { %3632 = vmatpush.bf16.msrb.mxu0 %v8267_v6  ;;  %3651 = vmatpush.bf16.msrb.mxu1 %v8331_v28 }
 0x496   : > { %v13402_v61 = vpop.f32.mrf.mxu0  ;;  %3671 = vmatpush.bf16.msrb.mxu2 %v8387_v5  ;;  %v8587_v5 = vor.u32 %v9457_v53, %v8584_v37 }
 0x497   : > { %v3507_v18 = vpop.f32.mrf.mxu1 }
 0x498   : > { %v13404_v7 = vadd.f32 %v3507_v18, %v3488_v17  ;;  %3633 = vmatpush.bf16.msrb.mxu0 %v8259_v41  ;;  %3652 = vmatpush.bf16.msrb.mxu1 %v8323_v27  ;;  %v8576_v41 = vld [vmem:[%s16545_s4 + $0x308] sm:$0xf0]  ;;  %v9441_v18 = vld [vmem:[%s16545_s4 + $0x294] sm:$0xf] }
 0x49a   : > { %3683 = vmatpush.bf16.msra.mxu2 %v13107_v20  ;;  %v8563_v20 = vor.u32 %v9451_v45, %v8560_v46  ;;  %v8523_v46 = vor.u32 %v9441_v18, %v8520_v24 }
 0x49c   : > { %3726 = vmatpush.bf16.msra.mxu1 %v3472_v8  ;;  %3702 = vmatpush.bf16.msra.mxu0 %v8571_v48  ;;  %v8552_v8 = vld [vmem:[%s16545_s4 + $0x2d8] sm:$0xf0] }
 0x49d   : > { %v8555_v34 = vor.u32 %v9449_v43, %v8552_v8 }
 0x49e   : > { %3684 = vmatpush.bf16.msra.mxu2 %v13128_v30  ;;  %v3521_v17 = vpop.f32.mrf.mxu0 }
 0x49f   : > { %v9800_v3 = vpop.permute.xlu1 %9799  ;;  %v3522_v26 = vadd.f32 %v3521_v17, %v13253_v29 }
 0x4a0   : > { %v9802_v1 = vunpack.i.h.bf16 %v9800_v3  ;;  %v9801_v40 = vunpack.i.l.bf16 %v9800_v3  ;;  %v9795_v16 = vpop.permute.xlu0 %9794  ;;  %3703 = vmatpush.bf16.msra.mxu0 %v8563_v20  ;;  %3727 = vmatpush.bf16.msra.mxu1 %v8587_v5  ;;  %v8512_v20 = vld [vmem:[%s16545_s4 + $0x288] sm:$0xf0]  ;;  %v3505_v5 = vadd.f32 %v13354_v63, %v13294_v21 }
 0x4a1   : > { %v9797_v10 = vunpack.i.h.bf16 %v9795_v16  ;;  %v9796_v50 = vunpack.i.l.bf16 %v9795_v16 }
 0x4a2   : > { %3685 = vmatpush.bf16.msra.mxu2 %v13151_v25  ;;  %v2836_v30 = vmax.f32 %v12966_v31, %v9802_v1  ;;  %v2829_v29 = vmax.f32 %v12973_v13, %v9801_v40  ;;  %v8544_v25 = vld [vmem:[%s16545_s4 + $0x2c8] sm:$0xf0] }
 0x4a3   : > { %v2773_v9 = vsel %vm1189_vm2, %v9781_v12, %v9796_v50  ;;  %v2779_v22 = vsel %vm1189_vm2, %v9782_v51, %v9797_v10  ;;  %v2774_v31 = vsel %vm1189_vm2, %v9796_v50, %v9801_v40  ;;  %v2780_v13 = vsel %vm1189_vm2, %v9797_v10, %v9802_v1  ;;  %v13453_v51 = vpop.f32.mrf.mxu1 }
 0x4a4   : > { %v2850_v6 = vpack.c.bf16 %v2836_v30, %v2829_v29  ;;  %v2827_v28 = vmax.f32 %v12844_v57, %v2773_v9  ;;  %v2834_v62 = vmax.f32 %v12848_v38, %v2779_v22  ;;  %v2828_v49 = vmax.f32 %v12981_v32, %v2774_v31  ;;  %3704 = vmatpush.bf16.msra.mxu0 %v8555_v34  ;;  %v9445_v57 = vld [vmem:[%s16545_s4 + $0x2b4] sm:$0xf]  ;;  %v8536_v38 = vld [vmem:[%s16545_s4 + $0x2b8] sm:$0xf0]  ;;  %v9443_v32 = vld [vmem:[%s16545_s4 + $0x2a4] sm:$0xf] }
 0x4a5   : > { %v2835_v55 = vmax.f32 %v12977_v15, %v2780_v13  ;;  %v8547_v12 = vor.u32 %v9447_v42, %v8544_v25  ;;  %v8539_v15 = vor.u32 %v9445_v57, %v8536_v38  ;;  %v3616_v13 = vpop.f32.mrf.mxu3 }
 0x4a6   : > { %3686 = vmatpush.bf16.msra.mxu2 %v13172_v60  ;;  %v2848_v36 = vpack.c.bf16 %v2834_v62, %v2827_v28  ;;  %v8528_v60 = vld [vmem:[%s16545_s4 + $0x2a8] sm:$0xf0]  ;;  %v3523_v3 = vpop.f32.mrf.mxu0 }
 0x4a7   : > { %8589 = vmatmul.msk.bf16.gmra.mxu2 %vm3457_vm10, %v2850_v6  ;;  %v2849_v4 = vpack.c.bf16 %v2835_v55, %v2828_v49  ;;  %v8531_v27 = vor.u32 %v9443_v32, %v8528_v60  ;;  %v3524_v24 = vadd.f32 %v3523_v3, %v3505_v5 }
 0x4a8   : > { %3563 = vmatmul.bf16.gmra.mxu0 %v2848_v36  ;;  %3696 = vmatmul.bf16.vlgmr.msrb.gmra.mxu3 %v2848_v36 }
 0x4a9   : > { %3582 = vmatmul.bf16.gmra.mxu1 %v2849_v4  ;;  %3705 = vmatpush.bf16.msra.mxu0 %v8547_v12 }
 0x4aa   : > { %3687 = vmatpush.bf16.msra.mxu2 %v13220_v14  ;;  %v9455_v14 = vld [vmem:[%s16545_s4 + $0x304] sm:$0xf] }
 0x4ab   : > { %v8579_v59 = vor.u32 %v9455_v14, %v8576_v41 }
 0x4ad   : > { %3706 = vmatpush.bf16.msra.mxu0 %v8539_v15  ;;  %3728 = vmatpush.bf16.msra.mxu1 %v8579_v59  ;;  %v3618_v12 = vpop.f32.mrf.mxu3 }
 0x4ae   : > { %3688 = vmatpush.bf16.msra.mxu2 %v13245_v23  ;;  %v9439_v23 = vld [vmem:[%s16545_s4 + $0x284] sm:$0xf]  ;;  %s16059_s4 = smov 122  }
 0x4af   : > { %v3540_v45 = vpop.f32.mrf.mxu1  ;;  %v8515_v17 = vor.u32 %v9439_v23, %v8512_v20 }
 0x4b0   : > { %v3541_v48 = vadd.f32 %v3540_v45, %v3522_v26 }
 0x4b1   : > { %3707 = vmatpush.bf16.msra.mxu0 %v8531_v27 }
 0x4b2   : > { %3689 = vmatpush.bf16.msra.mxu2 %v13274_v35 }
 0x4b5   : > { %3708 = vmatpush.bf16.msra.mxu0 %v8523_v46  ;;  %v3621_v38 = vpop.f32.mrf.mxu3 }
 0x4b6   : > { %3690 = vmatpush.bf16.msra.mxu2 %v13303_v56 }
 0x4b7   : > { %3672 = vmatmul.bf16.vlgmr.msrb.gmra.mxu2 %v13001_v52 }
 0x4b8   : > { %3634 = vmatmul.bf16.vlgmr.msrb.gmra.mxu0 %v12854_v39  ;;  %v3542_v39 = vpop.f32.mrf.mxu1 }
 0x4b9   : > { %3653 = vmatmul.bf16.vlgmr.msrb.gmra.mxu1 %v12941_v19  ;;  %3709 = vmatpush.bf16.msra.mxu0 %v8515_v17 }
 0x4bd   : > { %v3623_v27 = vpop.f32.mrf.mxu3 }
 0x4c2   : > { %v3526_v35 = vpop.f32.mrf.mxu0 }
 0x4c3   : > { %v3527_v26 = vadd.f32 %v3526_v35, %v13404_v7 }
 0x4c7   : > { %3677 = vmatmul.bf16.gmra.mxu2 %v13208_v11 }
 0x4c8   : > { %3639 = vmatmul.bf16.gmra.mxu0 %v12929_v54 }
 0x4c9   : > { %3658 = vmatmul.bf16.gmra.mxu1 %v13020_v44 }
 0x4ca   : > { %v13507_v56 = vpop.f32.mrf.mxu0 }
 0x4d7   : > { %3691 = vmatmul.bf16.vlgmr.msra.gmra.mxu2 %v13369_v0 }
 0x4d8   : > { %3710 = vmatmul.bf16.vlgmr.msra.gmra.mxu0 %v13371_v33 }
 0x4d9   : > { %8590 = vmatmul.msk.bf16.vlgmr.msra.gmra.mxu1 %vm3457_vm10, %v13174_v2 }
 0x4e8   : > { %3715 = vmatmul.bf16.gmra.mxu0 %v2849_v4 }
 0x4e9   : > { %8591 = vmatmul.msk.bf16.gmra.mxu1 %vm3457_vm10, %v2850_v6 }
 0x4f9   : > { %v3545_v19 = vpop.f32.mrf.mxu1 }
 0x4fa   : > { %v3546_v52 = vadd.f32 %v3545_v19, %v3527_v26 }
 0x4fc   : > { %v3597_v0 = vpop.f32.mrf.mxu2 }
 0x501   : > { %v13509_v11 = vpop.f32.mrf.mxu1 }
 0x504   : > { %v3599_v10 = vpop.f32.mrf.mxu2 }
 0x510   : > { %v3559_v54 = vpop.f32.mrf.mxu0  ;;  %v3578_v44 = vpop.f32.mrf.mxu1 }
 0x511   : > { %v3560_v7 = vadd.f32 %v3559_v54, %v3541_v48  ;;  %v3543_v48 = vadd.f32 %v3542_v39, %v3524_v24  ;;  %v3510_v54 = vadd.f32 %v13453_v51, %v13402_v61  ;;  %v8606_v24 = vld [vmem:[%s15838_s5 + $0x48] sm:$0xf] }
 0x513   : > { %v3579_v1 = vadd.f32 %v3578_v44, %v3560_v7 }
 0x515   : > { %v3598_v40 = vadd.f32 %v3597_v0, %v3579_v1  ;;  %v3529_v0 = vadd.f32 %v13507_v56, %v3510_v54  ;;  %v8640_v54 = vld [vmem:[%s15838_s5 + $0xc] sm:$0xf0] }
 0x518   : > { %v3561_v33 = vpop.f32.mrf.mxu0  ;;  %v3580_v16 = vpop.f32.mrf.mxu1 }
 0x519   : > { %v3562_v20 = vadd.f32 %v3561_v33, %v3543_v48  ;;  %v3548_v33 = vadd.f32 %v13509_v11, %v3529_v0  ;;  %v9466_v48 = vld [vmem:[%s15838_s5 + $0x38] sm:$0xf0]  ;;  %v8652_v0 = vld [vmem:[%s15838_s5 + $0x54] sm:$0xf0] }
 0x51b   : > { %v3581_v7 = vadd.f32 %v3580_v16, %v3562_v20  ;;  %v9462_v20 = vld [vmem:[%s15838_s5 + $0x1c] sm:$0xf] }
 0x525   : > { %v3564_v2 = vpop.f32.mrf.mxu0 }
 0x526   : > { %v3565_v50 = vadd.f32 %v3564_v2, %v3546_v52  ;;  %v3583_v43 = vpop.f32.mrf.mxu1 }
 0x528   : > { %v3584_v8 = vadd.f32 %v3583_v43, %v3565_v50  ;;  %v3600_v43 = vadd.f32 %v3599_v10, %v3581_v7  ;;  %v8598_v10 = vld [vmem:[%s15838_s5 + $0x18] sm:$0xf] }
 0x52a   : > { %v3602_v30 = vpop.f32.mrf.mxu2 }
 0x52b   : > { %v13511_v29 = vadd.f32 %v3602_v30, %v3584_v8  ;;  %v3697_v21 = vpop.f32.mrf.mxu3 }
 0x52d   : > { %v3566_v34 = vpop.f32.mrf.mxu0 }
 0x52e   : > { %v3585_v42 = vpop.f32.mrf.mxu1 }
 0x532   : > { %v13513_v25 = vpop.f32.mrf.mxu2 }
 0x535   : > { %v3635_v9 = vpop.f32.mrf.mxu0 }
 0x536   : > { %v3654_v22 = vpop.f32.mrf.mxu1  ;;  %v3636_v15 = vadd.f32 %v3635_v9, %v3616_v13 }
 0x538   : > { %v3655_v60 = vadd.f32 %v3654_v22, %v3636_v15 }
 0x53a   : > { %v3673_v31 = vpop.f32.mrf.mxu2 }
 0x53b   : > { %v3674_v14 = vadd.f32 %v3673_v31, %v3655_v60  ;;  %v3567_v31 = vadd.f32 %v3566_v34, %v3548_v33  ;;  %v9463_v34 = vld [vmem:[%s15838_s5 + $0x20] sm:$0xf0] }
 0x53d   : > { %v3637_v6 = vpop.f32.mrf.mxu0 }
 0x53e   : > { %v3656_v28 = vpop.f32.mrf.mxu1  ;;  %v3638_v41 = vadd.f32 %v3637_v6, %v3618_v12 }
 0x540   : > { %v3657_v46 = vadd.f32 %v3656_v28, %v3638_v41  ;;  %v3699_v28 = vpop.f32.mrf.mxu3 }
 0x542   : > { %v3675_v62 = vpop.f32.mrf.mxu2 }
 0x543   : > { %v3676_v19 = vadd.f32 %v3675_v62, %v3657_v46  ;;  %v3586_v62 = vadd.f32 %v3585_v42, %v3567_v31 }
 0x545   : > { %v3640_v49 = vpop.f32.mrf.mxu0  ;;  %v3605_v42 = vadd.f32 %v13513_v25, %v3586_v62  ;;  %v9460_v25 = vld [vmem:[%s15838_s5 + $0x8] sm:$0xf0] }
 0x546   : > { %v3659_v55 = vpop.f32.mrf.mxu1  ;;  %v3641_v59 = vadd.f32 %v3640_v49, %v3621_v38  ;;  %v13533_v38 = vor.u32 %v9463_v34, %v8598_v10  ;;  %v4746_v10 = vld [vmem:[%s15839_s6 + $0x18] sm:$0xff]  ;;  %v4744_v34 = vld [vmem:[%s15839_s6 + $0x8] sm:$0xff] }
 0x548   : > { %v3660_v17 = vadd.f32 %v3659_v55, %v3641_v59  ;;  %v9469_v59 = vld [vmem:[%s15838_s5 + $0x50] sm:$0xf0] }
 0x549   : > { %v13574_v46 = vor.u32 %v9469_v59, %v8606_v24  ;;  %v4749_v24 = vld [vmem:[%s15839_s6 + $0x30] sm:$0xff]  ;;  %v4748_v59 = vld [vmem:[%s15839_s6 + $0x28] sm:$0xff] }
 0x54a   : > { %v3678_v36 = vpop.f32.mrf.mxu2 }
 0x54b   : > { %v3679_v44 = vadd.f32 %v3678_v36, %v3660_v17  ;;  %v8644_v17 = vld [vmem:[%s15838_s5 + $0x24] sm:$0xf0] }
 0x54d   : > { %v3642_v4 = vpop.f32.mrf.mxu0  ;;  %v3698_v9 = vadd.f32 %v3697_v21, %v3679_v44 }
 0x54e   : > { %v3661_v57 = vpop.f32.mrf.mxu1  ;;  %v3643_v52 = vadd.f32 %v3642_v4, %v3623_v27 }
 0x550   : > { %v3662_v39 = vadd.f32 %v3661_v57, %v3643_v52  ;;  %v9459_v52 = vld [vmem:[%s15838_s5 + $0x4] sm:$0xf] }
 0x551   : > { %v13646_v7 = vor.u32 %v9459_v52, %v8640_v54 }
 0x552   : > { %v3680_v32 = vpop.f32.mrf.mxu2 }
 0x553   : > { %v3681_v61 = vadd.f32 %v3680_v32, %v3662_v39 }
 0x555   : > { %v3711_v53 = vpop.f32.mrf.mxu0  ;;  %v3700_v55 = vadd.f32 %v3699_v28, %v3681_v61 }
 0x556   : > { %v3730_v37 = vpop.f32.mrf.mxu1 }
 0x55a   : > { %v3692_v18 = vpop.f32.mrf.mxu2 }
 0x55b   : > { %v3693_v45 = vadd.f32 %v3692_v18, %v3674_v14 }
 0x55d   : > { %v3713_v23 = vpop.f32.mrf.mxu0  ;;  %v3712_v35 = vadd.f32 %v3711_v53, %v3693_v45  ;;  %v8602_v45 = vld [vmem:[%s15838_s5 + $0x30] sm:$0xf] }
 0x55e   : > { %v3732_v26 = vpop.f32.mrf.mxu1 }
 0x55f   : > { %v3731_v1 = vadd.f32 %v3730_v37, %v3712_v35  ;;  %v13626_v35 = vor.u32 %v9462_v20, %v8644_v17 }
 0x561   : > { %v3740_v8 = vpack.c.bf16 %v3731_v1, %v3598_v40 }
 0x562   : > { %v3694_v63 = vpop.f32.mrf.mxu2 }
 0x563   : > { %v3695_v3 = vadd.f32 %v3694_v63, %v3676_v19  ;;  %v3792_v16 = vunpack.c.l.b16 %v3740_v8  ;;  %v3793_v41 = vunpack.c.h.b16 %v3740_v8  ;;  %v8648_v19 = vld [vmem:[%s15838_s5 + $0x3c] sm:$0xf0] }
 0x565   : > { %v3714_v2 = vadd.f32 %v3713_v23, %v3695_v3  ;;  %v3716_v50 = vpop.f32.mrf.mxu0  ;;  %v13576_v23 = vor.u32 %v9466_v48, %v8602_v45  ;;  %v9468_v3 = vld [vmem:[%s15838_s5 + $0x4c] sm:$0xf] }
 0x566   : > { %v3735_v22 = vpop.f32.mrf.mxu1  ;;  %v3717_v13 = vadd.f32 %v3716_v50, %v3698_v9 }
 0x567   : > { %v3733_v30 = vadd.f32 %v3732_v26, %v3714_v2  ;;  %v9465_v26 = vld [vmem:[%s15838_s5 + $0x34] sm:$0xf]  ;;  %v13670_v2 = vor.u32 %v9468_v3, %v8652_v0 }
 0x568   : > { %v3736_v56 = vadd.f32 %v3735_v22, %v3717_v13  ;;  %v13644_v21 = vor.u32 %v9465_v26, %v8648_v19 }
 0x569   : > { %v3741_v51 = vpack.c.bf16 %v3733_v30, %v3600_v43 }
 0x56a   : > { %v3742_v36 = vpack.c.bf16 %v3736_v56, %v13511_v29  ;;  %v8594_v29 = vld [vmem:[%s15838_s5] sm:$0xf] }
 0x56b   : > { %v3794_v6 = vunpack.c.l.b16 %v3741_v51  ;;  %v3795_v37 = vunpack.c.h.b16 %v3741_v51  ;;  %v8595_v18 = vor.u32 %v9460_v25, %v8594_v29 }
 0x56c   : > { %v3796_v15 = vunpack.c.l.b16 %v3742_v36  ;;  %v3797_v32 = vunpack.c.h.b16 %v3742_v36 }
 0x56d   : > { %v13521_v49 = vpack.c.b16 %v3794_v6, %v3792_v16  ;;  %v3718_v12 = vpop.f32.mrf.mxu0  ;;  %v13553_v27 = vpack.c.b16 %v3795_v37, %v3793_v41  ;;  %v4743_v6 = vld [vmem:[%s15839_s6] sm:$0xff]  ;;  %v4809_v41 = vld [vmem:[%s15840_s7 + $0x10] sm:$0xff] }
 0x56e   : > { %v3719_v11 = vadd.f32 %v3718_v12, %v3700_v55  ;;  %v3737_v40 = vpop.f32.mrf.mxu1  ;;  %v4808_v55 = vld [vmem:[%s15840_s7 + $0x8] sm:$0xff] }
 0x56f   : > { %3804 = vrot.lane.b32.xlu1 %v13521_v49, %s16555_s26 }
 0x570   : > { %v3738_v4 = vadd.f32 %v3737_v40, %v3719_v11 }
 0x572   : > { %v3743_v57 = vpack.c.bf16 %v3738_v4, %v3605_v42 }
 0x574   : > { %v3798_v60 = vunpack.c.l.b16 %v3743_v57  ;;  %v3799_v53 = vunpack.c.h.b16 %v3743_v57 }
 0x576   : > { %v13535_v5 = vpack.c.b16 %v3798_v60, %v3796_v15  ;;  %v13537_v14 = vpack.c.b16 %v3799_v53, %v3797_v32  ;;  %v4745_v15 = vld [vmem:[%s15839_s6 + $0x10] sm:$0xff] }
 0x577   : > { %3782 = vrot.lane.b32.xlu1 %v13533_v38, %s16556_s22 }
 0x578   : > { %3810 = vrot.lane.b32.xlu0 %v13537_v14, %s16555_s26  ;;  %3941 = vmatpush.bf16.msrb.mxu1 %v13537_v14 }
 0x579   : > { %3808 = vrot.lane.b32.xlu2 %v13535_v5, %s16555_s26  ;;  %3912 = vmatpush.bf16.msrb.mxu0 %v13535_v5 }
 0x57c   : > { %3942 = vmatpush.bf16.msrb.mxu1 %v13553_v27 }
 0x57d   : > { %3913 = vmatpush.bf16.msrb.mxu0 %v13521_v49 }
 0x57f   : > { %3976 = vrot.lane.b32.xlu1 %v13535_v5, %s16557_s20  ;;  %8620 = vmatmul.msk.bf16.vlgmr.msrb.gmra.mxu1 %vm3819_vm11, %v8595_v18 }
 0x580   : > { %3780 = vrot.lane.b32.xlu0 %v8595_v18, %s16556_s22  ;;  %8616 = vmatmul.msk.bf16.vlgmr.msrb.gmra.mxu0 %vm3819_vm11, %v8595_v18 }
 0x581   : > { %3806 = vrot.lane.b32.xlu2 %v13553_v27, %s16555_s26 }
 0x587   : > { %3974 = vrot.lane.b32.xlu1 %v13553_v27, %s16557_s20 }
 0x588   : > { %3786 = vrot.lane.b32.xlu0 %v13574_v46, %s16556_s22 }
 0x589   : > { %3784 = vrot.lane.b32.xlu2 %v13576_v23, %s16556_s22 }
 0x58f   : > { %3968 = vrot.lane.b32.xlu1 %v13576_v23, %s16061_s0  ;;  %8621 = vmatmul.msk.bf16.gmra.mxu1 %vm3819_vm11, %v13533_v38 }
 0x590   : > { %3972 = vrot.lane.b32.xlu0 %v13521_v49, %s16557_s20  ;;  %8617 = vmatmul.msk.bf16.gmra.mxu0 %vm3819_vm11, %v13533_v38 }
 0x591   : > { %3978 = vrot.lane.b32.xlu2 %v13537_v14, %s16557_s20 }
 0x597   : > { %4200 = vrot.lane.b32.xlu1 %v13537_v14, %s9992_s19 }
 0x598   : > { %3966 = vrot.lane.b32.xlu0 %v13533_v38, %s16061_s0 }
 0x599   : > { %3964 = vrot.lane.b32.xlu2 %v8595_v18, %s16061_s0 }
 0x59f   : > { %4194 = vrot.lane.b32.xlu1 %v13521_v49, %s9992_s19  ;;  %8622 = vmatmul.msk.bf16.gmra.mxu1 %vm3819_vm11, %v13576_v23 }
 0x5a0   : > { %4198 = vrot.lane.b32.xlu0 %v13535_v5, %s9992_s19  ;;  %8618 = vmatmul.msk.bf16.gmra.mxu0 %vm3819_vm11, %v13576_v23 }
 0x5a1   : > { %3970 = vrot.lane.b32.xlu2 %v13574_v46, %s16061_s0 }
 0x5a7   : > { %4083 = vrot.lane.b32.xlu1 %v13553_v27, %s16054_s1 }
 0x5a8   : > { %4087 = vrot.lane.b32.xlu0 %v13537_v14, %s16054_s1 }
 0x5a9   : > { %4085 = vrot.lane.b32.xlu2 %v13535_v5, %s16054_s1 }
 0x5af   : > { %4077 = vrot.lane.b32.xlu1 %v13576_v23, %s16056_s21  ;;  %8623 = vmatmul.msk.bf16.gmra.mxu1 %vm3819_vm11, %v13574_v46  ;;  %v4814_v23 = vld [vmem:[%s15840_s7 + $0x38] sm:$0xff] }
 0x5b0   : > { %4081 = vrot.lane.b32.xlu0 %v13521_v49, %s16054_s1  ;;  %8619 = vmatmul.msk.bf16.gmra.mxu0 %vm3819_vm11, %v13574_v46 }
 0x5b1   : > { %4196 = vrot.lane.b32.xlu2 %v13553_v27, %s9992_s19  ;;  %s16585_s19 = smov 122  }
 0x5b7   : > { %4418 = vrot.lane.b32.xlu1 %v13537_v14, %s9995_s29 }
 0x5b8   : > { %4075 = vrot.lane.b32.xlu0 %v13533_v38, %s16056_s21  ;;  %v4747_v38 = vld [vmem:[%s15839_s6 + $0x20] sm:$0xff] }
 0x5b9   : > { %4073 = vrot.lane.b32.xlu2 %v8595_v18, %s16056_s21 }
 0x5bf   : > { %4412 = vrot.lane.b32.xlu1 %v13521_v49, %s9995_s29 }
 0x5c0   : > { %4416 = vrot.lane.b32.xlu0 %v13535_v5, %s9995_s29 }
 0x5c1   : > { %4079 = vrot.lane.b32.xlu2 %v13574_v46, %s16056_s21  ;;  %s10001_s21 = smov 116  }
 0x5c7   : > { %4305 = vrot.lane.b32.xlu1 %v13553_v27, %s9996_s18 }
 0x5c8   : > { %4309 = vrot.lane.b32.xlu0 %v13537_v14, %s9996_s18 }
 0x5c9   : > { %4307 = vrot.lane.b32.xlu2 %v13535_v5, %s9996_s18 }
 0x5cf   : > { %4406 = vrot.lane.b32.xlu1 %v13626_v35, %s16061_s0 }
 0x5d0   : > { %4303 = vrot.lane.b32.xlu0 %v13521_v49, %s9996_s18  ;;  %s9358_s18 = sshll.u32 %s16587_s25, 4 }
 0x5d1   : > { %4414 = vrot.lane.b32.xlu2 %v13553_v27, %s9995_s29  ;;  %s9997_s29 = smov 99  }
 0x5d3   : > { %v3809_v63 = vpop.permute.xlu2 %3808 }
 0x5d7   : > { %4299 = vrot.lane.b32.xlu1 %v13644_v21, %s16556_s22 }
 0x5d8   : > { %4295 = vrot.lane.b32.xlu0 %v13646_v7, %s16556_s22 }
 0x5d9   : > { %4404 = vrot.lane.b32.xlu2 %v13646_v7, %s16061_s0 }
 0x5db   : > { %v3807_v44 = vpop.permute.xlu2 %3806 }
 0x5df   : > { %4646 = vrot.lane.b32.xlu1 %v13535_v5, %s16550_s30 }
 0x5e0   : > { %4408 = vrot.lane.b32.xlu0 %v13644_v21, %s16061_s0 }
 0x5e1   : > { %v3805_v1 = vpop.permute.xlu1 %3804  ;;  %4297 = vrot.lane.b32.xlu2 %v13626_v35, %s16556_s22 }
 0x5e2   : > { %v3813_v30 = vsel %vm771_vm0, %v3805_v1, %v3807_v44 }
 0x5e3   : > { %v13668_v39 = vpop.permute.xlu2 %3784 }
 0x5e7   : > { %4527 = vrot.lane.b32.xlu1 %v13537_v14, %s9997_s29 }
 0x5e8   : > { %4301 = vrot.lane.b32.xlu0 %v13670_v2, %s16556_s22  ;;  %s16558_s22 = smov 32  }
 0x5e9   : > { %v3783_v33 = vpop.permute.xlu1 %3782  ;;  %4410 = vrot.lane.b32.xlu2 %v13670_v2, %s16061_s0 }
 0x5ea   : > { %v3811_v50 = vpop.permute.xlu0 %3810 }
 0x5eb   : > { %v3979_v43 = vpop.permute.xlu2 %3978  ;;  %3867 = vmatpush.bf16.msra.mxu3 %v3811_v50  ;;  %v3814_v8 = vsel %vm771_vm0, %v3809_v63, %v3811_v50 }
 0x5ec   : > { %3838 = vmatpush.bf16.msrb.mxu2 %v3814_v8 }
 0x5ef   : > { %4521 = vrot.lane.b32.xlu1 %v13521_v49, %s9997_s29  ;;  %3868 = vmatpush.bf16.msra.mxu3 %v3807_v44 }
 0x5f0   : > { %4525 = vrot.lane.b32.xlu0 %v13535_v5, %s9997_s29  ;;  %3839 = vmatpush.bf16.msrb.mxu2 %v3813_v30 }
 0x5f1   : > { %v3977_v9 = vpop.permute.xlu1 %3976  ;;  %4648 = vrot.lane.b32.xlu2 %v13537_v14, %s16550_s30  ;;  %v4812_v14 = vld [vmem:[%s15840_s7 + $0x28] sm:$0xff] }
 0x5f2   : > { %v3982_v22 = vsel %vm980_vm1, %v3977_v9, %v3979_v43  ;;  %v3781_v31 = vpop.permute.xlu0 %3780 }
 0x5f3   : > { %4034 = vmatpush.bf16.msrb.mxu3 %v3979_v43  ;;  %v13691_v61 = vpop.permute.xlu2 %3964  ;;  %8608 = vmatmul.msk.bf16.vlgmr.msrb.gmra.mxu2 %vm3819_vm11, %v3781_v31 }
 0x5f4   : > { %4005 = vmatpush.bf16.msra.mxu2 %v3982_v22  ;;  %8612 = vmatmul.msk.bf16.vlgmr.msra.gmra.mxu3 %vm3819_vm11, %v3781_v31  ;;  %v5090_v31 = vld [vmem:[%s15841_s8 + $0x48] sm:$0xf] }
 0x5f7   : > { %4515 = vrot.lane.b32.xlu1 %v13626_v35, %s16558_s22 }
 0x5f8   : > { %4644 = vrot.lane.b32.xlu0 %v13553_v27, %s16550_s30 }
 0x5f9   : > { %v3975_v51 = vpop.permute.xlu1 %3974  ;;  %4642 = vrot.lane.b32.xlu2 %v13521_v49, %s16550_s30  ;;  %s16579_s30 = smov 114  }
 0x5fa   : > { %4035 = vmatpush.bf16.msrb.mxu3 %v3975_v51  ;;  %v3787_v13 = vpop.permute.xlu0 %3786 }
 0x5fb   : > { %v13705_v16 = vpop.permute.xlu2 %3970 }
 0x5ff   : > { %4753 = vperm.xlu1 %9661, %v4743_v6  }
 0x600   : > { %4513 = vrot.lane.b32.xlu0 %v13646_v7, %s16558_s22 }
 0x601   : > { %v13710_v28 = vpop.permute.xlu1 %3968  ;;  %4523 = vrot.lane.b32.xlu2 %v13553_v27, %s9997_s29  ;;  %s16063_s29 = smov 115  }
 0x602   : > { %v3973_v62 = vpop.permute.xlu0 %3972 }
 0x603   : > { %v4086_v56 = vpop.permute.xlu2 %4085  ;;  %8609 = vmatmul.msk.bf16.gmra.mxu2 %vm3819_vm11, %v3783_v33  ;;  %v3981_v49 = vsel %vm980_vm1, %v3973_v62, %v3975_v51  ;;  %v3944_v51 = vpop.f32.mrf.mxu1  ;;  %vm4529_vm1 = vcmask 809984  }
 0x604   : > { %8613 = vmatmul.msk.bf16.gmra.mxu3 %vm3819_vm11, %v3783_v33  ;;  %4006 = vmatpush.bf16.msra.mxu2 %v3981_v49 }
 0x607   : > { %4822 = vperm.xlu1 %9661, %v4808_v55  }
 0x608   : > { %4519 = vrot.lane.b32.xlu0 %v13670_v2, %s16558_s22 }
 0x609   : > { %v4201_v12 = vpop.permute.xlu1 %4200  ;;  %4517 = vrot.lane.b32.xlu2 %v13644_v21, %s16558_s22 }
 0x60a   : > { %4256 = vmatpush.bf16.msra.mxu3 %v4201_v12  ;;  %v13730_v11 = vpop.permute.xlu0 %3966 }
 0x60b   : > { %v4197_v40 = vpop.permute.xlu2 %4196 }
 0x60e   : > { %4257 = vmatpush.bf16.msra.mxu3 %v4197_v40 }
 0x60f   : > { %4768 = vperm.xlu1 %9661, %v4746_v10  }
 0x611   : > { %v4195_v42 = vpop.permute.xlu1 %4194  ;;  %4758 = vperm.xlu2 %9662, %v4744_v34  }
 0x612   : > { %v4199_v36 = vpop.permute.xlu0 %4198  ;;  %v4203_v32 = vsel %vm4202_vm12, %v4195_v42, %v4197_v40 }
 0x613   : > { %v4204_v4 = vsel %vm4202_vm12, %v4199_v36, %v4201_v12  ;;  %v4074_v57 = vpop.permute.xlu2 %4073  ;;  %8610 = vmatmul.msk.bf16.gmra.mxu2 %vm3819_vm11, %v13668_v39 }
 0x614   : > { %8614 = vmatmul.msk.bf16.gmra.mxu3 %vm3819_vm11, %v13668_v39  ;;  %4227 = vmatpush.bf16.msrb.mxu2 %v4204_v4 }
 0x617   : > { %4773 = vperm.xlu1 %9661, %v4747_v38  }
 0x618   : > { %4228 = vmatpush.bf16.msrb.mxu2 %v4203_v32 }
 0x619   : > { %v4084_v60 = vpop.permute.xlu1 %4083  ;;  %4763 = vperm.xlu2 %9662, %v4745_v15  }
 0x61a   : > { %v4088_v53 = vpop.permute.xlu0 %4087 }
 0x61b   : > { %v13748_v37 = vpop.permute.xlu2 %4079  ;;  %4143 = vmatpush.bf16.msra.mxu1 %v4088_v53  ;;  %v4091_v5 = vsel %vm4089_vm13, %v4086_v56, %v4088_v53 }
 0x61c   : > { %4114 = vmatpush.bf16.msra.mxu0 %v4091_v5 }
 0x61f   : > { %4842 = vperm.xlu1 %9661, %v4812_v14   ;;  %4144 = vmatpush.bf16.msra.mxu1 %v4084_v60 }
 0x621   : > { %v4078_v29 = vpop.permute.xlu1 %4077  ;;  %4827 = vperm.xlu2 %9662, %v4809_v41  }
 0x622   : > { %v4082_v25 = vpop.permute.xlu0 %4081  ;;  %8636 = vmatmul.msk.bf16.vlgmr.msra.gmra.mxu1 %vm3819_vm11, %v4074_v57 }
 0x623   : > { %v4308_v27 = vpop.permute.xlu2 %4307  ;;  %8611 = vmatmul.msk.bf16.gmra.mxu2 %vm3819_vm11, %v3787_v13  ;;  %v4090_v18 = vsel %vm4089_vm13, %v4082_v25, %v4084_v60 }
 0x624   : > { %8615 = vmatmul.msk.bf16.gmra.mxu3 %vm3819_vm11, %v3787_v13  ;;  %4115 = vmatpush.bf16.msra.mxu0 %v4090_v18  ;;  %v5128_v13 = vunpack.c.l.b16 %v5090_v31 }
 0x626   : > { %v5138_v56 = vpack.c.b16 %v5128_v13, %v5128_v13 }
 0x627   : > { %4783 = vperm.xlu1 %9661, %v4749_v24   ;;  %8632 = vmatmul.msk.bf16.vlgmr.msra.gmra.mxu0 %vm3819_vm11, %v4074_v57 }
 0x628   : > { %v5162_v12 = vand.u32 %v5138_v56, %v12948_v58 }
 0x629   : > { %v4419_v45 = vpop.permute.xlu1 %4418  ;;  %4778 = vperm.xlu2 %9662, %v4748_v59  }
 0x62a   : > { %v4076_v48 = vpop.permute.xlu0 %4075 }
 0x62b   : > { %v4415_v46 = vpop.permute.xlu2 %4414 }
 0x62f   : > { %4852 = vperm.xlu1 %9661, %v4814_v23  }
 0x631   : > { %v4413_v20 = vpop.permute.xlu1 %4412 }
 0x632   : > { %v4417_v17 = vpop.permute.xlu0 %4416  ;;  %8637 = vmatmul.msk.bf16.gmra.mxu1 %vm3819_vm11, %v4076_v48  ;;  %v4421_v52 = vsel %vm4420_vm14, %v4413_v20, %v4415_v46 }
 0x633   : > { %v4422_v26 = vsel %vm4420_vm14, %v4417_v17, %v4419_v45  ;;  %v13772_v19 = vpop.permute.xlu2 %4404  ;;  %8624 = vmatmul.msk.bf16.vlgmr.msra.gmra.mxu2 %vm3819_vm11, %v13691_v61 }
 0x634   : > { %8628 = vmatmul.msk.bf16.vlgmr.msrb.gmra.mxu3 %vm3819_vm11, %v13691_v61  ;;  %4445 = vmatpush.bf16.msra.mxu2 %v4422_v26  ;;  %v3915_v61 = vpop.f32.mrf.mxu0 }
 0x635   : > { %4474 = vmatpush.bf16.msrb.mxu3 %v4419_v45 }
 0x637   : > { %8633 = vmatmul.msk.bf16.gmra.mxu0 %vm3819_vm11, %v4076_v48 }
 0x638   : > { %4446 = vmatpush.bf16.msra.mxu2 %v4421_v52 }
 0x639   : > { %4475 = vmatpush.bf16.msrb.mxu3 %v4415_v46  ;;  %v4306_v54 = vpop.permute.xlu1 %4305 }
 0x63a   : > { %v4310_v63 = vpop.permute.xlu0 %4309 }
 0x63b   : > { %v13779_v44 = vpop.permute.xlu2 %4297  ;;  %4365 = vmatpush.bf16.msrb.mxu1 %v4310_v63  ;;  %v4313_v1 = vsel %vm4311_vm15, %v4308_v27, %v4310_v63 }
 0x63c   : > { %4336 = vmatpush.bf16.msrb.mxu0 %v4313_v1  ;;  %v13808_v55 = vpop.f32.mrf.mxu0 }
 0x63f   : > { %4366 = vmatpush.bf16.msrb.mxu1 %v4306_v54 }
 0x641   : > { %v13781_v3 = vpop.permute.xlu1 %4406 }
 0x642   : > { %v4304_v0 = vpop.permute.xlu0 %4303  ;;  %8638 = vmatmul.msk.bf16.gmra.mxu1 %vm3819_vm11, %v4078_v29 }
 0x643   : > { %v13784_v39 = vpop.permute.xlu2 %4410  ;;  %8625 = vmatmul.msk.bf16.gmra.mxu2 %vm3819_vm11, %v13730_v11  ;;  %v4312_v33 = vsel %vm4311_vm15, %v4304_v0, %v4306_v54 }
 0x644   : > { %8629 = vmatmul.msk.bf16.gmra.mxu3 %vm3819_vm11, %v13730_v11  ;;  %4337 = vmatpush.bf16.msrb.mxu0 %v4312_v33  ;;  %v3920_v58 = vpop.f32.mrf.mxu0 }
 0x647   : > { %8634 = vmatmul.msk.bf16.gmra.mxu0 %vm3819_vm11, %v4078_v29 }
 0x649   : > { %v13791_v50 = vpop.permute.xlu1 %4299 }
 0x64a   : > { %v4296_v43 = vpop.permute.xlu0 %4295 }
 0x64b   : > { %v4649_v8 = vpop.permute.xlu2 %4648 }
 0x651   : > { %v4647_v30 = vpop.permute.xlu1 %4646 }
 0x652   : > { %v13793_v9 = vpop.permute.xlu0 %4408  ;;  %8639 = vmatmul.msk.bf16.gmra.mxu1 %vm3819_vm11, %v13748_v37  ;;  %v4652_v4 = vsel %vm1189_vm2, %v4647_v30, %v4649_v8 }
 0x653   : > { %v4643_v22 = vpop.permute.xlu2 %4642  ;;  %8626 = vmatmul.msk.bf16.gmra.mxu2 %vm3819_vm11, %v13710_v28 }
 0x654   : > { %8630 = vmatmul.msk.bf16.gmra.mxu3 %vm3819_vm11, %v13710_v28  ;;  %v3946_v28 = vpop.f32.mrf.mxu1 }
 0x657   : > { %8635 = vmatmul.msk.bf16.gmra.mxu0 %vm3819_vm11, %v13748_v37 }
 0x659   : > { %v4528_v6 = vpop.permute.xlu1 %4527 }
 0x65a   : > { %4583 = vmatpush.bf16.msra.mxu1 %v4528_v6  ;;  %v13806_v62 = vpop.permute.xlu0 %4301 }
 0x65b   : > { %v4524_v49 = vpop.permute.xlu2 %4523 }
 0x65c   : > { %v3949_v42 = vpop.f32.mrf.mxu1 }
 0x65e   : > { %4584 = vmatpush.bf16.msra.mxu1 %v4524_v49 }
 0x661   : > { %v4522_v10 = vpop.permute.xlu1 %4521 }
 0x662   : > { %v4526_v11 = vpop.permute.xlu0 %4525  ;;  %8668 = vmatmul.msk.bf16.vlgmr.msrb.gmra.mxu1 %vm3819_vm11, %v4296_v43  ;;  %v4530_v34 = vsel %vm4529_vm1, %v4522_v10, %v4524_v49 }
 0x663   : > { %v4531_v40 = vsel %vm4529_vm1, %v4526_v11, %v4528_v6  ;;  %8627 = vmatmul.msk.bf16.gmra.mxu2 %vm3819_vm11, %v13705_v16  ;;  %5199 = vmatpush.bf16.msrb.mxu1 %v5162_v12 }
 0x664   : > { %8631 = vmatmul.msk.bf16.gmra.mxu3 %vm3819_vm11, %v13705_v16  ;;  %4554 = vmatpush.bf16.msra.mxu0 %v4531_v40  ;;  %v3951_v36 = vpop.f32.mrf.mxu1  ;;  %v3922_v16 = vpop.f32.mrf.mxu0 }
 0x667   : > { %8664 = vmatmul.msk.bf16.vlgmr.msrb.gmra.mxu0 %vm3819_vm11, %v4296_v43 }
 0x668   : > { %4555 = vmatpush.bf16.msra.mxu0 %v4530_v34 }
 0x66a   : > { %v4645_v57 = vpop.permute.xlu0 %4644 }
 0x66b   : > { %v4651_v53 = vsel %vm1189_vm2, %v4643_v22, %v4645_v57  ;;  %vm5366_vm2 = vcmask 523264  }
 0x66c   : > { %v3954_v37 = vpop.f32.mrf.mxu1  ;;  %v3925_v5 = vpop.f32.mrf.mxu0 }
 0x672   : > { %8669 = vmatmul.msk.bf16.gmra.mxu1 %vm3819_vm11, %v13779_v44 }
 0x673   : > { %8656 = vmatmul.msk.bf16.vlgmr.msrb.gmra.mxu2 %vm3819_vm11, %v13646_v7 }
 0x674   : > { %8660 = vmatmul.msk.bf16.vlgmr.msra.gmra.mxu3 %vm3819_vm11, %v13646_v7  ;;  %4675 = vmatpush.bf16.msrb.mxu2 %v4652_v4  ;;  %v3956_v29 = vpop.f32.mrf.mxu1  ;;  %v3927_v59 = vpop.f32.mrf.mxu0 }
 0x675   : > { %4704 = vmatpush.bf16.msra.mxu3 %v4649_v8  ;;  %v4514_v8 = vpop.permute.xlu0 %4513 }
 0x676   : > { %v3841_v38 = vpop.f32.mrf.mxu2 }
 0x677   : > { %v3870_v15 = vpop.f32.mrf.mxu3  ;;  %v13824_v32 = vadd.f32 %v3915_v61, %v3841_v38  ;;  %8665 = vmatmul.msk.bf16.gmra.mxu0 %vm3819_vm11, %v13779_v44 }
 0x678   : > { %v13826_v60 = vadd.f32 %v3944_v51, %v3870_v15  ;;  %4676 = vmatpush.bf16.msrb.mxu2 %v4651_v53 }
 0x679   : > { %4705 = vmatpush.bf16.msra.mxu3 %v4645_v57 }
 0x67c   : > { %v3959_v45 = vpop.f32.mrf.mxu1  ;;  %v3930_v17 = vpop.f32.mrf.mxu0 }
 0x67e   : > { %v13831_v7 = vpop.f32.mrf.mxu2 }
 0x67f   : > { %v3872_v14 = vpop.f32.mrf.mxu3 }
 0x680   : > { %v13833_v41 = vadd.f32 %v3946_v28, %v3872_v14  ;;  %v4516_v28 = vpop.permute.xlu1 %4515 }
 0x682   : > { %8670 = vmatmul.msk.bf16.gmra.mxu1 %vm3819_vm11, %v13791_v50 }
 0x683   : > { %8657 = vmatmul.msk.bf16.gmra.mxu2 %vm3819_vm11, %v13626_v35 }
 0x684   : > { %8661 = vmatmul.msk.bf16.gmra.mxu3 %vm3819_vm11, %v13626_v35  ;;  %v3961_v63 = vpop.f32.mrf.mxu1  ;;  %v3932_v44 = vpop.f32.mrf.mxu0 }
 0x686   : > { %v3846_v25 = vpop.f32.mrf.mxu2 }
 0x687   : > { %v3875_v27 = vpop.f32.mrf.mxu3  ;;  %v13841_v18 = vadd.f32 %v3920_v58, %v3846_v25  ;;  %8666 = vmatmul.msk.bf16.gmra.mxu0 %vm3819_vm11, %v13791_v50 }
 0x688   : > { %v13843_v24 = vadd.f32 %v3949_v42, %v3875_v27 }
 0x68e   : > { %v3848_v48 = vpop.f32.mrf.mxu2 }
 0x68f   : > { %v3877_v46 = vpop.f32.mrf.mxu3  ;;  %v13847_v23 = vadd.f32 %v3922_v16, %v3848_v48 }
 0x690   : > { %v13849_v20 = vadd.f32 %v3951_v36, %v3877_v46 }
 0x692   : > { %8671 = vmatmul.msk.bf16.gmra.mxu1 %vm3819_vm11, %v13806_v62 }
 0x693   : > { %8658 = vmatmul.msk.bf16.gmra.mxu2 %vm3819_vm11, %v13644_v21 }
 0x694   : > { %8662 = vmatmul.msk.bf16.gmra.mxu3 %vm3819_vm11, %v13644_v21 }
 0x696   : > { %v3851_v35 = vpop.f32.mrf.mxu2 }
 0x697   : > { %v3880_v26 = vpop.f32.mrf.mxu3  ;;  %v13857_v52 = vadd.f32 %v3925_v5, %v3851_v35  ;;  %8667 = vmatmul.msk.bf16.gmra.mxu0 %vm3819_vm11, %v13806_v62 }
 0x698   : > { %v13859_v54 = vadd.f32 %v3954_v37, %v3880_v26 }
 0x69e   : > { %v3853_v1 = vpop.f32.mrf.mxu2 }
 0x69f   : > { %v3882_v0 = vpop.f32.mrf.mxu3  ;;  %v13863_v33 = vadd.f32 %v3927_v59, %v3853_v1  ;;  %v4146_v43 = vpop.f32.mrf.mxu1 }
 0x6a0   : > { %v13865_v50 = vadd.f32 %v3956_v29, %v3882_v0 }
 0x6a2   : > { %8684 = vmatmul.msk.bf16.vlgmr.msra.gmra.mxu1 %vm3819_vm11, %v4514_v8 }
 0x6a3   : > { %8659 = vmatmul.msk.bf16.gmra.mxu2 %vm3819_vm11, %v13670_v2 }
 0x6a4   : > { %8663 = vmatmul.msk.bf16.gmra.mxu3 %vm3819_vm11, %v13670_v2  ;;  %v4117_v21 = vpop.f32.mrf.mxu0 }
 0x6a6   : > { %v3856_v30 = vpop.f32.mrf.mxu2 }
 0x6a7   : > { %v3885_v22 = vpop.f32.mrf.mxu3  ;;  %v13872_v31 = vadd.f32 %v3930_v17, %v3856_v30  ;;  %8680 = vmatmul.msk.bf16.vlgmr.msra.gmra.mxu0 %vm3819_vm11, %v4514_v8  ;;  %v13877_v51 = vpop.f32.mrf.mxu1  ;;  %v4811_v30 = vld [vmem:[%s15840_s7 + $0x20] sm:$0xff] }
 0x6a8   : > { %v13874_v61 = vadd.f32 %v3959_v45, %v3885_v22 }
 0x6ac   : > { %v13879_v13 = vpop.f32.mrf.mxu0 }
 0x6ae   : > { %v3858_v6 = vpop.f32.mrf.mxu2 }
 0x6af   : > { %v3887_v62 = vpop.f32.mrf.mxu3  ;;  %v13881_v56 = vadd.f32 %v3932_v44, %v3858_v6  ;;  %v4151_v2 = vpop.f32.mrf.mxu1 }
 0x6b0   : > { %v13883_v49 = vadd.f32 %v3961_v63, %v3887_v62 }
 0x6b2   : > { %8685 = vmatmul.msk.bf16.gmra.mxu1 %vm3819_vm11, %v4516_v28 }
 0x6b3   : > { %8672 = vmatmul.msk.bf16.vlgmr.msra.gmra.mxu2 %vm3819_vm11, %v13772_v19 }
 0x6b4   : > { %8676 = vmatmul.msk.bf16.vlgmr.msrb.gmra.mxu3 %vm3819_vm11, %v13772_v19  ;;  %v4122_v12 = vpop.f32.mrf.mxu0  ;;  %v3918_v19 = vadd.f32 %v13808_v55, %v13831_v7 }
 0x6b6   : > { %v4008_v11 = vpop.f32.mrf.mxu2 }
 0x6b7   : > { %v4037_v40 = vpop.f32.mrf.mxu3  ;;  %v4057_v10 = vadd.f32 %v4008_v11, %v13824_v32  ;;  %8681 = vmatmul.msk.bf16.gmra.mxu0 %vm3819_vm11, %v4516_v28  ;;  %v13893_v42 = vpop.f32.mrf.mxu1 }
 0x6b8   : > { %v4058_v34 = vadd.f32 %v4037_v40, %v13826_v60  ;;  %v4518_v32 = vpop.permute.xlu2 %4517 }
 0x6b9   : > { %v13895_v58 = vadd.f32 %v4117_v21, %v4057_v10 }
 0x6ba   : > { %v13897_v36 = vadd.f32 %v4146_v43, %v4058_v34  ;;  %v4810_v43 = vld [vmem:[%s15840_s7 + $0x18] sm:$0xff] }
 0x6bc   : > { %v13899_v4 = vpop.f32.mrf.mxu0 }
 0x6be   : > { %v4010_v16 = vpop.f32.mrf.mxu2 }
 0x6bf   : > { %v4039_v57 = vpop.f32.mrf.mxu3  ;;  %v13903_v38 = vadd.f32 %v4010_v16, %v3918_v19  ;;  %v4156_v60 = vpop.f32.mrf.mxu1 }
 0x6c0   : > { %v13906_v15 = vadd.f32 %v4039_v57, %v13833_v41 }
 0x6c2   : > { %8686 = vmatmul.msk.bf16.gmra.mxu1 %vm3819_vm11, %v4518_v32 }
 0x6c3   : > { %8673 = vmatmul.msk.bf16.gmra.mxu2 %vm3819_vm11, %v13781_v3 }
 0x6c4   : > { %8677 = vmatmul.msk.bf16.gmra.mxu3 %vm3819_vm11, %v13781_v3  ;;  %v4127_v53 = vpop.f32.mrf.mxu0 }
 0x6c6   : > { %v4013_v37 = vpop.f32.mrf.mxu2 }
 0x6c7   : > { %v4042_v55 = vpop.f32.mrf.mxu3  ;;  %v4061_v5 = vadd.f32 %v4013_v37, %v13841_v18  ;;  %8682 = vmatmul.msk.bf16.gmra.mxu0 %vm3819_vm11, %v4518_v32  ;;  %v13920_v29 = vpop.f32.mrf.mxu1  ;;  %v9464_v32 = vld [vmem:[%s15838_s5 + $0x28] sm:$0xf0] }
 0x6c8   : > { %v4062_v7 = vadd.f32 %v4042_v55, %v13843_v24  ;;  %v4520_v18 = vpop.permute.xlu0 %4519 }
 0x6c9   : > { %v13916_v14 = vadd.f32 %v4122_v12, %v4061_v5 }
 0x6ca   : > { %v13918_v41 = vadd.f32 %v4151_v2, %v4062_v7 }
 0x6cc   : > { %v13922_v25 = vpop.f32.mrf.mxu0 }
 0x6ce   : > { %v4015_v27 = vpop.f32.mrf.mxu2 }
 0x6cf   : > { %v4044_v59 = vpop.f32.mrf.mxu3  ;;  %v13925_v3 = vadd.f32 %v4015_v27, %v13847_v23  ;;  %v4161_v48 = vpop.f32.mrf.mxu1 }
 0x6d0   : > { %v13928_v45 = vadd.f32 %v4044_v59, %v13849_v20  ;;  %v4807_v20 = vld [vmem:[%s15840_s7] sm:$0xff] }
 0x6d1   : > { %4817 = vperm.xlu0 %9803, %v4807_v20  }
 0x6d2   : > { %8687 = vmatmul.msk.bf16.gmra.mxu1 %vm3819_vm11, %v4520_v18 }
 0x6d3   : > { %8674 = vmatmul.msk.bf16.gmra.mxu2 %vm3819_vm11, %v13793_v9 }
 0x6d4   : > { %8678 = vmatmul.msk.bf16.gmra.mxu3 %vm3819_vm11, %v13793_v9  ;;  %v4132_v24 = vpop.f32.mrf.mxu0 }
 0x6d6   : > { %v4018_v46 = vpop.f32.mrf.mxu2 }
 0x6d7   : > { %v4047_v17 = vpop.f32.mrf.mxu3  ;;  %v4065_v35 = vadd.f32 %v4018_v46, %v13857_v52  ;;  %8683 = vmatmul.msk.bf16.gmra.mxu0 %vm3819_vm11, %v4520_v18  ;;  %v13953_v0 = vpop.f32.mrf.mxu1 }
 0x6d8   : > { %v4066_v23 = vadd.f32 %v4047_v17, %v13859_v54  ;;  %16560 = vst [vmem:[#allocation44_spill] sm:$0xff] %v13953_v0  ;;  %v4168_v0 = vadd.f32 %v13879_v13, %v13903_v38 }
 0x6d9   : > { %v13941_v26 = vadd.f32 %v4127_v53, %v4065_v35  ;;  %4832 = vperm.xlu0 %9803, %v4810_v43  }
 0x6da   : > { %v13943_v63 = vadd.f32 %v4156_v60, %v4066_v23 }
 0x6dc   : > { %v13951_v54 = vpop.f32.mrf.mxu0 }
 0x6dd   : > { %16559 = vst [vmem:[#allocation52_spill] sm:$0xff] %v13951_v54 }
 0x6de   : > { %v4020_v9 = vpop.f32.mrf.mxu2 }
 0x6df   : > { %v4049_v44 = vpop.f32.mrf.mxu3  ;;  %v13946_v1 = vadd.f32 %v4020_v9, %v13863_v33  ;;  %v13969_v2 = vpop.f32.mrf.mxu1 }
 0x6e0   : > { %v13949_v52 = vadd.f32 %v4049_v44, %v13865_v50 }
 0x6e1   : > { %4837 = vperm.xlu0 %9803, %v4811_v30  }
 0x6e3   : > { %8675 = vmatmul.msk.bf16.gmra.mxu2 %vm3819_vm11, %v13784_v39 }
 0x6e4   : > { %8679 = vmatmul.msk.bf16.gmra.mxu3 %vm3819_vm11, %v13784_v39  ;;  %v13967_v62 = vpop.f32.mrf.mxu0  ;;  %v8690_v39 = vld [vmem:[%s15838_s5 + $0x8] sm:$0xf] }
 0x6e6   : > { %v4023_v33 = vpop.f32.mrf.mxu2 }
 0x6e7   : > { %v4052_v8 = vpop.f32.mrf.mxu3  ;;  %v4069_v50 = vadd.f32 %v4023_v33, %v13872_v31  ;;  %v9461_v31 = vld [vmem:[%s15838_s5 + $0x10] sm:$0xf0]  ;;  %v13987_v34 = vpop.f32.mrf.mxu1 }
 0x6e8   : > { %v4070_v21 = vadd.f32 %v4052_v8, %v13874_v61  ;;  %v8691_v40 = vor.u32 %v9461_v31, %v8690_v39  ;;  %v8702_v8 = vld [vmem:[%s15838_s5 + $0x50] sm:$0xf] }
 0x6e9   : > { %v4178_v22 = vadd.f32 %v4132_v24, %v4069_v50  ;;  %v8698_v24 = vld [vmem:[%s15838_s5 + $0x38] sm:$0xf]  ;;  %v9470_v50 = vld [vmem:[%s15838_s5 + $0x58] sm:$0xf0] }
 0x6ea   : > { %v4179_v6 = vadd.f32 %v4161_v48, %v4070_v21  ;;  %v9467_v48 = vld [vmem:[%s15838_s5 + $0x40] sm:$0xf0] }
 0x6ec   : > { %v13985_v10 = vpop.f32.mrf.mxu0 }
 0x6ee   : > { %v4025_v61 = vpop.f32.mrf.mxu2 }
 0x6ef   : > { %v4054_v28 = vpop.f32.mrf.mxu3  ;;  %v13978_v12 = vadd.f32 %v4025_v61, %v13881_v56  ;;  %v14003_v53 = vpop.f32.mrf.mxu1 }
 0x6f0   : > { %v13981_v11 = vadd.f32 %v4054_v28, %v13883_v49  ;;  %v8694_v49 = vld [vmem:[%s15838_s5 + $0x20] sm:$0xf] }
 0x6f2   : > { %16561 = vst [vmem:[#allocation54_spill] sm:$0xff] %v13981_v11  ;;  %v4169_v11 = vadd.f32 %v13877_v51, %v13906_v15  ;;  %v4754_v51 = vpop.permute.xlu1 %4753 }
 0x6f3   : > { %8704 = vmatmul.msk.bf16.vlgmr.msrb.gmra.mxu2 %vm3819_vm11, %v8691_v40 }
 0x6f4   : > { %8708 = vmatmul.msk.bf16.vlgmr.msra.gmra.mxu3 %vm3819_vm11, %v8691_v40  ;;  %v14001_v60 = vpop.f32.mrf.mxu0 }
 0x6f6   : > { %v4230_v19 = vpop.f32.mrf.mxu2 }
 0x6f7   : > { %v4259_v16 = vpop.f32.mrf.mxu3  ;;  %v13990_v57 = vadd.f32 %v4230_v19, %v13895_v58  ;;  %v8695_v58 = vor.u32 %v9464_v32, %v8694_v49  ;;  %v14019_v18 = vpop.f32.mrf.mxu1 }
 0x6f8   : > { %v13993_v56 = vadd.f32 %v4259_v16, %v13897_v36 }
 0x6fc   : > { %v14017_v59 = vpop.f32.mrf.mxu0 }
 0x6fe   : > { %v14005_v37 = vpop.f32.mrf.mxu2 }
 0x6ff   : > { %v14007_v55 = vpop.f32.mrf.mxu3 }
 0x703   : > { %8705 = vmatmul.msk.bf16.gmra.mxu2 %vm3819_vm11, %v8695_v58 }
 0x704   : > { %8709 = vmatmul.msk.bf16.gmra.mxu3 %vm3819_vm11, %v8695_v58  ;;  %v14031_v35 = vpop.f32.mrf.mxu0 }
 0x706   : > { %v4235_v36 = vpop.f32.mrf.mxu2 }
 0x707   : > { %v4264_v5 = vpop.f32.mrf.mxu3  ;;  %v14012_v7 = vadd.f32 %v4235_v36, %v13916_v14  ;;  %v8699_v14 = vor.u32 %v9467_v48, %v8698_v24 }
 0x708   : > { %v14015_v27 = vadd.f32 %v4264_v5, %v13918_v41  ;;  %v14033_v41 = vpop.f32.mrf.mxu1 }
 0x70c   : > { %v14043_v43 = vpop.f32.mrf.mxu0 }
 0x70e   : > { %v14027_v46 = vpop.f32.mrf.mxu2 }
 0x70f   : > { %v14029_v17 = vpop.f32.mrf.mxu3 }
 0x710   : > { %v14045_v33 = vpop.f32.mrf.mxu1 }
 0x713   : > { %8706 = vmatmul.msk.bf16.gmra.mxu2 %vm3819_vm11, %v8699_v14 }
 0x714   : > { %8710 = vmatmul.msk.bf16.gmra.mxu3 %vm3819_vm11, %v8699_v14 }
 0x716   : > { %v4240_v23 = vpop.f32.mrf.mxu2 }
 0x717   : > { %v4269_v20 = vpop.f32.mrf.mxu3  ;;  %v14038_v9 = vadd.f32 %v4240_v23, %v13941_v26  ;;  %v8703_v26 = vor.u32 %v9470_v50, %v8702_v8 }
 0x718   : > { %v14041_v44 = vadd.f32 %v4269_v20, %v13943_v63  ;;  %v4354_v63 = vpop.f32.mrf.mxu0  ;;  %v4383_v39 = vpop.f32.mrf.mxu1 }
 0x71e   : > { %v14053_v21 = vpop.f32.mrf.mxu2 }
 0x71f   : > { %v14055_v30 = vpop.f32.mrf.mxu3 }
 0x720   : > { %v14073_v50 = vpop.f32.mrf.mxu1 }
 0x721   : > { %16565 = vst [vmem:[#allocation55_spill] sm:$0xff] %v14073_v50  ;;  %v4389_v50 = vadd.f32 %v13969_v2, %v13993_v56 }
 0x723   : > { %8707 = vmatmul.msk.bf16.gmra.mxu2 %vm3819_vm11, %v8703_v26 }
 0x724   : > { %8711 = vmatmul.msk.bf16.gmra.mxu3 %vm3819_vm11, %v8703_v26 }
 0x726   : > { %v4245_v31 = vpop.f32.mrf.mxu2 }
 0x727   : > { %v4274_v61 = vpop.f32.mrf.mxu3  ;;  %v4291_v28 = vadd.f32 %v4245_v31, %v4178_v22 }
 0x728   : > { %v4292_v40 = vadd.f32 %v4274_v61, %v4179_v6  ;;  %v14071_v6 = vpop.f32.mrf.mxu0 }
 0x729   : > { %v4400_v19 = vadd.f32 %v4354_v63, %v4291_v28  ;;  %16564 = vst [vmem:[#allocation57_spill] sm:$0xff] %v14071_v6  ;;  %v4586_v28 = vpop.f32.mrf.mxu1  ;;  %v4388_v6 = vadd.f32 %v13967_v62, %v13990_v57 }
 0x72a   : > { %v4401_v16 = vadd.f32 %v4383_v39, %v4292_v40 }
 0x72e   : > { %v14059_v49 = vpop.f32.mrf.mxu2 }
 0x72f   : > { %16562 = vst [vmem:[#allocation49_spill] sm:$0xff] %v14059_v49  ;;  %v14061_v32 = vpop.f32.mrf.mxu3 }
 0x730   : > { %16563 = vst [vmem:[#allocation47_spill] sm:$0xff] %v14061_v32  ;;  %v4557_v61 = vpop.f32.mrf.mxu0 }
 0x736   : > { %v4448_v58 = vpop.f32.mrf.mxu2 }
 0x737   : > { %v4477_v36 = vpop.f32.mrf.mxu3 }
 0x73e   : > { %v4450_v5 = vpop.f32.mrf.mxu2 }
 0x73f   : > { %v4479_v24 = vpop.f32.mrf.mxu3 }
 0x746   : > { %v4453_v48 = vpop.f32.mrf.mxu2 }
 0x747   : > { %v4482_v14 = vpop.f32.mrf.mxu3 }
 0x74e   : > { %v14063_v23 = vpop.f32.mrf.mxu2 }
 0x74f   : > { %v14065_v20 = vpop.f32.mrf.mxu3 }
 0x756   : > { %v14067_v8 = vpop.f32.mrf.mxu2 }
 0x757   : > { %v14069_v22 = vpop.f32.mrf.mxu3 }
 0x75e   : > { %v14075_v26 = vpop.f32.mrf.mxu2 }
 0x75f   : > { %v14077_v63 = vpop.f32.mrf.mxu3 }
 0x766   : > { %v4463_v39 = vpop.f32.mrf.mxu2 }
 0x767   : > { %v4492_v31 = vpop.f32.mrf.mxu3  ;;  %v14079_v40 = vadd.f32 %v4463_v39, %v4400_v19  ;;  %v4497_v19 = vadd.f32 %v4448_v58, %v4388_v6  ;;  %v4498_v39 = vadd.f32 %v4477_v36, %v4389_v50  ;;  %v4818_v50 = vpop.permute.xlu0 %4817 }
 0x768   : > { %v14081_v47 = vadd.f32 %v4492_v31, %v4401_v16  ;;  %v4559_v16 = vpop.f32.mrf.mxu0  ;;  %v4588_v31 = vpop.f32.mrf.mxu1 }
 0x769   : > { %16566 = vst [vmem:[#allocation60_spill] sm:$0xff] %v14079_v40  ;;  %v4282_v40 = vadd.f32 %v14007_v55, %v4169_v11  ;;  %v4607_v62 = vadd.f32 %v4586_v28, %v4498_v39 }
 0x76a   : > { %16567 = vst [vmem:[#allocation58_spill] sm:$0xff] %v14081_v47  ;;  %v4281_v47 = vadd.f32 %v14005_v37, %v4168_v0 }
 0x76b   : > { %v4391_v13 = vadd.f32 %v13987_v34, %v4282_v40 }
 0x76c   : > { %v4390_v2 = vadd.f32 %v13985_v10, %v4281_v47 }
 0x76d   : > { %v4500_v58 = vadd.f32 %v4479_v24, %v4391_v13 }
 0x76e   : > { %v14083_v32 = vpop.f32.mrf.mxu2  ;;  %v4499_v15 = vadd.f32 %v4450_v5, %v4390_v2  ;;  %v4393_v5 = vadd.f32 %v14003_v53, %v14015_v27  ;;  %v4823_v53 = vpop.permute.xlu1 %4822 }
 0x76f   : > { %16568 = vst [vmem:[#allocation61_spill] sm:$0xff] %v14083_v32  ;;  %v14085_v49 = vpop.f32.mrf.mxu3  ;;  %v4606_v32 = vadd.f32 %v4557_v61, %v4497_v19  ;;  %v4609_v28 = vadd.f32 %v4588_v31, %v4500_v58  ;;  %v4173_v31 = vadd.f32 %v13893_v42, %v13928_v45 }
 0x770   : > { %16569 = vst [vmem:[#allocation53_spill] sm:$0xff] %v14085_v49  ;;  %v4759_v49 = vpop.permute.xlu2 %4758  ;;  %v4562_v0 = vpop.f32.mrf.mxu0  ;;  %v4608_v61 = vadd.f32 %v4559_v16, %v4499_v15  ;;  %v4172_v16 = vadd.f32 %v13899_v4, %v13925_v3 }
 0x771   : > { %v4591_v37 = vpop.f32.mrf.mxu1  ;;  %v4286_v2 = vadd.f32 %v14029_v17, %v4173_v31 }
 0x772   : > { %v4285_v27 = vadd.f32 %v14027_v46, %v4172_v16  ;;  %v4750_v46 = vld [vmem:[%s15839_s6 + $0x38] sm:$0xff] }
 0x773   : > { %v4395_v17 = vadd.f32 %v14019_v18, %v4286_v2 }
 0x776   : > { %v4678_v57 = vpop.f32.mrf.mxu2 }
 0x777   : > { %v4707_v54 = vpop.f32.mrf.mxu3  ;;  %v4727_v38 = vadd.f32 %v4678_v57, %v4606_v32 }
 0x778   : > { %v4728_v56 = vadd.f32 %v4707_v54, %v4607_v62  ;;  %v4392_v54 = vadd.f32 %v14001_v60, %v14012_v7  ;;  %v4764_v39 = vpop.permute.xlu2 %4763  ;;  %v4502_v7 = vadd.f32 %v4482_v14, %v4393_v5  ;;  %v4564_v3 = vpop.f32.mrf.mxu0 }
 0x779   : > { %v4791_v36 = vmul.f32 %v4754_v51, %v4727_v38 }
 0x77a   : > { %v4792_v6 = vmul.f32 %v4754_v51, %v4728_v56  ;;  %v4501_v60 = vadd.f32 %v4453_v48, %v4392_v54  ;;  %v4611_v4 = vadd.f32 %v4591_v37, %v4502_v7  ;;  %v4593_v51 = vpop.f32.mrf.mxu1 }
 0x77b   : > { %v14099_v11 = vadd.f32 %v4818_v50, %v4791_v36 }
 0x77c   : > { %v14101_v55 = vadd.f32 %v4818_v50, %v4792_v6  ;;  %v4610_v56 = vadd.f32 %v4562_v0, %v4501_v60  ;;  %v4504_v50 = vadd.f32 %v14065_v20, %v4395_v17 }
 0x77d   : > { %v4871_v47 = vmax.f32 %v14099_v11, 0.0 }
 0x77e   : > { %v4872_v10 = vmax.f32 %v14101_v55, 0.0  ;;  %v4680_v34 = vpop.f32.mrf.mxu2 }
 0x77f   : > { %v4709_v32 = vpop.f32.mrf.mxu3  ;;  %v4729_v40 = vadd.f32 %v4680_v34, %v4608_v61  ;;  %v4613_v34 = vadd.f32 %v4593_v51, %v4504_v50 }
 0x780   : > { %v9804_v24 = vpack.i.bf16 %v4872_v10, %v4871_v47  ;;  %v4730_v19 = vadd.f32 %v4709_v32, %v4609_v28  ;;  %v4828_v37 = vpop.permute.xlu2 %4827  ;;  %v4769_v28 = vpop.permute.xlu1 %4768 }
 0x781   : > { %v4793_v62 = vmul.f32 %v4759_v49, %v4729_v40  ;;  %v4813_v40 = vld [vmem:[%s15840_s7 + $0x30] sm:$0xff] }
 0x782   : > { %v4794_v57 = vmul.f32 %v4759_v49, %v4730_v19  ;;  %9805 = vrot.lane.b32.xlu2 %v9804_v24, %s16555_s26  ;;  %v4394_v49 = vadd.f32 %v14017_v59, %v4285_v27  ;;  %v4397_v19 = vadd.f32 %v14033_v41, %v14041_v44 }
 0x783   : > { %v14120_v13 = vadd.f32 %v4823_v53, %v4793_v62  ;;  %v4567_v62 = vpop.f32.mrf.mxu0 }
 0x784   : > { %v14122_v38 = vadd.f32 %v4823_v53, %v4794_v57  ;;  %v4503_v6 = vadd.f32 %v14063_v23, %v4394_v49  ;;  %v4396_v23 = vadd.f32 %v14031_v35, %v14038_v9  ;;  %v4176_v35 = vadd.f32 %v13922_v25, %v13946_v1  ;;  %v4833_v57 = vpop.permute.xlu0 %4832 }
 0x785   : > { %v4873_v42 = vmax.f32 %v14120_v13, 0.0  ;;  %v4177_v9 = vadd.f32 %v13920_v29, %v13949_v52  ;;  %v4506_v41 = vadd.f32 %v14069_v22, %v4397_v19 }
 0x786   : > { %v4874_v45 = vmax.f32 %v14122_v38, 0.0  ;;  %v4683_v48 = vpop.f32.mrf.mxu2  ;;  %v4612_v54 = vadd.f32 %v4564_v3, %v4503_v6  ;;  %v4505_v7 = vadd.f32 %v14067_v8, %v4396_v23  ;;  %v4289_v27 = vadd.f32 %v14053_v21, %v4176_v35 }
 0x787   : > { %v4712_v14 = vpop.f32.mrf.mxu3  ;;  %v4731_v15 = vadd.f32 %v4683_v48, %v4610_v56  ;;  %v4290_v2 = vadd.f32 %v14055_v30, %v4177_v9 }
 0x788   : > { %v4732_v58 = vadd.f32 %v4712_v14, %v4611_v4  ;;  %v9809_v36 = vpack.i.bf16 %v4874_v45, %v4873_v42  ;;  %v4614_v29 = vadd.f32 %v4567_v62, %v4505_v7  ;;  %v4398_v22 = vadd.f32 %v14043_v43, %v4289_v27  ;;  %v4774_v48 = vpop.permute.xlu1 %4773  ;;  %v4779_v23 = vpop.permute.xlu2 %4778  ;;  %v16570_v7 = vld [vmem:[#allocation52_spill] sm:$0xff] }
 0x789   : > { %v4795_v59 = vmul.f32 %v4764_v39, %v4731_v15  ;;  %v4399_v51 = vadd.f32 %v14045_v33, %v4290_v2  ;;  %v4180_v62 = vadd.f32 %v16570_v7, %v13978_v12  ;;  %v16573_v2 = vld [vmem:[#allocation49_spill] sm:$0xff] }
 0x78a   : > { %v4796_v0 = vmul.f32 %v4764_v39, %v4732_v58  ;;  %9810 = vrot.lane.b32.xlu0 %v9809_v36, %s16555_s26  ;;  %4788 = vperm.xlu2 %9662, %v4750_v46   ;;  %v4596_v39 = vpop.f32.mrf.mxu1  ;;  %v4507_v14 = vadd.f32 %v14075_v26, %v4398_v22 }
 0x78b   : > { %v14138_v61 = vadd.f32 %v4828_v37, %v4795_v59  ;;  %v4615_v1 = vadd.f32 %v4596_v39, %v4506_v41  ;;  %v4508_v46 = vadd.f32 %v14077_v63, %v4399_v51  ;;  %v4569_v43 = vpop.f32.mrf.mxu0  ;;  %v16572_v41 = vld [vmem:[#allocation44_spill] sm:$0xff]  ;;  %v16576_v51 = vld [vmem:[#allocation55_spill] sm:$0xff] }
 0x78c   : > { %v14140_v18 = vadd.f32 %v4828_v37, %v4796_v0  ;;  %v4838_v36 = vpop.permute.xlu0 %4837  ;;  %v4616_v50 = vadd.f32 %v4569_v43, %v4507_v14 }
 0x78d   : > { %v4875_v32 = vmax.f32 %v14138_v61, 0.0 }
 0x78e   : > { %v4876_v5 = vmax.f32 %v14140_v18, 0.0  ;;  %v4685_v20 = vpop.f32.mrf.mxu2 }
 0x78f   : > { %v4714_v24 = vpop.f32.mrf.mxu3  ;;  %v4733_v31 = vadd.f32 %v4685_v20, %v4612_v54 }
 0x790   : > { %v9814_v16 = vpack.i.bf16 %v4876_v5, %v4875_v32  ;;  %v4734_v60 = vadd.f32 %v4714_v24, %v4613_v34 }
 0x791   : > { %v4797_v44 = vmul.f32 %v4769_v28, %v4733_v31 }
 0x792   : > { %v4798_v53 = vmul.f32 %v4769_v28, %v4734_v60  ;;  %4847 = vperm.xlu0 %9803, %v4813_v40   ;;  %9815 = vrot.lane.b32.xlu2 %v9814_v16, %s16555_s26  ;;  %v4598_v17 = vpop.f32.mrf.mxu1  ;;  %v4843_v40 = vpop.permute.xlu1 %4842 }
 0x793   : > { %v14164_v56 = vadd.f32 %v4833_v57, %v4797_v44  ;;  %v4617_v59 = vadd.f32 %v4598_v17, %v4508_v46  ;;  %v4572_v35 = vpop.f32.mrf.mxu0  ;;  %v16578_v46 = vld [vmem:[#allocation53_spill] sm:$0xff] }
 0x794   : > { %v14166_v25 = vadd.f32 %v4833_v57, %v4798_v53  ;;  %v16571_v57 = vld [vmem:[#allocation54_spill] sm:$0xff] }
 0x795   : > { %v4877_v52 = vmax.f32 %v14164_v56, 0.0  ;;  %v4181_v44 = vadd.f32 %v16572_v41, %v16571_v57  ;;  %v16580_v57 = vld [vmem:[#allocation60_spill] sm:$0xff] }
 0x796   : > { %v4878_v8 = vmax.f32 %v14166_v25, 0.0  ;;  %v4688_v4 = vpop.f32.mrf.mxu2  ;;  %v4618_v41 = vadd.f32 %v4572_v35, %v16580_v57  ;;  %v9471_v57 = vld [vmem:[%s15841_s8] sm:$0xff] }
 0x797   : > { %v4717_v3 = vpop.f32.mrf.mxu3  ;;  %v4735_v49 = vadd.f32 %v4688_v4, %v4614_v29  ;;  %v4293_v29 = vadd.f32 %v16573_v2, %v4180_v62  ;;  %v16575_v4 = vld [vmem:[#allocation57_spill] sm:$0xff] }
 0x798   : > { %v4736_v21 = vadd.f32 %v4717_v3, %v4615_v1  ;;  %v9819_v30 = vpack.i.bf16 %v4878_v8, %v4877_v52  ;;  %v16574_v1 = vld [vmem:[#allocation47_spill] sm:$0xff] }
 0x799   : > { %v4799_v15 = vmul.f32 %v4774_v48, %v4735_v49  ;;  %v4294_v22 = vadd.f32 %v16574_v1, %v4181_v44  ;;  %v4402_v3 = vadd.f32 %v16575_v4, %v4293_v29  ;;  %v16581_v44 = vld [vmem:[#allocation58_spill] sm:$0xff] }
 0x79a   : > { %v4800_v58 = vmul.f32 %v4774_v48, %v4736_v21  ;;  %9820 = vrot.lane.b32.xlu0 %v9819_v30, %s16555_s26  ;;  %v4601_v9 = vpop.f32.mrf.mxu1  ;;  %v4784_v21 = vpop.permute.xlu1 %4783  ;;  %v16577_v48 = vld [vmem:[#allocation61_spill] sm:$0xff] }
 0x79b   : > { %v14179_v33 = vadd.f32 %v4838_v36, %v4799_v15  ;;  %v4403_v49 = vadd.f32 %v16576_v51, %v4294_v22  ;;  %v4511_v14 = vadd.f32 %v16577_v48, %v4402_v3  ;;  %v4619_v2 = vadd.f32 %v4601_v9, %v16581_v44 }
 0x79c   : > { %v14181_v6 = vadd.f32 %v4838_v36, %v4800_v58  ;;  %v4574_v58 = vpop.f32.mrf.mxu0 }
 0x79d   : > { %v4879_v0 = vmax.f32 %v14179_v33, 0.0  ;;  %v4512_v17 = vadd.f32 %v16578_v46, %v4403_v49  ;;  %v9476_v33 = vld [vmem:[%s15841_s8 + $0x28] sm:$0xff] }
 0x79e   : > { %v4880_v37 = vmax.f32 %v14181_v6, 0.0  ;;  %v4690_v26 = vpop.f32.mrf.mxu2  ;;  %v9477_v6 = vld [vmem:[%s15841_s8 + $0x30] sm:$0xff] }
 0x79f   : > { %v4719_v28 = vpop.f32.mrf.mxu3  ;;  %v4737_v54 = vadd.f32 %v4690_v26, %v4616_v50 }
 0x7a0   : > { %v9824_v63 = vpack.i.bf16 %v4880_v37, %v4879_v0  ;;  %v4738_v34 = vadd.f32 %v4719_v28, %v4617_v59 }
 0x7a1   : > { %v4801_v20 = vmul.f32 %v4779_v23, %v4737_v54 }
 0x7a2   : > { %v4802_v24 = vmul.f32 %v4779_v23, %v4738_v34  ;;  %9825 = vrot.lane.b32.xlu1 %v9824_v63, %s16555_s26  ;;  %v4603_v43 = vpop.f32.mrf.mxu1  ;;  %v4620_v63 = vadd.f32 %v4574_v58, %v4511_v14 }
 0x7a3   : > { %v14190_v19 = vadd.f32 %v4843_v40, %v4801_v20  ;;  %v4621_v54 = vadd.f32 %v4603_v43, %v4512_v17 }
 0x7a4   : > { %v14192_v39 = vadd.f32 %v4843_v40, %v4802_v24  ;;  %v4853_v40 = vpop.permute.xlu1 %4852 }
 0x7a5   : > { %v4881_v16 = vmax.f32 %v14190_v19, 0.0 }
 0x7a6   : > { %v4882_v31 = vmax.f32 %v14192_v39, 0.0  ;;  %v4693_v53 = vpop.f32.mrf.mxu2 }
 0x7a7   : > { %v4722_v27 = vpop.f32.mrf.mxu3  ;;  %v4739_v3 = vadd.f32 %v4693_v53, %v4618_v41 }
 0x7a8   : > { %v9829_v60 = vpack.i.bf16 %v4882_v31, %v4881_v16  ;;  %v4740_v51 = vadd.f32 %v4722_v27, %v4619_v2 }
 0x7a9   : > { %v4803_v9 = vmul.f32 %v4784_v21, %v4739_v3 }
 0x7aa   : > { %9830 = vrot.lane.b32.xlu2 %v9829_v60, %s16555_s26  ;;  %v4804_v17 = vmul.f32 %v4784_v21, %v4740_v51 }
 0x7ae   : > { %v4695_v59 = vpop.f32.mrf.mxu2 }
 0x7af   : > { %v4724_v26 = vpop.f32.mrf.mxu3  ;;  %v4741_v23 = vadd.f32 %v4695_v59, %v4620_v63 }
 0x7b0   : > { %v4742_v20 = vadd.f32 %v4724_v26, %v4621_v54 }
 0x7dc   : > { %v9806_v30 = vpop.permute.xlu2 %9805 }
 0x7dd   : > { %v9808_v12 = vunpack.i.h.bf16 %v9806_v30  ;;  %v9807_v15 = vunpack.i.l.bf16 %v9806_v30 }
 0x7df   : > { %v14213_v36 = vmax.f32 %v4872_v10, %v9808_v12  ;;  %v4935_v50 = vsel %vm771_vm0, %v9807_v15, %v9808_v12 }
 0x7e0   : > { %v14218_v28 = vmax.f32 %v4871_v47, %v4935_v50 }
 0x7e2   : > { %v9834_v34 = vpack.i.bf16 %v14213_v36, %v14218_v28 }
 0x7e4   : > { %v4789_v24 = vpop.permute.xlu2 %4788  ;;  %9835 = vrot.lane.b32.xlu0 %v9834_v34, %s16579_s30 }
 0x7e5   : > { %v4805_v55 = vmul.f32 %v4789_v24, %v4741_v23  ;;  %v4806_v10 = vmul.f32 %v4789_v24, %v4742_v20  ;;  %v9478_v24 = vld [vmem:[%s15841_s8 + $0x38] sm:$0xff] }
 0x7e6   : > { %5164 = vmatpush.bf16.msrb.mxu0 %v9478_v24 }
 0x7e7   : > { %v14223_v60 = vadd.f32 %v4853_v40, %v4805_v55  ;;  %v14225_v7 = vadd.f32 %v4853_v40, %v4806_v10  ;;  %v9473_v55 = vld [vmem:[%s15841_s8 + $0x10] sm:$0xff]  ;;  %v9472_v40 = vld [vmem:[%s15841_s8 + $0x8] sm:$0xff] }
 0x7e9   : > { %v4885_v11 = vmax.f32 %v14223_v60, 0.0  ;;  %v4886_v47 = vmax.f32 %v14225_v7, 0.0 }
 0x7ea   : > { %5165 = vmatpush.bf16.msrb.mxu0 %v9477_v6 }
 0x7eb   : > { %v9849_v62 = vpack.i.bf16 %v4886_v47, %v4885_v11 }
 0x7ec   : > { %v9816_v29 = vpop.permute.xlu2 %9815 }
 0x7ed   : > { %9850 = vrot.lane.b32.xlu0 %v9849_v62, %s16555_s26  ;;  %v9818_v49 = vunpack.i.h.bf16 %v9816_v29  ;;  %v9817_v30 = vunpack.i.l.bf16 %v9816_v29  ;;  %v9479_v62 = vld [vmem:[%s15841_s8 + $0x40] sm:$0xff] }
 0x7ee   : > { %5166 = vmatpush.bf16.msrb.mxu0 %v9476_v33  ;;  %5200 = vmatpush.bf16.msrb.mxu1 %v9479_v62 }
 0x7ef   : > { %v4937_v53 = vsel %vm771_vm0, %v9817_v30, %v9818_v49  ;;  %v14255_v13 = vmax.f32 %v4876_v5, %v9818_v49 }
 0x7fc   : > { %v9811_v1 = vpop.permute.xlu0 %9810 }
 0x7fd   : > { %v9813_v22 = vunpack.i.h.bf16 %v9811_v1  ;;  %v9812_v4 = vunpack.i.l.bf16 %v9811_v1 }
 0x7ff   : > { %v14238_v48 = vmax.f32 %v4874_v45, %v9813_v22  ;;  %v4936_v14 = vsel %vm771_vm0, %v9812_v4, %v9813_v22 }
 0x800   : > { %v14243_v46 = vmax.f32 %v4873_v42, %v4936_v14  ;;  %v14259_v42 = vmax.f32 %v4875_v32, %v4937_v53 }
 0x802   : > { %v9839_v35 = vpack.i.bf16 %v14238_v48, %v14243_v46  ;;  %v9854_v59 = vpack.i.bf16 %v14255_v13, %v14259_v42 }
 0x804   : > { %v4848_v27 = vpop.permute.xlu0 %4847  ;;  %9840 = vrot.lane.b32.xlu1 %v9839_v35, %s16579_s30  ;;  %v9831_v12 = vpop.permute.xlu2 %9830 }
 0x805   : > { %v14249_v38 = vadd.f32 %v4848_v27, %v4803_v9  ;;  %v14251_v45 = vadd.f32 %v4848_v27, %v4804_v17  ;;  %v9833_v58 = vunpack.i.h.bf16 %v9831_v12  ;;  %v9832_v43 = vunpack.i.l.bf16 %v9831_v12 }
 0x807   : > { %v4883_v21 = vmax.f32 %v14249_v38, 0.0  ;;  %v4884_v15 = vmax.f32 %v14251_v45, 0.0  ;;  %v4940_v26 = vsel %vm771_vm0, %v9832_v43, %v9833_v58  ;;  %v14270_v5 = vmax.f32 %v4882_v31, %v9833_v58 }
 0x808   : > { %v14274_v63 = vmax.f32 %v4881_v16, %v4940_v26 }
 0x809   : > { %v9844_v50 = vpack.i.bf16 %v4884_v15, %v4883_v21 }
 0x80a   : > { %v9869_v20 = vpack.i.bf16 %v14270_v5, %v14274_v63 }
 0x80b   : > { %9845 = vrot.lane.b32.xlu2 %v9844_v50, %s16555_s26 }
 0x80c   : > { %v9821_v18 = vpop.permute.xlu0 %9820  ;;  %9855 = vrot.lane.b32.xlu1 %v9854_v59, %s16579_s30 }
 0x80d   : > { %v9823_v61 = vunpack.i.h.bf16 %v9821_v18  ;;  %v9822_v32 = vunpack.i.l.bf16 %v9821_v18 }
 0x80f   : > { %v14278_v54 = vmax.f32 %v4878_v8, %v9823_v61  ;;  %v4938_v34 = vsel %vm771_vm0, %v9822_v32, %v9823_v61 }
 0x810   : > { %v14283_v23 = vmax.f32 %v4877_v52, %v4938_v34 }
 0x812   : > { %v9859_v39 = vpack.i.bf16 %v14278_v54, %v14283_v23 }
 0x814   : > { %v9826_v31 = vpop.permute.xlu1 %9825  ;;  %9860 = vrot.lane.b32.xlu2 %v9859_v39, %s16579_s30  ;;  %9870 = vrot.lane.b32.xlu1 %v9869_v20, %s16579_s30 }
 0x815   : > { %v9828_v25 = vunpack.i.h.bf16 %v9826_v31  ;;  %v9827_v8 = vunpack.i.l.bf16 %v9826_v31 }
 0x817   : > { %v14293_v19 = vmax.f32 %v4880_v37, %v9828_v25  ;;  %v4939_v56 = vsel %vm771_vm0, %v9827_v8, %v9828_v25  ;;  %v9474_v37 = vld [vmem:[%s15841_s8 + $0x18] sm:$0xff] }
 0x818   : > { %v14298_v52 = vmax.f32 %v4879_v0, %v4939_v56  ;;  %v9475_v0 = vld [vmem:[%s15841_s8 + $0x20] sm:$0xff] }
 0x819   : > { %5167 = vmatpush.bf16.msrb.mxu0 %v9475_v0 }
 0x81a   : > { %v9864_v16 = vpack.i.bf16 %v14293_v19, %v14298_v52 }
 0x81c   : > { %9865 = vrot.lane.b32.xlu0 %v9864_v16, %s16579_s30 }
 0x81d   : > { %5168 = vmatpush.bf16.msrb.mxu0 %v9474_v37 }
 0x821   : > { %5169 = vmatpush.bf16.msrb.mxu0 %v9473_v55 }
 0x825   : > { %5170 = vmatpush.bf16.msrb.mxu0 %v9472_v40 }
 0x829   : > { %5171 = vmatpush.bf16.msrb.mxu0 %v9471_v57 }
 0x856   : > { %v9836_v10 = vpop.permute.xlu0 %9835 }
 0x857   : > { %v9838_v60 = vunpack.i.h.bf16 %v9836_v10 }
 0x859   : > { %v5049_v27 = vmax.f32 %v14213_v36, %v9838_v60 }
 0x85f   : > { %v9851_v41 = vpop.permute.xlu0 %9850 }
 0x860   : > { %v9853_v44 = vunpack.i.h.bf16 %v9851_v41  ;;  %v9852_v2 = vunpack.i.l.bf16 %v9851_v41 }
 0x862   : > { %v14332_v29 = vmax.f32 %v4886_v47, %v9853_v44  ;;  %v4942_v1 = vsel %vm771_vm0, %v9852_v2, %v9853_v44 }
 0x863   : > { %v14337_v22 = vmax.f32 %v4885_v11, %v4942_v1  ;;  %v9837_v11 = vunpack.i.l.bf16 %v9836_v10 }
 0x865   : > { %v9879_v4 = vpack.i.bf16 %v14332_v29, %v14337_v22  ;;  %v9846_v3 = vpop.permute.xlu2 %9845  ;;  %v5024_v9 = vsel %vm4089_vm13, %v9837_v11, %v9838_v60 }
 0x866   : > { %v9848_v51 = vunpack.i.h.bf16 %v9846_v3  ;;  %v9847_v49 = vunpack.i.l.bf16 %v9846_v3  ;;  %v5048_v45 = vmax.f32 %v14218_v28, %v5024_v9 }
 0x867   : > { %9880 = vrot.lane.b32.xlu0 %v9879_v4, %s16579_s30 }
 0x868   : > { %v4972_v30 = vmax.f32 %v4884_v15, %v9848_v51  ;;  %v4941_v14 = vsel %vm771_vm0, %v9847_v49, %v9848_v51  ;;  %vm5148_vm0 = vcmask 187392  }
 0x869   : > { %v14343_v7 = vmax.f32 %v4883_v21, %v4941_v14 }
 0x86b   : > { %v9874_v47 = vpack.i.bf16 %v4972_v30, %v14343_v7 }
 0x86d   : > { %9875 = vrot.lane.b32.xlu2 %v9874_v47, %s16579_s30 }
 0x86e   : > { %v9861_v50 = vpop.permute.xlu2 %9860 }
 0x86f   : > { %v9863_v18 = vunpack.i.h.bf16 %v9861_v50  ;;  %v9862_v36 = vunpack.i.l.bf16 %v9861_v50 }
 0x871   : > { %v5027_v61 = vsel %vm4089_vm13, %v9862_v36, %v9863_v18  ;;  %v5055_v32 = vmax.f32 %v14278_v54, %v9863_v18  ;;  %v8770_v18 = vld [vmem:[%s15842_s9 + $0xa0] sm:$0xf]  ;;  %v9502_v36 = vld [vmem:[%s15842_s9 + $0xb0] sm:$0xf0] }
 0x872   : > { %v5054_v34 = vmax.f32 %v14283_v23, %v5027_v61 }
 0x876   : > { %v9841_v35 = vpop.permute.xlu1 %9840 }
 0x877   : > { %v9843_v17 = vunpack.i.h.bf16 %v9841_v35  ;;  %v9842_v53 = vunpack.i.l.bf16 %v9841_v35 }
 0x879   : > { %v5051_v12 = vmax.f32 %v14238_v48, %v9843_v17  ;;  %v5025_v38 = vsel %vm4089_vm13, %v9842_v53, %v9843_v17 }
 0x87a   : > { %v5050_v21 = vmax.f32 %v14243_v46, %v5025_v38 }
 0x87b   : > { %v5065_v15 = vpack.c.bf16 %v5051_v12, %v5049_v27 }
 0x87c   : > { %v5064_v58 = vpack.c.bf16 %v5050_v21, %v5048_v45  ;;  %v8758_v45 = vld [vmem:[%s15842_s9 + $0x28] sm:$0xf]  ;;  %v9487_v21 = vld [vmem:[%s15842_s9 + $0x38] sm:$0xf0] }
 0x87d   : > { %8748 = vmatmul.msk.bf16.vlgmr.msrb.gmra.mxu1 %vm5148_vm0, %v5065_v15 }
 0x87e   : > { %v9856_v43 = vpop.permute.xlu1 %9855  ;;  %5172 = vmatmul.bf16.vlgmr.msrb.gmra.mxu0 %v5064_v58  ;;  %v14386_v58 = vor.u32 %v9487_v21, %v8758_v45  ;;  %v8850_v21 = vld [vmem:[%s15842_s9 + $0x8] sm:$0xf] }
 0x87f   : > { %v9858_v59 = vunpack.i.h.bf16 %v9856_v43  ;;  %v9857_v26 = vunpack.i.l.bf16 %v9856_v43 }
 0x881   : > { %v5026_v48 = vsel %vm4089_vm13, %v9857_v26, %v9858_v59  ;;  %v5053_v28 = vmax.f32 %v14255_v13, %v9858_v59 }
 0x882   : > { %v5052_v46 = vmax.f32 %v14259_v42, %v5026_v48 }
 0x883   : > { %v5067_v20 = vpack.c.bf16 %v5055_v32, %v5053_v28 }
 0x884   : > { %v5066_v39 = vpack.c.bf16 %v5054_v34, %v5052_v46  ;;  %v14396_v46 = vor.u32 %v9502_v36, %v8770_v18  ;;  %v8782_v34 = vld [vmem:[%s15842_s9 + $0x118] sm:$0xf] }
 0x886   : > { %v9871_v25 = vpop.permute.xlu1 %9870 }
 0x887   : > { %v9873_v16 = vunpack.i.h.bf16 %v9871_v25  ;;  %v9872_v24 = vunpack.i.l.bf16 %v9871_v25 }
 0x889   : > { %v5029_v13 = vsel %vm4089_vm13, %v9872_v24, %v9873_v16  ;;  %v5059_v23 = vmax.f32 %v14270_v5, %v9873_v16  ;;  %v9497_v16 = vld [vmem:[%s15842_s9 + $0x88] sm:$0xf0] }
 0x88a   : > { %v5058_v33 = vmax.f32 %v14274_v63, %v5029_v13  ;;  %v9512_v13 = vld [vmem:[%s15842_s9 + $0x100] sm:$0xf0] }
 0x88d   : > { %8749 = vmatmul.msk.bf16.gmra.mxu1 %vm5148_vm0, %v5067_v20  ;;  %v9517_v20 = vld [vmem:[%s15842_s9 + $0x128] sm:$0xf0] }
 0x88e   : > { %v9866_v31 = vpop.permute.xlu0 %9865  ;;  %5177 = vmatmul.bf16.gmra.mxu0 %v5066_v39  ;;  %v8754_v39 = vld [vmem:[%s15842_s9] sm:$0xf]  ;;  %v14416_v25 = vor.u32 %v9517_v20, %v8782_v34  ;;  %v9510_v34 = vld [vmem:[%s15842_s9 + $0xf4] sm:$0xf]  ;;  %v8824_v20 = vld [vmem:[%s15842_s9 + $0x104] sm:$0xf0] }
 0x88f   : > { %v9868_v8 = vunpack.i.h.bf16 %v9866_v31  ;;  %v9867_v56 = vunpack.i.l.bf16 %v9866_v31  ;;  %v9482_v31 = vld [vmem:[%s15842_s9 + $0x10] sm:$0xf0] }
 0x891   : > { %v5028_v6 = vsel %vm4089_vm13, %v9867_v56, %v9868_v8  ;;  %v5057_v42 = vmax.f32 %v14293_v19, %v9868_v8  ;;  %v14418_v8 = vor.u32 %v9482_v31, %v8754_v39  ;;  %v8766_v56 = vld [vmem:[%s15842_s9 + $0x78] sm:$0xf]  ;;  %v14601_v31 = vor.u32 %v9510_v34, %v8824_v20  ;;  %v8920_v34 = vld [vmem:[%s15842_s9 + $0x10c] sm:$0xf0] }
 0x892   : > { %v5056_v54 = vmax.f32 %v14298_v52, %v5028_v6  ;;  %v14430_v24 = vor.u32 %v9497_v16, %v8766_v56  ;;  %v8778_v6 = vld [vmem:[%s15842_s9 + $0xf0] sm:$0xf]  ;;  %v9488_v16 = vld [vmem:[%s15842_s9 + $0x40] sm:$0xf0] }
 0x893   : > { %v5069_v0 = vpack.c.bf16 %v5059_v23, %v5057_v42  ;;  %v14442_v42 = vor.u32 %v9512_v13, %v8778_v6  ;;  %v8854_v56 = vld [vmem:[%s15842_s9 + $0x30] sm:$0xf]  ;;  %v9481_v6 = vld [vmem:[%s15842_s9 + $0xc] sm:$0xf]  ;;  %v8896_v13 = vld [vmem:[%s15842_s9 + $0x1c] sm:$0xf0] }
 0x894   : > { %v5068_v37 = vpack.c.bf16 %v5058_v33, %v5056_v54 }
 0x89d   : > { %8750 = vmatmul.msk.bf16.gmra.mxu1 %vm5148_vm0, %v5069_v0 }
 0x89e   : > { %5182 = vmatmul.bf16.gmra.mxu0 %v5068_v37 }
 0x8c7   : > { %v9876_v55 = vpop.permute.xlu2 %9875 }
 0x8c8   : > { %v9878_v10 = vunpack.i.h.bf16 %v9876_v55  ;;  %v9877_v40 = vunpack.i.l.bf16 %v9876_v55 }
 0x8ca   : > { %v5030_v57 = vsel %vm4089_vm13, %v9877_v40, %v9878_v10  ;;  %v5061_v19 = vmax.f32 %v4972_v30, %v9878_v10 }
 0x8cb   : > { %v5060_v63 = vmax.f32 %v14343_v7, %v5030_v57 }
 0x8d9   : > { %v9881_v62 = vpop.permute.xlu0 %9880 }
 0x8da   : > { %v9883_v41 = vunpack.i.h.bf16 %v9881_v62  ;;  %v9882_v44 = vunpack.i.l.bf16 %v9881_v62 }
 0x8dc   : > { %v5063_v52 = vmax.f32 %v14332_v29, %v9883_v41  ;;  %v5031_v5 = vsel %vm4089_vm13, %v9882_v44, %v9883_v41 }
 0x8dd   : > { %v5062_v2 = vmax.f32 %v14337_v22, %v5031_v5 }
 0x8de   : > { %v5071_v1 = vpack.c.bf16 %v5063_v52, %v5061_v19 }
 0x8df   : > { %v5070_v4 = vpack.c.bf16 %v5062_v2, %v5060_v63 }
 0x8e0   : > { %8751 = vmatmul.msk.bf16.gmra.mxu1 %vm5148_vm0, %v5071_v1  ;;  %v8762_v1 = vld [vmem:[%s15842_s9 + $0x50] sm:$0xf] }
 0x8e1   : > { %5187 = vmatmul.bf16.gmra.mxu0 %v5070_v4  ;;  %v9492_v4 = vld [vmem:[%s15842_s9 + $0x60] sm:$0xf0] }
 0x8fa   : > { %v5202_v3 = vpop.f32.mrf.mxu1 }
 0x8fb   : > { %v5173_v51 = vpop.f32.mrf.mxu0 }
 0x8fc   : > { %v14374_v49 = vadd.f32 %v5202_v3, %v5173_v51  ;;  %v14476_v3 = vor.u32 %v9492_v4, %v8762_v1  ;;  %v9490_v51 = vld [vmem:[%s15842_s9 + $0x54] sm:$0xf]  ;;  %v8866_v1 = vld [vmem:[%s15842_s9 + $0xa8] sm:$0xf]  ;;  %v9503_v4 = vld [vmem:[%s15842_s9 + $0xb8] sm:$0xf0] }
 0x8fe   : > { %v5222_v52 = vpack.c.bf16 %v14374_v49, %v14374_v49  ;;  %v8808_v49 = vld [vmem:[%s15842_s9 + $0x64] sm:$0xf0] }
 0x900   : > { %v5342_v63 = vunpack.c.l.b16 %v5222_v52 }
 0x902   : > { %v5204_v14 = vpop.f32.mrf.mxu1 }
 0x903   : > { %v5175_v47 = vpop.f32.mrf.mxu0 }
 0x904   : > { %v5205_v62 = vadd.f32 %v5204_v14, %v5175_v47  ;;  %v9485_v14 = vld [vmem:[%s15842_s9 + $0x2c] sm:$0xf]  ;;  %v8804_v47 = vld [vmem:[%s15842_s9 + $0x3c] sm:$0xf0] }
 0x906   : > { %v5223_v19 = vpack.c.bf16 %v5205_v62, %v5205_v62  ;;  %v8904_v62 = vld [vmem:[%s15842_s9 + $0x6c] sm:$0xf0] }
 0x908   : > { %v5343_v5 = vunpack.c.l.b16 %v5223_v19 }
 0x90a   : > { %v5207_v30 = vpop.f32.mrf.mxu1  ;;  %v14460_v2 = vpack.c.b16 %v5343_v5, %v5342_v63 }
 0x90b   : > { %v5178_v60 = vpop.f32.mrf.mxu0 }
 0x90c   : > { %v5208_v29 = vadd.f32 %v5207_v30, %v5178_v60  ;;  %v8774_v30 = vld [vmem:[%s15842_s9 + $0xc8] sm:$0xf]  ;;  %v9507_v60 = vld [vmem:[%s15842_s9 + $0xd8] sm:$0xf0] }
 0x90e   : > { %v5224_v9 = vpack.c.bf16 %v5208_v29, %v5208_v29  ;;  %v14502_v29 = vor.u32 %v9490_v51, %v8808_v49  ;;  %v9496_v51 = vld [vmem:[%s15842_s9 + $0x84] sm:$0xf]  ;;  %v8908_v49 = vld [vmem:[%s15842_s9 + $0x94] sm:$0xf0] }
 0x910   : > { %v5344_v22 = vunpack.c.l.b16 %v5224_v9  ;;  %v9505_v9 = vld [vmem:[%s15842_s9 + $0xcc] sm:$0xf] }
 0x912   : > { %v5209_v11 = vpop.f32.mrf.mxu1 }
 0x913   : > { %v5180_v35 = vpop.f32.mrf.mxu0 }
 0x914   : > { %v5210_v7 = vadd.f32 %v5209_v11, %v5180_v35  ;;  %v14504_v11 = vor.u32 %v9485_v14, %v8804_v47  ;;  %v14506_v35 = vor.u32 %v9507_v60, %v8774_v30  ;;  %v14678_v47 = vor.u32 %v9503_v4, %v8866_v1  ;;  %v9506_v60 = vld [vmem:[%s15842_s9 + $0xd4] sm:$0xf] }
 0x915   : > { %v14680_v30 = vor.u32 %v9496_v51, %v8908_v49  ;;  %v6514_v4 = vld [vmem:[%s15844_s11 + $0x10] sm:$0xff] }
 0x916   : > { %v5225_v17 = vpack.c.bf16 %v5210_v7, %v5210_v7  ;;  %v8820_v7 = vld [vmem:[%s15842_s9 + $0xdc] sm:$0xf0] }
 0x918   : > { %v5345_v53 = vunpack.c.l.b16 %v5225_v17  ;;  %v9500_v17 = vld [vmem:[%s15842_s9 + $0xa4] sm:$0xf] }
 0x91a   : > { %v14376_v27 = vpack.c.b16 %v5345_v53, %v5344_v22  ;;  %v5212_v12 = vpop.f32.mrf.mxu1  ;;  %v8816_v22 = vld [vmem:[%s15842_s9 + $0xb4] sm:$0xf0]  ;;  %v14526_v53 = vor.u32 %v9505_v9, %v8820_v7  ;;  %v8870_v9 = vld [vmem:[%s15842_s9 + $0xd0] sm:$0xf]  ;;  %v9508_v7 = vld [vmem:[%s15842_s9 + $0xe0] sm:$0xf0] }
 0x91b   : > { %v5183_v38 = vpop.f32.mrf.mxu0 }
 0x91c   : > { %5356 = vrot.lane.b32.xlu0 %v14376_v27, %s16555_s26  ;;  %v5213_v15 = vadd.f32 %v5212_v12, %v5183_v38  ;;  %v14528_v12 = vor.u32 %v9500_v17, %v8816_v22 }
 0x91e   : > { %v5226_v59 = vpack.c.bf16 %v5213_v15, %v5213_v15  ;;  %v9483_v15 = vld [vmem:[%s15842_s9 + $0x18] sm:$0xf0] }
 0x920   : > { %v5346_v61 = vunpack.c.l.b16 %v5226_v59  ;;  %v14565_v59 = vor.u32 %v9483_v15, %v8850_v21  ;;  %v14702_v15 = vor.u32 %v9508_v7, %v8870_v9  ;;  %v6405_v7 = vld [vmem:[%s15843_s10 + $0x28] sm:$0xff] }
 0x922   : > { %v5214_v43 = vpop.f32.mrf.mxu1 }
 0x923   : > { %v5185_v50 = vpop.f32.mrf.mxu0 }
 0x924   : > { %v5215_v26 = vadd.f32 %v5214_v43, %v5185_v50  ;;  %5320 = vrot.lane.b32.xlu0 %v14386_v58, %s16061_s0  ;;  %v9480_v43 = vld [vmem:[%s15842_s9 + $0x4] sm:$0xf]  ;;  %v8800_v50 = vld [vmem:[%s15842_s9 + $0x14] sm:$0xf0] }
 0x926   : > { %v5227_v48 = vpack.c.bf16 %v5215_v26, %v5215_v26  ;;  %v14567_v26 = vor.u32 %v9480_v43, %v8800_v50  ;;  %v8878_v43 = vld [vmem:[%s15842_s9 + $0x120] sm:$0xf]  ;;  %v9518_v50 = vld [vmem:[%s15842_s9 + $0x130] sm:$0xf0] }
 0x927   : > { %v14728_v20 = vor.u32 %v9518_v50, %v8878_v43  ;;  %v6406_v50 = vld [vmem:[%s15843_s10 + $0x30] sm:$0xff] }
 0x928   : > { %v5347_v28 = vunpack.c.l.b16 %v5227_v48  ;;  %v9495_v48 = vld [vmem:[%s15842_s9 + $0x7c] sm:$0xf] }
 0x92a   : > { %v14398_v32 = vpack.c.b16 %v5347_v28, %v5346_v61  ;;  %v8812_v61 = vld [vmem:[%s15842_s9 + $0x8c] sm:$0xf0] }
 0x92b   : > { %v14584_v28 = vor.u32 %v9495_v48, %v8812_v61 }
 0x92c   : > { %5326 = vrot.lane.b32.xlu0 %v14396_v46, %s16061_s0  ;;  %5358 = vrot.lane.b32.xlu2 %v14398_v32, %s16555_s26 }
 0x934   : > { %5332 = vrot.lane.b32.xlu0 %v14416_v25, %s16061_s0  ;;  %5318 = vrot.lane.b32.xlu2 %v14418_v8, %s16061_s0 }
 0x93c   : > { %5662 = vrot.lane.b32.xlu0 %v14398_v32, %s16059_s4  ;;  %5324 = vrot.lane.b32.xlu2 %v14430_v24, %s16061_s0 }
 0x944   : > { %5330 = vrot.lane.b32.xlu2 %v14442_v42, %s16061_s0 }
 0x94c   : > { %5545 = vrot.lane.b32.xlu2 %v14398_v32, %s16557_s20 }
 0x95d   : > { %v5217_v54 = vpop.f32.mrf.mxu1 }
 0x95e   : > { %v5188_v23 = vpop.f32.mrf.mxu0 }
 0x95f   : > { %v5218_v33 = vadd.f32 %v5217_v54, %v5188_v23  ;;  %v9515_v23 = vld [vmem:[%s15842_s9 + $0x11c] sm:$0xf] }
 0x961   : > { %v5228_v55 = vpack.c.bf16 %v5218_v33, %v5218_v33  ;;  %v8828_v33 = vld [vmem:[%s15842_s9 + $0x12c] sm:$0xf0] }
 0x963   : > { %v5348_v57 = vunpack.c.l.b16 %v5228_v55  ;;  %v14630_v55 = vor.u32 %v9515_v23, %v8828_v33  ;;  %v8900_v23 = vld [vmem:[%s15842_s9 + $0x44] sm:$0xf0] }
 0x965   : > { %v5219_v0 = vpop.f32.mrf.mxu1 }
 0x966   : > { %v5190_v37 = vpop.f32.mrf.mxu0 }
 0x967   : > { %v5220_v10 = vadd.f32 %v5219_v0, %v5190_v37  ;;  %v14626_v0 = vor.u32 %v9488_v16, %v8854_v56  ;;  %v14628_v37 = vor.u32 %v9481_v6, %v8896_v13  ;;  %v6400_v13 = vld [vmem:[%s15843_s10] sm:$0xff] }
 0x969   : > { %v5229_v40 = vpack.c.bf16 %v5220_v10, %v5220_v10 }
 0x96b   : > { %v5349_v41 = vunpack.c.l.b16 %v5229_v40  ;;  %v9491_v40 = vld [vmem:[%s15842_s9 + $0x5c] sm:$0xf] }
 0x96c   : > { %v14652_v52 = vor.u32 %v9491_v40, %v8904_v62  ;;  %v6513_v40 = vld [vmem:[%s15844_s11 + $0x8] sm:$0xff] }
 0x96d   : > { %v14448_v44 = vpack.c.b16 %v5349_v41, %v5348_v57  ;;  %v8858_v57 = vld [vmem:[%s15842_s9 + $0x58] sm:$0xf]  ;;  %v9493_v41 = vld [vmem:[%s15842_s9 + $0x68] sm:$0xf0] }
 0x96e   : > { %v14654_v5 = vor.u32 %v9493_v41, %v8858_v57  ;;  %v9498_v57 = vld [vmem:[%s15842_s9 + $0x90] sm:$0xf0] }
 0x96f   : > { %5664 = vrot.lane.b32.xlu0 %v14448_v44, %s16059_s4  ;;  %5547 = vrot.lane.b32.xlu2 %v14448_v44, %s16557_s20 }
 0x970   : > { %5360 = vrot.lane.b32.xlu1 %v14448_v44, %s16555_s26  ;;  %5472 = vmatpush.bf16.msrb.mxu3 %v14448_v44 }
 0x974   : > { %5473 = vmatpush.bf16.msrb.mxu3 %v14398_v32 }
 0x977   : > { %5660 = vrot.lane.b32.xlu0 %v14376_v27, %s16059_s4  ;;  %5543 = vrot.lane.b32.xlu2 %v14376_v27, %s16557_s20 }
 0x978   : > { %5354 = vrot.lane.b32.xlu1 %v14460_v2, %s16555_s26  ;;  %5474 = vmatpush.bf16.msrb.mxu3 %v14376_v27 }
 0x97c   : > { %5475 = vmatpush.bf16.msrb.mxu3 %v14460_v2 }
 0x97f   : > { %5658 = vrot.lane.b32.xlu0 %v14460_v2, %s16059_s4  ;;  %5541 = vrot.lane.b32.xlu2 %v14460_v2, %s16557_s20 }
 0x980   : > { %5322 = vrot.lane.b32.xlu1 %v14476_v3, %s16061_s0  ;;  %8792 = vmatmul.msk.bf16.vlgmr.msrb.gmra.mxu3 %vm5366_vm2, %v14418_v8  ;;  %v8916_v8 = vld [vmem:[%s15842_s9 + $0xe4] sm:$0xf0] }
 0x981   : > { %v14700_v21 = vor.u32 %v9506_v60, %v8916_v8  ;;  %v8912_v60 = vld [vmem:[%s15842_s9 + $0xbc] sm:$0xf0] }
 0x982   : > { %v6516_v8 = vld [vmem:[%s15844_s11 + $0x20] sm:$0xff] }
 0x986   : > { %v14540_v38 = vpop.permute.xlu2 %5358 }
 0x987   : > { %5646 = vrot.lane.b32.xlu0 %v14502_v29, %s16061_s0  ;;  %5644 = vrot.lane.b32.xlu2 %v14504_v11, %s16061_s0 }
 0x988   : > { %5328 = vrot.lane.b32.xlu1 %v14506_v35, %s16061_s0 }
 0x98e   : > { %v14546_v45 = vpop.permute.xlu2 %5318  ;;  %v14576_v36 = vpop.permute.xlu0 %5356 }
 0x98f   : > { %5652 = vrot.lane.b32.xlu0 %v14526_v53, %s16061_s0  ;;  %5650 = vrot.lane.b32.xlu2 %v14528_v12, %s16061_s0  ;;  %s545_s0 = scalar_lea.vmem %s15850_s17, %s9358_s18 }
 0x990   : > { %5803 = vrot.lane.b32.xlu1 %v14398_v32, %s9999_s2  ;;  %8793 = vmatmul.msk.bf16.gmra.mxu3 %vm5366_vm2, %v14386_v58 }
 0x996   : > { %v14569_v18 = vpop.permute.xlu2 %5324  ;;  %v14599_v39 = vpop.permute.xlu0 %5320 }
 0x997   : > { %5920 = vrot.lane.b32.xlu0 %v14398_v32, %s10000_s3  ;;  %5918 = vrot.lane.b32.xlu2 %v14376_v27, %s10000_s3 }
 0x998   : > { %5805 = vrot.lane.b32.xlu1 %v14448_v44, %s9999_s2 }
 0x99e   : > { %v14632_v10 = vpop.permute.xlu0 %5326 }
 0x99f   : > { %6303 = vrot.lane.b32.xlu0 %v14398_v32, %s16579_s30  ;;  %6045 = vrot.lane.b32.xlu2 %v14398_v32, %s10001_s21 }
 0x9a0   : > { %5801 = vrot.lane.b32.xlu1 %v14376_v27, %s9999_s2  ;;  %8794 = vmatmul.msk.bf16.gmra.mxu3 %vm5366_vm2, %v14476_v3  ;;  %v8862_v3 = vld [vmem:[%s15842_s9 + $0x80] sm:$0xf] }
 0x9a1   : > { %v14787_v1 = vor.u32 %v9498_v57, %v8862_v3  ;;  %v16584_v57 = vmov 65535  }
 0x9a6   : > { %v14656_v63 = vpop.permute.xlu0 %5332 }
 0x9a7   : > { %6162 = vrot.lane.b32.xlu0 %v14398_v32, %s16063_s29  ;;  %5922 = vrot.lane.b32.xlu2 %v14448_v44, %s10000_s3  ;;  %v14586_v32 = vpop.permute.xlu2 %5330 }
 0x9a8   : > { %5799 = vrot.lane.b32.xlu1 %v14460_v2, %s9999_s2  ;;  %s16582_s2 = smov 64  }
 0x9ae   : > { %v5663_v17 = vpop.permute.xlu0 %5662 }
 0x9af   : > { %6047 = vrot.lane.b32.xlu0 %v14448_v44, %s10001_s21  ;;  %5900 = vrot.lane.b32.xlu2 %v14565_v59, %s16582_s2  ;;  %v5546_v54 = vpop.permute.xlu2 %5545 }
 0x9b0   : > { %5642 = vrot.lane.b32.xlu1 %v14567_v26, %s16582_s2  ;;  %8795 = vmatmul.msk.bf16.gmra.mxu3 %vm5366_vm2, %v14430_v24  ;;  %v8874_v24 = vld [vmem:[%s15842_s9 + $0xf8] sm:$0xf] }
 0x9b7   : > { %6043 = vrot.lane.b32.xlu0 %v14376_v27, %s10001_s21  ;;  %6164 = vrot.lane.b32.xlu2 %v14448_v44, %s16063_s29 }
 0x9b8   : > { %5648 = vrot.lane.b32.xlu1 %v14584_v28, %s16582_s2 }
 0x9bf   : > { %6041 = vrot.lane.b32.xlu0 %v14460_v2, %s10001_s21  ;;  %6299 = vrot.lane.b32.xlu2 %v14460_v2, %s16579_s30 }
 0x9c0   : > { %5654 = vrot.lane.b32.xlu1 %v14601_v31, %s16582_s2  ;;  %8796 = vmatmul.msk.bf16.gmra.mxu3 %vm5366_vm2, %v14396_v46  ;;  %v6512_v46 = vld [vmem:[%s15844_s11] sm:$0xff] }
 0x9c7   : > { %5902 = vrot.lane.b32.xlu0 %v14626_v0, %s16582_s2  ;;  %6142 = vrot.lane.b32.xlu2 %v14628_v37, %s16582_s2 }
 0x9c8   : > { %5656 = vrot.lane.b32.xlu1 %v14630_v55, %s16582_s2 }
 0x9c9   : > { %v5548_v19 = vpop.permute.xlu2 %5547 }
 0x9ca   : > { %5581 = vmatpush.bf16.msra.mxu0 %v5548_v19  ;;  %v6515_v19 = vld [vmem:[%s15844_s11 + $0x18] sm:$0xff] }
 0x9ce   : > { %5582 = vmatpush.bf16.msra.mxu0 %v5546_v54 }
 0x9cf   : > { %6146 = vrot.lane.b32.xlu0 %v14652_v52, %s16582_s2  ;;  %5904 = vrot.lane.b32.xlu2 %v14654_v5, %s16582_s2 }
 0x9d0   : > { %5916 = vrot.lane.b32.xlu1 %v14460_v2, %s10000_s3  ;;  %8797 = vmatmul.msk.bf16.gmra.mxu3 %vm5366_vm2, %v14506_v35 }
 0x9d1   : > { %v5544_v14 = vpop.permute.xlu2 %5543 }
 0x9d2   : > { %5583 = vmatpush.bf16.msra.mxu0 %v5544_v14  ;;  %v9501_v14 = vld [vmem:[%s15842_s9 + $0xac] sm:$0xf] }
 0x9d3   : > { %v14811_v9 = vor.u32 %v9501_v14, %v8912_v60 }
 0x9d7   : > { %5908 = vrot.lane.b32.xlu0 %v14678_v47, %s16582_s2  ;;  %6148 = vrot.lane.b32.xlu2 %v14680_v30, %s16582_s2 }
 0x9d8   : > { %6301 = vrot.lane.b32.xlu1 %v14376_v27, %s16579_s30 }
 0x9d9   : > { %v5542_v22 = vpop.permute.xlu2 %5541 }
 0x9da   : > { %5584 = vmatpush.bf16.msra.mxu0 %v5542_v22  ;;  %v9513_v22 = vld [vmem:[%s15842_s9 + $0x108] sm:$0xf0] }
 0x9dd   : > { %8832 = vmatmul.msk.bf16.vlgmr.msra.gmra.mxu0 %vm5366_vm2, %v14567_v26  ;;  %v9511_v26 = vld [vmem:[%s15842_s9 + $0xfc] sm:$0xf] }
 0x9de   : > { %v14730_v56 = vor.u32 %v9511_v26, %v8920_v34 }
 0x9df   : > { %6152 = vrot.lane.b32.xlu0 %v14700_v21, %s16582_s2  ;;  %5910 = vrot.lane.b32.xlu2 %v14702_v15, %s16582_s2 }
 0x9e0   : > { %6305 = vrot.lane.b32.xlu1 %v14448_v44, %s16579_s30  ;;  %s16583_s30 = smov 115   ;;  %8798 = vmatmul.msk.bf16.gmra.mxu3 %vm5366_vm2, %v14442_v42 }
 0x9e1   : > { %v5665_v48 = vpop.permute.xlu0 %5664  ;;  %v14718_v61 = vpop.permute.xlu2 %5644 }
 0x9e2   : > { %v5361_v44 = vpop.permute.xlu1 %5360  ;;  %5698 = vmatpush.bf16.msra.mxu1 %v5665_v48  ;;  %v14829_v48 = vor.u32 %v9513_v22, %v8874_v24 }
 0x9e3   : > { %5395 = vmatpush.bf16.msra.mxu2 %v5361_v44  ;;  %v9516_v44 = vld [vmem:[%s15842_s9 + $0x124] sm:$0xf] }
 0x9e6   : > { %5699 = vmatpush.bf16.msra.mxu1 %v5663_v17 }
 0x9e7   : > { %5396 = vmatpush.bf16.msra.mxu2 %v14540_v38  ;;  %5914 = vrot.lane.b32.xlu0 %v14728_v20, %s16582_s2  ;;  %v6401_v38 = vld [vmem:[%s15843_s10 + $0x8] sm:$0xff] }
 0x9e8   : > { %6154 = vrot.lane.b32.xlu2 %v14730_v56, %s16582_s2  ;;  %6160 = vrot.lane.b32.xlu1 %v14376_v27, %s16583_s30 }
 0x9e9   : > { %v5661_v16 = vpop.permute.xlu0 %5660  ;;  %v14739_v6 = vpop.permute.xlu2 %5650 }
 0x9ea   : > { %v5355_v58 = vpop.permute.xlu1 %5354  ;;  %5700 = vmatpush.bf16.msra.mxu1 %v5661_v16  ;;  %v8924_v16 = vld [vmem:[%s15842_s9 + $0x134] sm:$0xf0] }
 0x9eb   : > { %5397 = vmatpush.bf16.msra.mxu2 %v14576_v36  ;;  %v9486_v36 = vld [vmem:[%s15842_s9 + $0x34] sm:$0xf] }
 0x9ec   : > { %v14765_v33 = vor.u32 %v9486_v36, %v8900_v23 }
 0x9ed   : > { %8833 = vmatmul.msk.bf16.gmra.mxu0 %vm5366_vm2, %v14504_v11 }
 0x9ef   : > { %5398 = vmatpush.bf16.msra.mxu2 %v5355_v58  ;;  %6423 = vperm.xlu0 %9803, %v6401_v38   ;;  %v6519_v58 = vld [vmem:[%s15844_s11 + $0x38] sm:$0xff]  ;;  %v14849_v38 = vor.u32 %v9516_v44, %v8924_v16 }
 0x9f0   : > { %6418 = vperm.xlu2 %9662, %v6400_v13   ;;  %6158 = vrot.lane.b32.xlu1 %v14460_v2, %s16583_s30  ;;  %v6402_v2 = vld [vmem:[%s15843_s10 + $0x10] sm:$0xff] }
 0x9f1   : > { %v5659_v27 = vpop.permute.xlu0 %5658  ;;  %v5919_v54 = vpop.permute.xlu2 %5918  ;;  %8799 = vmatmul.msk.bf16.gmra.mxu3 %vm5366_vm2, %v14416_v25 }
 0x9f2   : > { %8784 = vmatmul.msk.bf16.vlgmr.msra.gmra.mxu2 %vm5366_vm2, %v14546_v45  ;;  %v5323_v11 = vpop.permute.xlu1 %5322  ;;  %5701 = vmatpush.bf16.msra.mxu1 %v5659_v27 }
 0x9f7   : > { %6428 = vperm.xlu0 %9803, %v6402_v2  }
 0x9f8   : > { %6535 = vperm.xlu2 %9662, %v6513_v40   ;;  %6144 = vrot.lane.b32.xlu1 %v14765_v33, %s16582_s2  ;;  %v6404_v40 = vld [vmem:[%s15843_s10 + $0x20] sm:$0xff] }
 0x9f9   : > { %v14772_v45 = vpop.permute.xlu0 %5646  ;;  %v14774_v62 = vpop.permute.xlu2 %6045 }
 0x9fa   : > { %v14782_v41 = vpop.permute.xlu1 %5328 }
 0x9fd   : > { %8834 = vmatmul.msk.bf16.gmra.mxu0 %vm5366_vm2, %v14502_v29 }
 0x9ff   : > { %6545 = vperm.xlu0 %9803, %v6515_v19   ;;  %v9520_v19 = vld [vmem:[%s15845_s12] sm:$0xff] }
 0xa00   : > { %6540 = vperm.xlu2 %9662, %v6514_v4   ;;  %5906 = vrot.lane.b32.xlu1 %v14787_v1, %s16582_s2 }
 0xa01   : > { %v14796_v51 = vpop.permute.xlu0 %5652  ;;  %v5923_v49 = vpop.permute.xlu2 %5922 }
 0xa02   : > { %8785 = vmatmul.msk.bf16.gmra.mxu2 %vm5366_vm2, %v14599_v39  ;;  %v5804_v29 = vpop.permute.xlu1 %5803  ;;  %5956 = vmatpush.bf16.msra.mxu3 %v5923_v49 }
 0xa07   : > { %6550 = vperm.xlu0 %9803, %v6516_v8  }
 0xa08   : > { %6443 = vperm.xlu2 %9662, %v6405_v7   ;;  %6150 = vrot.lane.b32.xlu1 %v14811_v9, %s16582_s2 }
 0xa09   : > { %v5921_v39 = vpop.permute.xlu0 %5920  ;;  %v14818_v17 = vpop.permute.xlu2 %5900 }
 0xa0a   : > { %v5806_v43 = vpop.permute.xlu1 %5805  ;;  %5957 = vmatpush.bf16.msra.mxu3 %v5921_v39 }
 0xa0b   : > { %5839 = vmatpush.bf16.msrb.mxu2 %v5806_v43 }
 0xa0d   : > { %8835 = vmatmul.msk.bf16.gmra.mxu0 %vm5366_vm2, %v14584_v28 }
 0xa0e   : > { %5958 = vmatpush.bf16.msra.mxu3 %v5919_v54  ;;  %v6409_v54 = vld [vmem:[%s15843_s10 + $0x48] sm:$0xff] }
 0xa0f   : > { %5840 = vmatpush.bf16.msrb.mxu2 %v5804_v29  ;;  %6448 = vperm.xlu0 %9803, %v6406_v50  }
 0xa10   : > { %5912 = vrot.lane.b32.xlu1 %v14829_v48, %s16582_s2 }
 0xa11   : > { %v14835_v26 = vpop.permute.xlu0 %6303  ;;  %v6165_v34 = vpop.permute.xlu2 %6164 }
 0xa12   : > { %8786 = vmatmul.msk.bf16.gmra.mxu2 %vm5366_vm2, %v5323_v11  ;;  %v5802_v28 = vpop.permute.xlu1 %5801  ;;  %6198 = vmatpush.bf16.msrb.mxu1 %v6165_v34  ;;  %v6522_v11 = vld [vmem:[%s15844_s11 + $0x50] sm:$0xff] }
 0xa13   : > { %5841 = vmatpush.bf16.msrb.mxu2 %v5802_v28 }
 0xa17   : > { %6565 = vperm.xlu0 %9803, %v6519_v58  }
 0xa18   : > { %6156 = vrot.lane.b32.xlu1 %v14849_v38, %s16582_s2 }
 0xa19   : > { %v6163_v13 = vpop.permute.xlu0 %6162 }
 0xa1a   : > { %v5800_v27 = vpop.permute.xlu1 %5799  ;;  %6199 = vmatpush.bf16.msrb.mxu1 %v6163_v13 }
 0xa1b   : > { %5842 = vmatpush.bf16.msrb.mxu2 %v5800_v27 }
 0xa1d   : > { %8836 = vmatmul.msk.bf16.gmra.mxu0 %vm5366_vm2, %v14528_v12  ;;  %v6403_v12 = vld [vmem:[%s15843_s10 + $0x18] sm:$0xff] }
 0xa1f   : > { %6463 = vperm.xlu0 %9803, %v6409_v54  }
 0xa20   : > { %6530 = vperm.xlu1 %9661, %v6512_v46  }
 0xa21   : > { %v6048_v36 = vpop.permute.xlu0 %6047 }
 0xa22   : > { %8787 = vmatmul.msk.bf16.gmra.mxu2 %vm5366_vm2, %v14569_v18  ;;  %v5643_v23 = vpop.permute.xlu1 %5642  ;;  %6081 = vmatpush.bf16.msrb.mxu0 %v6048_v36 }
 0xa23   : > { %8840 = vmatmul.msk.bf16.vlgmr.msra.gmra.mxu1 %vm5366_vm2, %v5643_v23 }
 0xa26   : > { %6082 = vmatpush.bf16.msrb.mxu0 %v14774_v62  ;;  %v6517_v62 = vld [vmem:[%s15844_s11 + $0x28] sm:$0xff] }
 0xa27   : > { %6580 = vperm.xlu0 %9803, %v6522_v11  }
 0xa28   : > { %6433 = vperm.xlu1 %9661, %v6403_v12  }
 0xa29   : > { %v6044_v18 = vpop.permute.xlu0 %6043 }
 0xa2a   : > { %v5649_v2 = vpop.permute.xlu1 %5648  ;;  %6083 = vmatpush.bf16.msrb.mxu0 %v6044_v18 }
 0xa2d   : > { %8837 = vmatmul.msk.bf16.gmra.mxu0 %vm5366_vm2, %v14526_v53 }
 0xa30   : > { %6438 = vperm.xlu1 %9661, %v6404_v40  }
 0xa31   : > { %v6042_v35 = vpop.permute.xlu0 %6041 }
 0xa32   : > { %8788 = vmatmul.msk.bf16.gmra.mxu2 %vm5366_vm2, %v14632_v10  ;;  %v14880_v3 = vpop.permute.xlu1 %5654  ;;  %6084 = vmatpush.bf16.msrb.mxu0 %v6042_v35  ;;  %v6842_v10 = vsel %vm6840_vm3, 4294967295, %v16584_v57 }
 0xa33   : > { %8841 = vmatmul.msk.bf16.gmra.mxu1 %vm5366_vm2, %v14718_v61  ;;  %v6407_v61 = vld [vmem:[%s15843_s10 + $0x38] sm:$0xff]  ;;  %v6843_v42 = vsel %vm6841_vm4, %v6842_v10, 0 }
 0xa34   : > { %v6845_v4 = vand.u32 %v9520_v19, %v6843_v42 }
 0xa38   : > { %6555 = vperm.xlu1 %9661, %v6517_v62  }
 0xa39   : > { %v5903_v29 = vpop.permute.xlu0 %5902 }
 0xa3a   : > { %v14889_v53 = vpop.permute.xlu1 %5656 }
 0xa3d   : > { %8838 = vmatmul.msk.bf16.gmra.mxu0 %vm5366_vm2, %v14601_v31 }
 0xa40   : > { %6453 = vperm.xlu1 %9661, %v6407_v61  }
 0xa41   : > { %v14935_v13 = vpop.permute.xlu0 %6146 }
 0xa42   : > { %8789 = vmatmul.msk.bf16.gmra.mxu2 %vm5366_vm2, %v14782_v41  ;;  %v5917_v49 = vpop.permute.xlu1 %5916 }
 0xa43   : > { %8842 = vmatmul.msk.bf16.gmra.mxu1 %vm5366_vm2, %v14772_v45  ;;  %5959 = vmatpush.bf16.msra.mxu3 %v5917_v49  ;;  %v5477_v45 = vpop.f32.mrf.mxu3 }
 0xa46   : > { %8888 = vmatmul.msk.bf16.vlgmr.msra.gmra.mxu3 %vm5366_vm2, %v14818_v17 }
 0xa47   : > { %6854 = vmatpush.bf16.msrb.mxu3 %v6845_v4 }
 0xa4a   : > { %v6302_v14 = vpop.permute.xlu1 %6301 }
 0xa4d   : > { %8839 = vmatmul.msk.bf16.gmra.mxu0 %vm5366_vm2, %v14630_v55  ;;  %v6300_v55 = vpop.permute.xlu2 %6299 }
 0xa52   : > { %8790 = vmatmul.msk.bf16.gmra.mxu2 %vm5366_vm2, %v14586_v32  ;;  %v6306_v31 = vpop.permute.xlu1 %6305  ;;  %v5479_v32 = vpop.f32.mrf.mxu3 }
 0xa53   : > { %8843 = vmatmul.msk.bf16.gmra.mxu1 %vm5366_vm2, %v5649_v2  ;;  %6339 = vmatpush.bf16.msra.mxu2 %v6306_v31 }
 0xa55   : > { %v6143_v7 = vpop.permute.xlu2 %6142 }
 0xa56   : > { %8889 = vmatmul.msk.bf16.gmra.mxu3 %vm5366_vm2, %v5903_v29 }
 0xa57   : > { %6340 = vmatpush.bf16.msra.mxu2 %v14835_v26 }
 0xa5a   : > { %v6161_v41 = vpop.permute.xlu1 %6160  ;;  %v5586_v25 = vpop.f32.mrf.mxu0 }
 0xa5b   : > { %6200 = vmatpush.bf16.msrb.mxu1 %v6161_v41  ;;  %6341 = vmatpush.bf16.msra.mxu2 %v6302_v14  ;;  %v5482_v39 = vpop.f32.mrf.mxu3 }
 0xa5d   : > { %8928 = vmatmul.msk.bf16.vlgmr.msrb.gmra.mxu0 %vm5366_vm2, %v14628_v37  ;;  %v5905_v37 = vpop.permute.xlu2 %5904 }
 0xa5f   : > { %6342 = vmatpush.bf16.msra.mxu2 %v6300_v55 }
 0xa62   : > { %8791 = vmatmul.msk.bf16.gmra.mxu2 %vm5366_vm2, %v14656_v63  ;;  %v6159_v60 = vpop.permute.xlu1 %6158  ;;  %v5588_v8 = vpop.f32.mrf.mxu0 }
 0xa63   : > { %8844 = vmatmul.msk.bf16.gmra.mxu1 %vm5366_vm2, %v14739_v6  ;;  %v5484_v6 = vpop.f32.mrf.mxu3 }
 0xa64   : > { %6201 = vmatpush.bf16.msrb.mxu1 %v6159_v60 }
 0xa65   : > { %v14944_v40 = vpop.permute.xlu2 %6148 }
 0xa66   : > { %8890 = vmatmul.msk.bf16.gmra.mxu3 %vm5366_vm2, %v5905_v37 }
 0xa6a   : > { %v5591_v17 = vpop.f32.mrf.mxu0  ;;  %v6145_v50 = vpop.permute.xlu1 %6144 }
 0xa6b   : > { %v5487_v34 = vpop.f32.mrf.mxu3 }
 0xa6d   : > { %8929 = vmatmul.msk.bf16.gmra.mxu0 %vm5366_vm2, %v14765_v33 }
 0xa72   : > { %8880 = vmatmul.msk.bf16.vlgmr.msrb.gmra.mxu2 %vm5366_vm2, %v14565_v59  ;;  %v5593_v22 = vpop.f32.mrf.mxu0 }
 0xa73   : > { %8845 = vmatmul.msk.bf16.gmra.mxu1 %vm5366_vm2, %v14796_v51  ;;  %v5907_v51 = vpop.permute.xlu1 %5906  ;;  %v5489_v27 = vpop.f32.mrf.mxu3 }
 0xa75   : > { %v5400_v63 = vpop.f32.mrf.mxu2 }
 0xa76   : > { %v5478_v24 = vadd.f32 %v5477_v45, %v5400_v63  ;;  %8891 = vmatmul.msk.bf16.gmra.mxu3 %vm5366_vm2, %v5907_v51 }
 0xa78   : > { %v5626_v43 = vadd.f32 %v5586_v25, %v5478_v24 }
 0xa7a   : > { %v5596_v59 = vpop.f32.mrf.mxu0 }
 0xa7b   : > { %v5492_v23 = vpop.f32.mrf.mxu3 }
 0xa7d   : > { %v5402_v26 = vpop.f32.mrf.mxu2  ;;  %8930 = vmatmul.msk.bf16.gmra.mxu0 %vm5366_vm2, %v14652_v52 }
 0xa7e   : > { %v5480_v33 = vadd.f32 %v5479_v32, %v5402_v26 }
 0xa80   : > { %v5627_v44 = vadd.f32 %v5588_v8, %v5480_v33 }
 0xa82   : > { %8881 = vmatmul.msk.bf16.gmra.mxu2 %vm5366_vm2, %v14626_v0  ;;  %v5598_v52 = vpop.f32.mrf.mxu0  ;;  %v5909_v0 = vpop.permute.xlu0 %5908 }
 0xa83   : > { %8846 = vmatmul.msk.bf16.gmra.mxu1 %vm5366_vm2, %v14880_v3 }
 0xa85   : > { %v5405_v16 = vpop.f32.mrf.mxu2 }
 0xa86   : > { %v5483_v28 = vadd.f32 %v5482_v39, %v5405_v16  ;;  %8892 = vmatmul.msk.bf16.gmra.mxu3 %vm5366_vm2, %v5909_v0 }
 0xa88   : > { %v5628_v58 = vadd.f32 %v5591_v17, %v5483_v28 }
 0xa8a   : > { %v5601_v12 = vpop.f32.mrf.mxu0  ;;  %v6153_v17 = vpop.permute.xlu0 %6152 }
 0xa8d   : > { %v5407_v54 = vpop.f32.mrf.mxu2  ;;  %8931 = vmatmul.msk.bf16.gmra.mxu0 %vm5366_vm2, %v14680_v30  ;;  %v5494_v30 = vpop.f32.mrf.mxu3 }
 0xa8e   : > { %v5485_v46 = vadd.f32 %v5484_v6, %v5407_v54 }
 0xa90   : > { %v5629_v36 = vadd.f32 %v5593_v22, %v5485_v46 }
 0xa92   : > { %8882 = vmatmul.msk.bf16.gmra.mxu2 %vm5366_vm2, %v14654_v5  ;;  %v5603_v5 = vpop.f32.mrf.mxu0 }
 0xa93   : > { %8847 = vmatmul.msk.bf16.gmra.mxu1 %vm5366_vm2, %v14889_v53  ;;  %v5911_v53 = vpop.permute.xlu2 %5910 }
 0xa95   : > { %v5410_v11 = vpop.f32.mrf.mxu2  ;;  %v5497_v42 = vpop.f32.mrf.mxu3 }
 0xa96   : > { %v5488_v18 = vadd.f32 %v5487_v34, %v5410_v11  ;;  %8893 = vmatmul.msk.bf16.gmra.mxu3 %vm5366_vm2, %v5911_v53 }
 0xa98   : > { %v5630_v2 = vadd.f32 %v5596_v59, %v5488_v18 }
 0xa9a   : > { %v5606_v31 = vpop.f32.mrf.mxu0 }
 0xa9d   : > { %v5412_v35 = vpop.f32.mrf.mxu2  ;;  %8932 = vmatmul.msk.bf16.gmra.mxu0 %vm5366_vm2, %v14811_v9  ;;  %v6151_v9 = vpop.permute.xlu1 %6150 }
 0xa9e   : > { %v5490_v3 = vadd.f32 %v5489_v27, %v5412_v35  ;;  %v14960_v32 = vpop.f32.mrf.mxu3 }
 0xaa0   : > { %v5631_v62 = vadd.f32 %v5598_v52, %v5490_v3  ;;  %v5703_v57 = vpop.f32.mrf.mxu1  ;;  %v9484_v3 = vld [vmem:[%s15842_s9 + $0x20] sm:$0xf0] }
 0xaa1   : > { %v14948_v10 = vadd.f32 %v5703_v57, %v5626_v43  ;;  %v5915_v43 = vpop.permute.xlu0 %5914 }
 0xaa2   : > { %8883 = vmatmul.msk.bf16.gmra.mxu2 %vm5366_vm2, %v14787_v1  ;;  %v14965_v29 = vpop.f32.mrf.mxu0 }
 0xaa3   : > { %8936 = vmatmul.msk.bf16.vlgmr.msrb.gmra.mxu1 %vm5366_vm2, %v6143_v7 }
 0xaa5   : > { %v5415_v19 = vpop.f32.mrf.mxu2  ;;  %v5913_v60 = vpop.permute.xlu1 %5912 }
 0xaa6   : > { %v5493_v61 = vadd.f32 %v5492_v23, %v5415_v19  ;;  %8894 = vmatmul.msk.bf16.gmra.mxu3 %vm5366_vm2, %v5913_v60  ;;  %v5502_v63 = vpop.f32.mrf.mxu3 }
 0xaa8   : > { %v5632_v4 = vadd.f32 %v5601_v12, %v5493_v61  ;;  %v5705_v49 = vpop.f32.mrf.mxu1 }
 0xaa9   : > { %v14954_v14 = vadd.f32 %v5705_v49, %v5627_v44 }
 0xaaa   : > { %v5611_v24 = vpop.f32.mrf.mxu0 }
 0xaad   : > { %v5417_v45 = vpop.f32.mrf.mxu2  ;;  %8933 = vmatmul.msk.bf16.gmra.mxu0 %vm5366_vm2, %v14700_v21 }
 0xaae   : > { %v5495_v41 = vadd.f32 %v5494_v30, %v5417_v45  ;;  %v14981_v26 = vpop.f32.mrf.mxu3  ;;  %v8946_v30 = vld [vmem:[%s15842_s9 + $0x10] sm:$0xf] }
 0xab0   : > { %v5633_v1 = vadd.f32 %v5603_v5, %v5495_v41  ;;  %v5708_v25 = vpop.f32.mrf.mxu1 }
 0xab1   : > { %v14958_v55 = vadd.f32 %v5708_v25, %v5628_v58 }
 0xab2   : > { %8884 = vmatmul.msk.bf16.gmra.mxu2 %vm5366_vm2, %v14678_v47  ;;  %v14983_v34 = vpop.f32.mrf.mxu0 }
 0xab3   : > { %8937 = vmatmul.msk.bf16.gmra.mxu1 %vm5366_vm2, %v6145_v50 }
 0xab5   : > { %v5420_v8 = vpop.f32.mrf.mxu2 }
 0xab6   : > { %v5498_v7 = vadd.f32 %v5497_v42, %v5420_v8  ;;  %8895 = vmatmul.msk.bf16.gmra.mxu3 %vm5366_vm2, %v5915_v43  ;;  %v8950_v42 = vld [vmem:[%s15842_s9 + $0x38] sm:$0xf]  ;;  %v8954_v8 = vld [vmem:[%s15842_s9 + $0x60] sm:$0xf]  ;;  %v8958_v43 = vld [vmem:[%s15842_s9 + $0x88] sm:$0xf] }
 0xab8   : > { %v5634_v21 = vadd.f32 %v5606_v31, %v5498_v7  ;;  %v5710_v39 = vpop.f32.mrf.mxu1 }
 0xab9   : > { %v14968_v37 = vadd.f32 %v5710_v39, %v5629_v36 }
 0xaba   : > { %v5616_v58 = vpop.f32.mrf.mxu0 }
 0xabd   : > { %v14970_v6 = vpop.f32.mrf.mxu2  ;;  %8934 = vmatmul.msk.bf16.gmra.mxu0 %vm5366_vm2, %v14730_v56 }
 0xac0   : > { %v5713_v47 = vpop.f32.mrf.mxu1 }
 0xac1   : > { %v14974_v22 = vadd.f32 %v5713_v47, %v5630_v2 }
 0xac2   : > { %8885 = vmatmul.msk.bf16.gmra.mxu2 %vm5366_vm2, %v14702_v15  ;;  %v5507_v15 = vpop.f32.mrf.mxu3  ;;  %v14999_v0 = vpop.f32.mrf.mxu0 }
 0xac3   : > { %8938 = vmatmul.msk.bf16.gmra.mxu1 %vm5366_vm2, %v14935_v13 }
 0xac5   : > { %v5425_v50 = vpop.f32.mrf.mxu2 }
 0xac6   : > { %v5503_v33 = vadd.f32 %v5502_v63, %v5425_v50 }
 0xac8   : > { %v5636_v44 = vadd.f32 %v5611_v24, %v5503_v33  ;;  %v5715_v56 = vpop.f32.mrf.mxu1  ;;  %v6157_v24 = vpop.permute.xlu1 %6156 }
 0xac9   : > { %v14985_v59 = vadd.f32 %v5715_v56, %v5631_v62 }
 0xaca   : > { %v14997_v36 = vpop.f32.mrf.mxu3  ;;  %v5621_v18 = vpop.f32.mrf.mxu0 }
 0xacd   : > { %v14987_v51 = vpop.f32.mrf.mxu2  ;;  %8935 = vmatmul.msk.bf16.gmra.mxu0 %vm5366_vm2, %v14849_v38 }
 0xad0   : > { %v5718_v16 = vpop.f32.mrf.mxu1 }
 0xad1   : > { %v14991_v28 = vadd.f32 %v5718_v16, %v5632_v4  ;;  %v9489_v4 = vld [vmem:[%s15842_s9 + $0x48] sm:$0xf0]  ;;  %v9504_v16 = vld [vmem:[%s15842_s9 + $0xc0] sm:$0xf0] }
 0xad2   : > { %8886 = vmatmul.msk.bf16.gmra.mxu2 %vm5366_vm2, %v14829_v48  ;;  %v5512_v48 = vpop.f32.mrf.mxu3  ;;  %v8951_v31 = vor.u32 %v9489_v4, %v8950_v42 }
 0xad3   : > { %8939 = vmatmul.msk.bf16.gmra.mxu1 %vm5366_vm2, %v14944_v40 }
 0xad5   : > { %v5430_v13 = vpop.f32.mrf.mxu2 }
 0xad6   : > { %v5508_v27 = vadd.f32 %v5507_v15, %v5430_v13 }
 0xad8   : > { %v5638_v52 = vadd.f32 %v5616_v58, %v5508_v27  ;;  %v5720_v54 = vpop.f32.mrf.mxu1 }
 0xad9   : > { %v5750_v46 = vadd.f32 %v5720_v54, %v5633_v1  ;;  %v6155_v1 = vpop.permute.xlu2 %6154  ;;  %v9509_v54 = vld [vmem:[%s15842_s9 + $0xe8] sm:$0xf0] }
 0xadd   : > { %v15001_v38 = vpop.f32.mrf.mxu2 }
 0xae0   : > { %v5723_v23 = vpop.f32.mrf.mxu1 }
 0xae1   : > { %v5751_v11 = vadd.f32 %v5723_v23, %v5634_v21 }
 0xae2   : > { %8887 = vmatmul.msk.bf16.gmra.mxu2 %vm5366_vm2, %v14728_v20  ;;  %v8947_v20 = vor.u32 %v9484_v3, %v8946_v30 }
 0xae3   : > { %8940 = vmatmul.msk.bf16.gmra.mxu1 %vm5366_vm2, %v6151_v9 }
 0xae5   : > { %v5435_v12 = vpop.f32.mrf.mxu2 }
 0xae6   : > { %v5513_v2 = vadd.f32 %v5512_v48, %v5435_v12 }
 0xae8   : > { %v5640_v40 = vadd.f32 %v5621_v18, %v5513_v2  ;;  %v15006_v35 = vpop.f32.mrf.mxu1  ;;  %v9514_v18 = vld [vmem:[%s15842_s9 + $0x110] sm:$0xf0] }
 0xaed   : > { %v15014_v5 = vpop.f32.mrf.mxu2 }
 0xaf0   : > { %v5728_v62 = vpop.f32.mrf.mxu1 }
 0xaf1   : > { %v5753_v57 = vadd.f32 %v5728_v62, %v5636_v44  ;;  %v8974_v62 = vld [vmem:[%s15842_s9 + $0x128] sm:$0xf] }
 0xaf2   : > { %8976 = vmatmul.msk.bf16.vlgmr.msra.gmra.mxu2 %vm5366_vm2, %v8947_v20  ;;  %v15099_v20 = vpop.f32.mrf.mxu3 }
 0xaf3   : > { %8941 = vmatmul.msk.bf16.gmra.mxu1 %vm5366_vm2, %v6153_v17 }
 0xaf5   : > { %v5844_v53 = vpop.f32.mrf.mxu2 }
 0xaf6   : > { %v15019_v19 = vadd.f32 %v5844_v53, %v14948_v10  ;;  %v15107_v53 = vpop.f32.mrf.mxu0 }
 0xaf8   : > { %v15021_v61 = vpop.f32.mrf.mxu1 }
 0xafd   : > { %v5846_v49 = vpop.f32.mrf.mxu2 }
 0xafe   : > { %v15030_v9 = vadd.f32 %v5846_v49, %v14954_v14  ;;  %v9494_v14 = vld [vmem:[%s15842_s9 + $0x70] sm:$0xf0] }
 0xaff   : > { %v8955_v39 = vor.u32 %v9494_v14, %v8954_v8 }
 0xb00   : > { %v5733_v45 = vpop.f32.mrf.mxu1 }
 0xb01   : > { %v5755_v41 = vadd.f32 %v5733_v45, %v5638_v52  ;;  %v6086_v45 = vpop.f32.mrf.mxu0 }
 0xb02   : > { %8977 = vmatmul.msk.bf16.gmra.mxu2 %vm5366_vm2, %v8951_v31  ;;  %v5961_v31 = vpop.f32.mrf.mxu3 }
 0xb03   : > { %8942 = vmatmul.msk.bf16.gmra.mxu1 %vm5366_vm2, %v6155_v1 }
 0xb05   : > { %v5849_v10 = vpop.f32.mrf.mxu2 }
 0xb06   : > { %v15035_v25 = vadd.f32 %v5849_v10, %v14958_v55 }
 0xb08   : > { %v15037_v60 = vpop.f32.mrf.mxu1 }
 0xb0a   : > { %v5963_v8 = vpop.f32.mrf.mxu3 }
 0xb0d   : > { %v5851_v7 = vpop.f32.mrf.mxu2 }
 0xb0e   : > { %v15046_v21 = vadd.f32 %v5851_v7, %v14968_v37  ;;  %v9499_v37 = vld [vmem:[%s15842_s9 + $0x98] sm:$0xf0]  ;;  %v6088_v7 = vpop.f32.mrf.mxu0 }
 0xb0f   : > { %v8959_v44 = vor.u32 %v9499_v37, %v8958_v43  ;;  %v6002_v37 = vadd.f32 %v5963_v8, %v15030_v9 }
 0xb10   : > { %v5738_v17 = vpop.f32.mrf.mxu1 }
 0xb11   : > { %v5757_v63 = vadd.f32 %v5738_v17, %v5640_v40 }
 0xb12   : > { %8978 = vmatmul.msk.bf16.gmra.mxu2 %vm5366_vm2, %v8955_v39  ;;  %v6001_v39 = vadd.f32 %v5961_v31, %v15019_v19 }
 0xb13   : > { %8943 = vmatmul.msk.bf16.gmra.mxu1 %vm5366_vm2, %v6157_v24 }
 0xb14   : > { %v6126_v24 = vadd.f32 %v6086_v45, %v6001_v39 }
 0xb15   : > { %v5854_v55 = vpop.f32.mrf.mxu2 }
 0xb16   : > { %v15051_v47 = vadd.f32 %v5854_v55, %v14974_v22  ;;  %v8962_v22 = vld [vmem:[%s15842_s9 + $0xb0] sm:$0xf]  ;;  %v5966_v55 = vpop.f32.mrf.mxu3 }
 0xb17   : > { %v6003_v19 = vadd.f32 %v5966_v55, %v15035_v25 }
 0xb18   : > { %v15109_v42 = vpop.f32.mrf.mxu1 }
 0xb1d   : > { %v5856_v50 = vpop.f32.mrf.mxu2 }
 0xb1e   : > { %v15060_v33 = vadd.f32 %v5856_v50, %v14985_v59  ;;  %v8963_v59 = vor.u32 %v9504_v16, %v8962_v22  ;;  %v6091_v22 = vpop.f32.mrf.mxu0  ;;  %v6127_v16 = vadd.f32 %v6088_v7, %v6002_v37 }
 0xb20   : > { %v6203_v10 = vpop.f32.mrf.mxu1 }
 0xb21   : > { %v6243_v50 = vadd.f32 %v6203_v10, %v6126_v24 }
 0xb22   : > { %8979 = vmatmul.msk.bf16.gmra.mxu2 %vm5366_vm2, %v8959_v44  ;;  %v6419_v44 = vpop.permute.xlu2 %6418 }
 0xb25   : > { %v5859_v56 = vpop.f32.mrf.mxu2 }
 0xb26   : > { %v15064_v15 = vadd.f32 %v5859_v56, %v14991_v28  ;;  %v8966_v28 = vld [vmem:[%s15842_s9 + $0xd8] sm:$0xf] }
 0xb27   : > { %v8967_v48 = vor.u32 %v9509_v54, %v8966_v28 }
 0xb28   : > { %v6205_v17 = vpop.f32.mrf.mxu1 }
 0xb2d   : > { %v5861_v58 = vpop.f32.mrf.mxu2 }
 0xb2e   : > { %v15072_v13 = vadd.f32 %v5861_v58, %v5750_v46  ;;  %v6244_v58 = vadd.f32 %v6205_v17, %v6127_v16 }
 0xb32   : > { %8980 = vmatmul.msk.bf16.gmra.mxu2 %vm5366_vm2, %v8963_v59 }
 0xb35   : > { %v5864_v27 = vpop.f32.mrf.mxu2 }
 0xb36   : > { %v15075_v52 = vadd.f32 %v5864_v27, %v5751_v11  ;;  %v8970_v11 = vld [vmem:[%s15842_s9 + $0x100] sm:$0xf]  ;;  %v6424_v27 = vpop.permute.xlu0 %6423 }
 0xb37   : > { %v8971_v40 = vor.u32 %v9514_v18, %v8970_v11 }
 0xb3d   : > { %v15083_v23 = vpop.f32.mrf.mxu2 }
 0xb3e   : > { %v6429_v8 = vpop.permute.xlu0 %6428 }
 0xb42   : > { %8981 = vmatmul.msk.bf16.gmra.mxu2 %vm5366_vm2, %v8967_v48  ;;  %v6531_v48 = vpop.permute.xlu1 %6530 }
 0xb45   : > { %v5869_v46 = vpop.f32.mrf.mxu2 }
 0xb46   : > { %v15086_v12 = vadd.f32 %v5869_v46, %v5753_v57  ;;  %v9519_v57 = vld [vmem:[%s15842_s9 + $0x138] sm:$0xf0]  ;;  %v5968_v46 = vpop.f32.mrf.mxu3 }
 0xb47   : > { %v8975_v49 = vor.u32 %v9519_v57, %v8974_v62  ;;  %v6128_v62 = vadd.f32 %v6091_v22, %v6003_v19 }
 0xb4a   : > { %v6434_v24 = vpop.permute.xlu1 %6433 }
 0xb4d   : > { %v15094_v2 = vpop.f32.mrf.mxu2 }
 0xb4e   : > { %v5971_v39 = vpop.f32.mrf.mxu3 }
 0xb4f   : > { %v6005_v16 = vadd.f32 %v5971_v39, %v15051_v47  ;;  %v6521_v39 = vld [vmem:[%s15844_s11 + $0x48] sm:$0xff] }
 0xb52   : > { %8982 = vmatmul.msk.bf16.gmra.mxu2 %vm5366_vm2, %v8971_v40  ;;  %v6536_v40 = vpop.permute.xlu2 %6535 }
 0xb55   : > { %v5874_v30 = vpop.f32.mrf.mxu2 }
 0xb56   : > { %v15097_v3 = vadd.f32 %v5874_v30, %v5755_v41  ;;  %v6093_v30 = vpop.f32.mrf.mxu0 }
 0xb5d   : > { %v15111_v4 = vpop.f32.mrf.mxu2 }
 0xb5e   : > { %v6096_v37 = vpop.f32.mrf.mxu0 }
 0xb62   : > { %8983 = vmatmul.msk.bf16.gmra.mxu2 %vm5366_vm2, %v8975_v49 }
 0xb65   : > { %v5879_v41 = vpop.f32.mrf.mxu2 }
 0xb66   : > { %v15114_v1 = vadd.f32 %v5879_v41, %v5757_v63  ;;  %v6208_v63 = vpop.f32.mrf.mxu1  ;;  %v6004_v41 = vadd.f32 %v5968_v46, %v15046_v21  ;;  %v6518_v21 = vld [vmem:[%s15844_s11 + $0x30] sm:$0xff] }
 0xb67   : > { %v6245_v10 = vadd.f32 %v6208_v63, %v6128_v62  ;;  %v6439_v62 = vpop.permute.xlu1 %6438 }
 0xb68   : > { %v6129_v17 = vadd.f32 %v6093_v30, %v6004_v41 }
 0xb6d   : > { %v15116_v14 = vpop.f32.mrf.mxu2 }
 0xb6e   : > { %v6210_v31 = vpop.f32.mrf.mxu1 }
 0xb6f   : > { %v6246_v55 = vadd.f32 %v6210_v31, %v6129_v17  ;;  %v6098_v31 = vpop.f32.mrf.mxu0 }
 0xb75   : > { %v6344_v43 = vpop.f32.mrf.mxu2 }
 0xb76   : > { %v6384_v56 = vadd.f32 %v6344_v43, %v6243_v50  ;;  %v6213_v22 = vpop.f32.mrf.mxu1 }
 0xb78   : > { %v6496_v59 = vmul.f32 %v6419_v44, %v6384_v56  ;;  %v6541_v56 = vpop.permute.xlu2 %6540 }
 0xb7a   : > { %v15121_v11 = vadd.f32 %v6531_v48, %v6496_v59  ;;  %v6546_v59 = vpop.permute.xlu0 %6545 }
 0xb7c   : > { %v6624_v57 = vmax.f32 %v15121_v11, 0.0  ;;  %v6413_v11 = vld [vmem:[%s15843_s10 + $0x68] sm:$0xff] }
 0xb7d   : > { %v6346_v28 = vpop.f32.mrf.mxu2 }
 0xb7e   : > { %v6385_v54 = vadd.f32 %v6346_v28, %v6244_v58  ;;  %v5973_v28 = vpop.f32.mrf.mxu3  ;;  %v6215_v41 = vpop.f32.mrf.mxu1 }
 0xb7f   : > { %v6006_v47 = vadd.f32 %v5973_v28, %v15060_v33  ;;  %v6520_v33 = vld [vmem:[%s15844_s11 + $0x40] sm:$0xff] }
 0xb80   : > { %v6497_v18 = vmul.f32 %v6424_v27, %v6385_v54  ;;  %v6130_v54 = vadd.f32 %v6096_v37, %v6005_v16  ;;  %v6412_v28 = vld [vmem:[%s15843_s10 + $0x60] sm:$0xff] }
 0xb82   : > { %v15123_v9 = vadd.f32 %v6536_v40, %v6497_v18  ;;  %v6408_v18 = vld [vmem:[%s15843_s10 + $0x40] sm:$0xff]  ;;  %v6247_v40 = vadd.f32 %v6213_v22, %v6130_v54  ;;  %v6410_v22 = vld [vmem:[%s15843_s10 + $0x50] sm:$0xff]  ;;  %v6525_v54 = vld [vmem:[%s15844_s11 + $0x68] sm:$0xff] }
 0xb84   : > { %v6625_v49 = vmax.f32 %v15123_v9, 0.0 }
 0xb85   : > { %v6349_v45 = vpop.f32.mrf.mxu2 }
 0xb86   : > { %v9884_v25 = vpack.i.bf16 %v6625_v49, %v6624_v57  ;;  %v6386_v7 = vadd.f32 %v6349_v45, %v6245_v10  ;;  %v6131_v10 = vadd.f32 %v6098_v31, %v6006_v47  ;;  %v6527_v47 = vld [vmem:[%s15844_s11 + $0x78] sm:$0xff] }
 0xb88   : > { %9885 = vrot.lane.b32.xlu2 %v9884_v25, %s16555_s26  ;;  %v6498_v43 = vmul.f32 %v6429_v8, %v6386_v7  ;;  %v6248_v25 = vadd.f32 %v6215_v41, %v6131_v10 }
 0xb8a   : > { %v15137_v63 = vadd.f32 %v6541_v56, %v6498_v43 }
 0xb8c   : > { %v6626_v48 = vmax.f32 %v15137_v63, 0.0 }
 0xb8d   : > { %v6351_v50 = vpop.f32.mrf.mxu2 }
 0xb8e   : > { %v6387_v44 = vadd.f32 %v6351_v50, %v6246_v55  ;;  %v6551_v55 = vpop.permute.xlu0 %6550  ;;  %v6556_v50 = vpop.permute.xlu1 %6555 }
 0xb90   : > { %v6499_v58 = vmul.f32 %v6434_v24, %v6387_v44  ;;  %6560 = vperm.xlu2 %9662, %v6518_v21   ;;  %v6444_v24 = vpop.permute.xlu2 %6443 }
 0xb92   : > { %v15139_v27 = vadd.f32 %v6546_v59, %v6499_v58  ;;  %v6411_v58 = vld [vmem:[%s15843_s10 + $0x58] sm:$0xff] }
 0xb93   : > { %v6523_v59 = vld [vmem:[%s15844_s11 + $0x58] sm:$0xff] }
 0xb94   : > { %v6627_v46 = vmax.f32 %v15139_v27, 0.0 }
 0xb95   : > { %v6354_v19 = vpop.f32.mrf.mxu2 }
 0xb96   : > { %v9889_v30 = vpack.i.bf16 %v6627_v46, %v6626_v48  ;;  %v6388_v45 = vadd.f32 %v6354_v19, %v6247_v40  ;;  %v6414_v19 = vld [vmem:[%s15843_s10 + $0x70] sm:$0xff]  ;;  %v6101_v40 = vpop.f32.mrf.mxu0 }
 0xb98   : > { %9890 = vrot.lane.b32.xlu1 %v9889_v30, %s16555_s26  ;;  %6458 = vperm.xlu2 %9662, %v6408_v18   ;;  %v6500_v8 = vmul.f32 %v6439_v62, %v6388_v45  ;;  %v5976_v18 = vpop.f32.mrf.mxu3  ;;  %v6218_v30 = vpop.f32.mrf.mxu1 }
 0xb9a   : > { %v15158_v43 = vadd.f32 %v6551_v55, %v6500_v8 }
 0xb9c   : > { %v6628_v44 = vmax.f32 %v15158_v43, 0.0 }
 0xb9d   : > { %v6356_v7 = vpop.f32.mrf.mxu2 }
 0xb9e   : > { %v6389_v17 = vadd.f32 %v6356_v7, %v6248_v25  ;;  %v6103_v41 = vpop.f32.mrf.mxu0  ;;  %v6007_v25 = vadd.f32 %v5976_v18, %v15064_v15  ;;  %v6449_v7 = vpop.permute.xlu0 %6448 }
 0xba0   : > { %v6501_v37 = vmul.f32 %v6444_v24, %v6389_v17  ;;  %6570 = vperm.xlu1 %9661, %v6520_v33   ;;  %6575 = vperm.xlu2 %9662, %v6521_v39   ;;  %v5978_v31 = vpop.f32.mrf.mxu3  ;;  %v6220_v10 = vpop.f32.mrf.mxu1  ;;  %v6132_v17 = vadd.f32 %v6101_v40, %v6007_v25 }
 0xba1   : > { %v6008_v45 = vadd.f32 %v5978_v31, %v15072_v13  ;;  %v5500_v31 = vadd.f32 %v14960_v32, %v14970_v6 }
 0xba2   : > { %v15160_v21 = vadd.f32 %v6556_v50, %v6501_v37  ;;  %v6249_v37 = vadd.f32 %v6218_v30, %v6132_v17 }
 0xba3   : > { %v6133_v8 = vadd.f32 %v6103_v41, %v6008_v45  ;;  %v5635_v41 = vadd.f32 %v14965_v29, %v5500_v31  ;;  %v5505_v29 = vadd.f32 %v14981_v26, %v14987_v51 }
 0xba4   : > { %v6629_v56 = vmax.f32 %v15160_v21, 0.0 }
 0xba5   : > { %v6359_v62 = vpop.f32.mrf.mxu2  ;;  %v6250_v39 = vadd.f32 %v6220_v10, %v6133_v8  ;;  %v5752_v25 = vadd.f32 %v15006_v35, %v5635_v41 }
 0xba6   : > { %v9894_v16 = vpack.i.bf16 %v6629_v56, %v6628_v44  ;;  %v6106_v45 = vpop.f32.mrf.mxu0 }
 0xba8   : > { %9895 = vrot.lane.b32.xlu0 %v9894_v16, %s16555_s26  ;;  %6468 = vperm.xlu1 %9661, %v6410_v22   ;;  %v6454_v16 = vpop.permute.xlu1 %6453  ;;  %v5981_v30 = vpop.f32.mrf.mxu3 }
 0xba9   : > { %6473 = vperm.xlu2 %9662, %v6411_v58   ;;  %v6390_v58 = vadd.f32 %v6359_v62, %v6249_v37  ;;  %v6524_v62 = vld [vmem:[%s15844_s11 + $0x60] sm:$0xff]  ;;  %v6223_v10 = vpop.f32.mrf.mxu1 }
 0xbad   : > { %v6361_v33 = vpop.f32.mrf.mxu2 }
 0xbae   : > { %v6391_v24 = vadd.f32 %v6361_v33, %v6250_v39  ;;  %v6108_v17 = vpop.f32.mrf.mxu0 }
 0xbb0   : > { %6585 = vperm.xlu1 %9661, %v6523_v59   ;;  %v6503_v59 = vmul.f32 %v6454_v16, %v6391_v24  ;;  %v5983_v33 = vpop.f32.mrf.mxu3 }
 0xbb5   : > { %v6364_v8 = vpop.f32.mrf.mxu2 }
 0xbb8   : > { %6478 = vperm.xlu1 %9661, %v6412_v28   ;;  %v5986_v16 = vpop.f32.mrf.mxu3 }
 0xbb9   : > { %v6011_v41 = vadd.f32 %v5986_v16, %v15086_v12 }
 0xbbd   : > { %v6366_v32 = vpop.f32.mrf.mxu2 }
 0xbc0   : > { %6595 = vperm.xlu1 %9661, %v6525_v54   ;;  %v6566_v54 = vpop.permute.xlu0 %6565 }
 0xbc1   : > { %v15203_v18 = vadd.f32 %v6566_v54, %v6503_v59 }
 0xbc3   : > { %v6631_v9 = vmax.f32 %v15203_v18, 0.0 }
 0xbc5   : > { %v6369_v63 = vpop.f32.mrf.mxu2 }
 0xbc8   : > { %6488 = vperm.xlu1 %9661, %v6414_v19   ;;  %v6502_v19 = vmul.f32 %v6449_v7, %v6390_v58  ;;  %v5893_v7 = vadd.f32 %v15083_v23, %v5752_v25  ;;  %v6464_v37 = vpop.permute.xlu0 %6463  ;;  %v5988_v25 = vpop.f32.mrf.mxu3 }
 0xbca   : > { %v6010_v39 = vadd.f32 %v5983_v33, %v5893_v7 }
 0xbd0   : > { %6605 = vperm.xlu1 %9661, %v6527_v47   ;;  %v6581_v31 = vpop.permute.xlu0 %6580 }
 0xbe2   : > { %v9886_v55 = vpop.permute.xlu2 %9885 }
 0xbe3   : > { %v9888_v50 = vunpack.i.h.bf16 %v9886_v55  ;;  %v9887_v22 = vunpack.i.l.bf16 %v9886_v55  ;;  %v6225_v55 = vpop.f32.mrf.mxu1 }
 0xbe5   : > { %v15194_v13 = vmax.f32 %v6625_v49, %v9888_v50  ;;  %v15198_v15 = vmax.f32 %v6624_v57, %v9887_v22  ;;  %v6009_v50 = vadd.f32 %v5981_v30, %v15075_v52  ;;  %v6135_v22 = vadd.f32 %v6108_v17, %v6010_v39 }
 0xbe7   : > { %v9904_v28 = vpack.i.bf16 %v15194_v13, %v15198_v15  ;;  %v6252_v6 = vadd.f32 %v6225_v55, %v6135_v22  ;;  %v6134_v35 = vadd.f32 %v6106_v45, %v6009_v50 }
 0xbe9   : > { %9905 = vrot.lane.b32.xlu2 %v9904_v28, %s16585_s19  ;;  %v6393_v59 = vadd.f32 %v6366_v32, %v6252_v6  ;;  %v6251_v54 = vadd.f32 %v6223_v10, %v6134_v35 }
 0xbea   : > { %v6561_v47 = vpop.permute.xlu2 %6560 }
 0xbeb   : > { %v15205_v40 = vadd.f32 %v6561_v47, %v6502_v19  ;;  %v6111_v47 = vpop.f32.mrf.mxu0  ;;  %v6228_v26 = vpop.f32.mrf.mxu1  ;;  %v6392_v51 = vadd.f32 %v6364_v8, %v6251_v54  ;;  %v6505_v30 = vmul.f32 %v6464_v37, %v6393_v59 }
 0xbec   : > { %v6136_v33 = vadd.f32 %v6111_v47, %v6011_v41 }
 0xbed   : > { %v6630_v49 = vmax.f32 %v15205_v40, 0.0 }
 0xbef   : > { %v9899_v57 = vpack.i.bf16 %v6631_v9, %v6630_v49 }
 0xbf1   : > { %9900 = vrot.lane.b32.xlu0 %v9899_v57, %s16555_s26  ;;  %6483 = vperm.xlu2 %9662, %v6413_v11   ;;  %v5637_v57 = vadd.f32 %v14983_v34, %v5505_v29  ;;  %v6371_v29 = vpop.f32.mrf.mxu2 }
 0xbf2   : > { %v6459_v24 = vpop.permute.xlu2 %6458 }
 0xbf3   : > { %v5754_v45 = vadd.f32 %v15021_v61, %v5637_v57  ;;  %v6504_v27 = vmul.f32 %v6459_v24, %v6392_v51  ;;  %v6415_v61 = vld [vmem:[%s15843_s10 + $0x78] sm:$0xff]  ;;  %v6113_v17 = vpop.f32.mrf.mxu0  ;;  %v6230_v24 = vpop.f32.mrf.mxu1 }
 0xbf5   : > { %v5895_v34 = vadd.f32 %v15094_v2, %v5754_v45  ;;  %v6253_v2 = vadd.f32 %v6228_v26, %v6136_v33 }
 0xbf7   : > { %v6012_v39 = vadd.f32 %v5988_v25, %v5895_v34  ;;  %v6394_v22 = vadd.f32 %v6369_v63, %v6253_v2  ;;  %v5991_v63 = vpop.f32.mrf.mxu3 }
 0xbf9   : > { %6590 = vperm.xlu0 %9803, %v6524_v62   ;;  %v6137_v50 = vadd.f32 %v6113_v17, %v6012_v39  ;;  %v6374_v33 = vpop.f32.mrf.mxu2 }
 0xbfa   : > { %v6576_v11 = vpop.permute.xlu2 %6575 }
 0xbfb   : > { %v6254_v16 = vadd.f32 %v6230_v24, %v6137_v50  ;;  %v6116_v41 = vpop.f32.mrf.mxu0  ;;  %v6233_v25 = vpop.f32.mrf.mxu1  ;;  %v6013_v24 = vadd.f32 %v5991_v63, %v15097_v3 }
 0xbfd   : > { %v6395_v54 = vadd.f32 %v6371_v29, %v6254_v16 }
 0xc03   : > { %v6235_v17 = vpop.f32.mrf.mxu1 }
 0xc0a   : > { %v9891_v58 = vpop.permute.xlu1 %9890 }
 0xc0b   : > { %v9893_v28 = vunpack.i.h.bf16 %v9891_v58  ;;  %v9892_v23 = vunpack.i.l.bf16 %v9891_v58 }
 0xc0d   : > { %v15230_v19 = vmax.f32 %v6627_v46, %v9893_v28  ;;  %v15234_v52 = vmax.f32 %v6626_v48, %v9892_v23  ;;  %v15240_v46 = vadd.f32 %v6576_v11, %v6505_v30  ;;  %v6474_v28 = vpop.permute.xlu2 %6473  ;;  %v6526_v23 = vld [vmem:[%s15844_s11 + $0x70] sm:$0xff] }
 0xc0e   : > { %v6507_v11 = vmul.f32 %v6474_v28, %v6395_v54 }
 0xc0f   : > { %v9914_v62 = vpack.i.bf16 %v15230_v19, %v15234_v52  ;;  %v6633_v8 = vmax.f32 %v15240_v46, 0.0 }
 0xc11   : > { %9915 = vrot.lane.b32.xlu2 %v9914_v62, %s16585_s19 }
 0xc12   : > { %v6571_v48 = vpop.permute.xlu1 %6570 }
 0xc13   : > { %v15245_v10 = vadd.f32 %v6571_v48, %v6504_v27  ;;  %v5510_v48 = vadd.f32 %v14997_v36, %v15001_v38 }
 0xc15   : > { %v6632_v7 = vmax.f32 %v15245_v10, 0.0  ;;  %v5639_v34 = vadd.f32 %v14999_v0, %v5510_v48 }
 0xc17   : > { %v9909_v12 = vpack.i.bf16 %v6633_v8, %v6632_v7 }
 0xc19   : > { %9910 = vrot.lane.b32.xlu0 %v9909_v12, %s16555_s26  ;;  %6493 = vperm.xlu2 %9662, %v6415_v61   ;;  %v5756_v61 = vadd.f32 %v15037_v60, %v5639_v34  ;;  %v6238_v34 = vpop.f32.mrf.mxu1 }
 0xc1a   : > { %v9896_v55 = vpop.permute.xlu0 %9895  ;;  %v6469_v37 = vpop.permute.xlu1 %6468 }
 0xc1b   : > { %v9898_v32 = vunpack.i.h.bf16 %v9896_v55  ;;  %v9897_v6 = vunpack.i.l.bf16 %v9896_v55  ;;  %v6506_v59 = vmul.f32 %v6469_v37, %v6394_v22  ;;  %v5897_v39 = vadd.f32 %v15111_v4, %v5756_v61  ;;  %v6376_v37 = vpop.f32.mrf.mxu2 }
 0xc1c   : > { %v6138_v22 = vadd.f32 %v6116_v41, %v6013_v24 }
 0xc1d   : > { %v15259_v58 = vmax.f32 %v6629_v56, %v9898_v32  ;;  %v15263_v35 = vmax.f32 %v6628_v44, %v9897_v6  ;;  %v15270_v57 = vadd.f32 %v6581_v31, %v6506_v59 }
 0xc1e   : > { %v6255_v60 = vadd.f32 %v6233_v25, %v6138_v22 }
 0xc1f   : > { %v9919_v47 = vpack.i.bf16 %v15259_v58, %v15263_v35  ;;  %v6634_v44 = vmax.f32 %v15270_v57, 0.0 }
 0xc20   : > { %v6396_v3 = vadd.f32 %v6374_v33, %v6255_v60 }
 0xc21   : > { %6600 = vperm.xlu0 %9803, %v6526_v23   ;;  %9920 = vrot.lane.b32.xlu2 %v9919_v47, %s16585_s19 }
 0xc22   : > { %v6586_v21 = vpop.permute.xlu1 %6585 }
 0xc23   : > { %v15273_v43 = vadd.f32 %v6586_v21, %v6507_v11 }
 0xc25   : > { %v6635_v56 = vmax.f32 %v15273_v43, 0.0 }
 0xc27   : > { %v9924_v26 = vpack.i.bf16 %v6635_v56, %v6634_v44 }
 0xc29   : > { %9925 = vrot.lane.b32.xlu0 %v9924_v26, %s16555_s26 }
 0xc2a   : > { %v6479_v2 = vpop.permute.xlu1 %6478 }
 0xc2b   : > { %v6508_v23 = vmul.f32 %v6479_v2, %v6396_v3 }
 0xc32   : > { %v6596_v28 = vpop.permute.xlu1 %6595 }
 0xc43   : > { %v9906_v51 = vpop.permute.xlu2 %9905 }
 0xc44   : > { %v9908_v30 = vunpack.i.h.bf16 %v9906_v51  ;;  %v9907_v62 = vunpack.i.l.bf16 %v9906_v51 }
 0xc46   : > { %v6785_v31 = vmax.f32 %v15194_v13, %v9908_v30  ;;  %v6784_v45 = vmax.f32 %v15198_v15, %v9907_v62  ;;  %v5993_v13 = vpop.f32.mrf.mxu3  ;;  %v6118_v15 = vpop.f32.mrf.mxu0 }
 0xc47   : > { %v6014_v12 = vadd.f32 %v5993_v13, %v5897_v39  ;;  %v6379_v39 = vpop.f32.mrf.mxu2 }
 0xc48   : > { %v6800_v27 = vpack.c.bf16 %v6785_v31, %v6784_v45 }
 0xc49   : > { %v6139_v55 = vadd.f32 %v6118_v15, %v6014_v12 }
 0xc4a   : > { %8988 = vmatmul.msk.bf16.vlgmr.msrb.gmra.mxu3 %vm6815_vm5, %v6800_v27  ;;  %v5515_v27 = vadd.f32 %v15099_v20, %v15014_v5 }
 0xc4b   : > { %v6256_v50 = vadd.f32 %v6235_v17, %v6139_v55  ;;  %v6484_v36 = vpop.permute.xlu2 %6483  ;;  %v6240_v17 = vpop.f32.mrf.mxu1 }
 0xc4d   : > { %v6397_v0 = vadd.f32 %v6376_v37, %v6256_v50 }
 0xc4e   : > { %v5996_v45 = vpop.f32.mrf.mxu3  ;;  %v6121_v63 = vpop.f32.mrf.mxu0 }
 0xc4f   : > { %v6509_v29 = vmul.f32 %v6484_v36, %v6397_v0  ;;  %v6015_v2 = vadd.f32 %v5996_v45, %v15114_v1  ;;  %v6381_v55 = vpop.f32.mrf.mxu2 }
 0xc51   : > { %v15301_v54 = vadd.f32 %v6596_v28, %v6509_v29 }
 0xc53   : > { %v6637_v40 = vmax.f32 %v15301_v54, 0.0 }
 0xc56   : > { %v5998_v15 = vpop.f32.mrf.mxu3  ;;  %v6123_v20 = vpop.f32.mrf.mxu0 }
 0xc63   : > { %v9901_v38 = vpop.permute.xlu0 %9900 }
 0xc64   : > { %v9903_v32 = vunpack.i.h.bf16 %v9901_v38  ;;  %v9902_v6 = vunpack.i.l.bf16 %v9901_v38 }
 0xc66   : > { %v15293_v4 = vmax.f32 %v6631_v9, %v9903_v32  ;;  %v15297_v16 = vmax.f32 %v6630_v49, %v9902_v6 }
 0xc68   : > { %v9929_v59 = vpack.i.bf16 %v15293_v4, %v15297_v16 }
 0xc6a   : > { %9930 = vrot.lane.b32.xlu1 %v9929_v59, %s16585_s19 }
 0xc6b   : > { %v6591_v47 = vpop.permute.xlu0 %6590  ;;  %v9916_v11 = vpop.permute.xlu2 %9915 }
 0xc6c   : > { %v15304_v21 = vadd.f32 %v6591_v47, %v6508_v23  ;;  %v9918_v18 = vunpack.i.h.bf16 %v9916_v11  ;;  %v9917_v9 = vunpack.i.l.bf16 %v9916_v11 }
 0xc6e   : > { %v6636_v49 = vmax.f32 %v15304_v21, 0.0  ;;  %v6787_v26 = vmax.f32 %v15230_v19, %v9918_v18  ;;  %v6786_v51 = vmax.f32 %v15234_v52, %v9917_v9  ;;  %v5641_v19 = vadd.f32 %v15107_v53, %v5515_v27  ;;  %v6489_v53 = vpop.permute.xlu1 %6488 }
 0xc70   : > { %v9934_v30 = vpack.i.bf16 %v6637_v40, %v6636_v49  ;;  %v6801_v62 = vpack.c.bf16 %v6787_v26, %v6786_v51  ;;  %v5758_v25 = vadd.f32 %v15109_v42, %v5641_v19 }
 0xc72   : > { %9935 = vrot.lane.b32.xlu2 %v9934_v30, %s16555_s26  ;;  %8989 = vmatmul.msk.bf16.gmra.mxu3 %vm6815_vm5, %v6801_v62  ;;  %v5899_v13 = vadd.f32 %v15116_v14, %v5758_v25 }
 0xc73   : > { %v6494_v31 = vpop.permute.xlu2 %6493 }
 0xc74   : > { %v6016_v5 = vadd.f32 %v5998_v15, %v5899_v13 }
 0xc76   : > { %v6141_v24 = vadd.f32 %v6123_v20, %v6016_v5  ;;  %v6606_v60 = vpop.permute.xlu1 %6605 }
 0xc78   : > { %v6258_v42 = vadd.f32 %v6240_v17, %v6141_v24 }
 0xc7a   : > { %v6399_v50 = vadd.f32 %v6381_v55, %v6258_v42 }
 0xc7b   : > { %v9921_v48 = vpop.permute.xlu2 %9920 }
 0xc7c   : > { %v9923_v52 = vunpack.i.h.bf16 %v9921_v48  ;;  %v9922_v41 = vunpack.i.l.bf16 %v9921_v48  ;;  %v6511_v14 = vmul.f32 %v6494_v31, %v6399_v50 }
 0xc7e   : > { %v6789_v61 = vmax.f32 %v15259_v58, %v9923_v52  ;;  %v6788_v33 = vmax.f32 %v15263_v35, %v9922_v41  ;;  %v6140_v58 = vadd.f32 %v6121_v63, %v6015_v2  ;;  %v6623_v29 = vadd.f32 %v6606_v60, %v6511_v14 }
 0xc80   : > { %v6802_v12 = vpack.c.bf16 %v6789_v61, %v6788_v33  ;;  %v6257_v38 = vadd.f32 %v6238_v34, %v6140_v58  ;;  %v6639_v28 = vmax.f32 %v6623_v29, 0.0 }
 0xc82   : > { %8990 = vmatmul.msk.bf16.gmra.mxu3 %vm6815_vm5, %v6802_v12  ;;  %v6398_v32 = vadd.f32 %v6379_v39, %v6257_v38 }
 0xc84   : > { %v6510_v1 = vmul.f32 %v6489_v53, %v6398_v32 }
 0xc8b   : > { %v9911_v37 = vpop.permute.xlu0 %9910 }
 0xc8c   : > { %v9913_v35 = vunpack.i.h.bf16 %v9911_v37  ;;  %v9912_v36 = vunpack.i.l.bf16 %v9911_v37 }
 0xc8e   : > { %v6713_v22 = vmax.f32 %v6633_v8, %v9913_v35  ;;  %v6712_v0 = vmax.f32 %v6632_v7, %v9912_v36 }
 0xc90   : > { %v9939_v6 = vpack.i.bf16 %v6713_v22, %v6712_v0 }
 0xc92   : > { %9940 = vrot.lane.b32.xlu0 %v9939_v6, %s16585_s19 }
 0xc93   : > { %v6601_v3 = vpop.permute.xlu0 %6600 }
 0xc94   : > { %v6622_v59 = vadd.f32 %v6601_v3, %v6510_v1 }
 0xc96   : > { %v6638_v23 = vmax.f32 %v6622_v59, 0.0 }
 0xc98   : > { %v9944_v47 = vpack.i.bf16 %v6639_v28, %v6638_v23 }
 0xc9a   : > { %9945 = vrot.lane.b32.xlu1 %v9944_v47, %s16555_s26 }
 0xc9b   : > { %v9926_v11 = vpop.permute.xlu0 %9925 }
 0xc9c   : > { %v9928_v46 = vunpack.i.h.bf16 %v9926_v11  ;;  %v9927_v8 = vunpack.i.l.bf16 %v9926_v11 }
 0xc9e   : > { %v6715_v10 = vmax.f32 %v6635_v56, %v9928_v46  ;;  %v6714_v7 = vmax.f32 %v6634_v44, %v9927_v8 }
 0xca0   : > { %v9949_v18 = vpack.i.bf16 %v6715_v10, %v6714_v7 }
 0xca2   : > { %9950 = vrot.lane.b32.xlu2 %v9949_v18, %s16585_s19 }
 0xccc   : > { %v9936_v9 = vpop.permute.xlu2 %9935 }
 0xccd   : > { %v9938_v26 = vunpack.i.h.bf16 %v9936_v9  ;;  %v9937_v51 = vunpack.i.l.bf16 %v9936_v9  ;;  %v15347_v15 = vpop.f32.mrf.mxu3 }
 0xccf   : > { %v6717_v30 = vmax.f32 %v6637_v40, %v9938_v26  ;;  %v6716_v62 = vmax.f32 %v6636_v49, %v9937_v51 }
 0xcd1   : > { %v9954_v31 = vpack.i.bf16 %v6717_v30, %v6716_v62 }
 0xcd3   : > { %9955 = vrot.lane.b32.xlu0 %v9954_v31, %s16585_s19 }
 0xcd5   : > { %v15350_v55 = vpop.f32.mrf.mxu3 }
 0xcdc   : > { %v9931_v43 = vpop.permute.xlu1 %9930 }
 0xcdd   : > { %v9933_v56 = vunpack.i.h.bf16 %v9931_v43  ;;  %v9932_v45 = vunpack.i.l.bf16 %v9931_v43 }
 0xcdf   : > { %v6791_v57 = vmax.f32 %v15293_v4, %v9933_v56  ;;  %v6790_v44 = vmax.f32 %v15297_v16, %v9932_v45 }
 0xce1   : > { %v6803_v27 = vpack.c.bf16 %v6791_v57, %v6790_v44 }
 0xce3   : > { %8991 = vmatmul.msk.bf16.gmra.mxu3 %vm6815_vm5, %v6803_v27 }
 0xcf5   : > { %v15352_v42 = vpop.f32.mrf.mxu3 }
 0xcfc   : > { %v9951_v34 = vpop.permute.xlu2 %9950 }
 0xcfd   : > { %v9953_v4 = vunpack.i.h.bf16 %v9951_v34  ;;  %v9952_v33 = vunpack.i.l.bf16 %v9951_v34  ;;  %v15354_v37 = vpop.f32.mrf.mxu3 }
 0xcff   : > { %v6795_v39 = vmax.f32 %v6715_v10, %v9953_v4  ;;  %v6794_v13 = vmax.f32 %v6714_v7, %v9952_v33  ;;  %v6898_v33 = vpack.c.bf16 %v15352_v42, %v15352_v42 }
 0xd01   : > { %v6805_v12 = vpack.c.bf16 %v6795_v39, %v6794_v13  ;;  %v6897_v39 = vpack.c.bf16 %v15350_v55, %v15350_v55  ;;  %v7090_v13 = vunpack.c.l.b16 %v6898_v33  ;;  %v9575_v33 = vld [vmem:[%s15846_s13 + $0x1b0] sm:$0xff] }
 0xd04   : > { %v9941_v63 = vpop.permute.xlu0 %9940 }
 0xd05   : > { %v9943_v48 = vunpack.i.h.bf16 %v9941_v63  ;;  %v9942_v54 = vunpack.i.l.bf16 %v9941_v63  ;;  %v15356_v58 = vpop.f32.mrf.mxu3 }
 0xd07   : > { %v6793_v40 = vmax.f32 %v6713_v22, %v9943_v48  ;;  %v6792_v19 = vmax.f32 %v6712_v0, %v9942_v54 }
 0xd09   : > { %v6804_v21 = vpack.c.bf16 %v6793_v40, %v6792_v19 }
 0xd0b   : > { %8992 = vmatmul.msk.bf16.gmra.mxu3 %vm6815_vm5, %v6804_v21 }
 0xd0c   : > { %v9946_v49 = vpop.permute.xlu1 %9945 }
 0xd0d   : > { %v9948_v52 = vunpack.i.h.bf16 %v9946_v49  ;;  %v9947_v41 = vunpack.i.l.bf16 %v9946_v49  ;;  %v15358_v50 = vpop.f32.mrf.mxu3 }
 0xd0e   : > { %v6901_v49 = vpack.c.bf16 %v15358_v50, %v15358_v50 }
 0xd0f   : > { %v6719_v25 = vmax.f32 %v6639_v28, %v9948_v52  ;;  %v6718_v61 = vmax.f32 %v6638_v23, %v9947_v41  ;;  %v6900_v41 = vpack.c.bf16 %v15356_v58, %v15356_v58 }
 0xd10   : > { %v7093_v34 = vunpack.c.l.b16 %v6901_v49  ;;  %v9559_v49 = vld [vmem:[%s15846_s13 + $0x130] sm:$0xff] }
 0xd11   : > { %v9959_v16 = vpack.i.bf16 %v6719_v25, %v6718_v61 }
 0xd13   : > { %9960 = vrot.lane.b32.xlu1 %v9959_v16, %s16585_s19 }
 0xd1b   : > { %8993 = vmatmul.msk.bf16.gmra.mxu3 %vm6815_vm5, %v6805_v12  ;;  %v6896_v12 = vpack.c.bf16 %v15347_v15, %v15347_v15 }
 0xd45   : > { %v9956_v5 = vpop.permute.xlu0 %9955 }
 0xd46   : > { %v9958_v20 = vunpack.i.h.bf16 %v9956_v5  ;;  %v9957_v17 = vunpack.i.l.bf16 %v9956_v5 }
 0xd48   : > { %v6797_v53 = vmax.f32 %v6717_v30, %v9958_v20  ;;  %v6796_v2 = vmax.f32 %v6716_v62, %v9957_v17  ;;  %v7089_v20 = vunpack.c.l.b16 %v6897_v39  ;;  %v7088_v17 = vunpack.c.l.b16 %v6896_v12  ;;  %v9530_v12 = vld [vmem:[%s15846_s13 + $0x48] sm:$0xff] }
 0xd4a   : > { %v6806_v24 = vpack.c.bf16 %v6797_v53, %v6796_v2  ;;  %v7104_v53 = vpack.c.b16 %v7089_v20, %v7088_v17  ;;  %v9576_v20 = vld [vmem:[%s15846_s13 + $0x1b8] sm:$0xff] }
 0xd4c   : > { %8994 = vmatmul.msk.bf16.gmra.mxu3 %vm6815_vm5, %v6806_v24 }
 0xd66   : > { %v6871_v35 = vpop.f32.mrf.mxu3 }
 0xd67   : > { %v6902_v40 = vpack.c.bf16 %v6871_v35, %v6871_v35 }
 0xd69   : > { %v7094_v21 = vunpack.c.l.b16 %v6902_v40  ;;  %v9541_v40 = vld [vmem:[%s15846_s13 + $0xa0] sm:$0xff] }
 0xd6e   : > { %v6873_v38 = vpop.f32.mrf.mxu3 }
 0xd6f   : > { %v6903_v48 = vpack.c.bf16 %v6873_v38, %v6873_v38 }
 0xd71   : > { %v7095_v19 = vunpack.c.l.b16 %v6903_v48  ;;  %v9527_v48 = vld [vmem:[%s15846_s13 + $0x30] sm:$0xff] }
 0xd73   : > { %v7107_v52 = vpack.c.b16 %v7095_v19, %v7094_v21  ;;  %v9573_v19 = vld [vmem:[%s15846_s13 + $0x1a0] sm:$0xff]  ;;  %v9528_v21 = vld [vmem:[%s15846_s13 + $0x38] sm:$0xff] }
 0xd85   : > { %v9961_v36 = vpop.permute.xlu1 %9960 }
 0xd86   : > { %v9963_v14 = vunpack.i.h.bf16 %v9961_v36  ;;  %v9962_v22 = vunpack.i.l.bf16 %v9961_v36 }
 0xd88   : > { %v6799_v0 = vmax.f32 %v6719_v25, %v9963_v14  ;;  %v6798_v32 = vmax.f32 %v6718_v61, %v9962_v22  ;;  %v7092_v25 = vunpack.c.l.b16 %v6900_v41  ;;  %v6899_v61 = vpack.c.bf16 %v15354_v37, %v15354_v37  ;;  %v9521_v22 = vld [vmem:[%s15846_s13] sm:$0xff]  ;;  %v9574_v41 = vld [vmem:[%s15846_s13 + $0x1a8] sm:$0xff] }
 0xd8a   : > { %v6807_v6 = vpack.c.bf16 %v6799_v0, %v6798_v32  ;;  %v7106_v4 = vpack.c.b16 %v7093_v34, %v7092_v25  ;;  %v7091_v16 = vunpack.c.l.b16 %v6899_v61  ;;  %v9529_v34 = vld [vmem:[%s15846_s13 + $0x40] sm:$0xff]  ;;  %v9560_v61 = vld [vmem:[%s15846_s13 + $0x138] sm:$0xff] }
 0xd8c   : > { %8995 = vmatmul.msk.bf16.gmra.mxu3 %vm6815_vm5, %v6807_v6  ;;  %v7105_v5 = vpack.c.b16 %v7091_v16, %v7090_v13  ;;  %v9561_v13 = vld [vmem:[%s15846_s13 + $0x140] sm:$0xff] }
 0xd8e   : > { %v6876_v60 = vpop.f32.mrf.mxu3 }
 0xd8f   : > { %v6904_v1 = vpack.c.bf16 %v6876_v60, %v6876_v60  ;;  %v9522_v60 = vld [vmem:[%s15846_s13 + $0x8] sm:$0xff] }
 0xd91   : > { %v7096_v59 = vunpack.c.l.b16 %v6904_v1 }
 0xd96   : > { %v6878_v29 = vpop.f32.mrf.mxu3 }
 0xd97   : > { %v6905_v3 = vpack.c.bf16 %v6878_v29, %v6878_v29 }
 0xd99   : > { %v7097_v28 = vunpack.c.l.b16 %v6905_v3 }
 0xd9b   : > { %v7108_v23 = vpack.c.b16 %v7097_v28, %v7096_v59  ;;  %v9553_v59 = vld [vmem:[%s15846_s13 + $0x100] sm:$0xff] }
 0xd9d   : > { %7378 = vrot.lane.b32.xlu1 %v7108_v23, %s16555_s26  ;;  %7926 = vrot.lane.b32.xlu0 %v7108_v23, %s10003_s23 }
 0xd9e   : > { %7652 = vrot.lane.b32.xlu2 %v7108_v23, %s16557_s20  ;;  %v6881_v47 = vpop.f32.mrf.mxu3 }
 0xd9f   : > { %v6906_v11 = vpack.c.bf16 %v6881_v47, %v6881_v47  ;;  %v9523_v47 = vld [vmem:[%s15846_s13 + $0x10] sm:$0xff] }
 0xda1   : > { %v7098_v10 = vunpack.c.l.b16 %v6906_v11 }
 0xda6   : > { %v6883_v46 = vpop.f32.mrf.mxu3 }
 0xda7   : > { %v6907_v8 = vpack.c.bf16 %v6883_v46, %v6883_v46 }
 0xda9   : > { %v7099_v7 = vunpack.c.l.b16 %v6907_v8  ;;  %v9554_v8 = vld [vmem:[%s15846_s13 + $0x108] sm:$0xff] }
 0xdab   : > { %v7109_v18 = vpack.c.b16 %v7099_v7, %v7098_v10 }
 0xdad   : > { %7380 = vrot.lane.b32.xlu1 %v7109_v18, %s16555_s26  ;;  %7928 = vrot.lane.b32.xlu0 %v7109_v18, %s10003_s23 }
 0xdae   : > { %7654 = vrot.lane.b32.xlu2 %v7109_v18, %s16557_s20 }
 0xdcf   : > { %v6886_v9 = vpop.f32.mrf.mxu3 }
 0xdd0   : > { %v6908_v26 = vpack.c.bf16 %v6886_v9, %v6886_v9  ;;  %v9569_v9 = vld [vmem:[%s15846_s13 + $0x180] sm:$0xff] }
 0xdd2   : > { %v7100_v62 = vunpack.c.l.b16 %v6908_v26  ;;  %v9524_v26 = vld [vmem:[%s15846_s13 + $0x18] sm:$0xff] }
 0xdd7   : > { %v6888_v51 = vpop.f32.mrf.mxu3 }
 0xdd8   : > { %v6909_v30 = vpack.c.bf16 %v6888_v51, %v6888_v51  ;;  %v9555_v51 = vld [vmem:[%s15846_s13 + $0x110] sm:$0xff] }
 0xdda   : > { %v7101_v31 = vunpack.c.l.b16 %v6909_v30  ;;  %v9538_v30 = vld [vmem:[%s15846_s13 + $0x88] sm:$0xff] }
 0xddc   : > { %v7110_v43 = vpack.c.b16 %v7101_v31, %v7100_v62  ;;  %v9570_v62 = vld [vmem:[%s15846_s13 + $0x188] sm:$0xff]  ;;  %v9525_v31 = vld [vmem:[%s15846_s13 + $0x20] sm:$0xff] }
 0xdde   : > { %7382 = vrot.lane.b32.xlu1 %v7110_v43, %s16555_s26  ;;  %7930 = vrot.lane.b32.xlu0 %v7110_v43, %s10003_s23 }
 0xddf   : > { %7656 = vrot.lane.b32.xlu2 %v7110_v43, %s16557_s20 }
 0xdf8   : > { %v7653_v15 = vpop.permute.xlu2 %7652 }
 0xe08   : > { %v7655_v2 = vpop.permute.xlu2 %7654 }
 0xe0f   : > { %v6891_v56 = vpop.f32.mrf.mxu3  ;;  %v7379_v55 = vpop.permute.xlu1 %7378 }
 0xe10   : > { %v6910_v45 = vpack.c.bf16 %v6891_v56, %v6891_v56  ;;  %v7927_v42 = vpop.permute.xlu0 %7926  ;;  %v9539_v56 = vld [vmem:[%s15846_s13 + $0x90] sm:$0xff] }
 0xe12   : > { %v7102_v27 = vunpack.c.l.b16 %v6910_v45  ;;  %v9571_v45 = vld [vmem:[%s15846_s13 + $0x190] sm:$0xff] }
 0xe17   : > { %v6893_v57 = vpop.f32.mrf.mxu3 }
 0xe18   : > { %v6911_v44 = vpack.c.bf16 %v6893_v57, %v6893_v57  ;;  %v9526_v57 = vld [vmem:[%s15846_s13 + $0x28] sm:$0xff] }
 0xe1a   : > { %v7103_v63 = vunpack.c.l.b16 %v6911_v44  ;;  %v9557_v44 = vld [vmem:[%s15846_s13 + $0x120] sm:$0xff] }
 0xe1c   : > { %v7111_v54 = vpack.c.b16 %v7103_v63, %v7102_v27  ;;  %v9540_v27 = vld [vmem:[%s15846_s13 + $0x98] sm:$0xff] }
 0xe1d   : > { %v9572_v63 = vld [vmem:[%s15846_s13 + $0x198] sm:$0xff] }
 0xe1e   : > { %7384 = vrot.lane.b32.xlu1 %v7111_v54, %s16555_s26  ;;  %7932 = vrot.lane.b32.xlu0 %v7111_v54, %s10003_s23 }
 0xe1f   : > { %7658 = vrot.lane.b32.xlu2 %v7111_v54, %s16557_s20  ;;  %7120 = vmatpush.bf16.msra.mxu0 %v7111_v54  ;;  %v7381_v58 = vpop.permute.xlu1 %7380  ;;  %v7929_v50 = vpop.permute.xlu0 %7928  ;;  %v9558_v54 = vld [vmem:[%s15846_s13 + $0x128] sm:$0xff] }
 0xe23   : > { %7121 = vmatpush.bf16.msra.mxu0 %v7110_v43  ;;  %v9556_v43 = vld [vmem:[%s15846_s13 + $0x118] sm:$0xff] }
 0xe26   : > { %7376 = vrot.lane.b32.xlu1 %v7107_v52, %s16555_s26  ;;  %7924 = vrot.lane.b32.xlu0 %v7107_v52, %s10003_s23 }
 0xe27   : > { %7650 = vrot.lane.b32.xlu2 %v7107_v52, %s16557_s20  ;;  %7122 = vmatpush.bf16.msra.mxu0 %v7109_v18  ;;  %v9537_v18 = vld [vmem:[%s15846_s13 + $0x80] sm:$0xff] }
 0xe2b   : > { %7123 = vmatpush.bf16.msra.mxu0 %v7108_v23 }
 0xe2e   : > { %7374 = vrot.lane.b32.xlu1 %v7106_v4, %s16555_s26  ;;  %7922 = vrot.lane.b32.xlu0 %v7106_v4, %s10003_s23 }
 0xe2f   : > { %7648 = vrot.lane.b32.xlu2 %v7106_v4, %s16557_s20  ;;  %7124 = vmatpush.bf16.msra.mxu0 %v7107_v52  ;;  %v9542_v52 = vld [vmem:[%s15846_s13 + $0xa8] sm:$0xff] }
 0xe33   : > { %7125 = vmatpush.bf16.msra.mxu0 %v7106_v4  ;;  %v9543_v4 = vld [vmem:[%s15846_s13 + $0xb0] sm:$0xff] }
 0xe36   : > { %7372 = vrot.lane.b32.xlu1 %v7105_v5, %s16555_s26  ;;  %7920 = vrot.lane.b32.xlu0 %v7105_v5, %s10003_s23 }
 0xe37   : > { %7646 = vrot.lane.b32.xlu2 %v7105_v5, %s16557_s20  ;;  %7126 = vmatpush.bf16.msra.mxu0 %v7105_v5  ;;  %v9544_v5 = vld [vmem:[%s15846_s13 + $0xb8] sm:$0xff] }
 0xe39   : > { %v7657_v24 = vpop.permute.xlu2 %7656 }
 0xe3b   : > { %7127 = vmatpush.bf16.msra.mxu0 %v7104_v53 }
 0xe3e   : > { %7370 = vrot.lane.b32.xlu1 %v7104_v53, %s16555_s26  ;;  %7918 = vrot.lane.b32.xlu0 %v7104_v53, %s10003_s23 }
 0xe3f   : > { %7644 = vrot.lane.b32.xlu2 %v7104_v53, %s16557_s20  ;;  %7128 = vmatmul.bf16.vlgmr.msra.gmra.mxu0 %v9521_v22 }
 0xe4f   : > { %7133 = vmatmul.bf16.gmra.mxu0 %v9522_v60 }
 0xe50   : > { %v7383_v36 = vpop.permute.xlu1 %7382  ;;  %v7931_v38 = vpop.permute.xlu0 %7930 }
 0xe5f   : > { %7138 = vmatmul.bf16.gmra.mxu0 %v9523_v47  ;;  %v6914_v47 = vld [vmem:[%s15847_s14 + $0x10] sm:$0xff] }
 0xe6f   : > { %7143 = vmatmul.bf16.gmra.mxu0 %v9524_v26 }
 0xe79   : > { %v7659_v37 = vpop.permute.xlu2 %7658 }
 0xe7a   : > { %7668 = vmatpush.bf16.msrb.mxu2 %v7659_v37 }
 0xe7e   : > { %7669 = vmatpush.bf16.msrb.mxu2 %v7657_v24 }
 0xe7f   : > { %7148 = vmatmul.bf16.gmra.mxu0 %v9525_v31 }
 0xe81   : > { %v7651_v35 = vpop.permute.xlu2 %7650 }
 0xe82   : > { %7670 = vmatpush.bf16.msrb.mxu2 %v7655_v2  ;;  %v9562_v2 = vld [vmem:[%s15846_s13 + $0x148] sm:$0xff] }
 0xe86   : > { %7671 = vmatpush.bf16.msrb.mxu2 %v7653_v15 }
 0xe89   : > { %v7649_v14 = vpop.permute.xlu2 %7648 }
 0xe8a   : > { %7672 = vmatpush.bf16.msrb.mxu2 %v7651_v35 }
 0xe8e   : > { %7673 = vmatpush.bf16.msrb.mxu2 %v7649_v14 }
 0xe8f   : > { %7153 = vmatmul.bf16.gmra.mxu0 %v9526_v57 }
 0xe90   : > { %v7385_v0 = vpop.permute.xlu1 %7384  ;;  %v7933_v32 = vpop.permute.xlu0 %7932 }
 0xe91   : > { %v7647_v6 = vpop.permute.xlu2 %7646  ;;  %7394 = vmatpush.bf16.msra.mxu1 %v7385_v0  ;;  %7942 = vmatpush.bf16.msra.mxu3 %v7933_v32  ;;  %v6913_v0 = vld [vmem:[%s15847_s14 + $0x8] sm:$0xff] }
 0xe92   : > { %7674 = vmatpush.bf16.msrb.mxu2 %v7647_v6 }
 0xe95   : > { %7395 = vmatpush.bf16.msra.mxu1 %v7383_v36  ;;  %7943 = vmatpush.bf16.msra.mxu3 %v7931_v38 }
 0xe98   : > { %v7377_v1 = vpop.permute.xlu1 %7376  ;;  %v7925_v29 = vpop.permute.xlu0 %7924 }
 0xe99   : > { %v7645_v3 = vpop.permute.xlu2 %7644  ;;  %7396 = vmatpush.bf16.msra.mxu1 %v7381_v58  ;;  %7944 = vmatpush.bf16.msra.mxu3 %v7929_v50  ;;  %v9545_v58 = vld [vmem:[%s15846_s13 + $0xc0] sm:$0xff] }
 0xe9a   : > { %7675 = vmatpush.bf16.msrb.mxu2 %v7645_v3  ;;  %v9577_v50 = vld [vmem:[%s15846_s13 + $0x1c0] sm:$0xff] }
 0xe9d   : > { %7397 = vmatpush.bf16.msra.mxu1 %v7379_v55  ;;  %7945 = vmatpush.bf16.msra.mxu3 %v7927_v42  ;;  %v9531_v55 = vld [vmem:[%s15846_s13 + $0x50] sm:$0xff]  ;;  %v6912_v42 = vld [vmem:[%s15847_s14] sm:$0xff] }
 0xe9e   : > { %7676 = vmatmul.bf16.vlgmr.msrb.gmra.mxu2 %v9553_v59  ;;  %v9563_v59 = vld [vmem:[%s15846_s13 + $0x150] sm:$0xff] }
 0xe9f   : > { %7158 = vmatmul.bf16.gmra.mxu0 %v9527_v48  ;;  %v9564_v48 = vld [vmem:[%s15846_s13 + $0x158] sm:$0xff] }
 0xea0   : > { %v7375_v28 = vpop.permute.xlu1 %7374  ;;  %v7923_v23 = vpop.permute.xlu0 %7922 }
 0xea1   : > { %7398 = vmatpush.bf16.msra.mxu1 %v7377_v1  ;;  %7946 = vmatpush.bf16.msra.mxu3 %v7925_v29 }
 0xea5   : > { %7399 = vmatpush.bf16.msra.mxu1 %v7375_v28  ;;  %7947 = vmatpush.bf16.msra.mxu3 %v7923_v23  ;;  %v9532_v23 = vld [vmem:[%s15846_s13 + $0x58] sm:$0xff] }
 0xea8   : > { %v7373_v11 = vpop.permute.xlu1 %7372  ;;  %v7921_v46 = vpop.permute.xlu0 %7920 }
 0xea9   : > { %7400 = vmatpush.bf16.msra.mxu1 %v7373_v11  ;;  %7948 = vmatpush.bf16.msra.mxu3 %v7921_v46 }
 0xeae   : > { %7681 = vmatmul.bf16.gmra.mxu2 %v9554_v8 }
 0xeaf   : > { %7163 = vmatmul.bf16.gmra.mxu0 %v9528_v21 }
 0xeb0   : > { %v7371_v10 = vpop.permute.xlu1 %7370  ;;  %v7919_v7 = vpop.permute.xlu0 %7918 }
 0xeb1   : > { %7401 = vmatpush.bf16.msra.mxu1 %v7371_v10  ;;  %7949 = vmatpush.bf16.msra.mxu3 %v7919_v7  ;;  %v9546_v7 = vld [vmem:[%s15846_s13 + $0xc8] sm:$0xff] }
 0xeb4   : > { %7402 = vmatmul.bf16.vlgmr.msra.gmra.mxu1 %v9537_v18  ;;  %7950 = vmatmul.bf16.vlgmr.msra.gmra.mxu3 %v9569_v9  ;;  %v9578_v18 = vld [vmem:[%s15846_s13 + $0x1c8] sm:$0xff] }
 0xebc   : > { %v7129_v25 = vpop.f32.mrf.mxu0 }
 0xebd   : > { %v7209_v37 = vadd.f32 %v7129_v25, %v6912_v42  ;;  %v9579_v25 = vld [vmem:[%s15846_s13 + $0x1d0] sm:$0xff]  ;;  %v9534_v42 = vld [vmem:[%s15846_s13 + $0x68] sm:$0xff] }
 0xebe   : > { %7686 = vmatmul.bf16.gmra.mxu2 %v9555_v51 }
 0xebf   : > { %7168 = vmatmul.bf16.gmra.mxu0 %v9529_v34  ;;  %v9547_v34 = vld [vmem:[%s15846_s13 + $0xd0] sm:$0xff] }
 0xec4   : > { %7407 = vmatmul.bf16.gmra.mxu1 %v9538_v30  ;;  %7955 = vmatmul.bf16.gmra.mxu3 %v9570_v62  ;;  %v7131_v16 = vpop.f32.mrf.mxu0 }
 0xec5   : > { %v7210_v6 = vadd.f32 %v7131_v16, %v6913_v0 }
 0xecc   : > { %v7134_v39 = vpop.f32.mrf.mxu0 }
 0xecd   : > { %v7211_v46 = vadd.f32 %v7134_v39, %v6914_v47 }
 0xece   : > { %7691 = vmatmul.bf16.gmra.mxu2 %v9556_v43  ;;  %v6915_v43 = vld [vmem:[%s15847_s14 + $0x18] sm:$0xff] }
 0xecf   : > { %7173 = vmatmul.bf16.gmra.mxu0 %v9530_v12  ;;  %v6917_v12 = vld [vmem:[%s15847_s14 + $0x28] sm:$0xff] }
 0xed4   : > { %7412 = vmatmul.bf16.gmra.mxu1 %v9539_v56  ;;  %7960 = vmatmul.bf16.gmra.mxu3 %v9571_v45  ;;  %v7136_v53 = vpop.f32.mrf.mxu0 }
 0xed5   : > { %v7212_v45 = vadd.f32 %v7136_v53, %v6915_v43  ;;  %v9549_v43 = vld [vmem:[%s15846_s13 + $0xe0] sm:$0xff] }
 0xedc   : > { %v7139_v24 = vpop.f32.mrf.mxu0 }
 0xede   : > { %7696 = vmatmul.bf16.gmra.mxu2 %v9557_v44 }
 0xedf   : > { %7178 = vmatmul.bf16.gmra.mxu0 %v9531_v55 }
 0xee4   : > { %7417 = vmatmul.bf16.gmra.mxu1 %v9540_v27  ;;  %7965 = vmatmul.bf16.gmra.mxu3 %v9572_v63  ;;  %v7141_v14 = vpop.f32.mrf.mxu0 }
 0xeec   : > { %v7144_v28 = vpop.f32.mrf.mxu0 }
 0xeee   : > { %7701 = vmatmul.bf16.gmra.mxu2 %v9558_v54 }
 0xeef   : > { %7183 = vmatmul.bf16.gmra.mxu0 %v9532_v23 }
 0xef4   : > { %7422 = vmatmul.bf16.gmra.mxu1 %v9541_v40  ;;  %7970 = vmatmul.bf16.gmra.mxu3 %v9573_v19  ;;  %v7146_v62 = vpop.f32.mrf.mxu0  ;;  %v9533_v40 = vld [vmem:[%s15846_s13 + $0x60] sm:$0xff] }
 0xef5   : > { %v6916_v19 = vld [vmem:[%s15847_s14 + $0x20] sm:$0xff] }
 0xefc   : > { %v7149_v54 = vpop.f32.mrf.mxu0 }
 0xefe   : > { %7706 = vmatmul.bf16.gmra.mxu2 %v9559_v49  ;;  %v7213_v49 = vadd.f32 %v7139_v24, %v6916_v19  ;;  %v9565_v24 = vld [vmem:[%s15846_s13 + $0x160] sm:$0xff] }
 0xeff   : > { %7188 = vmatmul.bf16.gmra.mxu0 %v9533_v40 }
 0xf04   : > { %7427 = vmatmul.bf16.gmra.mxu1 %v9542_v52  ;;  %7975 = vmatmul.bf16.gmra.mxu3 %v9574_v41  ;;  %v15565_v39 = vpop.f32.mrf.mxu0 }
 0xf0c   : > { %v15575_v55 = vpop.f32.mrf.mxu0 }
 0xf0e   : > { %7711 = vmatmul.bf16.gmra.mxu2 %v9560_v61 }
 0xf0f   : > { %7193 = vmatmul.bf16.gmra.mxu0 %v9534_v42 }
 0xf14   : > { %7432 = vmatmul.bf16.gmra.mxu1 %v9543_v4  ;;  %7980 = vmatmul.bf16.gmra.mxu3 %v9575_v33 }
 0xf1e   : > { %7716 = vmatmul.bf16.gmra.mxu2 %v9561_v13 }
 0xf21   : > { %v7677_v17 = vpop.f32.mrf.mxu2 }
 0xf24   : > { %7437 = vmatmul.bf16.gmra.mxu1 %v9544_v5  ;;  %7985 = vmatmul.bf16.gmra.mxu3 %v9576_v20  ;;  %v7214_v20 = vadd.f32 %v7141_v14, %v6917_v12  ;;  %v9580_v14 = vld [vmem:[%s15846_s13 + $0x1d8] sm:$0xff] }
 0xf29   : > { %v7679_v15 = vpop.f32.mrf.mxu2 }
 0xf2e   : > { %7721 = vmatmul.bf16.gmra.mxu2 %v9562_v2 }
 0xf31   : > { %v7403_v35 = vpop.f32.mrf.mxu1  ;;  %v7682_v36 = vpop.f32.mrf.mxu2 }
 0xf32   : > { %v7483_v38 = vadd.f32 %v7403_v35, %v7209_v37  ;;  %v6918_v37 = vld [vmem:[%s15847_s14 + $0x30] sm:$0xff] }
 0xf34   : > { %7442 = vmatmul.bf16.gmra.mxu1 %v9545_v58  ;;  %7990 = vmatmul.bf16.gmra.mxu3 %v9577_v50  ;;  %v7757_v22 = vadd.f32 %v7677_v17, %v7483_v38  ;;  %v7215_v50 = vadd.f32 %v7144_v28, %v6918_v37  ;;  %v9548_v38 = vld [vmem:[%s15846_s13 + $0xd8] sm:$0xff]  ;;  %v9551_v37 = vld [vmem:[%s15846_s13 + $0xf0] sm:$0xff] }
 0xf37   : > { %v7951_v32 = vpop.f32.mrf.mxu3 }
 0xf38   : > { %v15520_v60 = vadd.f32 %v7951_v32, %v7757_v22 }
 0xf39   : > { %v7405_v1 = vpop.f32.mrf.mxu1  ;;  %v7684_v29 = vpop.f32.mrf.mxu2 }
 0xf3a   : > { %v7484_v3 = vadd.f32 %v7405_v1, %v7210_v6  ;;  %v15593_v1 = vpop.f32.mrf.mxu0 }
 0xf3c   : > { %v7758_v11 = vadd.f32 %v7679_v15, %v7484_v3  ;;  %v6919_v3 = vld [vmem:[%s15847_s14 + $0x38] sm:$0xff] }
 0xf3d   : > { %v7216_v28 = vadd.f32 %v7146_v62, %v6919_v3  ;;  %v9584_v3 = vld [vmem:[%s15846_s13 + $0x1f8] sm:$0xff] }
 0xf3e   : > { %7726 = vmatmul.bf16.gmra.mxu2 %v9563_v59 }
 0xf3f   : > { %v7953_v8 = vpop.f32.mrf.mxu3 }
 0xf40   : > { %v15531_v10 = vadd.f32 %v7953_v8, %v7758_v11  ;;  %v9566_v8 = vld [vmem:[%s15846_s13 + $0x168] sm:$0xff] }
 0xf41   : > { %v7408_v9 = vpop.f32.mrf.mxu1  ;;  %v7687_v26 = vpop.f32.mrf.mxu2 }
 0xf42   : > { %v8065_v51 = vpack.c.bf16 %v15531_v10, %v15520_v60  ;;  %v7485_v30 = vadd.f32 %v7408_v9, %v7211_v46  ;;  %v6920_v9 = vld [vmem:[%s15847_s14 + $0x40] sm:$0xff]  ;;  %v6934_v60 = vld [vmem:[%s15847_s14 + $0xb0] sm:$0xff] }
 0xf44   : > { %7447 = vmatmul.bf16.gmra.mxu1 %v9546_v7  ;;  %7995 = vmatmul.bf16.gmra.mxu3 %v9578_v18  ;;  %v7759_v31 = vadd.f32 %v7682_v36, %v7485_v30  ;;  %v15605_v7 = vpop.f32.mrf.mxu0  ;;  %v9535_v18 = vld [vmem:[%s15846_s13 + $0x70] sm:$0xff]  ;;  %v7217_v30 = vadd.f32 %v7149_v54, %v6920_v9  ;;  %v6927_v9 = vld [vmem:[%s15847_s14 + $0x78] sm:$0xff] }
 0xf45   : > { %7198 = vmatmul.bf16.gmra.mxu0 %v9535_v18  ;;  %v6924_v18 = vld [vmem:[%s15847_s14 + $0x60] sm:$0xff] }
 0xf47   : > { %v7956_v56 = vpop.f32.mrf.mxu3 }
 0xf48   : > { %v15544_v57 = vadd.f32 %v7956_v56, %v7759_v31  ;;  %v9581_v56 = vld [vmem:[%s15846_s13 + $0x1e0] sm:$0xff] }
 0xf49   : > { %v7410_v44 = vpop.f32.mrf.mxu1  ;;  %v7689_v27 = vpop.f32.mrf.mxu2 }
 0xf4a   : > { %v7486_v63 = vadd.f32 %v7410_v44, %v7212_v45 }
 0xf4c   : > { %v7760_v21 = vadd.f32 %v7684_v29, %v7486_v63 }
 0xf4e   : > { %7731 = vmatmul.bf16.gmra.mxu2 %v9564_v48  ;;  %v7161_v48 = vpop.f32.mrf.mxu0 }
 0xf4f   : > { %v7958_v52 = vpop.f32.mrf.mxu3 }
 0xf50   : > { %v15555_v41 = vadd.f32 %v7958_v52, %v7760_v21  ;;  %v9567_v52 = vld [vmem:[%s15846_s13 + $0x170] sm:$0xff] }
 0xf51   : > { %v7413_v61 = vpop.f32.mrf.mxu1  ;;  %v7692_v4 = vpop.f32.mrf.mxu2 }
 0xf52   : > { %v8066_v33 = vpack.c.bf16 %v15555_v41, %v15544_v57  ;;  %v7487_v16 = vadd.f32 %v7413_v61, %v7213_v49  ;;  %v6933_v57 = vld [vmem:[%s15847_s14 + $0xa8] sm:$0xff] }
 0xf54   : > { %7452 = vmatmul.bf16.gmra.mxu1 %v9547_v34  ;;  %8000 = vmatmul.bf16.gmra.mxu3 %v9579_v25  ;;  %v7761_v13 = vadd.f32 %v7687_v26, %v7487_v16  ;;  %v9536_v25 = vld [vmem:[%s15846_s13 + $0x78] sm:$0xff]  ;;  %v9582_v16 = vld [vmem:[%s15846_s13 + $0x1e8] sm:$0xff] }
 0xf55   : > { %7203 = vmatmul.bf16.gmra.mxu0 %v9536_v25 }
 0xf56   : > { %v7164_v34 = vpop.f32.mrf.mxu0 }
 0xf57   : > { %v7961_v5 = vpop.f32.mrf.mxu3 }
 0xf58   : > { %v15570_v17 = vadd.f32 %v7961_v5, %v7761_v13 }
 0xf59   : > { %v7415_v53 = vpop.f32.mrf.mxu1  ;;  %v7694_v15 = vpop.f32.mrf.mxu2 }
 0xf5a   : > { %v7488_v2 = vadd.f32 %v7415_v53, %v7214_v20 }
 0xf5c   : > { %v7762_v58 = vadd.f32 %v7689_v27, %v7488_v2  ;;  %v9568_v2 = vld [vmem:[%s15846_s13 + $0x178] sm:$0xff] }
 0xf5e   : > { %7736 = vmatmul.bf16.gmra.mxu2 %v9565_v24  ;;  %v7166_v5 = vpop.f32.mrf.mxu0 }
 0xf5f   : > { %v7963_v35 = vpop.f32.mrf.mxu3 }
 0xf60   : > { %v15583_v36 = vadd.f32 %v7963_v35, %v7762_v58  ;;  %v9583_v58 = vld [vmem:[%s15846_s13 + $0x1f0] sm:$0xff] }
 0xf61   : > { %v7418_v22 = vpop.f32.mrf.mxu1  ;;  %v7697_v0 = vpop.f32.mrf.mxu2 }
 0xf62   : > { %v8067_v32 = vpack.c.bf16 %v15583_v36, %v15570_v17  ;;  %v7489_v6 = vadd.f32 %v7418_v22, %v7215_v50 }
 0xf64   : > { %7457 = vmatmul.bf16.gmra.mxu1 %v9548_v38  ;;  %8005 = vmatmul.bf16.gmra.mxu3 %v9580_v14  ;;  %v7763_v29 = vadd.f32 %v7692_v4, %v7489_v6  ;;  %v9550_v4 = vld [vmem:[%s15846_s13 + $0xe8] sm:$0xff] }
 0xf66   : > { %v7169_v24 = vpop.f32.mrf.mxu0 }
 0xf67   : > { %v7966_v59 = vpop.f32.mrf.mxu3 }
 0xf68   : > { %v15598_v23 = vadd.f32 %v7966_v59, %v7763_v29  ;;  %v9552_v29 = vld [vmem:[%s15846_s13 + $0xf8] sm:$0xff]  ;;  %v6926_v59 = vld [vmem:[%s15847_s14 + $0x70] sm:$0xff] }
 0xf69   : > { %v7420_v47 = vpop.f32.mrf.mxu1  ;;  %v15600_v11 = vpop.f32.mrf.mxu2 }
 0xf6a   : > { %v7490_v46 = vadd.f32 %v7420_v47, %v7216_v28 }
 0xf6c   : > { %v7764_v26 = vadd.f32 %v7694_v15, %v7490_v46 }
 0xf6e   : > { %7741 = vmatmul.bf16.gmra.mxu2 %v9566_v8  ;;  %v7171_v14 = vpop.f32.mrf.mxu0  ;;  %v7223_v8 = vadd.f32 %v7164_v34, %v6926_v59 }
 0xf6f   : > { %v7968_v62 = vpop.f32.mrf.mxu3 }
 0xf70   : > { %v15613_v31 = vadd.f32 %v7968_v62, %v7764_v26  ;;  %v6925_v26 = vld [vmem:[%s15847_s14 + $0x68] sm:$0xff]  ;;  %v6922_v62 = vld [vmem:[%s15847_s14 + $0x50] sm:$0xff] }
 0xf71   : > { %v7423_v45 = vpop.f32.mrf.mxu1  ;;  %v15621_v44 = vpop.f32.mrf.mxu2  ;;  %v7219_v25 = vadd.f32 %v15575_v55, %v6922_v62 }
 0xf72   : > { %v8068_v27 = vpack.c.bf16 %v15613_v31, %v15598_v23  ;;  %v7491_v63 = vadd.f32 %v7423_v45, %v7217_v30  ;;  %v6932_v23 = vld [vmem:[%s15847_s14 + $0xa0] sm:$0xff] }
 0xf74   : > { %7462 = vmatmul.bf16.gmra.mxu1 %v9549_v43  ;;  %8010 = vmatmul.bf16.gmra.mxu3 %v9581_v56  ;;  %v7765_v54 = vadd.f32 %v7697_v0, %v7491_v63  ;;  %v7221_v43 = vadd.f32 %v15605_v7, %v6924_v18  ;;  %v7224_v56 = vadd.f32 %v7166_v5, %v6927_v9 }
 0xf76   : > { %v15667_v46 = vpop.f32.mrf.mxu0 }
 0xf77   : > { %v7971_v40 = vpop.f32.mrf.mxu3 }
 0xf78   : > { %v15625_v19 = vadd.f32 %v7971_v40, %v7765_v54  ;;  %v6923_v40 = vld [vmem:[%s15847_s14 + $0x58] sm:$0xff] }
 0xf79   : > { %v15627_v21 = vpop.f32.mrf.mxu1  ;;  %v15629_v49 = vpop.f32.mrf.mxu2  ;;  %v7220_v5 = vadd.f32 %v15593_v1, %v6923_v40 }
 0xf7e   : > { %7746 = vmatmul.bf16.gmra.mxu2 %v9567_v52  ;;  %v7222_v52 = vadd.f32 %v7161_v48, %v6925_v26  ;;  %v7176_v7 = vpop.f32.mrf.mxu0 }
 0xf7f   : > { %v15637_v61 = vpop.f32.mrf.mxu3 }
 0xf81   : > { %v7428_v13 = vpop.f32.mrf.mxu1  ;;  %v7707_v12 = vpop.f32.mrf.mxu2 }
 0xf82   : > { %v7493_v48 = vadd.f32 %v7428_v13, %v7219_v25 }
 0xf84   : > { %7467 = vmatmul.bf16.gmra.mxu1 %v9550_v4  ;;  %8015 = vmatmul.bf16.gmra.mxu3 %v9582_v16  ;;  %v6928_v4 = vld [vmem:[%s15847_s14 + $0x80] sm:$0xff] }
 0xf87   : > { %v15645_v20 = vpop.f32.mrf.mxu3 }
 0xf89   : > { %v7430_v53 = vpop.f32.mrf.mxu1  ;;  %v7709_v15 = vpop.f32.mrf.mxu2 }
 0xf8a   : > { %v7494_v59 = vadd.f32 %v7430_v53, %v7220_v5 }
 0xf8e   : > { %7751 = vmatmul.bf16.gmra.mxu2 %v9568_v2 }
 0xf8f   : > { %v15650_v42 = vpop.f32.mrf.mxu3 }
 0xf91   : > { %v7433_v50 = vpop.f32.mrf.mxu1  ;;  %v7712_v35 = vpop.f32.mrf.mxu2 }
 0xf92   : > { %v7495_v16 = vadd.f32 %v7433_v50, %v7221_v43 }
 0xf94   : > { %7472 = vmatmul.bf16.gmra.mxu1 %v9551_v37  ;;  %8020 = vmatmul.bf16.gmra.mxu3 %v9583_v58  ;;  %v6921_v58 = vld [vmem:[%s15847_s14 + $0x48] sm:$0xff]  ;;  %v7769_v55 = vadd.f32 %v7707_v12, %v7495_v16 }
 0xf95   : > { %v7218_v50 = vadd.f32 %v15565_v39, %v6921_v58  ;;  %v6929_v12 = vld [vmem:[%s15847_s14 + $0x88] sm:$0xff] }
 0xf97   : > { %v7981_v38 = vpop.f32.mrf.mxu3  ;;  %v7492_v43 = vadd.f32 %v15627_v21, %v7218_v50 }
 0xf98   : > { %v8043_v13 = vadd.f32 %v7981_v38, %v7769_v55 }
 0xf99   : > { %v7435_v22 = vpop.f32.mrf.mxu1  ;;  %v7714_v0 = vpop.f32.mrf.mxu2 }
 0xf9a   : > { %v7496_v2 = vadd.f32 %v7435_v22, %v7222_v52 }
 0xf9f   : > { %v7983_v6 = vpop.f32.mrf.mxu3 }
 0xfa1   : > { %v7438_v28 = vpop.f32.mrf.mxu1  ;;  %v7717_v47 = vpop.f32.mrf.mxu2 }
 0xfa2   : > { %v7497_v45 = vadd.f32 %v7438_v28, %v7223_v8  ;;  %v7770_v8 = vadd.f32 %v7709_v15, %v7496_v2 }
 0xfa4   : > { %7477 = vmatmul.bf16.gmra.mxu1 %v9552_v29  ;;  %8025 = vmatmul.bf16.gmra.mxu3 %v9584_v3  ;;  %v7771_v37 = vadd.f32 %v7712_v35, %v7497_v45  ;;  %v7225_v29 = vadd.f32 %v7169_v24, %v6928_v4  ;;  %v8044_v26 = vadd.f32 %v7983_v6, %v7770_v8 }
 0xfa5   : > { %v7768_v24 = vadd.f32 %v15629_v49, %v7494_v59  ;;  %v7226_v45 = vadd.f32 %v7171_v14, %v6929_v12 }
 0xfa6   : > { %v8071_v15 = vpack.c.bf16 %v8044_v26, %v8043_v13  ;;  %v6935_v13 = vld [vmem:[%s15847_s14 + $0xb8] sm:$0xff] }
 0xfa7   : > { %v7986_v30 = vpop.f32.mrf.mxu3  ;;  %v8042_v39 = vadd.f32 %v15650_v42, %v7768_v24  ;;  %v6930_v42 = vld [vmem:[%s15847_s14 + $0x90] sm:$0xff] }
 0xfa8   : > { %v8045_v18 = vadd.f32 %v7986_v30, %v7771_v37  ;;  %v7766_v30 = vadd.f32 %v15600_v11, %v7492_v43 }
 0xfa9   : > { %v7440_v63 = vpop.f32.mrf.mxu1  ;;  %v7719_v54 = vpop.f32.mrf.mxu2 }
 0xfaa   : > { %v7498_v34 = vadd.f32 %v7440_v63, %v7224_v56  ;;  %v7767_v56 = vadd.f32 %v15621_v44, %v7493_v48 }
 0xfac   : > { %v7772_v3 = vadd.f32 %v7714_v0, %v7498_v34  ;;  %v7179_v0 = vpop.f32.mrf.mxu0  ;;  %v8041_v21 = vadd.f32 %v15645_v20, %v7767_v56  ;;  %v7227_v20 = vadd.f32 %v15667_v46, %v6930_v42 }
 0xfae   : > { %v8070_v63 = vpack.c.bf16 %v8042_v39, %v8041_v21  ;;  %v6936_v21 = vld [vmem:[%s15847_s14 + $0xc0] sm:$0xff] }
 0xfaf   : > { %v7988_v28 = vpop.f32.mrf.mxu3 }
 0xfb0   : > { %v8046_v9 = vadd.f32 %v7988_v28, %v7772_v3 }
 0xfb1   : > { %v7443_v22 = vpop.f32.mrf.mxu1  ;;  %v7722_v35 = vpop.f32.mrf.mxu2 }
 0xfb2   : > { %v8072_v62 = vpack.c.bf16 %v8046_v9, %v8045_v18  ;;  %v7499_v1 = vadd.f32 %v7443_v22, %v7225_v29 }
 0xfb4   : > { %8093 = vmatpush.bf16.msrb.mxu0 %v8072_v62  ;;  %v7773_v53 = vadd.f32 %v7717_v47, %v7499_v1  ;;  %v8040_v47 = vadd.f32 %v15637_v61, %v7766_v30  ;;  %v7181_v25 = vpop.f32.mrf.mxu0 }
 0xfb5   : > { %v7230_v8 = vadd.f32 %v7181_v25, %v6933_v57 }
 0xfb6   : > { %v8069_v11 = vpack.c.bf16 %v8040_v47, %v15625_v19  ;;  %v6931_v19 = vld [vmem:[%s15847_s14 + $0x98] sm:$0xff] }
 0xfb7   : > { %v7991_v6 = vpop.f32.mrf.mxu3  ;;  %v7228_v37 = vadd.f32 %v7176_v7, %v6931_v19  ;;  %v7229_v7 = vadd.f32 %v7179_v0, %v6932_v23 }
 0xfb8   : > { %v15703_v44 = vadd.f32 %v7991_v6, %v7773_v53  ;;  %8094 = vmatpush.bf16.msrb.mxu0 %v8071_v15 }
 0xfb9   : > { %v7445_v49 = vpop.f32.mrf.mxu1  ;;  %v7724_v38 = vpop.f32.mrf.mxu2 }
 0xfba   : > { %v7500_v40 = vadd.f32 %v7445_v49, %v7226_v45 }
 0xfbc   : > { %8095 = vmatpush.bf16.msrb.mxu0 %v8070_v63  ;;  %v7774_v52 = vadd.f32 %v7719_v54, %v7500_v40  ;;  %v7184_v31 = vpop.f32.mrf.mxu0 }
 0xfbd   : > { %v7231_v22 = vadd.f32 %v7184_v31, %v6934_v60  ;;  %v6941_v60 = vld [vmem:[%s15847_s14 + $0xe8] sm:$0xff] }
 0xfbf   : > { %v7993_v14 = vpop.f32.mrf.mxu3 }
 0xfc0   : > { %v15711_v34 = vadd.f32 %v7993_v14, %v7774_v52  ;;  %8096 = vmatpush.bf16.msrb.mxu0 %v8069_v11 }
 0xfc1   : > { %v7448_v4 = vpop.f32.mrf.mxu1  ;;  %v7727_v16 = vpop.f32.mrf.mxu2 }
 0xfc2   : > { %v8073_v61 = vpack.c.bf16 %v15711_v34, %v15703_v44  ;;  %v7501_v2 = vadd.f32 %v7448_v4, %v7227_v20  ;;  %v8082_v44 = vld [vmem:[%s15849_s16 + $0x8] sm:$0x3] }
 0xfc4   : > { %8097 = vmatpush.bf16.msrb.mxu0 %v8068_v27  ;;  %v7775_v54 = vadd.f32 %v7722_v35, %v7501_v2  ;;  %v7186_v41 = vpop.f32.mrf.mxu0 }
 0xfc5   : > { %v7232_v39 = vadd.f32 %v7186_v41, %v6935_v13 }
 0xfc7   : > { %v7996_v46 = vpop.f32.mrf.mxu3 }
 0xfc8   : > { %v15721_v5 = vadd.f32 %v7996_v46, %v7775_v54  ;;  %8098 = vmatpush.bf16.msrb.mxu0 %v8067_v32 }
 0xfc9   : > { %v7450_v58 = vpop.f32.mrf.mxu1  ;;  %v7729_v29 = vpop.f32.mrf.mxu2 }
 0xfca   : > { %v7502_v3 = vadd.f32 %v7450_v58, %v7228_v37 }
 0xfcc   : > { %8099 = vmatpush.bf16.msrb.mxu0 %v8066_v33  ;;  %v7776_v27 = vadd.f32 %v7724_v38, %v7502_v3  ;;  %v7189_v26 = vpop.f32.mrf.mxu0 }
 0xfcd   : > { %v7233_v49 = vadd.f32 %v7189_v26, %v6936_v21 }
 0xfcf   : > { %v7998_v48 = vpop.f32.mrf.mxu3 }
 0xfd0   : > { %v15732_v59 = vadd.f32 %v7998_v48, %v7776_v27  ;;  %8100 = vmatpush.bf16.msrb.mxu0 %v8065_v51 }
 0xfd1   : > { %v7453_v17 = vpop.f32.mrf.mxu1  ;;  %v7732_v28 = vpop.f32.mrf.mxu2 }
 0xfd2   : > { %v8074_v36 = vpack.c.bf16 %v15732_v59, %v15721_v5  ;;  %v7503_v32 = vadd.f32 %v7453_v17, %v7229_v7 }
 0xfd4   : > { %v7777_v55 = vadd.f32 %v7727_v16, %v7503_v32  ;;  %v15756_v6 = vpop.f32.mrf.mxu0 }
 0xfd7   : > { %v8001_v33 = vpop.f32.mrf.mxu3 }
 0xfd8   : > { %v15742_v18 = vadd.f32 %v8001_v33, %v7777_v55  ;;  %v6942_v55 = vld [vmem:[%s15847_s14 + $0xf0] sm:$0xff] }
 0xfd9   : > { %v7455_v9 = vpop.f32.mrf.mxu1  ;;  %v7734_v51 = vpop.f32.mrf.mxu2 }
 0xfda   : > { %v7504_v50 = vadd.f32 %v7455_v9, %v7230_v8  ;;  %v6940_v8 = vld [vmem:[%s15847_s14 + $0xe0] sm:$0xff]  ;;  %v6943_v9 = vld [vmem:[%s15847_s14 + $0xf8] sm:$0xff] }
 0xfdc   : > { %v7778_v10 = vadd.f32 %v7729_v29, %v7504_v50  ;;  %v7194_v11 = vpop.f32.mrf.mxu0 }
 0xfdf   : > { %v8003_v35 = vpop.f32.mrf.mxu3 }
 0xfe0   : > { %v15747_v62 = vadd.f32 %v8003_v35, %v7778_v10 }
 0xfe1   : > { %v7458_v1 = vpop.f32.mrf.mxu1  ;;  %v7737_v12 = vpop.f32.mrf.mxu2 }
 0xfe2   : > { %v8075_v43 = vpack.c.bf16 %v15747_v62, %v15742_v18  ;;  %v7505_v56 = vadd.f32 %v7458_v1, %v7231_v22  ;;  %v9350_v1 = vld [vmem:[%s15848_s15] sm:$0xf] }
 0xfe3   : > { %v8081_v18 = vld [vmem:[%s15849_s16] sm:$0xff] }
 0xfe4   : > { %v7779_v24 = vadd.f32 %v7732_v28, %v7505_v56  ;;  %v7196_v2 = vpop.f32.mrf.mxu0  ;;  %v9586_v56 = vld [vmem:[%s15848_s15 + $0x4] sm:$0x10] }
 0xfe5   : > { %v9351_v13 = vor.u32 %v9586_v56, %v9350_v1 }
 0xfe7   : > { %v8006_v53 = vpop.f32.mrf.mxu3  ;;  %8101 = vmatmul.bf16.vlgmr.msrb.gmra.mxu0 %v9351_v13 }
 0xfe8   : > { %v15754_v15 = vadd.f32 %v8006_v53, %v7779_v24  ;;  %v6939_v53 = vld [vmem:[%s15847_s14 + $0xd8] sm:$0xff] }
 0xfe9   : > { %v7460_v0 = vpop.f32.mrf.mxu1  ;;  %v15763_v40 = vpop.f32.mrf.mxu2 }
 0xfea   : > { %v7506_v30 = vadd.f32 %v7460_v0, %v7232_v39 }
 0xfec   : > { %v7780_v45 = vadd.f32 %v7734_v51, %v7506_v30  ;;  %v7199_v58 = vpop.f32.mrf.mxu0  ;;  %v6938_v51 = vld [vmem:[%s15847_s14 + $0xd0] sm:$0xff] }
 0xfed   : > { %v7237_v22 = vadd.f32 %v7199_v58, %v6940_v8  ;;  %v7235_v0 = vadd.f32 %v7194_v11, %v6938_v51 }
 0xfef   : > { %v8008_v38 = vpop.f32.mrf.mxu3 }
 0xff0   : > { %v15761_v47 = vadd.f32 %v8008_v38, %v7780_v45 }
 0xff1   : > { %v7463_v63 = vpop.f32.mrf.mxu1  ;;  %v7742_v16 = vpop.f32.mrf.mxu2 }
 0xff2   : > { %v8076_v42 = vpack.c.bf16 %v15761_v47, %v15754_v15  ;;  %v7507_v52 = vadd.f32 %v7463_v63, %v7233_v49  ;;  %v7236_v49 = vadd.f32 %v7196_v2, %v6939_v53 }
 0xff4   : > { %v7781_v20 = vadd.f32 %v7737_v12, %v7507_v52  ;;  %v7201_v31 = vpop.f32.mrf.mxu0  ;;  %v6937_v52 = vld [vmem:[%s15847_s14 + $0xc8] sm:$0xff] }
 0xff5   : > { %v7238_v12 = vadd.f32 %v7201_v31, %v6941_v60  ;;  %v7234_v11 = vadd.f32 %v15756_v6, %v6937_v52 }
 0xff7   : > { %v8011_v14 = vpop.f32.mrf.mxu3 }
 0xff8   : > { %v15767_v25 = vadd.f32 %v8011_v14, %v7781_v20 }
 0xff9   : > { %v7465_v4 = vpop.f32.mrf.mxu1  ;;  %v7744_v46 = vpop.f32.mrf.mxu2 }
 0xffc   : > { %v7204_v32 = vpop.f32.mrf.mxu0 }
 0xffd   : > { %v7239_v33 = vadd.f32 %v7204_v32, %v6942_v55 }
 0xfff   : > { %v15769_v54 = vpop.f32.mrf.mxu3 }
0x1001   : > { %v7468_v19 = vpop.f32.mrf.mxu1  ;;  %v7747_v3 = vpop.f32.mrf.mxu2 }
0x1002   : > { %v7509_v20 = vadd.f32 %v7468_v19, %v7235_v0 }
0x1004   : > { %v7206_v50 = vpop.f32.mrf.mxu0 }
0x1005   : > { %v7240_v35 = vadd.f32 %v7206_v50, %v6943_v9 }
0x1007   : > { %v8016_v37 = vpop.f32.mrf.mxu3 }
0x1009   : > { %v7470_v29 = vpop.f32.mrf.mxu1  ;;  %v7749_v48 = vpop.f32.mrf.mxu2 }
0x100a   : > { %v7510_v14 = vadd.f32 %v7470_v29, %v7236_v49 }
0x100c   : > { %v7784_v2 = vadd.f32 %v7744_v46, %v7510_v14 }
0x100f   : > { %v8018_v23 = vpop.f32.mrf.mxu3 }
0x1010   : > { %v8058_v9 = vadd.f32 %v8018_v23, %v7784_v2 }
0x1011   : > { %v7473_v27 = vpop.f32.mrf.mxu1  ;;  %v7752_v41 = vpop.f32.mrf.mxu2 }
0x1012   : > { %v7511_v30 = vadd.f32 %v7473_v27, %v7237_v22 }
0x1014   : > { %v7785_v32 = vadd.f32 %v7747_v3, %v7511_v30 }
0x1017   : > { %v8021_v7 = vpop.f32.mrf.mxu3 }
0x1018   : > { %v8059_v8 = vadd.f32 %v8021_v7, %v7785_v32 }
0x1019   : > { %v7475_v17 = vpop.f32.mrf.mxu1  ;;  %v7754_v38 = vpop.f32.mrf.mxu2 }
0x101a   : > { %v7512_v21 = vadd.f32 %v7475_v17, %v7238_v12  ;;  %v7508_v17 = vadd.f32 %v7465_v4, %v7234_v11 }
0x101c   : > { %v7786_v55 = vadd.f32 %v7749_v48, %v7512_v21  ;;  %v7782_v60 = vadd.f32 %v15763_v40, %v7508_v17  ;;  %v9585_v40 = vld [vmem:[%s15848_s15 + $0x4] sm:$0xf] }
0x101e   : > { %v8056_v29 = vadd.f32 %v15769_v54, %v7782_v60 }
0x101f   : > { %v8023_v28 = vpop.f32.mrf.mxu3 }
0x1020   : > { %v8077_v6 = vpack.c.bf16 %v8056_v29, %v15767_v25  ;;  %v9352_v25 = vld [vmem:[%s15848_s15 + $0x8] sm:$0x10] }
0x1021   : > { %v7478_v57 = vpop.f32.mrf.mxu1  ;;  %v9355_v4 = vor.u32 %v9585_v40, %v9352_v25 }
0x1022   : > { %v7513_v26 = vadd.f32 %v7478_v57, %v7239_v33  ;;  %v8060_v33 = vadd.f32 %v8023_v28, %v7786_v55 }
0x1024   : > { %v7787_v45 = vadd.f32 %v7752_v41, %v7513_v26  ;;  %v7783_v41 = vadd.f32 %v7742_v16, %v7509_v20  ;;  %v8079_v50 = vpack.c.bf16 %v8060_v33, %v8059_v8 }
0x1026   : > { %v8057_v19 = vadd.f32 %v8016_v37, %v7783_v41 }
0x1027   : > { %v8026_v10 = vpop.f32.mrf.mxu3 }
0x1028   : > { %v8061_v57 = vadd.f32 %v8026_v10, %v7787_v45  ;;  %v8078_v3 = vpack.c.bf16 %v8058_v9, %v8057_v19 }
0x1029   : > { %v7480_v24 = vpop.f32.mrf.mxu1 }
0x102a   : > { %v7514_v39 = vadd.f32 %v7480_v24, %v7240_v35 }
0x102c   : > { %v7788_v63 = vadd.f32 %v7754_v38, %v7514_v39 }
0x102f   : > { %v8028_v58 = vpop.f32.mrf.mxu3 }
0x1030   : > { %v8062_v31 = vadd.f32 %v8028_v58, %v7788_v63 }
0x1032   : > { %v8080_v27 = vpack.c.bf16 %v8062_v31, %v8061_v57 }
0x1034   : > { %8107 = vmatpush.bf16.msrb.mxu1 %v8080_v27 }
0x1038   : > { %8108 = vmatpush.bf16.msrb.mxu1 %v8079_v50 }
0x103c   : > { %8109 = vmatpush.bf16.msrb.mxu1 %v8078_v3 }
0x1040   : > { %8110 = vmatpush.bf16.msrb.mxu1 %v8077_v6 }
0x1044   : > { %8111 = vmatpush.bf16.msrb.mxu1 %v8076_v42 }
0x1048   : > { %8112 = vmatpush.bf16.msrb.mxu1 %v8075_v43 }
0x104c   : > { %8113 = vmatpush.bf16.msrb.mxu1 %v8074_v36 }
0x1050   : > { %8114 = vmatpush.bf16.msrb.mxu1 %v8073_v61 }
0x1053   : > { %8115 = vmatmul.bf16.vlgmr.msrb.gmra.mxu1 %v9355_v4 }
0x1064   : > { %v8102_v5 = vpop.f32.mrf.mxu0 }
0x1065   : > { %v8103_v59 = vadd.f32 %v8102_v5, %v8081_v18 }
0x106c   : > { %v8104_v34 = vpop.f32.mrf.mxu0 }
0x106d   : > { %v8105_v61 = vadd.f32 %v8104_v34, %v8082_v44 }
0x10d0   : > { %v8116_v36 = vpop.f32.mrf.mxu1 }
0x10d1   : > { %v8117_v62 = vadd.f32 %v8116_v36, %v8103_v59 }
0x10d3   : > { %8122 = vst.msk [vmem:[%s545_s0] sm:$0xff] %vm8121_vm6, %v8117_v62 }
0x10d8   : > { %v8118_v43 = vpop.f32.mrf.mxu1 }
0x10d9   : > { %v8119_v15 = vadd.f32 %v8118_v43, %v8105_v61 }
0x10db   : > { %8124 = vst.msk [vmem:[%s545_s0 + $0x8] sm:$0x3] %vm8123_vm7, %v8119_v15 }
0x10dc PF: > { %s27_s24 = sadd.s32 1, %s9971_s24  }
0x10dd   : > { %p24_p4 = scmp.ge.s32.totalorder %s27_s24, 4  }
0x10df   :  { %26 = sbr.rel (!%p24_p4) target bundleno = 6 (0x6), region = 121 }

</bundles_post_ra>
